<compile_context>
chip_gen: v7x
topology: tpu7x:2x2x1
jax: 0.10.0
libtpu: 0.0.40
codegen_flags: <defaults>
</compile_context>

<pallas_src>
import math

import numpy as np
import jax
import jax.numpy as jnp
from jax.experimental import pallas as pl
from jax.experimental.pallas import tpu as pltpu

# ------------------------------- configuration (small, module-consistent) -------------------
W_DIM = 32                  # w_dim
TEACHER_IMSIZE = 16         # teacher_imsize (power of two >= 4)
STUDENT_IMSIZE = 8          # cfg.dataset.imsize
IMG_CHANNELS = 3
CHANNEL_BASE = 256
CHANNEL_MAX = 64
CONV_CLAMP = 256.0
LRELU_GAIN = math.sqrt(2.0)  # bias_act def_gain for 'lrelu'

BLOCK_RESOLUTIONS = [2 ** i for i in range(2, int(math.log2(TEACHER_IMSIZE)) + 1)]
CHANNELS = {res: min(CHANNEL_BASE // res, CHANNEL_MAX) for res in BLOCK_RESOLUTIONS}
NUM_WS = sum(1 if res == 4 else 2 for res in BLOCK_RESOLUTIONS) + 1  # = 6

# normalized 2D resample filter: outer([1,3,3,1],[1,3,3,1]) / 64 (upfirdn2d.setup_filter)
_F = np.array([1.0, 3.0, 3.0, 1.0], dtype=np.float64)
FIR_2D = np.outer(_F, _F) / np.outer(_F, _F).sum()

# fused-kernel internal packing
CPAD = 64                    # per-sample channel axes padded to 64 (= CHANNEL_MAX)
LANES = 2 * CPAD             # two samples packed along the 128-lane axis
DROWS = 64                   # dense spatial frames (H*W <= 64) padded to 64 rows
PROWS = 128                  # zero-padded / zero-upsampled frame rows (prep-time only)
YROWS = 97                   # per-tap window length (prep-time only)
NTAPS = 9
NCONV = 5
NRGB = 3
NSTY = NCONV + NRGB          # 8 style rows per sample

# fused layer schedule (teacher=16 / student=8): b4 (first) -> b8 (up) -> b16 (non-up @ 8)
#   (group, block, layer, in_ch, out_ch, out_res, flip_weights(up-conv))
_CONV_DEFS = [
    ('g1', 'b4',  'conv1', CHANNELS[4],  CHANNELS[4],  4, False),
    ('g1', 'b8',  'conv0', CHANNELS[4],  CHANNELS[8],  8, True),   # up=2 conv_transpose + FIR
    ('g1', 'b8',  'conv1', CHANNELS[8],  CHANNELS[8],  8, False),
    ('g2', 'b16', 'conv0', CHANNELS[8],  CHANNELS[16], 8, False),
    ('g2', 'b16', 'conv1', CHANNELS[16], CHANNELS[16], 8, False),
]
_RGB_DEFS = [('g1', 'b4', CHANNELS[4]), ('g1', 'b8', CHANNELS[8]), ('g2', 'b16', CHANNELS[16])]
_CONV_W_IDX = [0, 1, 2, 3, 4]      # which ws vector each conv layer uses
_RGB_W_IDX = [1, 3, 5]             # which ws vector each torgb uses
_CONV_WP = [6, 11, 10, 10, 10]     # padded-frame width of each conv layer's GEMM frame


# =========================== row-transform matrices (precomputed, host) ======================

def _place_matrix(H, W, Wp, oh, ow, stride):
    """dense (H*W) rows -> padded/zero-inserted frame rows (Wp-wide), padded to (PROWS, DROWS)."""
    P = np.zeros((PROWS, DROWS), np.float32)
    for h in range(H):
        for w in range(W):
            P[(oh + stride * h) * Wp + (ow + stride * w), h * W + w] = 1.0
    return P


def _select_matrix(H, W, Wp):
    """padded-coordinate conv output rows -> dense (H*W) rows, padded to (DROWS, YROWS)."""
    S = np.zeros((DROWS, YROWS), np.float32)
    for h in range(H):
        for w in range(W):
            S[h * W + w, h * Wp + w] = 1.0
    return S


def _upconv_fir_sel():
    """conv_transpose output (9x9, Wp=11 flat coords) -> pad 1 -> 4x4 FIR (gain 4) -> dense 8x8."""
    M = np.zeros((DROWS, YROWS), np.float32)
    f = FIR_2D * 4.0
    for p in range(8):
        for q in range(8):
            for a in range(4):
                for b in range(4):
                    ht, wt = p + a - 1, q + b - 1
                    if 0 <= ht < 9 and 0 <= wt < 9:
                        M[p * 8 + q, ht * 11 + wt] += f[a, b]
    return M


def _img_up_matrix():
    """upfirdn2d.upsample2d for the skip image: dense 4x4 -> zero-insert, pad(2,1), FIR*4 -> 8x8."""
    M = np.zeros((DROWS, DROWS), np.float32)
    f = FIR_2D * 4.0
    for p in range(8):
        for q in range(8):
            for a in range(4):
                for b in range(4):
                    i, j = p + a, q + b            # position in the padded zero-inserted frame
                    if i in (2, 4, 6, 8) and j in (2, 4, 6, 8):
                        M[p * 8 + q, ((i - 2) // 2) * 4 + (j - 2) // 2] += f[a, b]
    return M


# =================================== one-time parameter prep ================================

def prepare_params(params):
    """Pack / channel-pad all weights and pre-multiply the row/tap transform matrices (once)."""
    assert TEACHER_IMSIZE == 16 and STUDENT_IMSIZE == 8 and CHANNEL_MAX <= CPAD
    f32 = np.float32
    sq_wdim = math.sqrt(W_DIM)

    L = len(_CONV_DEFS)
    cafft = np.zeros((L, W_DIM, CPAD), f32)              # wrapper-side (style affine)
    caffb = np.zeros((L, CPAD), f32)
    cwsq = np.zeros((L, CPAD, CPAD), f32)                # wrapper-side (demod)
    cmask = np.zeros((L, CPAD), f32)                     # valid out-channel mask
    A = np.zeros((L, NTAPS, DROWS, DROWS), f32)          # fused pad/shift/FIR/crop per tap
    wcat = np.zeros((L, LANES, NTAPS * LANES), f32)      # block-diag per-tap weights, concat
    nb = np.zeros((L, DROWS, LANES), f32)                # noise + bias, masked to valid region

    for l, (g, blk, name, in_ch, out_ch, out_res, flip) in enumerate(_CONV_DEFS):
        p = params[g][blk][name]
        aw = np.asarray(p['aff_w'], f32)                  # (I, W_DIM)
        cafft[l, :, :in_ch] = aw.T / sq_wdim              # FullyConnectedLayer weight gain
        caffb[l, :in_ch] = np.asarray(p['aff_b'], f32)
        w = np.asarray(p['weight'], f32)                  # (O, I, 3, 3)
        wt = w[:, :, ::-1, ::-1] if flip else w           # conv_transpose == flipped corr.
        cwsq[l, :in_ch, :out_ch] = (w * w).sum(axis=(2, 3)).T
        cmask[l, :out_ch] = 1.0

        wp = _CONV_WP[l]
        if flip:                                          # up=2 layer: zero-insert + FIR fused
            place = _place_matrix(4, 4, 11, 2, 2, 2)
            sel = _upconv_fir_sel()
        elif out_res == 4:
            place = _place_matrix(4, 4, 6, 1, 1, 1)
            sel = _select_matrix(4, 4, 6)
        else:
            place = _place_matrix(8, 8, 10, 1, 1, 1)
            sel = _select_matrix(8, 8, 10)

        for kh in range(3):
            for kw in range(3):
                t = kh * 3 + kw
                s = kh * wp + kw
                A[l, t] = sel @ place[s:s + YROWS, :]      # (64, 64) fused row transform
                cwt = np.zeros((CPAD, CPAD), f32)
                cwt[:in_ch, :out_ch] = wt[:, :, kh, kw].T
                wcat[l, :CPAD, t * LANES: t * LANES + CPAD] = cwt          # sample a block
                wcat[l, CPAD:, t * LANES + CPAD: (t + 1) * LANES] = cwt    # sample b block

        hw = out_res * out_res
        nvec = (np.asarray(p['noise_const'], f32).reshape(hw)
                * float(np.asarray(p['noise_strength'], f32)))
        bias = np.asarray(p['bias'], f32)
        nb[l, :hw, :out_ch] = nvec[:, None] + bias[None, :]
        nb[l, :hw, CPAD:CPAD + out_ch] = nvec[:, None] + bias[None, :]

    R = len(_RGB_DEFS)
    rafft = np.zeros((R, W_DIM, CPAD), f32)               # wrapper-side (style affine, gain folded)
    raffb = np.zeros((R, CPAD), f32)
    rwbd = np.zeros((R, LANES, LANES), f32)               # block-diag ToRGB weights
    rb = np.zeros((R, 1, LANES), f32)
    for r, (g, blk, in_ch) in enumerate(_RGB_DEFS):
        p = params[g][blk]['torgb']
        wg = 1.0 / math.sqrt(in_ch)                       # ToRGB weight_gain folded into styles
        rafft[r, :, :in_ch] = np.asarray(p['aff_w'], f32).T / sq_wdim * wg
        raffb[r, :in_ch] = np.asarray(p['aff_b'], f32) * wg
        rw = np.asarray(p['weight'], f32)[:, :, 0, 0].T   # (in_ch, 3)
        rwbd[r, :in_ch, :IMG_CHANNELS] = rw
        rwbd[r, CPAD:CPAD + in_ch, CPAD:CPAD + IMG_CHANNELS] = rw
        rb[r, 0, :IMG_CHANNELS] = np.asarray(p['bias'], f32)
        rb[r, 0, CPAD:CPAD + IMG_CHANNELS] = np.asarray(p['bias'], f32)

    constp = np.zeros((DROWS, LANES), f32)
    c = np.asarray(params['g1']['b4']['const'], f32).reshape(16, CHANNELS[4])   # (4,4,64) HWC
    constp[:16, :CHANNELS[4]] = c
    constp[:16, CPAD:CPAD + CHANNELS[4]] = c

    packed = (constp, A, wcat, nb, _img_up_matrix(), rwbd, rb,
              cafft, caffb, cwsq, cmask, rafft, raffb)
    return tuple(jnp.asarray(a) for a in packed)


# ======================================= the fused kernel ===================================

def _sg2_kernel(sty_ref, dem_ref, const_ref, a_ref, wcat_ref, nb_ref,
                rw_ref, rb_ref, mimg_ref, out_ref, z_ref, acc_ref):
    """Whole Sg2SplitStudent forward for a PAIR of samples packed along the 128-lane axis."""
    sty = sty_ref[0]                                      # (NSTY, 128): rows 0..4 conv, 5..7 rgb
    dem = dem_ref[0]                                      # (NSTY, 128): rows 0..4 demod coeffs

    def conv3x3(l, x):
        """Modulated 3x3 conv (up=1, or up=2 conv_transpose + FIR folded into A[l,t])."""
        xm = x * sty[l:l + 1, :]                          # modulate once per layer
        # one lane-dense GEMM over all 9 taps: (64,128) @ (128, 9*128)
        z_ref[...] = jnp.dot(xm, wcat_ref[l], preferred_element_type=jnp.float32)
        acc_ref[...] = jnp.zeros_like(acc_ref)
        for t in range(NTAPS):                            # 128-lane-aligned static slices
            acc_ref[...] += jnp.dot(a_ref[l, t], z_ref[:, t * LANES:(t + 1) * LANES],
                                    preferred_element_type=jnp.float32)
        y = acc_ref[...] * dem[l:l + 1, :] + nb_ref[l]    # demod -> +noise+bias (pre-combined)
        y = jnp.where(y >= 0.0, y, 0.2 * y) * LRELU_GAIN  # lrelu * sqrt(2)
        return jnp.clip(y, -CONV_CLAMP, CONV_CLAMP)

    def torgb(r, x):
        y = jnp.dot(x * sty[NCONV + r:NCONV + r + 1, :], rw_ref[r],
                    preferred_element_type=jnp.float32)
        return jnp.clip(y + rb_ref[r], -CONV_CLAMP, CONV_CLAMP)

    # ---- g1 / block 4 (SynthesisBlock, learned const input) ----
    x = conv3x3(0, const_ref[...])
    img = torgb(0, x)
    # ---- g1 / block 8 (SynthesisBlock, up=2 conv + skip-image upsample) ----
    x = conv3x3(1, x)                                     # conv_transpose + FIR fused into A
    img = jnp.dot(mimg_ref[...], img, preferred_element_type=jnp.float32)   # upsample2d(img)
    x = conv3x3(2, x)
    img = img + torgb(1, x)
    # ---- g2 / block 16 (NonUpSynthesisBlock at student resolution) ----
    x = conv3x3(3, x)
    x = conv3x3(4, x)
    img = img + torgb(2, x)
    out_ref[0] = img                                      # (64,128): RGB in lanes 0..2 / 64..66


def _const_index_map(rank):
    def index_map(p):
        return (0,) * rank
    return index_map


_HP = jax.lax.Precision.HIGHEST


def sg2_split_student_forward(prepped, ws):
    """out = g2(ws, *g1(ws, None, None))[1]; one fused pallas_call, 2 samples per grid step."""
    (constp, A, wcat, nb, mimg, rwbd, rb,
     cafft, caffb, cwsq, cmask, rafft, raffb) = prepped
    ws = ws.astype(jnp.float32)
    B = ws.shape[0]
    Bp = (B + 1) // 2
    B2 = 2 * Bp
    if B2 != B:                                           # pad batch to a multiple of 2
        ws = jnp.concatenate([ws, jnp.zeros((B2 - B, NUM_WS, W_DIM), jnp.float32)], axis=0)

    # batched style affines + demod coefficients (review: one XLA GEMM for the whole batch)
    ws_c = ws[:, np.array(_CONV_W_IDX), :]                                   # (B2, 5, 32)
    sty_c = jnp.einsum('blw,lwc->blc', ws_c, cafft, precision=_HP) + caffb[None]
    dem_c = jax.lax.rsqrt(jnp.einsum('blc,lco->blo', sty_c * sty_c, cwsq,
                                     precision=_HP) + 1e-8) * cmask[None]
    ws_r = ws[:, np.array(_RGB_W_IDX), :]                                    # (B2, 3, 32)
    sty_r = jnp.einsum('brw,rwc->brc', ws_r, rafft, precision=_HP) + raffb[None]

    sty_all = jnp.concatenate([sty_c, sty_r], axis=1)                        # (B2, 8, 64)
    dem_all = jnp.concatenate([dem_c, jnp.zeros((B2, NRGB, CPAD), jnp.float32)], axis=1)
    # pack sample pairs along the lane axis: lanes 0..63 = sample 2p, 64..127 = sample 2p+1
    sty_pair = sty_all.reshape(Bp, 2, NSTY, CPAD).transpose(0, 2, 1, 3).reshape(Bp, NSTY, LANES)
    dem_pair = dem_all.reshape(Bp, 2, NSTY, CPAD).transpose(0, 2, 1, 3).reshape(Bp, NSTY, LANES)

    const_ins = (constp, A, wcat, nb, rwbd, rb, mimg)
    in_specs = [pl.BlockSpec((1, NSTY, LANES), lambda p: (p, 0, 0)),
                pl.BlockSpec((1, NSTY, LANES), lambda p: (p, 0, 0))]
    in_specs += [pl.BlockSpec(a.shape, _const_index_map(a.ndim)) for a in const_ins]

    out = pl.pallas_call(
        _sg2_kernel,
        grid=(Bp,),
        out_shape=jax.ShapeDtypeStruct((Bp, DROWS, LANES), jnp.float32),
        in_specs=in_specs,
        out_specs=pl.BlockSpec((1, DROWS, LANES), lambda p: (p, 0, 0)),
        scratch_shapes=[pltpu.VMEM((DROWS, NTAPS * LANES), jnp.float32),   # per-layer tap GEMM
                        pltpu.VMEM((DROWS, LANES), jnp.float32)],          # tap accumulator
        compiler_params=pltpu.CompilerParams(dimension_semantics=("parallel",)),
    )(sty_pair, dem_pair, *const_ins)

    # unpack the pair lanes -> per-sample images (tiny wrapper-side layout work)
    out = out.reshape(Bp, DROWS, 2, CPAD).transpose(0, 2, 1, 3).reshape(B2, DROWS, CPAD)
    img = out[:B, :, :IMG_CHANNELS].reshape(B, STUDENT_IMSIZE, STUDENT_IMSIZE, IMG_CHANNELS)
    return jnp.transpose(img, (0, 3, 1, 2))               # NHWC -> NCHW (PyTorch layout)


# ============================ pure-JAX reference (correctness check) =========================

def zero_insert2(x):
    B, H, W, C = x.shape
    z = jnp.zeros((B, H, 2, W, 2, C), x.dtype)
    z = z.at[:, :, 0, :, 0, :].set(x)
    return z.reshape(B, 2 * H, 2 * W, C)


def _ref_affine(wvec, p):
    return jnp.dot(wvec, jnp.transpose(p['aff_w']), precision=_HP) / math.sqrt(W_DIM) + p['aff_b']


def _ref_taps3(xpad, weight):
    B, Hp, Wp, _ = xpad.shape
    H, W = Hp - 2, Wp - 2
    y = 0.0
    for kh in range(3):
        for kw in range(3):
            y = y + jnp.einsum('bhwi,io->bhwo', xpad[:, kh:kh + H, kw:kw + W, :],
                               jnp.transpose(weight[:, :, kh, kw]), precision=_HP)
    return y


def _ref_fir4(zpad, gain):
    B, Hp, Wp, _ = zpad.shape
    H, W = Hp - 3, Wp - 3
    y = 0.0
    for a in range(4):
        for b in range(4):
            y = y + zpad[:, a:a + H, b:b + W, :] * float(FIR_2D[a, b] * gain)
    return y


def _ref_demod(styles, weight):
    cwsq = jnp.sum(weight * weight, axis=(2, 3))              # (O, I)
    return jax.lax.rsqrt(jnp.einsum('bi,oi->bo', styles * styles, cwsq, precision=_HP) + 1e-8)


def _ref_post(y, p):
    y = y + (p['noise_const'] * p['noise_strength'])[None, :, :, None]
    y = y + p['bias'][None, None, None, :]
    y = jnp.where(y >= 0.0, y, 0.2 * y) * LRELU_GAIN
    return jnp.clip(y, -CONV_CLAMP, CONV_CLAMP)


def _ref_conv_layer(x, wvec, p):
    styles = _ref_affine(wvec, p)
    xm = x * styles[:, None, None, :]
    xpad = jnp.pad(xm, ((0, 0), (1, 1), (1, 1), (0, 0)))
    y = _ref_taps3(xpad, p['weight'])
    y = y * _ref_demod(styles, p['weight'])[:, None, None, :]
    return _ref_post(y, p)


def _ref_up_layer(x, wvec, p):
    B, H, W, _ = x.shape
    styles = _ref_affine(wvec, p)
    xm = x * styles[:, None, None, :]
    z = zero_insert2(xm)[:, :2 * H - 1, :2 * W - 1, :]
    zpad = jnp.pad(z, ((0, 0), (2, 2), (2, 2), (0, 0)))
    y = _ref_taps3(zpad, p['weight'][:, :, ::-1, ::-1])       # conv_transpose stride 2
    ypad = jnp.pad(y, ((0, 0), (1, 1), (1, 1), (0, 0)))
    y = _ref_fir4(ypad, 4.0)                                  # upfirdn2d, gain = up**2
    y = y * _ref_demod(styles, p['weight'])[:, None, None, :]
    return _ref_post(y, p)


def _ref_torgb(x, wvec, p):
    in_ch = p['weight'].shape[1]
    styles = _ref_affine(wvec, p) / math.sqrt(in_ch)
    y = jnp.einsum('bhwi,io->bhwo', x * styles[:, None, None, :],
                   jnp.transpose(p['weight'][:, :, 0, 0]), precision=_HP)
    return jnp.clip(y + p['bias'][None, None, None, :], -CONV_CLAMP, CONV_CLAMP)


def _ref_upsample2d(img):
    z = zero_insert2(img)
    zpad = jnp.pad(z, ((0, 0), (2, 1), (2, 1), (0, 0)))
    return _ref_fir4(zpad, 4.0)


def reference_forward(params, ws):
    ws = ws.astype(jnp.float32)
    B = ws.shape[0]
    b4, b8, b16 = params['g1']['b4'], params['g1']['b8'], params['g2']['b16']
    x = jnp.broadcast_to(b4['const'][None], (B,) + b4['const'].shape)
    x = _ref_conv_layer(x, ws[:, 0], b4['conv1'])
    img = _ref_torgb(x, ws[:, 1], b4['torgb'])
    x = _ref_up_layer(x, ws[:, 1], b8['conv0'])
    img = _ref_upsample2d(img)
    x = _ref_conv_layer(x, ws[:, 2], b8['conv1'])
    img = img + _ref_torgb(x, ws[:, 3], b8['torgb'])
    x = _ref_conv_layer(x, ws[:, 3], b16['conv0'])
    x = _ref_conv_layer(x, ws[:, 4], b16['conv1'])
    img = img + _ref_torgb(x, ws[:, 5], b16['torgb'])
    return jnp.transpose(img, (0, 3, 1, 2))


# ==================================== deterministic init ====================================

def _randn(key, shape):
    return jax.random.normal(key, shape, dtype=jnp.float32)


def init_synth_layer(key, in_ch, out_ch, res):
    k0, k1, k2, k3 = jax.random.split(key, 4)
    return dict(
        aff_w=_randn(k0, (in_ch, W_DIM)),                # FullyConnectedLayer(w_dim -> in_ch)
        aff_b=jnp.ones((in_ch,), jnp.float32),           # bias_init = 1
        weight=_randn(k1, (out_ch, in_ch, 3, 3)),
        bias=0.1 * _randn(k3, (out_ch,)),                # nonzero so the bias path is exercised
        noise_const=_randn(k2, (res, res)),
        noise_strength=jnp.float32(0.1),                 # nonzero so the noise path is exercised
    )


def init_torgb(key, in_ch):
    k0, k1, k2 = jax.random.split(key, 3)
    return dict(
        aff_w=_randn(k0, (in_ch, W_DIM)),
        aff_b=jnp.ones((in_ch,), jnp.float32),
        weight=_randn(k1, (IMG_CHANNELS, in_ch, 1, 1)),
        bias=0.1 * _randn(k2, (IMG_CHANNELS,)),
    )


def init_params(key):
    params = {'g1': {}, 'g2': {}}
    keys = iter(jax.random.split(key, 64))
    for res in BLOCK_RESOLUTIONS:
        in_ch = CHANNELS[res // 2] if res > 4 else 0
        out_ch = CHANNELS[res]
        if res <= STUDENT_IMSIZE:                        # g1: SynthesisBlock at resolution res
            blk = {}
            if in_ch == 0:
                blk['const'] = _randn(next(keys), (res, res, out_ch))   # stored HWC
            else:
                blk['conv0'] = init_synth_layer(next(keys), in_ch, out_ch, res)
            blk['conv1'] = init_synth_layer(next(keys), out_ch, out_ch, res)
            blk['torgb'] = init_torgb(next(keys), out_ch)
            params['g1'][f'b{res}'] = blk
        else:                                            # g2: NonUpSynthesisBlock at student res
            params['g2'][f'b{res}'] = dict(
                conv0=init_synth_layer(next(keys), in_ch, out_ch, STUDENT_IMSIZE),
                conv1=init_synth_layer(next(keys), out_ch, out_ch, STUDENT_IMSIZE),
                torgb=init_torgb(next(keys), out_ch),
            )
    return params


if __name__ == "__main__":
    key = jax.random.PRNGKey(0)
    pkey, wkey = jax.random.split(key)
    params = init_params(pkey)
    prepped = prepare_params(params)                     # one-time parameter prep (hoisted)

    B = 2
    ws = jax.random.normal(wkey, (B, NUM_WS, W_DIM), dtype=jnp.float32)

    fwd = jax.jit(sg2_split_student_forward)
    out = jax.block_until_ready(fwd(prepped, ws))

    assert out.shape == (B, IMG_CHANNELS, STUDENT_IMSIZE, STUDENT_IMSIZE), out.shape
    assert bool(jnp.all(jnp.isfinite(out)))

    # tolerance check against the pure-JAX reference of the same module semantics
    ref = jax.block_until_ready(jax.jit(reference_forward)(params, ws))
    np.testing.assert_allclose(np.asarray(out), np.asarray(ref), rtol=2e-3, atol=2e-3)

    print("KERNEL_OK")
</pallas_src>

<mosaic_0001>
module attributes {stable_mosaic.version = 11 : i64} {
  func.func @_sg2_kernel(%arg0: i32, %arg1: memref<1x8x128xf32, #tpu.memory_space<vmem>>, %arg2: memref<1x8x128xf32, #tpu.memory_space<vmem>>, %arg3: memref<64x128xf32, #tpu.memory_space<vmem>>, %arg4: memref<5x9x64x64xf32, #tpu.memory_space<vmem>>, %arg5: memref<5x128x1152xf32, #tpu.memory_space<vmem>>, %arg6: memref<5x64x128xf32, #tpu.memory_space<vmem>>, %arg7: memref<3x128x128xf32, #tpu.memory_space<vmem>>, %arg8: memref<3x1x128xf32, #tpu.memory_space<vmem>>, %arg9: memref<64x64xf32, #tpu.memory_space<vmem>>, %arg10: memref<1x64x128xf32, #tpu.memory_space<vmem>>, %arg11: memref<64x1152xf32, #tpu.memory_space<vmem>>, %arg12: memref<64x128xf32, #tpu.memory_space<vmem>>) attributes {dimension_semantics = [#tpu.dimension_semantics<parallel>], iteration_bounds = array<i64: 1>, scalar_prefetch = 0 : i64, scratch_operands = 2 : i64, tpu.core_type = #tpu.core_type<tc>, window_params = [{transform_indices = @transform_0, window_bounds = array<i64: 1, 8, 128>}, {transform_indices = @transform_1, window_bounds = array<i64: 1, 8, 128>}, {pipeline_mode = #tpu.pipeline_mode<synchronous>, transform_indices = @transform_2, window_bounds = array<i64: 64, 128>}, {pipeline_mode = #tpu.pipeline_mode<synchronous>, transform_indices = @transform_3, window_bounds = array<i64: 5, 9, 64, 64>}, {pipeline_mode = #tpu.pipeline_mode<synchronous>, transform_indices = @transform_4, window_bounds = array<i64: 5, 128, 1152>}, {pipeline_mode = #tpu.pipeline_mode<synchronous>, transform_indices = @transform_5, window_bounds = array<i64: 5, 64, 128>}, {pipeline_mode = #tpu.pipeline_mode<synchronous>, transform_indices = @transform_6, window_bounds = array<i64: 3, 128, 128>}, {pipeline_mode = #tpu.pipeline_mode<synchronous>, transform_indices = @transform_7, window_bounds = array<i64: 3, 1, 128>}, {pipeline_mode = #tpu.pipeline_mode<synchronous>, transform_indices = @transform_8, window_bounds = array<i64: 64, 64>}, {transform_indices = @transform_9, window_bounds = array<i64: 1, 64, 128>}]} {
    %c0 = arith.constant 0 : index
    %c0_0 = arith.constant 0 : index
    %c0_1 = arith.constant 0 : index
    %0 = vector.load %arg1[%c0, %c0_0, %c0_1] : memref<1x8x128xf32, #tpu.memory_space<vmem>>, vector<1x8x128xf32>
    %1 = vector.shape_cast %0 : vector<1x8x128xf32> to vector<8x128xf32>
    %c0_2 = arith.constant 0 : index
    %c0_3 = arith.constant 0 : index
    %c0_4 = arith.constant 0 : index
    %2 = vector.load %arg2[%c0_2, %c0_3, %c0_4] : memref<1x8x128xf32, #tpu.memory_space<vmem>>, vector<1x8x128xf32>
    %3 = vector.shape_cast %2 : vector<1x8x128xf32> to vector<8x128xf32>
    %c0_5 = arith.constant 0 : index
    %c0_6 = arith.constant 0 : index
    %4 = vector.load %arg3[%c0_5, %c0_6] : memref<64x128xf32, #tpu.memory_space<vmem>>, vector<64x128xf32>
    %5 = vector.extract_strided_slice %1 {offsets = [0, 0], sizes = [1, 128], strides = [1, 1]} : vector<8x128xf32> to vector<1x128xf32>
    %6 = vector.broadcast %5 : vector<1x128xf32> to vector<64x128xf32>
    %7 = arith.mulf %4, %6 : vector<64x128xf32>
    %c0_7 = arith.constant 0 : index
    %c0_8 = arith.constant 0 : index
    %c0_9 = arith.constant 0 : index
    %8 = vector.load %arg5[%c0_7, %c0_8, %c0_9] : memref<5x128x1152xf32, #tpu.memory_space<vmem>>, vector<1x128x1152xf32>
    %9 = vector.shape_cast %8 : vector<1x128x1152xf32> to vector<128x1152xf32>
    %cst = arith.constant dense<0.000000e+00> : vector<64x1152xf32>
    %10 = tpu.matmul %7, %9, %cst {dimension_numbers = #tpu.dot_dimension_numbers<[1], [0], [0], [1], [0, 0, 1, 1], [], []>} : vector<64x128xf32>, vector<128x1152xf32>, vector<64x1152xf32> -> vector<64x1152xf32>
    %c0_10 = arith.constant 0 : index
    %c0_11 = arith.constant 0 : index
    %11 = vector.load %arg11[%c0_10, %c0_11] : memref<64x1152xf32, #tpu.memory_space<vmem>>, vector<64x1152xf32>
    tpu.vector_store %arg11[%c0_10, %c0_11], %10 {strides = array<i32>} : memref<64x1152xf32, #tpu.memory_space<vmem>>, vector<64x1152xf32>,
    %cst_12 = arith.constant 0.000000e+00 : f32
    %12 = vector.broadcast %cst_12 : f32 to vector<64x128xf32>
    %c0_13 = arith.constant 0 : index
    %c0_14 = arith.constant 0 : index
    %13 = vector.load %arg12[%c0_13, %c0_14] : memref<64x128xf32, #tpu.memory_space<vmem>>, vector<64x128xf32>
    tpu.vector_store %arg12[%c0_13, %c0_14], %12 {strides = array<i32>} : memref<64x128xf32, #tpu.memory_space<vmem>>, vector<64x128xf32>,
    %c0_15 = arith.constant 0 : index
    %c0_16 = arith.constant 0 : index
    %14 = vector.load %arg12[%c0_15, %c0_16] : memref<64x128xf32, #tpu.memory_space<vmem>>, vector<64x128xf32>
    %c0_17 = arith.constant 0 : index
    %c0_18 = arith.constant 0 : index
    %c0_19 = arith.constant 0 : index
    %c0_20 = arith.constant 0 : index
    %15 = vector.load %arg4[%c0_17, %c0_18, %c0_19, %c0_20] : memref<5x9x64x64xf32, #tpu.memory_space<vmem>>, vector<1x1x64x64xf32>
    %16 = vector.shape_cast %15 : vector<1x1x64x64xf32> to vector<64x64xf32>
    %c0_21 = arith.constant 0 : index
    %c0_22 = arith.constant 0 : index
    %17 = vector.load %arg11[%c0_21, %c0_22] : memref<64x1152xf32, #tpu.memory_space<vmem>>, vector<64x128xf32>
    %cst_23 = arith.constant dense<0.000000e+00> : vector<64x128xf32>
    %18 = tpu.matmul %16, %17, %cst_23 {dimension_numbers = #tpu.dot_dimension_numbers<[1], [0], [0], [1], [0, 0, 1, 1], [], []>} : vector<64x64xf32>, vector<64x128xf32>, vector<64x128xf32> -> vector<64x128xf32>
    %19 = arith.addf %14, %18 : vector<64x128xf32>
    %c0_24 = arith.constant 0 : index
    %c0_25 = arith.constant 0 : index
    %20 = vector.load %arg12[%c0_24, %c0_25] : memref<64x128xf32, #tpu.memory_space<vmem>>, vector<64x128xf32>
    tpu.vector_store %arg12[%c0_24, %c0_25], %19 {strides = array<i32>} : memref<64x128xf32, #tpu.memory_space<vmem>>, vector<64x128xf32>,
    %c0_26 = arith.constant 0 : index
    %c0_27 = arith.constant 0 : index
    %21 = vector.load %arg12[%c0_26, %c0_27] : memref<64x128xf32, #tpu.memory_space<vmem>>, vector<64x128xf32>
    %c0_28 = arith.constant 0 : index
    %c1 = arith.constant 1 : index
    %c0_29 = arith.constant 0 : index
    %c0_30 = arith.constant 0 : index
    %22 = vector.load %arg4[%c0_28, %c1, %c0_29, %c0_30] : memref<5x9x64x64xf32, #tpu.memory_space<vmem>>, vector<1x1x64x64xf32>
    %23 = vector.shape_cast %22 : vector<1x1x64x64xf32> to vector<64x64xf32>
    %c0_31 = arith.constant 0 : index
    %c128 = arith.constant 128 : index
    %24 = vector.load %arg11[%c0_31, %c128] : memref<64x1152xf32, #tpu.memory_space<vmem>>, vector<64x128xf32>
    %cst_32 = arith.constant dense<0.000000e+00> : vector<64x128xf32>
    %25 = tpu.matmul %23, %24, %cst_32 {dimension_numbers = #tpu.dot_dimension_numbers<[1], [0], [0], [1], [0, 0, 1, 1], [], []>} : vector<64x64xf32>, vector<64x128xf32>, vector<64x128xf32> -> vector<64x128xf32>
    %26 = arith.addf %21, %25 : vector<64x128xf32>
    %c0_33 = arith.constant 0 : index
    %c0_34 = arith.constant 0 : index
    %27 = vector.load %arg12[%c0_33, %c0_34] : memref<64x128xf32, #tpu.memory_space<vmem>>, vector<64x128xf32>
    tpu.vector_store %arg12[%c0_33, %c0_34], %26 {strides = array<i32>} : memref<64x128xf32, #tpu.memory_space<vmem>>, vector<64x128xf32>,
    %c0_35 = arith.constant 0 : index
    %c0_36 = arith.constant 0 : index
    %28 = vector.load %arg12[%c0_35, %c0_36] : memref<64x128xf32, #tpu.memory_space<vmem>>, vector<64x128xf32>
    %c0_37 = arith.constant 0 : index
    %c2 = arith.constant 2 : index
    %c0_38 = arith.constant 0 : index
    %c0_39 = arith.constant 0 : index
    %29 = vector.load %arg4[%c0_37, %c2, %c0_38, %c0_39] : memref<5x9x64x64xf32, #tpu.memory_space<vmem>>, vector<1x1x64x64xf32>
    %30 = vector.shape_cast %29 : vector<1x1x64x64xf32> to vector<64x64xf32>
    %c0_40 = arith.constant 0 : index
    %c256 = arith.constant 256 : index
    %31 = vector.load %arg11[%c0_40, %c256] : memref<64x1152xf32, #tpu.memory_space<vmem>>, vector<64x128xf32>
    %cst_41 = arith.constant dense<0.000000e+00> : vector<64x128xf32>
    %32 = tpu.matmul %30, %31, %cst_41 {dimension_numbers = #tpu.dot_dimension_numbers<[1], [0], [0], [1], [0, 0, 1, 1], [], []>} : vector<64x64xf32>, vector<64x128xf32>, vector<64x128xf32> -> vector<64x128xf32>
    %33 = arith.addf %28, %32 : vector<64x128xf32>
    %c0_42 = arith.constant 0 : index
    %c0_43 = arith.constant 0 : index
    %34 = vector.load %arg12[%c0_42, %c0_43] : memref<64x128xf32, #tpu.memory_space<vmem>>, vector<64x128xf32>
    tpu.vector_store %arg12[%c0_42, %c0_43], %33 {strides = array<i32>} : memref<64x128xf32, #tpu.memory_space<vmem>>, vector<64x128xf32>,
    %c0_44 = arith.constant 0 : index
    %c0_45 = arith.constant 0 : index
    %35 = vector.load %arg12[%c0_44, %c0_45] : memref<64x128xf32, #tpu.memory_space<vmem>>, vector<64x128xf32>
    %c0_46 = arith.constant 0 : index
    %c3 = arith.constant 3 : index
    %c0_47 = arith.constant 0 : index
    %c0_48 = arith.constant 0 : index
    %36 = vector.load %arg4[%c0_46, %c3, %c0_47, %c0_48] : memref<5x9x64x64xf32, #tpu.memory_space<vmem>>, vector<1x1x64x64xf32>
    %37 = vector.shape_cast %36 : vector<1x1x64x64xf32> to vector<64x64xf32>
    %c0_49 = arith.constant 0 : index
    %c384 = arith.constant 384 : index
    %38 = vector.load %arg11[%c0_49, %c384] : memref<64x1152xf32, #tpu.memory_space<vmem>>, vector<64x128xf32>
    %cst_50 = arith.constant dense<0.000000e+00> : vector<64x128xf32>
    %39 = tpu.matmul %37, %38, %cst_50 {dimension_numbers = #tpu.dot_dimension_numbers<[1], [0], [0], [1], [0, 0, 1, 1], [], []>} : vector<64x64xf32>, vector<64x128xf32>, vector<64x128xf32> -> vector<64x128xf32>
    %40 = arith.addf %35, %39 : vector<64x128xf32>
    %c0_51 = arith.constant 0 : index
    %c0_52 = arith.constant 0 : index
    %41 = vector.load %arg12[%c0_51, %c0_52] : memref<64x128xf32, #tpu.memory_space<vmem>>, vector<64x128xf32>
    tpu.vector_store %arg12[%c0_51, %c0_52], %40 {strides = array<i32>} : memref<64x128xf32, #tpu.memory_space<vmem>>, vector<64x128xf32>,
    %c0_53 = arith.constant 0 : index
    %c0_54 = arith.constant 0 : index
    %42 = vector.load %arg12[%c0_53, %c0_54] : memref<64x128xf32, #tpu.memory_space<vmem>>, vector<64x128xf32>
    %c0_55 = arith.constant 0 : index
    %c4 = arith.constant 4 : index
    %c0_56 = arith.constant 0 : index
    %c0_57 = arith.constant 0 : index
    %43 = vector.load %arg4[%c0_55, %c4, %c0_56, %c0_57] : memref<5x9x64x64xf32, #tpu.memory_space<vmem>>, vector<1x1x64x64xf32>
    %44 = vector.shape_cast %43 : vector<1x1x64x64xf32> to vector<64x64xf32>
    %c0_58 = arith.constant 0 : index
    %c512 = arith.constant 512 : index
    %45 = vector.load %arg11[%c0_58, %c512] : memref<64x1152xf32, #tpu.memory_space<vmem>>, vector<64x128xf32>
    %cst_59 = arith.constant dense<0.000000e+00> : vector<64x128xf32>
    %46 = tpu.matmul %44, %45, %cst_59 {dimension_numbers = #tpu.dot_dimension_numbers<[1], [0], [0], [1], [0, 0, 1, 1], [], []>} : vector<64x64xf32>, vector<64x128xf32>, vector<64x128xf32> -> vector<64x128xf32>
    %47 = arith.addf %42, %46 : vector<64x128xf32>
    %c0_60 = arith.constant 0 : index
    %c0_61 = arith.constant 0 : index
    %48 = vector.load %arg12[%c0_60, %c0_61] : memref<64x128xf32, #tpu.memory_space<vmem>>, vector<64x128xf32>
    tpu.vector_store %arg12[%c0_60, %c0_61], %47 {strides = array<i32>} : memref<64x128xf32, #tpu.memory_space<vmem>>, vector<64x128xf32>,
    %c0_62 = arith.constant 0 : index
    %c0_63 = arith.constant 0 : index
    %49 = vector.load %arg12[%c0_62, %c0_63] : memref<64x128xf32, #tpu.memory_space<vmem>>, vector<64x128xf32>
    %c0_64 = arith.constant 0 : index
    %c5 = arith.constant 5 : index
    %c0_65 = arith.constant 0 : index
    %c0_66 = arith.constant 0 : index
    %50 = vector.load %arg4[%c0_64, %c5, %c0_65, %c0_66] : memref<5x9x64x64xf32, #tpu.memory_space<vmem>>, vector<1x1x64x64xf32>
    %51 = vector.shape_cast %50 : vector<1x1x64x64xf32> to vector<64x64xf32>
    %c0_67 = arith.constant 0 : index
    %c640 = arith.constant 640 : index
    %52 = vector.load %arg11[%c0_67, %c640] : memref<64x1152xf32, #tpu.memory_space<vmem>>, vector<64x128xf32>
    %cst_68 = arith.constant dense<0.000000e+00> : vector<64x128xf32>
    %53 = tpu.matmul %51, %52, %cst_68 {dimension_numbers = #tpu.dot_dimension_numbers<[1], [0], [0], [1], [0, 0, 1, 1], [], []>} : vector<64x64xf32>, vector<64x128xf32>, vector<64x128xf32> -> vector<64x128xf32>
    %54 = arith.addf %49, %53 : vector<64x128xf32>
    %c0_69 = arith.constant 0 : index
    %c0_70 = arith.constant 0 : index
    %55 = vector.load %arg12[%c0_69, %c0_70] : memref<64x128xf32, #tpu.memory_space<vmem>>, vector<64x128xf32>
    tpu.vector_store %arg12[%c0_69, %c0_70], %54 {strides = array<i32>} : memref<64x128xf32, #tpu.memory_space<vmem>>, vector<64x128xf32>,
    %c0_71 = arith.constant 0 : index
    %c0_72 = arith.constant 0 : index
    %56 = vector.load %arg12[%c0_71, %c0_72] : memref<64x128xf32, #tpu.memory_space<vmem>>, vector<64x128xf32>
    %c0_73 = arith.constant 0 : index
    %c6 = arith.constant 6 : index
    %c0_74 = arith.constant 0 : index
    %c0_75 = arith.constant 0 : index
    %57 = vector.load %arg4[%c0_73, %c6, %c0_74, %c0_75] : memref<5x9x64x64xf32, #tpu.memory_space<vmem>>, vector<1x1x64x64xf32>
    %58 = vector.shape_cast %57 : vector<1x1x64x64xf32> to vector<64x64xf32>
    %c0_76 = arith.constant 0 : index
    %c768 = arith.constant 768 : index
    %59 = vector.load %arg11[%c0_76, %c768] : memref<64x1152xf32, #tpu.memory_space<vmem>>, vector<64x128xf32>
    %cst_77 = arith.constant dense<0.000000e+00> : vector<64x128xf32>
    %60 = tpu.matmul %58, %59, %cst_77 {dimension_numbers = #tpu.dot_dimension_numbers<[1], [0], [0], [1], [0, 0, 1, 1], [], []>} : vector<64x64xf32>, vector<64x128xf32>, vector<64x128xf32> -> vector<64x128xf32>
    %61 = arith.addf %56, %60 : vector<64x128xf32>
    %c0_78 = arith.constant 0 : index
    %c0_79 = arith.constant 0 : index
    %62 = vector.load %arg12[%c0_78, %c0_79] : memref<64x128xf32, #tpu.memory_space<vmem>>, vector<64x128xf32>
    tpu.vector_store %arg12[%c0_78, %c0_79], %61 {strides = array<i32>} : memref<64x128xf32, #tpu.memory_space<vmem>>, vector<64x128xf32>,
    %c0_80 = arith.constant 0 : index
    %c0_81 = arith.constant 0 : index
    %63 = vector.load %arg12[%c0_80, %c0_81] : memref<64x128xf32, #tpu.memory_space<vmem>>, vector<64x128xf32>
    %c0_82 = arith.constant 0 : index
    %c7 = arith.constant 7 : index
    %c0_83 = arith.constant 0 : index
    %c0_84 = arith.constant 0 : index
    %64 = vector.load %arg4[%c0_82, %c7, %c0_83, %c0_84] : memref<5x9x64x64xf32, #tpu.memory_space<vmem>>, vector<1x1x64x64xf32>
    %65 = vector.shape_cast %64 : vector<1x1x64x64xf32> to vector<64x64xf32>
    %c0_85 = arith.constant 0 : index
    %c896 = arith.constant 896 : index
    %66 = vector.load %arg11[%c0_85, %c896] : memref<64x1152xf32, #tpu.memory_space<vmem>>, vector<64x128xf32>
    %cst_86 = arith.constant dense<0.000000e+00> : vector<64x128xf32>
    %67 = tpu.matmul %65, %66, %cst_86 {dimension_numbers = #tpu.dot_dimension_numbers<[1], [0], [0], [1], [0, 0, 1, 1], [], []>} : vector<64x64xf32>, vector<64x128xf32>, vector<64x128xf32> -> vector<64x128xf32>
    %68 = arith.addf %63, %67 : vector<64x128xf32>
    %c0_87 = arith.constant 0 : index
    %c0_88 = arith.constant 0 : index
    %69 = vector.load %arg12[%c0_87, %c0_88] : memref<64x128xf32, #tpu.memory_space<vmem>>, vector<64x128xf32>
    tpu.vector_store %arg12[%c0_87, %c0_88], %68 {strides = array<i32>} : memref<64x128xf32, #tpu.memory_space<vmem>>, vector<64x128xf32>,
    %c0_89 = arith.constant 0 : index
    %c0_90 = arith.constant 0 : index
    %70 = vector.load %arg12[%c0_89, %c0_90] : memref<64x128xf32, #tpu.memory_space<vmem>>, vector<64x128xf32>
    %c0_91 = arith.constant 0 : index
    %c8 = arith.constant 8 : index
    %c0_92 = arith.constant 0 : index
    %c0_93 = arith.constant 0 : index
    %71 = vector.load %arg4[%c0_91, %c8, %c0_92, %c0_93] : memref<5x9x64x64xf32, #tpu.memory_space<vmem>>, vector<1x1x64x64xf32>
    %72 = vector.shape_cast %71 : vector<1x1x64x64xf32> to vector<64x64xf32>
    %c0_94 = arith.constant 0 : index
    %c1024 = arith.constant 1024 : index
    %73 = vector.load %arg11[%c0_94, %c1024] : memref<64x1152xf32, #tpu.memory_space<vmem>>, vector<64x128xf32>
    %cst_95 = arith.constant dense<0.000000e+00> : vector<64x128xf32>
    %74 = tpu.matmul %72, %73, %cst_95 {dimension_numbers = #tpu.dot_dimension_numbers<[1], [0], [0], [1], [0, 0, 1, 1], [], []>} : vector<64x64xf32>, vector<64x128xf32>, vector<64x128xf32> -> vector<64x128xf32>
    %75 = arith.addf %70, %74 : vector<64x128xf32>
    %c0_96 = arith.constant 0 : index
    %c0_97 = arith.constant 0 : index
    %76 = vector.load %arg12[%c0_96, %c0_97] : memref<64x128xf32, #tpu.memory_space<vmem>>, vector<64x128xf32>
    tpu.vector_store %arg12[%c0_96, %c0_97], %75 {strides = array<i32>} : memref<64x128xf32, #tpu.memory_space<vmem>>, vector<64x128xf32>,
    %c0_98 = arith.constant 0 : index
    %c0_99 = arith.constant 0 : index
    %77 = vector.load %arg12[%c0_98, %c0_99] : memref<64x128xf32, #tpu.memory_space<vmem>>, vector<64x128xf32>
    %78 = vector.extract_strided_slice %3 {offsets = [0, 0], sizes = [1, 128], strides = [1, 1]} : vector<8x128xf32> to vector<1x128xf32>
    %79 = vector.broadcast %78 : vector<1x128xf32> to vector<64x128xf32>
    %80 = arith.mulf %77, %79 : vector<64x128xf32>
    %c0_100 = arith.constant 0 : index
    %c0_101 = arith.constant 0 : index
    %c0_102 = arith.constant 0 : index
    %81 = vector.load %arg6[%c0_100, %c0_101, %c0_102] : memref<5x64x128xf32, #tpu.memory_space<vmem>>, vector<1x64x128xf32>
    %82 = vector.shape_cast %81 : vector<1x64x128xf32> to vector<64x128xf32>
    %83 = arith.addf %80, %82 : vector<64x128xf32>
    %cst_103 = arith.constant 0.000000e+00 : f32
    %84 = vector.broadcast %cst_103 : f32 to vector<64x128xf32>
    %85 = arith.cmpf oge, %83, %84 : vector<64x128xf32>
    %cst_104 = arith.constant 2.000000e-01 : f32
    %86 = vector.broadcast %cst_104 : f32 to vector<64x128xf32>
    %87 = arith.mulf %86, %83 : vector<64x128xf32>
    %88 = arith.select %85, %83, %87 : vector<64x128xi1>, vector<64x128xf32>
    %cst_105 = arith.constant 1.41421354 : f32
    %89 = vector.broadcast %cst_105 : f32 to vector<64x128xf32>
    %90 = arith.mulf %88, %89 : vector<64x128xf32>
    %cst_106 = arith.constant -2.560000e+02 : f32
    %cst_107 = arith.constant 2.560000e+02 : f32
    %91 = vector.broadcast %cst_106 : f32 to vector<64x128xf32>
    %92 = arith.maximumf %91, %90 : vector<64x128xf32>
    %93 = vector.broadcast %cst_107 : f32 to vector<64x128xf32>
    %94 = arith.minimumf %93, %92 : vector<64x128xf32>
    %95 = vector.extract_strided_slice %1 {offsets = [5, 0], sizes = [1, 128], strides = [1, 1]} : vector<8x128xf32> to vector<1x128xf32>
    %96 = vector.broadcast %95 : vector<1x128xf32> to vector<64x128xf32>
    %97 = arith.mulf %94, %96 : vector<64x128xf32>
    %c0_108 = arith.constant 0 : index
    %c0_109 = arith.constant 0 : index
    %c0_110 = arith.constant 0 : index
    %98 = vector.load %arg7[%c0_108, %c0_109, %c0_110] : memref<3x128x128xf32, #tpu.memory_space<vmem>>, vector<1x128x128xf32>
    %99 = vector.shape_cast %98 : vector<1x128x128xf32> to vector<128x128xf32>
    %cst_111 = arith.constant dense<0.000000e+00> : vector<64x128xf32>
    %100 = tpu.matmul %97, %99, %cst_111 {dimension_numbers = #tpu.dot_dimension_numbers<[1], [0], [0], [1], [0, 0, 1, 1], [], []>} : vector<64x128xf32>, vector<128x128xf32>, vector<64x128xf32> -> vector<64x128xf32>
    %c0_112 = arith.constant 0 : index
    %c0_113 = arith.constant 0 : index
    %c0_114 = arith.constant 0 : index
    %101 = vector.load %arg8[%c0_112, %c0_113, %c0_114] : memref<3x1x128xf32, #tpu.memory_space<vmem>>, vector<1x1x128xf32>
    %102 = vector.shape_cast %101 : vector<1x1x128xf32> to vector<1x128xf32>
    %103 = vector.broadcast %102 : vector<1x128xf32> to vector<64x128xf32>
    %104 = arith.addf %100, %103 : vector<64x128xf32>
    %cst_115 = arith.constant -2.560000e+02 : f32
    %cst_116 = arith.constant 2.560000e+02 : f32
    %105 = vector.broadcast %cst_115 : f32 to vector<64x128xf32>
    %106 = arith.maximumf %105, %104 : vector<64x128xf32>
    %107 = vector.broadcast %cst_116 : f32 to vector<64x128xf32>
    %108 = arith.minimumf %107, %106 : vector<64x128xf32>
    %109 = vector.extract_strided_slice %1 {offsets = [1, 0], sizes = [1, 128], strides = [1, 1]} : vector<8x128xf32> to vector<1x128xf32>
    %110 = vector.broadcast %109 : vector<1x128xf32> to vector<64x128xf32>
    %111 = arith.mulf %94, %110 : vector<64x128xf32>
    %c1_117 = arith.constant 1 : index
    %c0_118 = arith.constant 0 : index
    %c0_119 = arith.constant 0 : index
    %112 = vector.load %arg5[%c1_117, %c0_118, %c0_119] : memref<5x128x1152xf32, #tpu.memory_space<vmem>>, vector<1x128x1152xf32>
    %113 = vector.shape_cast %112 : vector<1x128x1152xf32> to vector<128x1152xf32>
    %cst_120 = arith.constant dense<0.000000e+00> : vector<64x1152xf32>
    %114 = tpu.matmul %111, %113, %cst_120 {dimension_numbers = #tpu.dot_dimension_numbers<[1], [0], [0], [1], [0, 0, 1, 1], [], []>} : vector<64x128xf32>, vector<128x1152xf32>, vector<64x1152xf32> -> vector<64x1152xf32>
    %c0_121 = arith.constant 0 : index
    %c0_122 = arith.constant 0 : index
    %115 = vector.load %arg11[%c0_121, %c0_122] : memref<64x1152xf32, #tpu.memory_space<vmem>>, vector<64x1152xf32>
    tpu.vector_store %arg11[%c0_121, %c0_122], %114 {strides = array<i32>} : memref<64x1152xf32, #tpu.memory_space<vmem>>, vector<64x1152xf32>,
    %cst_123 = arith.constant 0.000000e+00 : f32
    %116 = vector.broadcast %cst_123 : f32 to vector<64x128xf32>
    %c0_124 = arith.constant 0 : index
    %c0_125 = arith.constant 0 : index
    %117 = vector.load %arg12[%c0_124, %c0_125] : memref<64x128xf32, #tpu.memory_space<vmem>>, vector<64x128xf32>
    tpu.vector_store %arg12[%c0_124, %c0_125], %116 {strides = array<i32>} : memref<64x128xf32, #tpu.memory_space<vmem>>, vector<64x128xf32>,
    %c0_126 = arith.constant 0 : index
    %c0_127 = arith.constant 0 : index
    %118 = vector.load %arg12[%c0_126, %c0_127] : memref<64x128xf32, #tpu.memory_space<vmem>>, vector<64x128xf32>
    %c1_128 = arith.constant 1 : index
    %c0_129 = arith.constant 0 : index
    %c0_130 = arith.constant 0 : index
    %c0_131 = arith.constant 0 : index
    %119 = vector.load %arg4[%c1_128, %c0_129, %c0_130, %c0_131] : memref<5x9x64x64xf32, #tpu.memory_space<vmem>>, vector<1x1x64x64xf32>
    %120 = vector.shape_cast %119 : vector<1x1x64x64xf32> to vector<64x64xf32>
    %c0_132 = arith.constant 0 : index
    %c0_133 = arith.constant 0 : index
    %121 = vector.load %arg11[%c0_132, %c0_133] : memref<64x1152xf32, #tpu.memory_space<vmem>>, vector<64x128xf32>
    %cst_134 = arith.constant dense<0.000000e+00> : vector<64x128xf32>
    %122 = tpu.matmul %120, %121, %cst_134 {dimension_numbers = #tpu.dot_dimension_numbers<[1], [0], [0], [1], [0, 0, 1, 1], [], []>} : vector<64x64xf32>, vector<64x128xf32>, vector<64x128xf32> -> vector<64x128xf32>
    %123 = arith.addf %118, %122 : vector<64x128xf32>
    %c0_135 = arith.constant 0 : index
    %c0_136 = arith.constant 0 : index
    %124 = vector.load %arg12[%c0_135, %c0_136] : memref<64x128xf32, #tpu.memory_space<vmem>>, vector<64x128xf32>
    tpu.vector_store %arg12[%c0_135, %c0_136], %123 {strides = array<i32>} : memref<64x128xf32, #tpu.memory_space<vmem>>, vector<64x128xf32>,
    %c0_137 = arith.constant 0 : index
    %c0_138 = arith.constant 0 : index
    %125 = vector.load %arg12[%c0_137, %c0_138] : memref<64x128xf32, #tpu.memory_space<vmem>>, vector<64x128xf32>
    %c1_139 = arith.constant 1 : index
    %c1_140 = arith.constant 1 : index
    %c0_141 = arith.constant 0 : index
    %c0_142 = arith.constant 0 : index
    %126 = vector.load %arg4[%c1_139, %c1_140, %c0_141, %c0_142] : memref<5x9x64x64xf32, #tpu.memory_space<vmem>>, vector<1x1x64x64xf32>
    %127 = vector.shape_cast %126 : vector<1x1x64x64xf32> to vector<64x64xf32>
    %c0_143 = arith.constant 0 : index
    %c128_144 = arith.constant 128 : index
    %128 = vector.load %arg11[%c0_143, %c128_144] : memref<64x1152xf32, #tpu.memory_space<vmem>>, vector<64x128xf32>
    %cst_145 = arith.constant dense<0.000000e+00> : vector<64x128xf32>
    %129 = tpu.matmul %127, %128, %cst_145 {dimension_numbers = #tpu.dot_dimension_numbers<[1], [0], [0], [1], [0, 0, 1, 1], [], []>} : vector<64x64xf32>, vector<64x128xf32>, vector<64x128xf32> -> vector<64x128xf32>
    %130 = arith.addf %125, %129 : vector<64x128xf32>
    %c0_146 = arith.constant 0 : index
    %c0_147 = arith.constant 0 : index
    %131 = vector.load %arg12[%c0_146, %c0_147] : memref<64x128xf32, #tpu.memory_space<vmem>>, vector<64x128xf32>
    tpu.vector_store %arg12[%c0_146, %c0_147], %130 {strides = array<i32>} : memref<64x128xf32, #tpu.memory_space<vmem>>, vector<64x128xf32>,
    %c0_148 = arith.constant 0 : index
    %c0_149 = arith.constant 0 : index
    %132 = vector.load %arg12[%c0_148, %c0_149] : memref<64x128xf32, #tpu.memory_space<vmem>>, vector<64x128xf32>
    %c1_150 = arith.constant 1 : index
    %c2_151 = arith.constant 2 : index
    %c0_152 = arith.constant 0 : index
    %c0_153 = arith.constant 0 : index
    %133 = vector.load %arg4[%c1_150, %c2_151, %c0_152, %c0_153] : memref<5x9x64x64xf32, #tpu.memory_space<vmem>>, vector<1x1x64x64xf32>
    %134 = vector.shape_cast %133 : vector<1x1x64x64xf32> to vector<64x64xf32>
    %c0_154 = arith.constant 0 : index
    %c256_155 = arith.constant 256 : index
    %135 = vector.load %arg11[%c0_154, %c256_155] : memref<64x1152xf32, #tpu.memory_space<vmem>>, vector<64x128xf32>
    %cst_156 = arith.constant dense<0.000000e+00> : vector<64x128xf32>
    %136 = tpu.matmul %134, %135, %cst_156 {dimension_numbers = #tpu.dot_dimension_numbers<[1], [0], [0], [1], [0, 0, 1, 1], [], []>} : vector<64x64xf32>, vector<64x128xf32>, vector<64x128xf32> -> vector<64x128xf32>
    %137 = arith.addf %132, %136 : vector<64x128xf32>
    %c0_157 = arith.constant 0 : index
    %c0_158 = arith.constant 0 : index
    %138 = vector.load %arg12[%c0_157, %c0_158] : memref<64x128xf32, #tpu.memory_space<vmem>>, vector<64x128xf32>
    tpu.vector_store %arg12[%c0_157, %c0_158], %137 {strides = array<i32>} : memref<64x128xf32, #tpu.memory_space<vmem>>, vector<64x128xf32>,
    %c0_159 = arith.constant 0 : index
    %c0_160 = arith.constant 0 : index
    %139 = vector.load %arg12[%c0_159, %c0_160] : memref<64x128xf32, #tpu.memory_space<vmem>>, vector<64x128xf32>
    %c1_161 = arith.constant 1 : index
    %c3_162 = arith.constant 3 : index
    %c0_163 = arith.constant 0 : index
    %c0_164 = arith.constant 0 : index
    %140 = vector.load %arg4[%c1_161, %c3_162, %c0_163, %c0_164] : memref<5x9x64x64xf32, #tpu.memory_space<vmem>>, vector<1x1x64x64xf32>
    %141 = vector.shape_cast %140 : vector<1x1x64x64xf32> to vector<64x64xf32>
    %c0_165 = arith.constant 0 : index
    %c384_166 = arith.constant 384 : index
    %142 = vector.load %arg11[%c0_165, %c384_166] : memref<64x1152xf32, #tpu.memory_space<vmem>>, vector<64x128xf32>
    %cst_167 = arith.constant dense<0.000000e+00> : vector<64x128xf32>
    %143 = tpu.matmul %141, %142, %cst_167 {dimension_numbers = #tpu.dot_dimension_numbers<[1], [0], [0], [1], [0, 0, 1, 1], [], []>} : vector<64x64xf32>, vector<64x128xf32>, vector<64x128xf32> -> vector<64x128xf32>
    %144 = arith.addf %139, %143 : vector<64x128xf32>
    %c0_168 = arith.constant 0 : index
    %c0_169 = arith.constant 0 : index
    %145 = vector.load %arg12[%c0_168, %c0_169] : memref<64x128xf32, #tpu.memory_space<vmem>>, vector<64x128xf32>
    tpu.vector_store %arg12[%c0_168, %c0_169], %144 {strides = array<i32>} : memref<64x128xf32, #tpu.memory_space<vmem>>, vector<64x128xf32>,
    %c0_170 = arith.constant 0 : index
    %c0_171 = arith.constant 0 : index
    %146 = vector.load %arg12[%c0_170, %c0_171] : memref<64x128xf32, #tpu.memory_space<vmem>>, vector<64x128xf32>
    %c1_172 = arith.constant 1 : index
    %c4_173 = arith.constant 4 : index
    %c0_174 = arith.constant 0 : index
    %c0_175 = arith.constant 0 : index
    %147 = vector.load %arg4[%c1_172, %c4_173, %c0_174, %c0_175] : memref<5x9x64x64xf32, #tpu.memory_space<vmem>>, vector<1x1x64x64xf32>
    %148 = vector.shape_cast %147 : vector<1x1x64x64xf32> to vector<64x64xf32>
    %c0_176 = arith.constant 0 : index
    %c512_177 = arith.constant 512 : index
    %149 = vector.load %arg11[%c0_176, %c512_177] : memref<64x1152xf32, #tpu.memory_space<vmem>>, vector<64x128xf32>
    %cst_178 = arith.constant dense<0.000000e+00> : vector<64x128xf32>
    %150 = tpu.matmul %148, %149, %cst_178 {dimension_numbers = #tpu.dot_dimension_numbers<[1], [0], [0], [1], [0, 0, 1, 1], [], []>} : vector<64x64xf32>, vector<64x128xf32>, vector<64x128xf32> -> vector<64x128xf32>
    %151 = arith.addf %146, %150 : vector<64x128xf32>
    %c0_179 = arith.constant 0 : index
    %c0_180 = arith.constant 0 : index
    %152 = vector.load %arg12[%c0_179, %c0_180] : memref<64x128xf32, #tpu.memory_space<vmem>>, vector<64x128xf32>
    tpu.vector_store %arg12[%c0_179, %c0_180], %151 {strides = array<i32>} : memref<64x128xf32, #tpu.memory_space<vmem>>, vector<64x128xf32>,
    %c0_181 = arith.constant 0 : index
    %c0_182 = arith.constant 0 : index
    %153 = vector.load %arg12[%c0_181, %c0_182] : memref<64x128xf32, #tpu.memory_space<vmem>>, vector<64x128xf32>
    %c1_183 = arith.constant 1 : index
    %c5_184 = arith.constant 5 : index
    %c0_185 = arith.constant 0 : index
    %c0_186 = arith.constant 0 : index
    %154 = vector.load %arg4[%c1_183, %c5_184, %c0_185, %c0_186] : memref<5x9x64x64xf32, #tpu.memory_space<vmem>>, vector<1x1x64x64xf32>
    %155 = vector.shape_cast %154 : vector<1x1x64x64xf32> to vector<64x64xf32>
    %c0_187 = arith.constant 0 : index
    %c640_188 = arith.constant 640 : index
    %156 = vector.load %arg11[%c0_187, %c640_188] : memref<64x1152xf32, #tpu.memory_space<vmem>>, vector<64x128xf32>
    %cst_189 = arith.constant dense<0.000000e+00> : vector<64x128xf32>
    %157 = tpu.matmul %155, %156, %cst_189 {dimension_numbers = #tpu.dot_dimension_numbers<[1], [0], [0], [1], [0, 0, 1, 1], [], []>} : vector<64x64xf32>, vector<64x128xf32>, vector<64x128xf32> -> vector<64x128xf32>
    %158 = arith.addf %153, %157 : vector<64x128xf32>
    %c0_190 = arith.constant 0 : index
    %c0_191 = arith.constant 0 : index
    %159 = vector.load %arg12[%c0_190, %c0_191] : memref<64x128xf32, #tpu.memory_space<vmem>>, vector<64x128xf32>
    tpu.vector_store %arg12[%c0_190, %c0_191], %158 {strides = array<i32>} : memref<64x128xf32, #tpu.memory_space<vmem>>, vector<64x128xf32>,
    %c0_192 = arith.constant 0 : index
    %c0_193 = arith.constant 0 : index
    %160 = vector.load %arg12[%c0_192, %c0_193] : memref<64x128xf32, #tpu.memory_space<vmem>>, vector<64x128xf32>
    %c1_194 = arith.constant 1 : index
    %c6_195 = arith.constant 6 : index
    %c0_196 = arith.constant 0 : index
    %c0_197 = arith.constant 0 : index
    %161 = vector.load %arg4[%c1_194, %c6_195, %c0_196, %c0_197] : memref<5x9x64x64xf32, #tpu.memory_space<vmem>>, vector<1x1x64x64xf32>
    %162 = vector.shape_cast %161 : vector<1x1x64x64xf32> to vector<64x64xf32>
    %c0_198 = arith.constant 0 : index
    %c768_199 = arith.constant 768 : index
    %163 = vector.load %arg11[%c0_198, %c768_199] : memref<64x1152xf32, #tpu.memory_space<vmem>>, vector<64x128xf32>
    %cst_200 = arith.constant dense<0.000000e+00> : vector<64x128xf32>
    %164 = tpu.matmul %162, %163, %cst_200 {dimension_numbers = #tpu.dot_dimension_numbers<[1], [0], [0], [1], [0, 0, 1, 1], [], []>} : vector<64x64xf32>, vector<64x128xf32>, vector<64x128xf32> -> vector<64x128xf32>
    %165 = arith.addf %160, %164 : vector<64x128xf32>
    %c0_201 = arith.constant 0 : index
    %c0_202 = arith.constant 0 : index
    %166 = vector.load %arg12[%c0_201, %c0_202] : memref<64x128xf32, #tpu.memory_space<vmem>>, vector<64x128xf32>
    tpu.vector_store %arg12[%c0_201, %c0_202], %165 {strides = array<i32>} : memref<64x128xf32, #tpu.memory_space<vmem>>, vector<64x128xf32>,
    %c0_203 = arith.constant 0 : index
    %c0_204 = arith.constant 0 : index
    %167 = vector.load %arg12[%c0_203, %c0_204] : memref<64x128xf32, #tpu.memory_space<vmem>>, vector<64x128xf32>
    %c1_205 = arith.constant 1 : index
    %c7_206 = arith.constant 7 : index
    %c0_207 = arith.constant 0 : index
    %c0_208 = arith.constant 0 : index
    %168 = vector.load %arg4[%c1_205, %c7_206, %c0_207, %c0_208] : memref<5x9x64x64xf32, #tpu.memory_space<vmem>>, vector<1x1x64x64xf32>
    %169 = vector.shape_cast %168 : vector<1x1x64x64xf32> to vector<64x64xf32>
    %c0_209 = arith.constant 0 : index
    %c896_210 = arith.constant 896 : index
    %170 = vector.load %arg11[%c0_209, %c896_210] : memref<64x1152xf32, #tpu.memory_space<vmem>>, vector<64x128xf32>
    %cst_211 = arith.constant dense<0.000000e+00> : vector<64x128xf32>
    %171 = tpu.matmul %169, %170, %cst_211 {dimension_numbers = #tpu.dot_dimension_numbers<[1], [0], [0], [1], [0, 0, 1, 1], [], []>} : vector<64x64xf32>, vector<64x128xf32>, vector<64x128xf32> -> vector<64x128xf32>
    %172 = arith.addf %167, %171 : vector<64x128xf32>
    %c0_212 = arith.constant 0 : index
    %c0_213 = arith.constant 0 : index
    %173 = vector.load %arg12[%c0_212, %c0_213] : memref<64x128xf32, #tpu.memory_space<vmem>>, vector<64x128xf32>
    tpu.vector_store %arg12[%c0_212, %c0_213], %172 {strides = array<i32>} : memref<64x128xf32, #tpu.memory_space<vmem>>, vector<64x128xf32>,
    %c0_214 = arith.constant 0 : index
    %c0_215 = arith.constant 0 : index
    %174 = vector.load %arg12[%c0_214, %c0_215] : memref<64x128xf32, #tpu.memory_space<vmem>>, vector<64x128xf32>
    %c1_216 = arith.constant 1 : index
    %c8_217 = arith.constant 8 : index
    %c0_218 = arith.constant 0 : index
    %c0_219 = arith.constant 0 : index
    %175 = vector.load %arg4[%c1_216, %c8_217, %c0_218, %c0_219] : memref<5x9x64x64xf32, #tpu.memory_space<vmem>>, vector<1x1x64x64xf32>
    %176 = vector.shape_cast %175 : vector<1x1x64x64xf32> to vector<64x64xf32>
    %c0_220 = arith.constant 0 : index
    %c1024_221 = arith.constant 1024 : index
    %177 = vector.load %arg11[%c0_220, %c1024_221] : memref<64x1152xf32, #tpu.memory_space<vmem>>, vector<64x128xf32>
    %cst_222 = arith.constant dense<0.000000e+00> : vector<64x128xf32>
    %178 = tpu.matmul %176, %177, %cst_222 {dimension_numbers = #tpu.dot_dimension_numbers<[1], [0], [0], [1], [0, 0, 1, 1], [], []>} : vector<64x64xf32>, vector<64x128xf32>, vector<64x128xf32> -> vector<64x128xf32>
    %179 = arith.addf %174, %178 : vector<64x128xf32>
    %c0_223 = arith.constant 0 : index
    %c0_224 = arith.constant 0 : index
    %180 = vector.load %arg12[%c0_223, %c0_224] : memref<64x128xf32, #tpu.memory_space<vmem>>, vector<64x128xf32>
    tpu.vector_store %arg12[%c0_223, %c0_224], %179 {strides = array<i32>} : memref<64x128xf32, #tpu.memory_space<vmem>>, vector<64x128xf32>,
    %c0_225 = arith.constant 0 : index
    %c0_226 = arith.constant 0 : index
    %181 = vector.load %arg12[%c0_225, %c0_226] : memref<64x128xf32, #tpu.memory_space<vmem>>, vector<64x128xf32>
    %182 = vector.extract_strided_slice %3 {offsets = [1, 0], sizes = [1, 128], strides = [1, 1]} : vector<8x128xf32> to vector<1x128xf32>
    %183 = vector.broadcast %182 : vector<1x128xf32> to vector<64x128xf32>
    %184 = arith.mulf %181, %183 : vector<64x128xf32>
    %c1_227 = arith.constant 1 : index
    %c0_228 = arith.constant 0 : index
    %c0_229 = arith.constant 0 : index
    %185 = vector.load %arg6[%c1_227, %c0_228, %c0_229] : memref<5x64x128xf32, #tpu.memory_space<vmem>>, vector<1x64x128xf32>
    %186 = vector.shape_cast %185 : vector<1x64x128xf32> to vector<64x128xf32>
    %187 = arith.addf %184, %186 : vector<64x128xf32>
    %cst_230 = arith.constant 0.000000e+00 : f32
    %188 = vector.broadcast %cst_230 : f32 to vector<64x128xf32>
    %189 = arith.cmpf oge, %187, %188 : vector<64x128xf32>
    %cst_231 = arith.constant 2.000000e-01 : f32
    %190 = vector.broadcast %cst_231 : f32 to vector<64x128xf32>
    %191 = arith.mulf %190, %187 : vector<64x128xf32>
    %192 = arith.select %189, %187, %191 : vector<64x128xi1>, vector<64x128xf32>
    %cst_232 = arith.constant 1.41421354 : f32
    %193 = vector.broadcast %cst_232 : f32 to vector<64x128xf32>
    %194 = arith.mulf %192, %193 : vector<64x128xf32>
    %cst_233 = arith.constant -2.560000e+02 : f32
    %cst_234 = arith.constant 2.560000e+02 : f32
    %195 = vector.broadcast %cst_233 : f32 to vector<64x128xf32>
    %196 = arith.maximumf %195, %194 : vector<64x128xf32>
    %197 = vector.broadcast %cst_234 : f32 to vector<64x128xf32>
    %198 = arith.minimumf %197, %196 : vector<64x128xf32>
    %c0_235 = arith.constant 0 : index
    %c0_236 = arith.constant 0 : index
    %199 = vector.load %arg9[%c0_235, %c0_236] : memref<64x64xf32, #tpu.memory_space<vmem>>, vector<64x64xf32>
    %cst_237 = arith.constant dense<0.000000e+00> : vector<64x128xf32>
    %200 = tpu.matmul %199, %108, %cst_237 {dimension_numbers = #tpu.dot_dimension_numbers<[1], [0], [0], [1], [0, 0, 1, 1], [], []>} : vector<64x64xf32>, vector<64x128xf32>, vector<64x128xf32> -> vector<64x128xf32>
    %201 = vector.extract_strided_slice %1 {offsets = [2, 0], sizes = [1, 128], strides = [1, 1]} : vector<8x128xf32> to vector<1x128xf32>
    %202 = vector.broadcast %201 : vector<1x128xf32> to vector<64x128xf32>
    %203 = arith.mulf %198, %202 : vector<64x128xf32>
    %c2_238 = arith.constant 2 : index
    %c0_239 = arith.constant 0 : index
    %c0_240 = arith.constant 0 : index
    %204 = vector.load %arg5[%c2_238, %c0_239, %c0_240] : memref<5x128x1152xf32, #tpu.memory_space<vmem>>, vector<1x128x1152xf32>
    %205 = vector.shape_cast %204 : vector<1x128x1152xf32> to vector<128x1152xf32>
    %cst_241 = arith.constant dense<0.000000e+00> : vector<64x1152xf32>
    %206 = tpu.matmul %203, %205, %cst_241 {dimension_numbers = #tpu.dot_dimension_numbers<[1], [0], [0], [1], [0, 0, 1, 1], [], []>} : vector<64x128xf32>, vector<128x1152xf32>, vector<64x1152xf32> -> vector<64x1152xf32>
    %c0_242 = arith.constant 0 : index
    %c0_243 = arith.constant 0 : index
    %207 = vector.load %arg11[%c0_242, %c0_243] : memref<64x1152xf32, #tpu.memory_space<vmem>>, vector<64x1152xf32>
    tpu.vector_store %arg11[%c0_242, %c0_243], %206 {strides = array<i32>} : memref<64x1152xf32, #tpu.memory_space<vmem>>, vector<64x1152xf32>,
    %cst_244 = arith.constant 0.000000e+00 : f32
    %208 = vector.broadcast %cst_244 : f32 to vector<64x128xf32>
    %c0_245 = arith.constant 0 : index
    %c0_246 = arith.constant 0 : index
    %209 = vector.load %arg12[%c0_245, %c0_246] : memref<64x128xf32, #tpu.memory_space<vmem>>, vector<64x128xf32>
    tpu.vector_store %arg12[%c0_245, %c0_246], %208 {strides = array<i32>} : memref<64x128xf32, #tpu.memory_space<vmem>>, vector<64x128xf32>,
    %c0_247 = arith.constant 0 : index
    %c0_248 = arith.constant 0 : index
    %210 = vector.load %arg12[%c0_247, %c0_248] : memref<64x128xf32, #tpu.memory_space<vmem>>, vector<64x128xf32>
    %c2_249 = arith.constant 2 : index
    %c0_250 = arith.constant 0 : index
    %c0_251 = arith.constant 0 : index
    %c0_252 = arith.constant 0 : index
    %211 = vector.load %arg4[%c2_249, %c0_250, %c0_251, %c0_252] : memref<5x9x64x64xf32, #tpu.memory_space<vmem>>, vector<1x1x64x64xf32>
    %212 = vector.shape_cast %211 : vector<1x1x64x64xf32> to vector<64x64xf32>
    %c0_253 = arith.constant 0 : index
    %c0_254 = arith.constant 0 : index
    %213 = vector.load %arg11[%c0_253, %c0_254] : memref<64x1152xf32, #tpu.memory_space<vmem>>, vector<64x128xf32>
    %cst_255 = arith.constant dense<0.000000e+00> : vector<64x128xf32>
    %214 = tpu.matmul %212, %213, %cst_255 {dimension_numbers = #tpu.dot_dimension_numbers<[1], [0], [0], [1], [0, 0, 1, 1], [], []>} : vector<64x64xf32>, vector<64x128xf32>, vector<64x128xf32> -> vector<64x128xf32>
    %215 = arith.addf %210, %214 : vector<64x128xf32>
    %c0_256 = arith.constant 0 : index
    %c0_257 = arith.constant 0 : index
    %216 = vector.load %arg12[%c0_256, %c0_257] : memref<64x128xf32, #tpu.memory_space<vmem>>, vector<64x128xf32>
    tpu.vector_store %arg12[%c0_256, %c0_257], %215 {strides = array<i32>} : memref<64x128xf32, #tpu.memory_space<vmem>>, vector<64x128xf32>,
    %c0_258 = arith.constant 0 : index
    %c0_259 = arith.constant 0 : index
    %217 = vector.load %arg12[%c0_258, %c0_259] : memref<64x128xf32, #tpu.memory_space<vmem>>, vector<64x128xf32>
    %c2_260 = arith.constant 2 : index
    %c1_261 = arith.constant 1 : index
    %c0_262 = arith.constant 0 : index
    %c0_263 = arith.constant 0 : index
    %218 = vector.load %arg4[%c2_260, %c1_261, %c0_262, %c0_263] : memref<5x9x64x64xf32, #tpu.memory_space<vmem>>, vector<1x1x64x64xf32>
    %219 = vector.shape_cast %218 : vector<1x1x64x64xf32> to vector<64x64xf32>
    %c0_264 = arith.constant 0 : index
    %c128_265 = arith.constant 128 : index
    %220 = vector.load %arg11[%c0_264, %c128_265] : memref<64x1152xf32, #tpu.memory_space<vmem>>, vector<64x128xf32>
    %cst_266 = arith.constant dense<0.000000e+00> : vector<64x128xf32>
    %221 = tpu.matmul %219, %220, %cst_266 {dimension_numbers = #tpu.dot_dimension_numbers<[1], [0], [0], [1], [0, 0, 1, 1], [], []>} : vector<64x64xf32>, vector<64x128xf32>, vector<64x128xf32> -> vector<64x128xf32>
    %222 = arith.addf %217, %221 : vector<64x128xf32>
    %c0_267 = arith.constant 0 : index
    %c0_268 = arith.constant 0 : index
    %223 = vector.load %arg12[%c0_267, %c0_268] : memref<64x128xf32, #tpu.memory_space<vmem>>, vector<64x128xf32>
    tpu.vector_store %arg12[%c0_267, %c0_268], %222 {strides = array<i32>} : memref<64x128xf32, #tpu.memory_space<vmem>>, vector<64x128xf32>,
    %c0_269 = arith.constant 0 : index
    %c0_270 = arith.constant 0 : index
    %224 = vector.load %arg12[%c0_269, %c0_270] : memref<64x128xf32, #tpu.memory_space<vmem>>, vector<64x128xf32>
    %c2_271 = arith.constant 2 : index
    %c2_272 = arith.constant 2 : index
    %c0_273 = arith.constant 0 : index
    %c0_274 = arith.constant 0 : index
    %225 = vector.load %arg4[%c2_271, %c2_272, %c0_273, %c0_274] : memref<5x9x64x64xf32, #tpu.memory_space<vmem>>, vector<1x1x64x64xf32>
    %226 = vector.shape_cast %225 : vector<1x1x64x64xf32> to vector<64x64xf32>
    %c0_275 = arith.constant 0 : index
    %c256_276 = arith.constant 256 : index
    %227 = vector.load %arg11[%c0_275, %c256_276] : memref<64x1152xf32, #tpu.memory_space<vmem>>, vector<64x128xf32>
    %cst_277 = arith.constant dense<0.000000e+00> : vector<64x128xf32>
    %228 = tpu.matmul %226, %227, %cst_277 {dimension_numbers = #tpu.dot_dimension_numbers<[1], [0], [0], [1], [0, 0, 1, 1], [], []>} : vector<64x64xf32>, vector<64x128xf32>, vector<64x128xf32> -> vector<64x128xf32>
    %229 = arith.addf %224, %228 : vector<64x128xf32>
    %c0_278 = arith.constant 0 : index
    %c0_279 = arith.constant 0 : index
    %230 = vector.load %arg12[%c0_278, %c0_279] : memref<64x128xf32, #tpu.memory_space<vmem>>, vector<64x128xf32>
    tpu.vector_store %arg12[%c0_278, %c0_279], %229 {strides = array<i32>} : memref<64x128xf32, #tpu.memory_space<vmem>>, vector<64x128xf32>,
    %c0_280 = arith.constant 0 : index
    %c0_281 = arith.constant 0 : index
    %231 = vector.load %arg12[%c0_280, %c0_281] : memref<64x128xf32, #tpu.memory_space<vmem>>, vector<64x128xf32>
    %c2_282 = arith.constant 2 : index
    %c3_283 = arith.constant 3 : index
    %c0_284 = arith.constant 0 : index
    %c0_285 = arith.constant 0 : index
    %232 = vector.load %arg4[%c2_282, %c3_283, %c0_284, %c0_285] : memref<5x9x64x64xf32, #tpu.memory_space<vmem>>, vector<1x1x64x64xf32>
    %233 = vector.shape_cast %232 : vector<1x1x64x64xf32> to vector<64x64xf32>
    %c0_286 = arith.constant 0 : index
    %c384_287 = arith.constant 384 : index
    %234 = vector.load %arg11[%c0_286, %c384_287] : memref<64x1152xf32, #tpu.memory_space<vmem>>, vector<64x128xf32>
    %cst_288 = arith.constant dense<0.000000e+00> : vector<64x128xf32>
    %235 = tpu.matmul %233, %234, %cst_288 {dimension_numbers = #tpu.dot_dimension_numbers<[1], [0], [0], [1], [0, 0, 1, 1], [], []>} : vector<64x64xf32>, vector<64x128xf32>, vector<64x128xf32> -> vector<64x128xf32>
    %236 = arith.addf %231, %235 : vector<64x128xf32>
    %c0_289 = arith.constant 0 : index
    %c0_290 = arith.constant 0 : index
    %237 = vector.load %arg12[%c0_289, %c0_290] : memref<64x128xf32, #tpu.memory_space<vmem>>, vector<64x128xf32>
    tpu.vector_store %arg12[%c0_289, %c0_290], %236 {strides = array<i32>} : memref<64x128xf32, #tpu.memory_space<vmem>>, vector<64x128xf32>,
    %c0_291 = arith.constant 0 : index
    %c0_292 = arith.constant 0 : index
    %238 = vector.load %arg12[%c0_291, %c0_292] : memref<64x128xf32, #tpu.memory_space<vmem>>, vector<64x128xf32>
    %c2_293 = arith.constant 2 : index
    %c4_294 = arith.constant 4 : index
    %c0_295 = arith.constant 0 : index
    %c0_296 = arith.constant 0 : index
    %239 = vector.load %arg4[%c2_293, %c4_294, %c0_295, %c0_296] : memref<5x9x64x64xf32, #tpu.memory_space<vmem>>, vector<1x1x64x64xf32>
    %240 = vector.shape_cast %239 : vector<1x1x64x64xf32> to vector<64x64xf32>
    %c0_297 = arith.constant 0 : index
    %c512_298 = arith.constant 512 : index
    %241 = vector.load %arg11[%c0_297, %c512_298] : memref<64x1152xf32, #tpu.memory_space<vmem>>, vector<64x128xf32>
    %cst_299 = arith.constant dense<0.000000e+00> : vector<64x128xf32>
    %242 = tpu.matmul %240, %241, %cst_299 {dimension_numbers = #tpu.dot_dimension_numbers<[1], [0], [0], [1], [0, 0, 1, 1], [], []>} : vector<64x64xf32>, vector<64x128xf32>, vector<64x128xf32> -> vector<64x128xf32>
    %243 = arith.addf %238, %242 : vector<64x128xf32>
    %c0_300 = arith.constant 0 : index
    %c0_301 = arith.constant 0 : index
    %244 = vector.load %arg12[%c0_300, %c0_301] : memref<64x128xf32, #tpu.memory_space<vmem>>, vector<64x128xf32>
    tpu.vector_store %arg12[%c0_300, %c0_301], %243 {strides = array<i32>} : memref<64x128xf32, #tpu.memory_space<vmem>>, vector<64x128xf32>,
    %c0_302 = arith.constant 0 : index
    %c0_303 = arith.constant 0 : index
    %245 = vector.load %arg12[%c0_302, %c0_303] : memref<64x128xf32, #tpu.memory_space<vmem>>, vector<64x128xf32>
    %c2_304 = arith.constant 2 : index
    %c5_305 = arith.constant 5 : index
    %c0_306 = arith.constant 0 : index
    %c0_307 = arith.constant 0 : index
    %246 = vector.load %arg4[%c2_304, %c5_305, %c0_306, %c0_307] : memref<5x9x64x64xf32, #tpu.memory_space<vmem>>, vector<1x1x64x64xf32>
    %247 = vector.shape_cast %246 : vector<1x1x64x64xf32> to vector<64x64xf32>
    %c0_308 = arith.constant 0 : index
    %c640_309 = arith.constant 640 : index
    %248 = vector.load %arg11[%c0_308, %c640_309] : memref<64x1152xf32, #tpu.memory_space<vmem>>, vector<64x128xf32>
    %cst_310 = arith.constant dense<0.000000e+00> : vector<64x128xf32>
    %249 = tpu.matmul %247, %248, %cst_310 {dimension_numbers = #tpu.dot_dimension_numbers<[1], [0], [0], [1], [0, 0, 1, 1], [], []>} : vector<64x64xf32>, vector<64x128xf32>, vector<64x128xf32> -> vector<64x128xf32>
    %250 = arith.addf %245, %249 : vector<64x128xf32>
    %c0_311 = arith.constant 0 : index
    %c0_312 = arith.constant 0 : index
    %251 = vector.load %arg12[%c0_311, %c0_312] : memref<64x128xf32, #tpu.memory_space<vmem>>, vector<64x128xf32>
    tpu.vector_store %arg12[%c0_311, %c0_312], %250 {strides = array<i32>} : memref<64x128xf32, #tpu.memory_space<vmem>>, vector<64x128xf32>,
    %c0_313 = arith.constant 0 : index
    %c0_314 = arith.constant 0 : index
    %252 = vector.load %arg12[%c0_313, %c0_314] : memref<64x128xf32, #tpu.memory_space<vmem>>, vector<64x128xf32>
    %c2_315 = arith.constant 2 : index
    %c6_316 = arith.constant 6 : index
    %c0_317 = arith.constant 0 : index
    %c0_318 = arith.constant 0 : index
    %253 = vector.load %arg4[%c2_315, %c6_316, %c0_317, %c0_318] : memref<5x9x64x64xf32, #tpu.memory_space<vmem>>, vector<1x1x64x64xf32>
    %254 = vector.shape_cast %253 : vector<1x1x64x64xf32> to vector<64x64xf32>
    %c0_319 = arith.constant 0 : index
    %c768_320 = arith.constant 768 : index
    %255 = vector.load %arg11[%c0_319, %c768_320] : memref<64x1152xf32, #tpu.memory_space<vmem>>, vector<64x128xf32>
    %cst_321 = arith.constant dense<0.000000e+00> : vector<64x128xf32>
    %256 = tpu.matmul %254, %255, %cst_321 {dimension_numbers = #tpu.dot_dimension_numbers<[1], [0], [0], [1], [0, 0, 1, 1], [], []>} : vector<64x64xf32>, vector<64x128xf32>, vector<64x128xf32> -> vector<64x128xf32>
    %257 = arith.addf %252, %256 : vector<64x128xf32>
    %c0_322 = arith.constant 0 : index
    %c0_323 = arith.constant 0 : index
    %258 = vector.load %arg12[%c0_322, %c0_323] : memref<64x128xf32, #tpu.memory_space<vmem>>, vector<64x128xf32>
    tpu.vector_store %arg12[%c0_322, %c0_323], %257 {strides = array<i32>} : memref<64x128xf32, #tpu.memory_space<vmem>>, vector<64x128xf32>,
    %c0_324 = arith.constant 0 : index
    %c0_325 = arith.constant 0 : index
    %259 = vector.load %arg12[%c0_324, %c0_325] : memref<64x128xf32, #tpu.memory_space<vmem>>, vector<64x128xf32>
    %c2_326 = arith.constant 2 : index
    %c7_327 = arith.constant 7 : index
    %c0_328 = arith.constant 0 : index
    %c0_329 = arith.constant 0 : index
    %260 = vector.load %arg4[%c2_326, %c7_327, %c0_328, %c0_329] : memref<5x9x64x64xf32, #tpu.memory_space<vmem>>, vector<1x1x64x64xf32>
    %261 = vector.shape_cast %260 : vector<1x1x64x64xf32> to vector<64x64xf32>
    %c0_330 = arith.constant 0 : index
    %c896_331 = arith.constant 896 : index
    %262 = vector.load %arg11[%c0_330, %c896_331] : memref<64x1152xf32, #tpu.memory_space<vmem>>, vector<64x128xf32>
    %cst_332 = arith.constant dense<0.000000e+00> : vector<64x128xf32>
    %263 = tpu.matmul %261, %262, %cst_332 {dimension_numbers = #tpu.dot_dimension_numbers<[1], [0], [0], [1], [0, 0, 1, 1], [], []>} : vector<64x64xf32>, vector<64x128xf32>, vector<64x128xf32> -> vector<64x128xf32>
    %264 = arith.addf %259, %263 : vector<64x128xf32>
    %c0_333 = arith.constant 0 : index
    %c0_334 = arith.constant 0 : index
    %265 = vector.load %arg12[%c0_333, %c0_334] : memref<64x128xf32, #tpu.memory_space<vmem>>, vector<64x128xf32>
    tpu.vector_store %arg12[%c0_333, %c0_334], %264 {strides = array<i32>} : memref<64x128xf32, #tpu.memory_space<vmem>>, vector<64x128xf32>,
    %c0_335 = arith.constant 0 : index
    %c0_336 = arith.constant 0 : index
    %266 = vector.load %arg12[%c0_335, %c0_336] : memref<64x128xf32, #tpu.memory_space<vmem>>, vector<64x128xf32>
    %c2_337 = arith.constant 2 : index
    %c8_338 = arith.constant 8 : index
    %c0_339 = arith.constant 0 : index
    %c0_340 = arith.constant 0 : index
    %267 = vector.load %arg4[%c2_337, %c8_338, %c0_339, %c0_340] : memref<5x9x64x64xf32, #tpu.memory_space<vmem>>, vector<1x1x64x64xf32>
    %268 = vector.shape_cast %267 : vector<1x1x64x64xf32> to vector<64x64xf32>
    %c0_341 = arith.constant 0 : index
    %c1024_342 = arith.constant 1024 : index
    %269 = vector.load %arg11[%c0_341, %c1024_342] : memref<64x1152xf32, #tpu.memory_space<vmem>>, vector<64x128xf32>
    %cst_343 = arith.constant dense<0.000000e+00> : vector<64x128xf32>
    %270 = tpu.matmul %268, %269, %cst_343 {dimension_numbers = #tpu.dot_dimension_numbers<[1], [0], [0], [1], [0, 0, 1, 1], [], []>} : vector<64x64xf32>, vector<64x128xf32>, vector<64x128xf32> -> vector<64x128xf32>
    %271 = arith.addf %266, %270 : vector<64x128xf32>
    %c0_344 = arith.constant 0 : index
    %c0_345 = arith.constant 0 : index
    %272 = vector.load %arg12[%c0_344, %c0_345] : memref<64x128xf32, #tpu.memory_space<vmem>>, vector<64x128xf32>
    tpu.vector_store %arg12[%c0_344, %c0_345], %271 {strides = array<i32>} : memref<64x128xf32, #tpu.memory_space<vmem>>, vector<64x128xf32>,
    %c0_346 = arith.constant 0 : index
    %c0_347 = arith.constant 0 : index
    %273 = vector.load %arg12[%c0_346, %c0_347] : memref<64x128xf32, #tpu.memory_space<vmem>>, vector<64x128xf32>
    %274 = vector.extract_strided_slice %3 {offsets = [2, 0], sizes = [1, 128], strides = [1, 1]} : vector<8x128xf32> to vector<1x128xf32>
    %275 = vector.broadcast %274 : vector<1x128xf32> to vector<64x128xf32>
    %276 = arith.mulf %273, %275 : vector<64x128xf32>
    %c2_348 = arith.constant 2 : index
    %c0_349 = arith.constant 0 : index
    %c0_350 = arith.constant 0 : index
    %277 = vector.load %arg6[%c2_348, %c0_349, %c0_350] : memref<5x64x128xf32, #tpu.memory_space<vmem>>, vector<1x64x128xf32>
    %278 = vector.shape_cast %277 : vector<1x64x128xf32> to vector<64x128xf32>
    %279 = arith.addf %276, %278 : vector<64x128xf32>
    %cst_351 = arith.constant 0.000000e+00 : f32
    %280 = vector.broadcast %cst_351 : f32 to vector<64x128xf32>
    %281 = arith.cmpf oge, %279, %280 : vector<64x128xf32>
    %cst_352 = arith.constant 2.000000e-01 : f32
    %282 = vector.broadcast %cst_352 : f32 to vector<64x128xf32>
    %283 = arith.mulf %282, %279 : vector<64x128xf32>
    %284 = arith.select %281, %279, %283 : vector<64x128xi1>, vector<64x128xf32>
    %cst_353 = arith.constant 1.41421354 : f32
    %285 = vector.broadcast %cst_353 : f32 to vector<64x128xf32>
    %286 = arith.mulf %284, %285 : vector<64x128xf32>
    %cst_354 = arith.constant -2.560000e+02 : f32
    %cst_355 = arith.constant 2.560000e+02 : f32
    %287 = vector.broadcast %cst_354 : f32 to vector<64x128xf32>
    %288 = arith.maximumf %287, %286 : vector<64x128xf32>
    %289 = vector.broadcast %cst_355 : f32 to vector<64x128xf32>
    %290 = arith.minimumf %289, %288 : vector<64x128xf32>
    %291 = vector.extract_strided_slice %1 {offsets = [6, 0], sizes = [1, 128], strides = [1, 1]} : vector<8x128xf32> to vector<1x128xf32>
    %292 = vector.broadcast %291 : vector<1x128xf32> to vector<64x128xf32>
    %293 = arith.mulf %290, %292 : vector<64x128xf32>
    %c1_356 = arith.constant 1 : index
    %c0_357 = arith.constant 0 : index
    %c0_358 = arith.constant 0 : index
    %294 = vector.load %arg7[%c1_356, %c0_357, %c0_358] : memref<3x128x128xf32, #tpu.memory_space<vmem>>, vector<1x128x128xf32>
    %295 = vector.shape_cast %294 : vector<1x128x128xf32> to vector<128x128xf32>
    %cst_359 = arith.constant dense<0.000000e+00> : vector<64x128xf32>
    %296 = tpu.matmul %293, %295, %cst_359 {dimension_numbers = #tpu.dot_dimension_numbers<[1], [0], [0], [1], [0, 0, 1, 1], [], []>} : vector<64x128xf32>, vector<128x128xf32>, vector<64x128xf32> -> vector<64x128xf32>
    %c1_360 = arith.constant 1 : index
    %c0_361 = arith.constant 0 : index
    %c0_362 = arith.constant 0 : index
    %297 = vector.load %arg8[%c1_360, %c0_361, %c0_362] : memref<3x1x128xf32, #tpu.memory_space<vmem>>, vector<1x1x128xf32>
    %298 = vector.shape_cast %297 : vector<1x1x128xf32> to vector<1x128xf32>
    %299 = vector.broadcast %298 : vector<1x128xf32> to vector<64x128xf32>
    %300 = arith.addf %296, %299 : vector<64x128xf32>
    %cst_363 = arith.constant -2.560000e+02 : f32
    %cst_364 = arith.constant 2.560000e+02 : f32
    %301 = vector.broadcast %cst_363 : f32 to vector<64x128xf32>
    %302 = arith.maximumf %301, %300 : vector<64x128xf32>
    %303 = vector.broadcast %cst_364 : f32 to vector<64x128xf32>
    %304 = arith.minimumf %303, %302 : vector<64x128xf32>
    %305 = arith.addf %200, %304 : vector<64x128xf32>
    %306 = vector.extract_strided_slice %1 {offsets = [3, 0], sizes = [1, 128], strides = [1, 1]} : vector<8x128xf32> to vector<1x128xf32>
    %307 = vector.broadcast %306 : vector<1x128xf32> to vector<64x128xf32>
    %308 = arith.mulf %290, %307 : vector<64x128xf32>
    %c3_365 = arith.constant 3 : index
    %c0_366 = arith.constant 0 : index
    %c0_367 = arith.constant 0 : index
    %309 = vector.load %arg5[%c3_365, %c0_366, %c0_367] : memref<5x128x1152xf32, #tpu.memory_space<vmem>>, vector<1x128x1152xf32>
    %310 = vector.shape_cast %309 : vector<1x128x1152xf32> to vector<128x1152xf32>
    %cst_368 = arith.constant dense<0.000000e+00> : vector<64x1152xf32>
    %311 = tpu.matmul %308, %310, %cst_368 {dimension_numbers = #tpu.dot_dimension_numbers<[1], [0], [0], [1], [0, 0, 1, 1], [], []>} : vector<64x128xf32>, vector<128x1152xf32>, vector<64x1152xf32> -> vector<64x1152xf32>
    %c0_369 = arith.constant 0 : index
    %c0_370 = arith.constant 0 : index
    %312 = vector.load %arg11[%c0_369, %c0_370] : memref<64x1152xf32, #tpu.memory_space<vmem>>, vector<64x1152xf32>
    tpu.vector_store %arg11[%c0_369, %c0_370], %311 {strides = array<i32>} : memref<64x1152xf32, #tpu.memory_space<vmem>>, vector<64x1152xf32>,
    %cst_371 = arith.constant 0.000000e+00 : f32
    %313 = vector.broadcast %cst_371 : f32 to vector<64x128xf32>
    %c0_372 = arith.constant 0 : index
    %c0_373 = arith.constant 0 : index
    %314 = vector.load %arg12[%c0_372, %c0_373] : memref<64x128xf32, #tpu.memory_space<vmem>>, vector<64x128xf32>
    tpu.vector_store %arg12[%c0_372, %c0_373], %313 {strides = array<i32>} : memref<64x128xf32, #tpu.memory_space<vmem>>, vector<64x128xf32>,
    %c0_374 = arith.constant 0 : index
    %c0_375 = arith.constant 0 : index
    %315 = vector.load %arg12[%c0_374, %c0_375] : memref<64x128xf32, #tpu.memory_space<vmem>>, vector<64x128xf32>
    %c3_376 = arith.constant 3 : index
    %c0_377 = arith.constant 0 : index
    %c0_378 = arith.constant 0 : index
    %c0_379 = arith.constant 0 : index
    %316 = vector.load %arg4[%c3_376, %c0_377, %c0_378, %c0_379] : memref<5x9x64x64xf32, #tpu.memory_space<vmem>>, vector<1x1x64x64xf32>
    %317 = vector.shape_cast %316 : vector<1x1x64x64xf32> to vector<64x64xf32>
    %c0_380 = arith.constant 0 : index
    %c0_381 = arith.constant 0 : index
    %318 = vector.load %arg11[%c0_380, %c0_381] : memref<64x1152xf32, #tpu.memory_space<vmem>>, vector<64x128xf32>
    %cst_382 = arith.constant dense<0.000000e+00> : vector<64x128xf32>
    %319 = tpu.matmul %317, %318, %cst_382 {dimension_numbers = #tpu.dot_dimension_numbers<[1], [0], [0], [1], [0, 0, 1, 1], [], []>} : vector<64x64xf32>, vector<64x128xf32>, vector<64x128xf32> -> vector<64x128xf32>
    %320 = arith.addf %315, %319 : vector<64x128xf32>
    %c0_383 = arith.constant 0 : index
    %c0_384 = arith.constant 0 : index
    %321 = vector.load %arg12[%c0_383, %c0_384] : memref<64x128xf32, #tpu.memory_space<vmem>>, vector<64x128xf32>
    tpu.vector_store %arg12[%c0_383, %c0_384], %320 {strides = array<i32>} : memref<64x128xf32, #tpu.memory_space<vmem>>, vector<64x128xf32>,
    %c0_385 = arith.constant 0 : index
    %c0_386 = arith.constant 0 : index
    %322 = vector.load %arg12[%c0_385, %c0_386] : memref<64x128xf32, #tpu.memory_space<vmem>>, vector<64x128xf32>
    %c3_387 = arith.constant 3 : index
    %c1_388 = arith.constant 1 : index
    %c0_389 = arith.constant 0 : index
    %c0_390 = arith.constant 0 : index
    %323 = vector.load %arg4[%c3_387, %c1_388, %c0_389, %c0_390] : memref<5x9x64x64xf32, #tpu.memory_space<vmem>>, vector<1x1x64x64xf32>
    %324 = vector.shape_cast %323 : vector<1x1x64x64xf32> to vector<64x64xf32>
    %c0_391 = arith.constant 0 : index
    %c128_392 = arith.constant 128 : index
    %325 = vector.load %arg11[%c0_391, %c128_392] : memref<64x1152xf32, #tpu.memory_space<vmem>>, vector<64x128xf32>
    %cst_393 = arith.constant dense<0.000000e+00> : vector<64x128xf32>
    %326 = tpu.matmul %324, %325, %cst_393 {dimension_numbers = #tpu.dot_dimension_numbers<[1], [0], [0], [1], [0, 0, 1, 1], [], []>} : vector<64x64xf32>, vector<64x128xf32>, vector<64x128xf32> -> vector<64x128xf32>
    %327 = arith.addf %322, %326 : vector<64x128xf32>
    %c0_394 = arith.constant 0 : index
    %c0_395 = arith.constant 0 : index
    %328 = vector.load %arg12[%c0_394, %c0_395] : memref<64x128xf32, #tpu.memory_space<vmem>>, vector<64x128xf32>
    tpu.vector_store %arg12[%c0_394, %c0_395], %327 {strides = array<i32>} : memref<64x128xf32, #tpu.memory_space<vmem>>, vector<64x128xf32>,
    %c0_396 = arith.constant 0 : index
    %c0_397 = arith.constant 0 : index
    %329 = vector.load %arg12[%c0_396, %c0_397] : memref<64x128xf32, #tpu.memory_space<vmem>>, vector<64x128xf32>
    %c3_398 = arith.constant 3 : index
    %c2_399 = arith.constant 2 : index
    %c0_400 = arith.constant 0 : index
    %c0_401 = arith.constant 0 : index
    %330 = vector.load %arg4[%c3_398, %c2_399, %c0_400, %c0_401] : memref<5x9x64x64xf32, #tpu.memory_space<vmem>>, vector<1x1x64x64xf32>
    %331 = vector.shape_cast %330 : vector<1x1x64x64xf32> to vector<64x64xf32>
    %c0_402 = arith.constant 0 : index
    %c256_403 = arith.constant 256 : index
    %332 = vector.load %arg11[%c0_402, %c256_403] : memref<64x1152xf32, #tpu.memory_space<vmem>>, vector<64x128xf32>
    %cst_404 = arith.constant dense<0.000000e+00> : vector<64x128xf32>
    %333 = tpu.matmul %331, %332, %cst_404 {dimension_numbers = #tpu.dot_dimension_numbers<[1], [0], [0], [1], [0, 0, 1, 1], [], []>} : vector<64x64xf32>, vector<64x128xf32>, vector<64x128xf32> -> vector<64x128xf32>
    %334 = arith.addf %329, %333 : vector<64x128xf32>
    %c0_405 = arith.constant 0 : index
    %c0_406 = arith.constant 0 : index
    %335 = vector.load %arg12[%c0_405, %c0_406] : memref<64x128xf32, #tpu.memory_space<vmem>>, vector<64x128xf32>
    tpu.vector_store %arg12[%c0_405, %c0_406], %334 {strides = array<i32>} : memref<64x128xf32, #tpu.memory_space<vmem>>, vector<64x128xf32>,
    %c0_407 = arith.constant 0 : index
    %c0_408 = arith.constant 0 : index
    %336 = vector.load %arg12[%c0_407, %c0_408] : memref<64x128xf32, #tpu.memory_space<vmem>>, vector<64x128xf32>
    %c3_409 = arith.constant 3 : index
    %c3_410 = arith.constant 3 : index
    %c0_411 = arith.constant 0 : index
    %c0_412 = arith.constant 0 : index
    %337 = vector.load %arg4[%c3_409, %c3_410, %c0_411, %c0_412] : memref<5x9x64x64xf32, #tpu.memory_space<vmem>>, vector<1x1x64x64xf32>
    %338 = vector.shape_cast %337 : vector<1x1x64x64xf32> to vector<64x64xf32>
    %c0_413 = arith.constant 0 : index
    %c384_414 = arith.constant 384 : index
    %339 = vector.load %arg11[%c0_413, %c384_414] : memref<64x1152xf32, #tpu.memory_space<vmem>>, vector<64x128xf32>
    %cst_415 = arith.constant dense<0.000000e+00> : vector<64x128xf32>
    %340 = tpu.matmul %338, %339, %cst_415 {dimension_numbers = #tpu.dot_dimension_numbers<[1], [0], [0], [1], [0, 0, 1, 1], [], []>} : vector<64x64xf32>, vector<64x128xf32>, vector<64x128xf32> -> vector<64x128xf32>
    %341 = arith.addf %336, %340 : vector<64x128xf32>
    %c0_416 = arith.constant 0 : index
    %c0_417 = arith.constant 0 : index
    %342 = vector.load %arg12[%c0_416, %c0_417] : memref<64x128xf32, #tpu.memory_space<vmem>>, vector<64x128xf32>
    tpu.vector_store %arg12[%c0_416, %c0_417], %341 {strides = array<i32>} : memref<64x128xf32, #tpu.memory_space<vmem>>, vector<64x128xf32>,
    %c0_418 = arith.constant 0 : index
    %c0_419 = arith.constant 0 : index
    %343 = vector.load %arg12[%c0_418, %c0_419] : memref<64x128xf32, #tpu.memory_space<vmem>>, vector<64x128xf32>
    %c3_420 = arith.constant 3 : index
    %c4_421 = arith.constant 4 : index
    %c0_422 = arith.constant 0 : index
    %c0_423 = arith.constant 0 : index
    %344 = vector.load %arg4[%c3_420, %c4_421, %c0_422, %c0_423] : memref<5x9x64x64xf32, #tpu.memory_space<vmem>>, vector<1x1x64x64xf32>
    %345 = vector.shape_cast %344 : vector<1x1x64x64xf32> to vector<64x64xf32>
    %c0_424 = arith.constant 0 : index
    %c512_425 = arith.constant 512 : index
    %346 = vector.load %arg11[%c0_424, %c512_425] : memref<64x1152xf32, #tpu.memory_space<vmem>>, vector<64x128xf32>
    %cst_426 = arith.constant dense<0.000000e+00> : vector<64x128xf32>
    %347 = tpu.matmul %345, %346, %cst_426 {dimension_numbers = #tpu.dot_dimension_numbers<[1], [0], [0], [1], [0, 0, 1, 1], [], []>} : vector<64x64xf32>, vector<64x128xf32>, vector<64x128xf32> -> vector<64x128xf32>
    %348 = arith.addf %343, %347 : vector<64x128xf32>
    %c0_427 = arith.constant 0 : index
    %c0_428 = arith.constant 0 : index
    %349 = vector.load %arg12[%c0_427, %c0_428] : memref<64x128xf32, #tpu.memory_space<vmem>>, vector<64x128xf32>
    tpu.vector_store %arg12[%c0_427, %c0_428], %348 {strides = array<i32>} : memref<64x128xf32, #tpu.memory_space<vmem>>, vector<64x128xf32>,
    %c0_429 = arith.constant 0 : index
    %c0_430 = arith.constant 0 : index
    %350 = vector.load %arg12[%c0_429, %c0_430] : memref<64x128xf32, #tpu.memory_space<vmem>>, vector<64x128xf32>
    %c3_431 = arith.constant 3 : index
    %c5_432 = arith.constant 5 : index
    %c0_433 = arith.constant 0 : index
    %c0_434 = arith.constant 0 : index
    %351 = vector.load %arg4[%c3_431, %c5_432, %c0_433, %c0_434] : memref<5x9x64x64xf32, #tpu.memory_space<vmem>>, vector<1x1x64x64xf32>
    %352 = vector.shape_cast %351 : vector<1x1x64x64xf32> to vector<64x64xf32>
    %c0_435 = arith.constant 0 : index
    %c640_436 = arith.constant 640 : index
    %353 = vector.load %arg11[%c0_435, %c640_436] : memref<64x1152xf32, #tpu.memory_space<vmem>>, vector<64x128xf32>
    %cst_437 = arith.constant dense<0.000000e+00> : vector<64x128xf32>
    %354 = tpu.matmul %352, %353, %cst_437 {dimension_numbers = #tpu.dot_dimension_numbers<[1], [0], [0], [1], [0, 0, 1, 1], [], []>} : vector<64x64xf32>, vector<64x128xf32>, vector<64x128xf32> -> vector<64x128xf32>
    %355 = arith.addf %350, %354 : vector<64x128xf32>
    %c0_438 = arith.constant 0 : index
    %c0_439 = arith.constant 0 : index
    %356 = vector.load %arg12[%c0_438, %c0_439] : memref<64x128xf32, #tpu.memory_space<vmem>>, vector<64x128xf32>
    tpu.vector_store %arg12[%c0_438, %c0_439], %355 {strides = array<i32>} : memref<64x128xf32, #tpu.memory_space<vmem>>, vector<64x128xf32>,
    %c0_440 = arith.constant 0 : index
    %c0_441 = arith.constant 0 : index
    %357 = vector.load %arg12[%c0_440, %c0_441] : memref<64x128xf32, #tpu.memory_space<vmem>>, vector<64x128xf32>
    %c3_442 = arith.constant 3 : index
    %c6_443 = arith.constant 6 : index
    %c0_444 = arith.constant 0 : index
    %c0_445 = arith.constant 0 : index
    %358 = vector.load %arg4[%c3_442, %c6_443, %c0_444, %c0_445] : memref<5x9x64x64xf32, #tpu.memory_space<vmem>>, vector<1x1x64x64xf32>
    %359 = vector.shape_cast %358 : vector<1x1x64x64xf32> to vector<64x64xf32>
    %c0_446 = arith.constant 0 : index
    %c768_447 = arith.constant 768 : index
    %360 = vector.load %arg11[%c0_446, %c768_447] : memref<64x1152xf32, #tpu.memory_space<vmem>>, vector<64x128xf32>
    %cst_448 = arith.constant dense<0.000000e+00> : vector<64x128xf32>
    %361 = tpu.matmul %359, %360, %cst_448 {dimension_numbers = #tpu.dot_dimension_numbers<[1], [0], [0], [1], [0, 0, 1, 1], [], []>} : vector<64x64xf32>, vector<64x128xf32>, vector<64x128xf32> -> vector<64x128xf32>
    %362 = arith.addf %357, %361 : vector<64x128xf32>
    %c0_449 = arith.constant 0 : index
    %c0_450 = arith.constant 0 : index
    %363 = vector.load %arg12[%c0_449, %c0_450] : memref<64x128xf32, #tpu.memory_space<vmem>>, vector<64x128xf32>
    tpu.vector_store %arg12[%c0_449, %c0_450], %362 {strides = array<i32>} : memref<64x128xf32, #tpu.memory_space<vmem>>, vector<64x128xf32>,
    %c0_451 = arith.constant 0 : index
    %c0_452 = arith.constant 0 : index
    %364 = vector.load %arg12[%c0_451, %c0_452] : memref<64x128xf32, #tpu.memory_space<vmem>>, vector<64x128xf32>
    %c3_453 = arith.constant 3 : index
    %c7_454 = arith.constant 7 : index
    %c0_455 = arith.constant 0 : index
    %c0_456 = arith.constant 0 : index
    %365 = vector.load %arg4[%c3_453, %c7_454, %c0_455, %c0_456] : memref<5x9x64x64xf32, #tpu.memory_space<vmem>>, vector<1x1x64x64xf32>
    %366 = vector.shape_cast %365 : vector<1x1x64x64xf32> to vector<64x64xf32>
    %c0_457 = arith.constant 0 : index
    %c896_458 = arith.constant 896 : index
    %367 = vector.load %arg11[%c0_457, %c896_458] : memref<64x1152xf32, #tpu.memory_space<vmem>>, vector<64x128xf32>
    %cst_459 = arith.constant dense<0.000000e+00> : vector<64x128xf32>
    %368 = tpu.matmul %366, %367, %cst_459 {dimension_numbers = #tpu.dot_dimension_numbers<[1], [0], [0], [1], [0, 0, 1, 1], [], []>} : vector<64x64xf32>, vector<64x128xf32>, vector<64x128xf32> -> vector<64x128xf32>
    %369 = arith.addf %364, %368 : vector<64x128xf32>
    %c0_460 = arith.constant 0 : index
    %c0_461 = arith.constant 0 : index
    %370 = vector.load %arg12[%c0_460, %c0_461] : memref<64x128xf32, #tpu.memory_space<vmem>>, vector<64x128xf32>
    tpu.vector_store %arg12[%c0_460, %c0_461], %369 {strides = array<i32>} : memref<64x128xf32, #tpu.memory_space<vmem>>, vector<64x128xf32>,
    %c0_462 = arith.constant 0 : index
    %c0_463 = arith.constant 0 : index
    %371 = vector.load %arg12[%c0_462, %c0_463] : memref<64x128xf32, #tpu.memory_space<vmem>>, vector<64x128xf32>
    %c3_464 = arith.constant 3 : index
    %c8_465 = arith.constant 8 : index
    %c0_466 = arith.constant 0 : index
    %c0_467 = arith.constant 0 : index
    %372 = vector.load %arg4[%c3_464, %c8_465, %c0_466, %c0_467] : memref<5x9x64x64xf32, #tpu.memory_space<vmem>>, vector<1x1x64x64xf32>
    %373 = vector.shape_cast %372 : vector<1x1x64x64xf32> to vector<64x64xf32>
    %c0_468 = arith.constant 0 : index
    %c1024_469 = arith.constant 1024 : index
    %374 = vector.load %arg11[%c0_468, %c1024_469] : memref<64x1152xf32, #tpu.memory_space<vmem>>, vector<64x128xf32>
    %cst_470 = arith.constant dense<0.000000e+00> : vector<64x128xf32>
    %375 = tpu.matmul %373, %374, %cst_470 {dimension_numbers = #tpu.dot_dimension_numbers<[1], [0], [0], [1], [0, 0, 1, 1], [], []>} : vector<64x64xf32>, vector<64x128xf32>, vector<64x128xf32> -> vector<64x128xf32>
    %376 = arith.addf %371, %375 : vector<64x128xf32>
    %c0_471 = arith.constant 0 : index
    %c0_472 = arith.constant 0 : index
    %377 = vector.load %arg12[%c0_471, %c0_472] : memref<64x128xf32, #tpu.memory_space<vmem>>, vector<64x128xf32>
    tpu.vector_store %arg12[%c0_471, %c0_472], %376 {strides = array<i32>} : memref<64x128xf32, #tpu.memory_space<vmem>>, vector<64x128xf32>,
    %c0_473 = arith.constant 0 : index
    %c0_474 = arith.constant 0 : index
    %378 = vector.load %arg12[%c0_473, %c0_474] : memref<64x128xf32, #tpu.memory_space<vmem>>, vector<64x128xf32>
    %379 = vector.extract_strided_slice %3 {offsets = [3, 0], sizes = [1, 128], strides = [1, 1]} : vector<8x128xf32> to vector<1x128xf32>
    %380 = vector.broadcast %379 : vector<1x128xf32> to vector<64x128xf32>
    %381 = arith.mulf %378, %380 : vector<64x128xf32>
    %c3_475 = arith.constant 3 : index
    %c0_476 = arith.constant 0 : index
    %c0_477 = arith.constant 0 : index
    %382 = vector.load %arg6[%c3_475, %c0_476, %c0_477] : memref<5x64x128xf32, #tpu.memory_space<vmem>>, vector<1x64x128xf32>
    %383 = vector.shape_cast %382 : vector<1x64x128xf32> to vector<64x128xf32>
    %384 = arith.addf %381, %383 : vector<64x128xf32>
    %cst_478 = arith.constant 0.000000e+00 : f32
    %385 = vector.broadcast %cst_478 : f32 to vector<64x128xf32>
    %386 = arith.cmpf oge, %384, %385 : vector<64x128xf32>
    %cst_479 = arith.constant 2.000000e-01 : f32
    %387 = vector.broadcast %cst_479 : f32 to vector<64x128xf32>
    %388 = arith.mulf %387, %384 : vector<64x128xf32>
    %389 = arith.select %386, %384, %388 : vector<64x128xi1>, vector<64x128xf32>
    %cst_480 = arith.constant 1.41421354 : f32
    %390 = vector.broadcast %cst_480 : f32 to vector<64x128xf32>
    %391 = arith.mulf %389, %390 : vector<64x128xf32>
    %cst_481 = arith.constant -2.560000e+02 : f32
    %cst_482 = arith.constant 2.560000e+02 : f32
    %392 = vector.broadcast %cst_481 : f32 to vector<64x128xf32>
    %393 = arith.maximumf %392, %391 : vector<64x128xf32>
    %394 = vector.broadcast %cst_482 : f32 to vector<64x128xf32>
    %395 = arith.minimumf %394, %393 : vector<64x128xf32>
    %396 = vector.extract_strided_slice %1 {offsets = [4, 0], sizes = [1, 128], strides = [1, 1]} : vector<8x128xf32> to vector<1x128xf32>
    %397 = vector.broadcast %396 : vector<1x128xf32> to vector<64x128xf32>
    %398 = arith.mulf %395, %397 : vector<64x128xf32>
    %c4_483 = arith.constant 4 : index
    %c0_484 = arith.constant 0 : index
    %c0_485 = arith.constant 0 : index
    %399 = vector.load %arg5[%c4_483, %c0_484, %c0_485] : memref<5x128x1152xf32, #tpu.memory_space<vmem>>, vector<1x128x1152xf32>
    %400 = vector.shape_cast %399 : vector<1x128x1152xf32> to vector<128x1152xf32>
    %cst_486 = arith.constant dense<0.000000e+00> : vector<64x1152xf32>
    %401 = tpu.matmul %398, %400, %cst_486 {dimension_numbers = #tpu.dot_dimension_numbers<[1], [0], [0], [1], [0, 0, 1, 1], [], []>} : vector<64x128xf32>, vector<128x1152xf32>, vector<64x1152xf32> -> vector<64x1152xf32>
    %c0_487 = arith.constant 0 : index
    %c0_488 = arith.constant 0 : index
    %402 = vector.load %arg11[%c0_487, %c0_488] : memref<64x1152xf32, #tpu.memory_space<vmem>>, vector<64x1152xf32>
    tpu.vector_store %arg11[%c0_487, %c0_488], %401 {strides = array<i32>} : memref<64x1152xf32, #tpu.memory_space<vmem>>, vector<64x1152xf32>,
    %cst_489 = arith.constant 0.000000e+00 : f32
    %403 = vector.broadcast %cst_489 : f32 to vector<64x128xf32>
    %c0_490 = arith.constant 0 : index
    %c0_491 = arith.constant 0 : index
    %404 = vector.load %arg12[%c0_490, %c0_491] : memref<64x128xf32, #tpu.memory_space<vmem>>, vector<64x128xf32>
    tpu.vector_store %arg12[%c0_490, %c0_491], %403 {strides = array<i32>} : memref<64x128xf32, #tpu.memory_space<vmem>>, vector<64x128xf32>,
    %c0_492 = arith.constant 0 : index
    %c0_493 = arith.constant 0 : index
    %405 = vector.load %arg12[%c0_492, %c0_493] : memref<64x128xf32, #tpu.memory_space<vmem>>, vector<64x128xf32>
    %c4_494 = arith.constant 4 : index
    %c0_495 = arith.constant 0 : index
    %c0_496 = arith.constant 0 : index
    %c0_497 = arith.constant 0 : index
    %406 = vector.load %arg4[%c4_494, %c0_495, %c0_496, %c0_497] : memref<5x9x64x64xf32, #tpu.memory_space<vmem>>, vector<1x1x64x64xf32>
    %407 = vector.shape_cast %406 : vector<1x1x64x64xf32> to vector<64x64xf32>
    %c0_498 = arith.constant 0 : index
    %c0_499 = arith.constant 0 : index
    %408 = vector.load %arg11[%c0_498, %c0_499] : memref<64x1152xf32, #tpu.memory_space<vmem>>, vector<64x128xf32>
    %cst_500 = arith.constant dense<0.000000e+00> : vector<64x128xf32>
    %409 = tpu.matmul %407, %408, %cst_500 {dimension_numbers = #tpu.dot_dimension_numbers<[1], [0], [0], [1], [0, 0, 1, 1], [], []>} : vector<64x64xf32>, vector<64x128xf32>, vector<64x128xf32> -> vector<64x128xf32>
    %410 = arith.addf %405, %409 : vector<64x128xf32>
    %c0_501 = arith.constant 0 : index
    %c0_502 = arith.constant 0 : index
    %411 = vector.load %arg12[%c0_501, %c0_502] : memref<64x128xf32, #tpu.memory_space<vmem>>, vector<64x128xf32>
    tpu.vector_store %arg12[%c0_501, %c0_502], %410 {strides = array<i32>} : memref<64x128xf32, #tpu.memory_space<vmem>>, vector<64x128xf32>,
    %c0_503 = arith.constant 0 : index
    %c0_504 = arith.constant 0 : index
    %412 = vector.load %arg12[%c0_503, %c0_504] : memref<64x128xf32, #tpu.memory_space<vmem>>, vector<64x128xf32>
    %c4_505 = arith.constant 4 : index
    %c1_506 = arith.constant 1 : index
    %c0_507 = arith.constant 0 : index
    %c0_508 = arith.constant 0 : index
    %413 = vector.load %arg4[%c4_505, %c1_506, %c0_507, %c0_508] : memref<5x9x64x64xf32, #tpu.memory_space<vmem>>, vector<1x1x64x64xf32>
    %414 = vector.shape_cast %413 : vector<1x1x64x64xf32> to vector<64x64xf32>
    %c0_509 = arith.constant 0 : index
    %c128_510 = arith.constant 128 : index
    %415 = vector.load %arg11[%c0_509, %c128_510] : memref<64x1152xf32, #tpu.memory_space<vmem>>, vector<64x128xf32>
    %cst_511 = arith.constant dense<0.000000e+00> : vector<64x128xf32>
    %416 = tpu.matmul %414, %415, %cst_511 {dimension_numbers = #tpu.dot_dimension_numbers<[1], [0], [0], [1], [0, 0, 1, 1], [], []>} : vector<64x64xf32>, vector<64x128xf32>, vector<64x128xf32> -> vector<64x128xf32>
    %417 = arith.addf %412, %416 : vector<64x128xf32>
    %c0_512 = arith.constant 0 : index
    %c0_513 = arith.constant 0 : index
    %418 = vector.load %arg12[%c0_512, %c0_513] : memref<64x128xf32, #tpu.memory_space<vmem>>, vector<64x128xf32>
    tpu.vector_store %arg12[%c0_512, %c0_513], %417 {strides = array<i32>} : memref<64x128xf32, #tpu.memory_space<vmem>>, vector<64x128xf32>,
    %c0_514 = arith.constant 0 : index
    %c0_515 = arith.constant 0 : index
    %419 = vector.load %arg12[%c0_514, %c0_515] : memref<64x128xf32, #tpu.memory_space<vmem>>, vector<64x128xf32>
    %c4_516 = arith.constant 4 : index
    %c2_517 = arith.constant 2 : index
    %c0_518 = arith.constant 0 : index
    %c0_519 = arith.constant 0 : index
    %420 = vector.load %arg4[%c4_516, %c2_517, %c0_518, %c0_519] : memref<5x9x64x64xf32, #tpu.memory_space<vmem>>, vector<1x1x64x64xf32>
    %421 = vector.shape_cast %420 : vector<1x1x64x64xf32> to vector<64x64xf32>
    %c0_520 = arith.constant 0 : index
    %c256_521 = arith.constant 256 : index
    %422 = vector.load %arg11[%c0_520, %c256_521] : memref<64x1152xf32, #tpu.memory_space<vmem>>, vector<64x128xf32>
    %cst_522 = arith.constant dense<0.000000e+00> : vector<64x128xf32>
    %423 = tpu.matmul %421, %422, %cst_522 {dimension_numbers = #tpu.dot_dimension_numbers<[1], [0], [0], [1], [0, 0, 1, 1], [], []>} : vector<64x64xf32>, vector<64x128xf32>, vector<64x128xf32> -> vector<64x128xf32>
    %424 = arith.addf %419, %423 : vector<64x128xf32>
    %c0_523 = arith.constant 0 : index
    %c0_524 = arith.constant 0 : index
    %425 = vector.load %arg12[%c0_523, %c0_524] : memref<64x128xf32, #tpu.memory_space<vmem>>, vector<64x128xf32>
    tpu.vector_store %arg12[%c0_523, %c0_524], %424 {strides = array<i32>} : memref<64x128xf32, #tpu.memory_space<vmem>>, vector<64x128xf32>,
    %c0_525 = arith.constant 0 : index
    %c0_526 = arith.constant 0 : index
    %426 = vector.load %arg12[%c0_525, %c0_526] : memref<64x128xf32, #tpu.memory_space<vmem>>, vector<64x128xf32>
    %c4_527 = arith.constant 4 : index
    %c3_528 = arith.constant 3 : index
    %c0_529 = arith.constant 0 : index
    %c0_530 = arith.constant 0 : index
    %427 = vector.load %arg4[%c4_527, %c3_528, %c0_529, %c0_530] : memref<5x9x64x64xf32, #tpu.memory_space<vmem>>, vector<1x1x64x64xf32>
    %428 = vector.shape_cast %427 : vector<1x1x64x64xf32> to vector<64x64xf32>
    %c0_531 = arith.constant 0 : index
    %c384_532 = arith.constant 384 : index
    %429 = vector.load %arg11[%c0_531, %c384_532] : memref<64x1152xf32, #tpu.memory_space<vmem>>, vector<64x128xf32>
    %cst_533 = arith.constant dense<0.000000e+00> : vector<64x128xf32>
    %430 = tpu.matmul %428, %429, %cst_533 {dimension_numbers = #tpu.dot_dimension_numbers<[1], [0], [0], [1], [0, 0, 1, 1], [], []>} : vector<64x64xf32>, vector<64x128xf32>, vector<64x128xf32> -> vector<64x128xf32>
    %431 = arith.addf %426, %430 : vector<64x128xf32>
    %c0_534 = arith.constant 0 : index
    %c0_535 = arith.constant 0 : index
    %432 = vector.load %arg12[%c0_534, %c0_535] : memref<64x128xf32, #tpu.memory_space<vmem>>, vector<64x128xf32>
    tpu.vector_store %arg12[%c0_534, %c0_535], %431 {strides = array<i32>} : memref<64x128xf32, #tpu.memory_space<vmem>>, vector<64x128xf32>,
    %c0_536 = arith.constant 0 : index
    %c0_537 = arith.constant 0 : index
    %433 = vector.load %arg12[%c0_536, %c0_537] : memref<64x128xf32, #tpu.memory_space<vmem>>, vector<64x128xf32>
    %c4_538 = arith.constant 4 : index
    %c4_539 = arith.constant 4 : index
    %c0_540 = arith.constant 0 : index
    %c0_541 = arith.constant 0 : index
    %434 = vector.load %arg4[%c4_538, %c4_539, %c0_540, %c0_541] : memref<5x9x64x64xf32, #tpu.memory_space<vmem>>, vector<1x1x64x64xf32>
    %435 = vector.shape_cast %434 : vector<1x1x64x64xf32> to vector<64x64xf32>
    %c0_542 = arith.constant 0 : index
    %c512_543 = arith.constant 512 : index
    %436 = vector.load %arg11[%c0_542, %c512_543] : memref<64x1152xf32, #tpu.memory_space<vmem>>, vector<64x128xf32>
    %cst_544 = arith.constant dense<0.000000e+00> : vector<64x128xf32>
    %437 = tpu.matmul %435, %436, %cst_544 {dimension_numbers = #tpu.dot_dimension_numbers<[1], [0], [0], [1], [0, 0, 1, 1], [], []>} : vector<64x64xf32>, vector<64x128xf32>, vector<64x128xf32> -> vector<64x128xf32>
    %438 = arith.addf %433, %437 : vector<64x128xf32>
    %c0_545 = arith.constant 0 : index
    %c0_546 = arith.constant 0 : index
    %439 = vector.load %arg12[%c0_545, %c0_546] : memref<64x128xf32, #tpu.memory_space<vmem>>, vector<64x128xf32>
    tpu.vector_store %arg12[%c0_545, %c0_546], %438 {strides = array<i32>} : memref<64x128xf32, #tpu.memory_space<vmem>>, vector<64x128xf32>,
    %c0_547 = arith.constant 0 : index
    %c0_548 = arith.constant 0 : index
    %440 = vector.load %arg12[%c0_547, %c0_548] : memref<64x128xf32, #tpu.memory_space<vmem>>, vector<64x128xf32>
    %c4_549 = arith.constant 4 : index
    %c5_550 = arith.constant 5 : index
    %c0_551 = arith.constant 0 : index
    %c0_552 = arith.constant 0 : index
    %441 = vector.load %arg4[%c4_549, %c5_550, %c0_551, %c0_552] : memref<5x9x64x64xf32, #tpu.memory_space<vmem>>, vector<1x1x64x64xf32>
    %442 = vector.shape_cast %441 : vector<1x1x64x64xf32> to vector<64x64xf32>
    %c0_553 = arith.constant 0 : index
    %c640_554 = arith.constant 640 : index
    %443 = vector.load %arg11[%c0_553, %c640_554] : memref<64x1152xf32, #tpu.memory_space<vmem>>, vector<64x128xf32>
    %cst_555 = arith.constant dense<0.000000e+00> : vector<64x128xf32>
    %444 = tpu.matmul %442, %443, %cst_555 {dimension_numbers = #tpu.dot_dimension_numbers<[1], [0], [0], [1], [0, 0, 1, 1], [], []>} : vector<64x64xf32>, vector<64x128xf32>, vector<64x128xf32> -> vector<64x128xf32>
    %445 = arith.addf %440, %444 : vector<64x128xf32>
    %c0_556 = arith.constant 0 : index
    %c0_557 = arith.constant 0 : index
    %446 = vector.load %arg12[%c0_556, %c0_557] : memref<64x128xf32, #tpu.memory_space<vmem>>, vector<64x128xf32>
    tpu.vector_store %arg12[%c0_556, %c0_557], %445 {strides = array<i32>} : memref<64x128xf32, #tpu.memory_space<vmem>>, vector<64x128xf32>,
    %c0_558 = arith.constant 0 : index
    %c0_559 = arith.constant 0 : index
    %447 = vector.load %arg12[%c0_558, %c0_559] : memref<64x128xf32, #tpu.memory_space<vmem>>, vector<64x128xf32>
    %c4_560 = arith.constant 4 : index
    %c6_561 = arith.constant 6 : index
    %c0_562 = arith.constant 0 : index
    %c0_563 = arith.constant 0 : index
    %448 = vector.load %arg4[%c4_560, %c6_561, %c0_562, %c0_563] : memref<5x9x64x64xf32, #tpu.memory_space<vmem>>, vector<1x1x64x64xf32>
    %449 = vector.shape_cast %448 : vector<1x1x64x64xf32> to vector<64x64xf32>
    %c0_564 = arith.constant 0 : index
    %c768_565 = arith.constant 768 : index
    %450 = vector.load %arg11[%c0_564, %c768_565] : memref<64x1152xf32, #tpu.memory_space<vmem>>, vector<64x128xf32>
    %cst_566 = arith.constant dense<0.000000e+00> : vector<64x128xf32>
    %451 = tpu.matmul %449, %450, %cst_566 {dimension_numbers = #tpu.dot_dimension_numbers<[1], [0], [0], [1], [0, 0, 1, 1], [], []>} : vector<64x64xf32>, vector<64x128xf32>, vector<64x128xf32> -> vector<64x128xf32>
    %452 = arith.addf %447, %451 : vector<64x128xf32>
    %c0_567 = arith.constant 0 : index
    %c0_568 = arith.constant 0 : index
    %453 = vector.load %arg12[%c0_567, %c0_568] : memref<64x128xf32, #tpu.memory_space<vmem>>, vector<64x128xf32>
    tpu.vector_store %arg12[%c0_567, %c0_568], %452 {strides = array<i32>} : memref<64x128xf32, #tpu.memory_space<vmem>>, vector<64x128xf32>,
    %c0_569 = arith.constant 0 : index
    %c0_570 = arith.constant 0 : index
    %454 = vector.load %arg12[%c0_569, %c0_570] : memref<64x128xf32, #tpu.memory_space<vmem>>, vector<64x128xf32>
    %c4_571 = arith.constant 4 : index
    %c7_572 = arith.constant 7 : index
    %c0_573 = arith.constant 0 : index
    %c0_574 = arith.constant 0 : index
    %455 = vector.load %arg4[%c4_571, %c7_572, %c0_573, %c0_574] : memref<5x9x64x64xf32, #tpu.memory_space<vmem>>, vector<1x1x64x64xf32>
    %456 = vector.shape_cast %455 : vector<1x1x64x64xf32> to vector<64x64xf32>
    %c0_575 = arith.constant 0 : index
    %c896_576 = arith.constant 896 : index
    %457 = vector.load %arg11[%c0_575, %c896_576] : memref<64x1152xf32, #tpu.memory_space<vmem>>, vector<64x128xf32>
    %cst_577 = arith.constant dense<0.000000e+00> : vector<64x128xf32>
    %458 = tpu.matmul %456, %457, %cst_577 {dimension_numbers = #tpu.dot_dimension_numbers<[1], [0], [0], [1], [0, 0, 1, 1], [], []>} : vector<64x64xf32>, vector<64x128xf32>, vector<64x128xf32> -> vector<64x128xf32>
    %459 = arith.addf %454, %458 : vector<64x128xf32>
    %c0_578 = arith.constant 0 : index
    %c0_579 = arith.constant 0 : index
    %460 = vector.load %arg12[%c0_578, %c0_579] : memref<64x128xf32, #tpu.memory_space<vmem>>, vector<64x128xf32>
    tpu.vector_store %arg12[%c0_578, %c0_579], %459 {strides = array<i32>} : memref<64x128xf32, #tpu.memory_space<vmem>>, vector<64x128xf32>,
    %c0_580 = arith.constant 0 : index
    %c0_581 = arith.constant 0 : index
    %461 = vector.load %arg12[%c0_580, %c0_581] : memref<64x128xf32, #tpu.memory_space<vmem>>, vector<64x128xf32>
    %c4_582 = arith.constant 4 : index
    %c8_583 = arith.constant 8 : index
    %c0_584 = arith.constant 0 : index
    %c0_585 = arith.constant 0 : index
    %462 = vector.load %arg4[%c4_582, %c8_583, %c0_584, %c0_585] : memref<5x9x64x64xf32, #tpu.memory_space<vmem>>, vector<1x1x64x64xf32>
    %463 = vector.shape_cast %462 : vector<1x1x64x64xf32> to vector<64x64xf32>
    %c0_586 = arith.constant 0 : index
    %c1024_587 = arith.constant 1024 : index
    %464 = vector.load %arg11[%c0_586, %c1024_587] : memref<64x1152xf32, #tpu.memory_space<vmem>>, vector<64x128xf32>
    %cst_588 = arith.constant dense<0.000000e+00> : vector<64x128xf32>
    %465 = tpu.matmul %463, %464, %cst_588 {dimension_numbers = #tpu.dot_dimension_numbers<[1], [0], [0], [1], [0, 0, 1, 1], [], []>} : vector<64x64xf32>, vector<64x128xf32>, vector<64x128xf32> -> vector<64x128xf32>
    %466 = arith.addf %461, %465 : vector<64x128xf32>
    %c0_589 = arith.constant 0 : index
    %c0_590 = arith.constant 0 : index
    %467 = vector.load %arg12[%c0_589, %c0_590] : memref<64x128xf32, #tpu.memory_space<vmem>>, vector<64x128xf32>
    tpu.vector_store %arg12[%c0_589, %c0_590], %466 {strides = array<i32>} : memref<64x128xf32, #tpu.memory_space<vmem>>, vector<64x128xf32>,
    %c0_591 = arith.constant 0 : index
    %c0_592 = arith.constant 0 : index
    %468 = vector.load %arg12[%c0_591, %c0_592] : memref<64x128xf32, #tpu.memory_space<vmem>>, vector<64x128xf32>
    %469 = vector.extract_strided_slice %3 {offsets = [4, 0], sizes = [1, 128], strides = [1, 1]} : vector<8x128xf32> to vector<1x128xf32>
    %470 = vector.broadcast %469 : vector<1x128xf32> to vector<64x128xf32>
    %471 = arith.mulf %468, %470 : vector<64x128xf32>
    %c4_593 = arith.constant 4 : index
    %c0_594 = arith.constant 0 : index
    %c0_595 = arith.constant 0 : index
    %472 = vector.load %arg6[%c4_593, %c0_594, %c0_595] : memref<5x64x128xf32, #tpu.memory_space<vmem>>, vector<1x64x128xf32>
    %473 = vector.shape_cast %472 : vector<1x64x128xf32> to vector<64x128xf32>
    %474 = arith.addf %471, %473 : vector<64x128xf32>
    %cst_596 = arith.constant 0.000000e+00 : f32
    %475 = vector.broadcast %cst_596 : f32 to vector<64x128xf32>
    %476 = arith.cmpf oge, %474, %475 : vector<64x128xf32>
    %cst_597 = arith.constant 2.000000e-01 : f32
    %477 = vector.broadcast %cst_597 : f32 to vector<64x128xf32>
    %478 = arith.mulf %477, %474 : vector<64x128xf32>
    %479 = arith.select %476, %474, %478 : vector<64x128xi1>, vector<64x128xf32>
    %cst_598 = arith.constant 1.41421354 : f32
    %480 = vector.broadcast %cst_598 : f32 to vector<64x128xf32>
    %481 = arith.mulf %479, %480 : vector<64x128xf32>
    %cst_599 = arith.constant -2.560000e+02 : f32
    %cst_600 = arith.constant 2.560000e+02 : f32
    %482 = vector.broadcast %cst_599 : f32 to vector<64x128xf32>
    %483 = arith.maximumf %482, %481 : vector<64x128xf32>
    %484 = vector.broadcast %cst_600 : f32 to vector<64x128xf32>
    %485 = arith.minimumf %484, %483 : vector<64x128xf32>
    %486 = vector.extract_strided_slice %1 {offsets = [7, 0], sizes = [1, 128], strides = [1, 1]} : vector<8x128xf32> to vector<1x128xf32>
    %487 = vector.broadcast %486 : vector<1x128xf32> to vector<64x128xf32>
    %488 = arith.mulf %485, %487 : vector<64x128xf32>
    %c2_601 = arith.constant 2 : index
    %c0_602 = arith.constant 0 : index
    %c0_603 = arith.constant 0 : index
    %489 = vector.load %arg7[%c2_601, %c0_602, %c0_603] : memref<3x128x128xf32, #tpu.memory_space<vmem>>, vector<1x128x128xf32>
    %490 = vector.shape_cast %489 : vector<1x128x128xf32> to vector<128x128xf32>
    %cst_604 = arith.constant dense<0.000000e+00> : vector<64x128xf32>
    %491 = tpu.matmul %488, %490, %cst_604 {dimension_numbers = #tpu.dot_dimension_numbers<[1], [0], [0], [1], [0, 0, 1, 1], [], []>} : vector<64x128xf32>, vector<128x128xf32>, vector<64x128xf32> -> vector<64x128xf32>
    %c2_605 = arith.constant 2 : index
    %c0_606 = arith.constant 0 : index
    %c0_607 = arith.constant 0 : index
    %492 = vector.load %arg8[%c2_605, %c0_606, %c0_607] : memref<3x1x128xf32, #tpu.memory_space<vmem>>, vector<1x1x128xf32>
    %493 = vector.shape_cast %492 : vector<1x1x128xf32> to vector<1x128xf32>
    %494 = vector.broadcast %493 : vector<1x128xf32> to vector<64x128xf32>
    %495 = arith.addf %491, %494 : vector<64x128xf32>
    %cst_608 = arith.constant -2.560000e+02 : f32
    %cst_609 = arith.constant 2.560000e+02 : f32
    %496 = vector.broadcast %cst_608 : f32 to vector<64x128xf32>
    %497 = arith.maximumf %496, %495 : vector<64x128xf32>
    %498 = vector.broadcast %cst_609 : f32 to vector<64x128xf32>
    %499 = arith.minimumf %498, %497 : vector<64x128xf32>
    %500 = arith.addf %305, %499 : vector<64x128xf32>
    %c0_610 = arith.constant 0 : index
    %c0_611 = arith.constant 0 : index
    %c0_612 = arith.constant 0 : index
    %501 = vector.load %arg10[%c0_610, %c0_611, %c0_612] : memref<1x64x128xf32, #tpu.memory_space<vmem>>, vector<1x64x128xf32>
    %502 = vector.shape_cast %501 : vector<1x64x128xf32> to vector<64x128xf32>
    %503 = vector.shape_cast %500 : vector<64x128xf32> to vector<1x64x128xf32>
    tpu.vector_store %arg10[%c0_610, %c0_611, %c0_612], %503 {strides = array<i32>} : memref<1x64x128xf32, #tpu.memory_space<vmem>>, vector<1x64x128xf32>,
    return
  }
  func.func @transform_0(%arg0: i32) -> (i32, i32, i32) {
    %c0_i32 = arith.constant 0 : i32
    %c0_i32_0 = arith.constant 0 : i32
    %c0_i32_1 = arith.constant 0 : i32
    return %arg0, %c0_i32, %c0_i32_0 : i32, i32, i32
  }
  func.func @transform_1(%arg0: i32) -> (i32, i32, i32) {
    %c0_i32 = arith.constant 0 : i32
    %c0_i32_0 = arith.constant 0 : i32
    %c0_i32_1 = arith.constant 0 : i32
    return %arg0, %c0_i32, %c0_i32_0 : i32, i32, i32
  }
  func.func @transform_2(%arg0: i32) -> (i32, i32) {
    %c0_i32 = arith.constant 0 : i32
    %c0_i32_0 = arith.constant 0 : i32
    %c0_i32_1 = arith.constant 0 : i32
    return %c0_i32, %c0_i32_0 : i32, i32
  }
  func.func @transform_3(%arg0: i32) -> (i32, i32, i32, i32) {
    %c0_i32 = arith.constant 0 : i32
    %c0_i32_0 = arith.constant 0 : i32
    %c0_i32_1 = arith.constant 0 : i32
    %c0_i32_2 = arith.constant 0 : i32
    %c0_i32_3 = arith.constant 0 : i32
    return %c0_i32, %c0_i32_0, %c0_i32_1, %c0_i32_2 : i32, i32, i32, i32
  }
  func.func @transform_4(%arg0: i32) -> (i32, i32, i32) {
    %c0_i32 = arith.constant 0 : i32
    %c0_i32_0 = arith.constant 0 : i32
    %c0_i32_1 = arith.constant 0 : i32
    %c0_i32_2 = arith.constant 0 : i32
    return %c0_i32, %c0_i32_0, %c0_i32_1 : i32, i32, i32
  }
  func.func @transform_5(%arg0: i32) -> (i32, i32, i32) {
    %c0_i32 = arith.constant 0 : i32
    %c0_i32_0 = arith.constant 0 : i32
    %c0_i32_1 = arith.constant 0 : i32
    %c0_i32_2 = arith.constant 0 : i32
    return %c0_i32, %c0_i32_0, %c0_i32_1 : i32, i32, i32
  }
  func.func @transform_6(%arg0: i32) -> (i32, i32, i32) {
    %c0_i32 = arith.constant 0 : i32
    %c0_i32_0 = arith.constant 0 : i32
    %c0_i32_1 = arith.constant 0 : i32
    %c0_i32_2 = arith.constant 0 : i32
    return %c0_i32, %c0_i32_0, %c0_i32_1 : i32, i32, i32
  }
  func.func @transform_7(%arg0: i32) -> (i32, i32, i32) {
    %c0_i32 = arith.constant 0 : i32
    %c0_i32_0 = arith.constant 0 : i32
    %c0_i32_1 = arith.constant 0 : i32
    %c0_i32_2 = arith.constant 0 : i32
    return %c0_i32, %c0_i32_0, %c0_i32_1 : i32, i32, i32
  }
  func.func @transform_8(%arg0: i32) -> (i32, i32) {
    %c0_i32 = arith.constant 0 : i32
    %c0_i32_0 = arith.constant 0 : i32
    %c0_i32_1 = arith.constant 0 : i32
    return %c0_i32, %c0_i32_0 : i32, i32
  }
  func.func @transform_9(%arg0: i32) -> (i32, i32, i32) {
    %c0_i32 = arith.constant 0 : i32
    %c0_i32_0 = arith.constant 0 : i32
    %c0_i32_1 = arith.constant 0 : i32
    return %arg0, %c0_i32, %c0_i32_0 : i32, i32, i32
  }
}

</mosaic_0001>

<bundles_post_ra>
// kernel: sg2_split_student_forward.1
= control target key start
LH: loop header
LB: loop body
LE: loop exit
PB: predicated region body
PF: predicated region fallthrough
CT: control target
= control target key end

     0   :  { %14 = vsyncpa [#allocation5], 0  ;;  %s19388_s0 = inlined_call_operand.vmem [shape: f32[1,8,128], index: 0, kind: input, shape index: {}]   ;;  %s19389_s1 = inlined_call_operand.vmem [shape: f32[1,8,128], index: 1, kind: input, shape index: {}]   ;;  %s19390_s2 = inlined_call_operand.hbm [shape: f32[64,128], index: 2, kind: input, shape index: {}]   ;;  %s19391_s3 = inlined_call_operand.hbm [shape: f32[5,9,64,64], index: 3, kind: input, shape index: {}]   ;;  %s19392_s4 = inlined_call_operand.hbm [shape: f32[5,128,1152], index: 4, kind: input, shape index: {}]   ;;  %s19393_s5 = inlined_call_operand.hbm [shape: f32[5,64,128], index: 5, kind: input, shape index: {}]   ;;  %s19394_s6 = inlined_call_operand.hbm [shape: f32[3,128,128], index: 6, kind: input, shape index: {}]   ;;  %s19395_s7 = inlined_call_operand.hbm [shape: f32[3,1,128], index: 7, kind: input, shape index: {}]   ;;  %s19396_s8 = inlined_call_operand.hbm [shape: f32[64,64], index: 8, kind: input, shape index: {}]   ;;  %s19397_s9 = inlined_call_operand.vmem [shape: f32[1,64,128], index: 9, kind: output, shape index: {}]  }
   0x1   :  { %15 = vsyncpa [#allocation7], 0 }
   0x2   :  { %16 = vsyncpa [#allocation10], 0 }
   0x3   :  { %17 = vsyncpa [#allocation13], 0  ;;  %s17953_s30 = smov [#allocation6]   ;;  %s17954_s11 = smov [#allocation9]  }
   0x4   :  { %s39_s10 = sshll.u32 %s17953_s30, 4  ;;  %s63_s12 = sshll.u32 %s17954_s11, 4  ;;  %s40_s10 = int_to_ptr.vmem [resolvable:$true] %s39_s10  ;;  %s18017_s12 = int_to_ptr.vmem [resolvable:$true] %s63_s12 }
   0x5   :  { %s17791_s15 = scalar_lea.hbm %s19391_s3, 46080 }
   0x6   :  { %p17792_p0 = scmp.ne.s32.totalorder %s19391_s3, %s17791_s15  ;;  %p17795_p1 = scmp.lt.u32.totalorder %s17791_s15, %s19391_s3 }
   0x8   :  { %p17797_p2 = pnand %p17795_p1, %p17792_p0 }
   0xa   :  { %17800 = shalt.err (!%p17797_p2)
}
   0xb   :  { %s17801_s20 = scalar_lea.vmem %s40_s10, 46080  ;;  %p17806_p4 = scmp.lt.s32.totalorder %s40_s10, %s40_s10 }
   0xc   :  { %p17802_p3 = scmp.ne.s32.totalorder %s40_s10, %s17801_s20  ;;  %p17807_p5 = scmp.lt.s32.totalorder %s17801_s20, %s17801_s20 }
   0xe   :  { %p17808_p6 = por %p17807_p5, %p17806_p4 }
  0x10   :  { %p17809_p7 = pnand %p17808_p6, %p17802_p3 }
  0x12   :  { %17812 = shalt.err (!%p17809_p7)
}
  0x13   :  { %s17955_s21 = smov 128   ;;  %s17956_s22 = smov 8  }
  0x14   :  { %45 = dma.hbm_to_vmem [thread:$0]  %s19391_s3, 46080, %s40_s10, [#allocation7], %s17955_s21, %s17955_s21, %s17956_s22  }
  0x15   :  { %s17813_s27 = scalar_lea.hbm %s19393_s5, 5120 }
  0x16   :  { %p17814_p8 = scmp.ne.s32.totalorder %s19393_s5, %s17813_s27  ;;  %p17817_p9 = scmp.lt.u32.totalorder %s17813_s27, %s19393_s5 }
  0x18   :  { %p17819_p10 = pnand %p17817_p9, %p17814_p8 }
  0x1a   :  { %17822 = shalt.err (!%p17819_p10)
}
  0x1b   :  { %s17823_s13 = scalar_lea.vmem %s18017_s12, 5120  ;;  %p17828_p12 = scmp.lt.s32.totalorder %s18017_s12, %s18017_s12 }
  0x1c   :  { %p17824_p11 = scmp.ne.s32.totalorder %s18017_s12, %s17823_s13  ;;  %p17829_p13 = scmp.lt.s32.totalorder %s17823_s13, %s17823_s13 }
  0x1e   :  { %p17830_p0 = por %p17829_p13, %p17828_p12 }
  0x20   :  { %p17831_p1 = pnand %p17830_p0, %p17824_p11 }
  0x22   :  { %17834 = shalt.err (!%p17831_p1)
}
  0x23   :  { %69 = dma.hbm_to_vmem [thread:$0]  %s19393_s5, 5120, %s18017_s12, [#allocation10], %s17955_s21, %s17955_s21, %s17956_s22  }
  0x24   :  { %s17957_s14 = smov [#allocation12]   ;;  %s17835_s18 = scalar_lea.hbm %s19395_s7, 48 }
  0x25   :  { %s87_s15 = sshll.u32 %s17957_s14, 4  ;;  %p17836_p2 = scmp.ne.s32.totalorder %s19395_s7, %s17835_s18  ;;  %s88_s15 = int_to_ptr.vmem [resolvable:$true] %s87_s15 }
  0x26   :  { %p17839_p3 = scmp.lt.u32.totalorder %s17835_s18, %s19395_s7 }
  0x28   :  { %p17841_p4 = pnand %p17839_p3, %p17836_p2 }
  0x2a   :  { %17844 = shalt.err (!%p17841_p4)
}
  0x2b   :  { %s17845_s25 = scalar_lea.vmem %s88_s15, 48  ;;  %s17849_s5 = scalar_lea.vmem %s88_s15, 64 }
  0x2c   :  { %p17846_p5 = scmp.ne.s32.totalorder %s88_s15, %s17845_s25  ;;  %p17850_p6 = scmp.lt.s32.totalorder %s88_s15, %s88_s15 }
  0x2d   :  { %p17851_p7 = scmp.lt.s32.totalorder %s17849_s5, %s17845_s25 }
  0x2f   :  { %p17852_p8 = por %p17851_p7, %p17850_p6 }
  0x31   :  { %p17853_p9 = pnand %p17852_p8, %p17846_p5 }
  0x33   :  { %17856 = shalt.err (!%p17853_p9)
}
  0x34   :  { %s17958_s12 = smov 16   ;;  %s17959_s26 = smov 1  }
  0x35   :  { %93 = dma.hbm_to_vmem [thread:$0]  %s19395_s7, 48, %s88_s15, [#allocation13], %s17958_s12, %s17958_s12, %s17959_s26  }
  0x36   :  { %s17960_s29 = smov [#allocation4]   ;;  %s17961_s11 = smov [#allocation8]  }
  0x37   :  { %s27_s30 = sshll.u32 %s17960_s29, 4  ;;  %s51_s13 = sshll.u32 %s17961_s11, 4  ;;  %s28_s30 = int_to_ptr.vmem [resolvable:$true] %s27_s30  ;;  %s52_s13 = int_to_ptr.vmem [resolvable:$true] %s51_s13 }
  0x38   :  { %s17857_s14 = scalar_lea.hbm %s19390_s2, 1024 }
  0x39   :  { %p17858_p10 = scmp.ne.s32.totalorder %s19390_s2, %s17857_s14  ;;  %p17861_p11 = scmp.lt.u32.totalorder %s17857_s14, %s19390_s2 }
  0x3b   :  { %p17863_p12 = pnand %p17861_p11, %p17858_p10 }
  0x3d   :  { %17866 = shalt.err (!%p17863_p12)
}
  0x3e   :  { %s17867_s7 = scalar_lea.vmem %s28_s30, 1024  ;;  %p17872_p0 = scmp.lt.s32.totalorder %s28_s30, %s28_s30 }
  0x3f   :  { %p17868_p13 = scmp.ne.s32.totalorder %s28_s30, %s17867_s7  ;;  %p17873_p1 = scmp.lt.s32.totalorder %s17867_s7, %s17867_s7 }
  0x41   :  { %p17874_p2 = por %p17873_p1, %p17872_p0 }
  0x43   :  { %p17875_p3 = pnand %p17874_p2, %p17868_p13 }
  0x45   :  { %17878 = shalt.err (!%p17875_p3)
}
  0x46   :  { %33 = dma.hbm_to_vmem [thread:$0]  %s19390_s2, 1024, %s28_s30, [#allocation5], %s17955_s21, %s17955_s21, %s17956_s22  }
  0x47   :  { %s17879_s25 = scalar_lea.hbm %s19392_s4, 92160 }
  0x48   :  { %p17880_p4 = scmp.ne.s32.totalorder %s19392_s4, %s17879_s25  ;;  %p17883_p5 = scmp.lt.u32.totalorder %s17879_s25, %s19392_s4 }
  0x4a   :  { %p17885_p6 = pnand %p17883_p5, %p17880_p4 }
  0x4c   :  { %17888 = shalt.err (!%p17885_p6)
}
  0x4d   :  { %s17889_s28 = scalar_lea.vmem %s52_s13, 92160  ;;  %p17894_p8 = scmp.lt.s32.totalorder %s52_s13, %s52_s13 }
  0x4e   :  { %p17890_p7 = scmp.ne.s32.totalorder %s52_s13, %s17889_s28  ;;  %p17895_p9 = scmp.lt.s32.totalorder %s17889_s28, %s17889_s28 }
  0x50   :  { %p17896_p10 = por %p17895_p9, %p17894_p8 }
  0x52   :  { %p17897_p11 = pnand %p17896_p10, %p17890_p7 }
  0x54   :  { %17900 = shalt.err (!%p17897_p11)
}
  0x55   :  { %s17962_s2 = smov 1152   ;;  %s17963_s29 = smov 72  }
  0x56   :  { %57 = dma.hbm_to_vmem [thread:$0]  %s19392_s4, 92160, %s52_s13, [#allocation7], %s17962_s2, %s17962_s2, %s17963_s29  }
  0x57   :  { %s17964_s3 = smov [#allocation11]   ;;  %s17965_s14 = smov [#allocation14]  }
  0x58   :  { %s75_s10 = sshll.u32 %s17964_s3, 4  ;;  %s99_s16 = sshll.u32 %s17965_s14, 4  ;;  %s76_s10 = int_to_ptr.vmem [resolvable:$true] %s75_s10  ;;  %s100_s16 = int_to_ptr.vmem [resolvable:$true] %s99_s16 }
  0x59   :  { %s17901_s19 = scalar_lea.hbm %s19394_s6, 6144 }
  0x5a   :  { %p17902_p12 = scmp.ne.s32.totalorder %s19394_s6, %s17901_s19  ;;  %p17905_p13 = scmp.lt.u32.totalorder %s17901_s19, %s19394_s6 }
  0x5c   :  { %p17907_p0 = pnand %p17905_p13, %p17902_p12 }
  0x5e   :  { %17910 = shalt.err (!%p17907_p0)
}
  0x5f   :  { %s17911_s4 = scalar_lea.vmem %s76_s10, 6144  ;;  %p17916_p2 = scmp.lt.s32.totalorder %s76_s10, %s76_s10 }
  0x60   :  { %p17912_p1 = scmp.ne.s32.totalorder %s76_s10, %s17911_s4  ;;  %p17917_p3 = scmp.lt.s32.totalorder %s17911_s4, %s17911_s4 }
  0x62   :  { %p17918_p4 = por %p17917_p3, %p17916_p2 }
  0x64   :  { %p17919_p5 = pnand %p17918_p4, %p17912_p1 }
  0x66   :  { %17922 = shalt.err (!%p17919_p5)
}
  0x67   :  { %81 = dma.hbm_to_vmem [thread:$0]  %s19394_s6, 6144, %s76_s10, [#allocation10], %s17955_s21, %s17955_s21, %s17956_s22  }
  0x68   :  { %s17923_s12 = scalar_lea.hbm %s19396_s8, 1024 }
  0x69   :  { %p17924_p6 = scmp.ne.s32.totalorder %s19396_s8, %s17923_s12  ;;  %p17927_p7 = scmp.lt.u32.totalorder %s17923_s12, %s19396_s8 }
  0x6b   :  { %p17929_p8 = pnand %p17927_p7, %p17924_p6 }
  0x6d   :  { %17932 = shalt.err (!%p17929_p8)
}
  0x6e   :  { %s17933_s29 = scalar_lea.vmem %s100_s16, 1024  ;;  %p17938_p10 = scmp.lt.s32.totalorder %s100_s16, %s100_s16 }
  0x6f   :  { %p17934_p9 = scmp.ne.s32.totalorder %s100_s16, %s17933_s29  ;;  %p17939_p11 = scmp.lt.s32.totalorder %s17933_s29, %s17933_s29 }
  0x71   :  { %p17940_p12 = por %p17939_p11, %p17938_p10 }
  0x73   :  { %p17941_p13 = pnand %p17940_p12, %p17934_p9 }
  0x75   :  { %17944 = shalt.err (!%p17941_p13)
}
  0x76   :  { %105 = dma.hbm_to_vmem [thread:$0]  %s19396_s8, 1024, %s100_s16, [#allocation13], %s17955_s21, %s17955_s21, %s17956_s22  }
  0x77   :  { %17945 = dma.done.wait [#allocation5], 1024  }
  0x78   :  { %17946 = vsyncadd [#allocation5], 4294966272 }
  0x79   :  { %17947 = dma.done.wait [#allocation7], 138240  }
  0x7a   :  { %17948 = vsyncadd [#allocation7], 4294829056 }
  0x7b   :  { %17949 = dma.done.wait [#allocation10], 11264  }
  0x7c   :  { %17950 = vsyncadd [#allocation10], 4294956032 }
  0x7d   :  { %17951 = dma.done.wait [#allocation13], 1072  }
  0x7e   :  { %17952 = vsyncadd [#allocation13], 4294966224  ;;  %v17966_v0 = vmov 0.0   ;;  %v150_v1 = vld [vmem:[#allocation8 + $0x8] sm:$0xff]  ;;  %v159_v2 = vld [vmem:[#allocation8 + $0x50] sm:$0xff]  ;;  %v137_v32 = vlaneseq  ;;  %vm954_vm0 = vcmask 523264  }
  0x7f   :  { %357 = vmatprep.mubr.f32.mxu1 %v17966_v0  ;;  %583 = vmatprep.mubr.f32.mxu0 %v17966_v0  ;;  %v149_v3 = vld [vmem:[#allocation8] sm:$0xff]  ;;  %v15816_v4 = vpack.c.bf16 %v159_v2, %v150_v1  ;;  %v158_v5 = vld [vmem:[#allocation8 + $0x48] sm:$0xff]  ;;  %v168_v6 = vld [vmem:[#allocation8 + $0x98] sm:$0xff] }
  0x80   :  { %v177_v7 = vld [vmem:[#allocation8 + $0xe0] sm:$0xff]  ;;  %v15818_v8 = vpack.c.bf16 %v158_v5, %v149_v3  ;;  %v167_v10 = vld [vmem:[#allocation8 + $0x90] sm:$0xff]  ;;  %v176_v11 = vld [vmem:[#allocation8 + $0xd8] sm:$0xff]  ;;  %v18125_v39 = vshrl.u32 %v137_v32, 7 }
  0x81   :  { %v15820_v9 = vpack.c.bf16 %v177_v7, %v168_v6  ;;  %v186_v12 = vld [vmem:[#allocation8 + $0x128] sm:$0xff]  ;;  %15817 = vmatprep.subr.bf16.mxu1 %v15816_v4  ;;  %v195_v13 = vld [vmem:[#allocation8 + $0x170] sm:$0xff]  ;;  %v15822_v14 = vpack.c.bf16 %v176_v11, %v167_v10  ;;  %v185_v16 = vld [vmem:[#allocation8 + $0x120] sm:$0xff] }
  0x82   :  { %15819 = vmatpush1.bf16.msra.mxu1 %v15818_v8  ;;  %v15824_v15 = vpack.c.bf16 %v195_v13, %v186_v12  ;;  %v194_v17 = vld [vmem:[#allocation8 + $0x168] sm:$0xff]  ;;  %v204_v18 = vld [vmem:[#allocation8 + $0x1b8] sm:$0xff]  ;;  %v213_v19 = vld [vmem:[#allocation8 + $0x200] sm:$0xff]  ;;  %v139_v49 = vsub.s32 0, %v18125_v39 }
  0x83   :  { %15821 = vmatprep.subr.bf16.mxu1 %v15820_v9  ;;  %v15826_v20 = vpack.c.bf16 %v194_v17, %v185_v16  ;;  %v15828_v21 = vpack.c.bf16 %v213_v19, %v204_v18  ;;  %v203_v22 = vld [vmem:[#allocation8 + $0x1b0] sm:$0xff]  ;;  %v212_v23 = vld [vmem:[#allocation8 + $0x1f8] sm:$0xff]  ;;  %v222_v24 = vld [vmem:[#allocation8 + $0x248] sm:$0xff] }
  0x84   :  { %v231_v25 = vld [vmem:[#allocation8 + $0x290] sm:$0xff]  ;;  %v15830_v26 = vpack.c.bf16 %v212_v23, %v203_v22  ;;  %v221_v28 = vld [vmem:[#allocation8 + $0x240] sm:$0xff]  ;;  %v230_v29 = vld [vmem:[#allocation8 + $0x288] sm:$0xff] }
  0x85   :  { %v15832_v27 = vpack.c.bf16 %v231_v25, %v222_v24  ;;  %v240_v30 = vld [vmem:[#allocation8 + $0x2d8] sm:$0xff]  ;;  %v249_v31 = vld [vmem:[#allocation8 + $0x320] sm:$0xff]  ;;  %v15834_v33 = vpack.c.bf16 %v230_v29, %v221_v28  ;;  %v239_v35 = vld [vmem:[#allocation8 + $0x2d0] sm:$0xff] }
  0x86   :  { %15823 = vmatpush1.bf16.msra.mxu1 %v15822_v14  ;;  %v15836_v34 = vpack.c.bf16 %v249_v31, %v240_v30  ;;  %v248_v36 = vld [vmem:[#allocation8 + $0x318] sm:$0xff]  ;;  %v258_v37 = vld [vmem:[#allocation8 + $0x368] sm:$0xff]  ;;  %v267_v38 = vld [vmem:[#allocation8 + $0x3b0] sm:$0xff] }
  0x87   :  { %15825 = vmatprep.subr.bf16.mxu1 %v15824_v15  ;;  %v15838_v40 = vpack.c.bf16 %v248_v36, %v239_v35  ;;  %v15840_v41 = vpack.c.bf16 %v267_v38, %v258_v37  ;;  %v257_v42 = vld [vmem:[#allocation8 + $0x360] sm:$0xff]  ;;  %v266_v43 = vld [vmem:[#allocation8 + $0x3a8] sm:$0xff]  ;;  %v276_v44 = vld [vmem:[#allocation8 + $0x3f8] sm:$0xff] }
  0x88   :  { %v285_v45 = vld [vmem:[#allocation8 + $0x440] sm:$0xff]  ;;  %v154_v46 = vld [vmem:[#allocation8 + $0x28] sm:$0xff]  ;;  %v275_v47 = vld [vmem:[#allocation8 + $0x3f0] sm:$0xff]  ;;  %v15842_v51 = vpack.c.bf16 %v266_v43, %v257_v42 }
  0x89   :  { %v284_v48 = vld [vmem:[#allocation8 + $0x438] sm:$0xff]  ;;  %v163_v50 = vld [vmem:[#allocation8 + $0x70] sm:$0xff]  ;;  %v127_v52 = vld [vmem:[%s19388_s0] sm:$0xff]  ;;  %v15844_v56 = vpack.c.bf16 %v285_v45, %v276_v44 }
  0x8a   :  { %15827 = vmatpush1.bf16.msra.mxu1 %v15826_v20  ;;  %v15880_v53 = vpack.c.bf16 %v163_v50, %v154_v46  ;;  %v153_v54 = vld [vmem:[#allocation8 + $0x20] sm:$0xff]  ;;  %v162_v55 = vld [vmem:[#allocation8 + $0x68] sm:$0xff]  ;;  %v152_v57 = vld [vmem:[#allocation8 + $0x18] sm:$0xff]  ;;  %v18133_v1 = vrot.slane %v127_v52, %v139_v49  ;;  %v15846_v6 = vpack.c.bf16 %v284_v48, %v275_v47 }
  0x8b   :  { %15829 = vmatprep.subr.bf16.mxu1 %v15828_v21  ;;  %v161_v58 = vld [vmem:[#allocation8 + $0x60] sm:$0xff]  ;;  %v15882_v59 = vpack.c.bf16 %v162_v55, %v153_v54  ;;  %v172_v60 = vld [vmem:[#allocation8 + $0xb8] sm:$0xff]  ;;  %v171_v62 = vld [vmem:[#allocation8 + $0xb0] sm:$0xff] }
  0x8c   :  { %15881 = vmatprep.subr.bf16.mxu0 %v15880_v53  ;;  %v181_v61 = vld [vmem:[#allocation8 + $0x100] sm:$0xff]  ;;  %v180_v63 = vld [vmem:[#allocation8 + $0xf8] sm:$0xff]  ;;  %v190_v4 = vld [vmem:[#allocation8 + $0x148] sm:$0xff]  ;;  %v15848_v11 = vpack.c.bf16 %v161_v58, %v152_v57 }
  0x8d   :  { %15883 = vmatpush1.bf16.msra.mxu0 %v15882_v59  ;;  %v15884_v2 = vpack.c.bf16 %v181_v61, %v172_v60  ;;  %v15886_v3 = vpack.c.bf16 %v180_v63, %v171_v62  ;;  %v199_v5 = vld [vmem:[#allocation8 + $0x190] sm:$0xff]  ;;  %v129_v7 = vld [vmem:[#allocation4] sm:$0xff]  ;;  %v198_v10 = vld [vmem:[#allocation8 + $0x188] sm:$0xff] }
  0x8e   :  { %15831 = vmatpush1.bf16.msra.mxu1 %v15830_v26  ;;  %v15888_v8 = vpack.c.bf16 %v199_v5, %v190_v4  ;;  %v189_v9 = vld [vmem:[#allocation8 + $0x140] sm:$0xff]  ;;  %v151_v12 = vld [vmem:[#allocation8 + $0x10] sm:$0xff]  ;;  %v160_v13 = vld [vmem:[#allocation8 + $0x58] sm:$0xff]  ;;  %v18136_v18 = vmul.f32 %v18133_v1, %v129_v7 }
  0x8f   :  { %15833 = vmatprep.subr.bf16.mxu1 %v15832_v27  ;;  %v170_v14 = vld [vmem:[#allocation8 + $0xa8] sm:$0xff]  ;;  %15885 = vmatprep.subr.bf16.mxu0 %v15884_v2  ;;  %v179_v15 = vld [vmem:[#allocation8 + $0xf0] sm:$0xff]  ;;  %v208_v16 = vld [vmem:[#allocation8 + $0x1d8] sm:$0xff]  ;;  %v15890_v19 = vpack.c.bf16 %v198_v10, %v189_v9  ;;  %v15850_v20 = vpack.c.bf16 %v160_v13, %v151_v12 }
  0x90   :  { %v217_v17 = vld [vmem:[#allocation8 + $0x220] sm:$0xff]  ;;  %v130_v21 = vld [vmem:[#allocation4 + $0x8] sm:$0xff]  ;;  %v207_v22 = vld [vmem:[#allocation8 + $0x1d0] sm:$0xff]  ;;  %v15852_v24 = vpack.c.bf16 %v179_v15, %v170_v14 }
  0x91   :  { %15887 = vmatpush1.bf16.msra.mxu0 %v15886_v3  ;;  %v216_v23 = vld [vmem:[#allocation8 + $0x218] sm:$0xff]  ;;  %v169_v25 = vld [vmem:[#allocation8 + $0xa0] sm:$0xff]  ;;  %v178_v26 = vld [vmem:[#allocation8 + $0xe8] sm:$0xff]  ;;  %v15892_v28 = vpack.c.bf16 %v217_v17, %v208_v16  ;;  %v18140_v32 = vmul.f32 %v18133_v1, %v130_v21 }
  0x92   :  { %15835 = vmatpush1.bf16.msra.mxu1 %v15834_v33  ;;  %15889 = vmatprep.subr.bf16.mxu0 %v15888_v8  ;;  %v188_v27 = vld [vmem:[#allocation8 + $0x138] sm:$0xff]  ;;  %v197_v29 = vld [vmem:[#allocation8 + $0x180] sm:$0xff]  ;;  %v226_v30 = vld [vmem:[#allocation8 + $0x268] sm:$0xff]  ;;  %v15894_v33 = vpack.c.bf16 %v216_v23, %v207_v22 }
  0x93   :  { %15837 = vmatprep.subr.bf16.mxu1 %v15836_v34  ;;  %v235_v31 = vld [vmem:[#allocation8 + $0x2b0] sm:$0xff]  ;;  %v15854_v34 = vpack.c.bf16 %v178_v26, %v169_v25  ;;  %v225_v36 = vld [vmem:[#allocation8 + $0x260] sm:$0xff]  ;;  %v234_v37 = vld [vmem:[#allocation8 + $0x2a8] sm:$0xff]  ;;  %v15856_v38 = vpack.c.bf16 %v197_v29, %v188_v27 }
  0x94   :  { %v131_v35 = vld [vmem:[#allocation4 + $0x10] sm:$0xff]  ;;  %v206_v42 = vld [vmem:[#allocation8 + $0x1c8] sm:$0xff]  ;;  %v15896_v43 = vpack.c.bf16 %v235_v31, %v226_v30  ;;  %v244_v45 = vld [vmem:[#allocation8 + $0x2f8] sm:$0xff]  ;;  %v15898_v48 = vpack.c.bf16 %v234_v37, %v225_v36 }
  0x95   :  { %15891 = vmatpush1.bf16.msra.mxu0 %v15890_v19  ;;  %v215_v44 = vld [vmem:[#allocation8 + $0x210] sm:$0xff]  ;;  %v253_v46 = vld [vmem:[#allocation8 + $0x340] sm:$0xff]  ;;  %v18145_v47 = vmul.f32 %v18133_v1, %v131_v35  ;;  %v252_v53 = vld [vmem:[#allocation8 + $0x338] sm:$0xff] }
  0x96   :  { %15839 = vmatpush1.bf16.msra.mxu1 %v15838_v40  ;;  %v187_v40 = vld [vmem:[#allocation8 + $0x130] sm:$0xff]  ;;  %15893 = vmatprep.subr.bf16.mxu0 %v15892_v28  ;;  %v15860_v54 = vpack.c.bf16 %v215_v44, %v206_v42  ;;  %v205_v55 = vld [vmem:[#allocation8 + $0x1c0] sm:$0xff]  ;;  %v224_v57 = vld [vmem:[#allocation8 + $0x258] sm:$0xff]  ;;  %v15900_v58 = vpack.c.bf16 %v253_v46, %v244_v45 }
  0x97   :  { %15841 = vmatprep.subr.bf16.mxu1 %v15840_v41  ;;  %v196_v41 = vld [vmem:[#allocation8 + $0x178] sm:$0xff]  ;;  %v243_v52 = vld [vmem:[#allocation8 + $0x2f0] sm:$0xff]  ;;  %v233_v59 = vld [vmem:[#allocation8 + $0x2a0] sm:$0xff] }
  0x98   :  { %v15858_v50 = vpack.c.bf16 %v196_v41, %v187_v40  ;;  %v262_v60 = vld [vmem:[#allocation8 + $0x388] sm:$0xff]  ;;  %v271_v61 = vld [vmem:[#allocation8 + $0x3d0] sm:$0xff]  ;;  %v15902_v63 = vpack.c.bf16 %v252_v53, %v243_v52  ;;  %v133_v3 = vld [vmem:[#allocation4 + $0x20] sm:$0xff] }
  0x99   :  { %15895 = vmatpush1.bf16.msra.mxu0 %v15894_v33  ;;  %v261_v4 = vld [vmem:[#allocation8 + $0x380] sm:$0xff]  ;;  %v270_v5 = vld [vmem:[#allocation8 + $0x3c8] sm:$0xff]  ;;  %v223_v7 = vld [vmem:[#allocation8 + $0x250] sm:$0xff]  ;;  %v15904_v10 = vpack.c.bf16 %v271_v61, %v262_v60  ;;  %v18155_v14 = vmul.f32 %v18133_v1, %v133_v3 }
  0x9a   :  { %15843 = vmatpush1.bf16.msra.mxu1 %v15842_v51  ;;  %v132_v51 = vld [vmem:[#allocation4 + $0x18] sm:$0xff]  ;;  %15897 = vmatprep.subr.bf16.mxu0 %v15896_v43  ;;  %v242_v9 = vld [vmem:[#allocation8 + $0x2e8] sm:$0xff]  ;;  %v289_v13 = vld [vmem:[#allocation8 + $0x460] sm:$0xff]  ;;  %v15906_v15 = vpack.c.bf16 %v270_v5, %v261_v4 }
  0x9b   :  { %15845 = vmatprep.subr.bf16.mxu1 %v15844_v56  ;;  %v214_v56 = vld [vmem:[#allocation8 + $0x208] sm:$0xff]  ;;  %v18150_v62 = vmul.f32 %v18133_v1, %v132_v51  ;;  %v232_v8 = vld [vmem:[#allocation8 + $0x298] sm:$0xff]  ;;  %v279_v19 = vld [vmem:[#allocation8 + $0x410] sm:$0xff] }
  0x9c   :  { %v15862_v2 = vpack.c.bf16 %v214_v56, %v205_v55  ;;  %v280_v12 = vld [vmem:[#allocation8 + $0x418] sm:$0xff]  ;;  %v15866_v16 = vpack.c.bf16 %v232_v8, %v223_v7  ;;  %v134_v17 = vld [vmem:[#allocation4 + $0x28] sm:$0xff]  ;;  %v241_v22 = vld [vmem:[#allocation8 + $0x2e0] sm:$0xff] }
  0x9d   :  { %15899 = vmatpush1.bf16.msra.mxu0 %v15898_v48  ;;  %v250_v23 = vld [vmem:[#allocation8 + $0x328] sm:$0xff]  ;;  %v260_v25 = vld [vmem:[#allocation8 + $0x378] sm:$0xff]  ;;  %v269_v26 = vld [vmem:[#allocation8 + $0x3c0] sm:$0xff]  ;;  %v18160_v27 = vmul.f32 %v18133_v1, %v134_v17 }
  0x9e   :  { %15847 = vmatpush1.bf16.msra.mxu1 %v15846_v6  ;;  %v15864_v6 = vpack.c.bf16 %v233_v59, %v224_v57  ;;  %15901 = vmatprep.subr.bf16.mxu0 %v15900_v58  ;;  %v15870_v29 = vpack.c.bf16 %v250_v23, %v241_v22  ;;  %v135_v30 = vld [vmem:[#allocation4 + $0x30] sm:$0xff]  ;;  %v15872_v31 = vpack.c.bf16 %v269_v26, %v260_v25  ;;  %v278_v35 = vld [vmem:[#allocation8 + $0x408] sm:$0xff]  ;;  %v136_v40 = vld [vmem:[#allocation4 + $0x38] sm:$0xff] }
  0x9f   :  { %15849 = vmatprep.subr.bf16.mxu1 %v15848_v11  ;;  %v251_v11 = vld [vmem:[#allocation8 + $0x330] sm:$0xff]  ;;  %v18165_v37 = vmul.f32 %v18133_v1, %v135_v30  ;;  %v277_v42 = vld [vmem:[#allocation8 + $0x400] sm:$0xff]  ;;  %v286_v43 = vld [vmem:[#allocation8 + $0x448] sm:$0xff]  ;;  %v18171_v46 = vmul.f32 %v18133_v1, %v136_v40 }
  0xa0   :  { %v15868_v21 = vpack.c.bf16 %v251_v11, %v242_v9  ;;  %v259_v33 = vld [vmem:[#allocation8 + $0x370] sm:$0xff]  ;;  %v156_v44 = vld [vmem:[#allocation8 + $0x38] sm:$0xff]  ;;  %v165_v45 = vld [vmem:[#allocation8 + $0x80] sm:$0xff]  ;;  %v15878_v48 = vpack.c.bf16 %v286_v43, %v277_v42 }
  0xa1   :  { %358 = vmatmul.mubr.f32.vlgmr.msra.gmra.mrb[0].mxu1 %v18136_v18  ;;  %15903 = vmatpush1.bf16.msra.mxu0 %v15902_v63  ;;  %v287_v36 = vld [vmem:[#allocation8 + $0x450] sm:$0xff]  ;;  %v164_v52 = vld [vmem:[#allocation8 + $0x78] sm:$0xff]  ;;  %v174_v53 = vld [vmem:[#allocation8 + $0xc8] sm:$0xff] }
  0xa2   :  { %15851 = vmatpush1.bf16.msra.mxu1 %v15850_v20  ;;  %363 = vmatprep.mubr.f32.mxu1 %v17966_v0  ;;  %v288_v20 = vld [vmem:[#allocation8 + $0x458] sm:$0xff]  ;;  %v15876_v41 = vpack.c.bf16 %v287_v36, %v278_v35  ;;  %v155_v51 = vld [vmem:[#allocation8 + $0x30] sm:$0xff]  ;;  %v173_v56 = vld [vmem:[#allocation8 + $0xc0] sm:$0xff] }
  0xa3   :  { %15853 = vmatprep.subr.bf16.mxu1 %v15852_v24  ;;  %15905 = vmatprep.subr.bf16.mxu0 %v15904_v10  ;;  %v15908_v24 = vpack.c.bf16 %v289_v13, %v280_v12  ;;  %v15910_v28 = vpack.c.bf16 %v288_v20, %v279_v19  ;;  %v15914_v1 = vpack.c.bf16 %v164_v52, %v155_v51  ;;  %v182_v57 = vld [vmem:[#allocation8 + $0x108] sm:$0xff]  ;;  %v192_v58 = vld [vmem:[#allocation8 + $0x158] sm:$0xff]  ;;  %v201_v59 = vld [vmem:[#allocation8 + $0x1a0] sm:$0xff] }
  0xa4   :  { %v15918_v60 = vpack.c.bf16 %v182_v57, %v173_v56  ;;  %v15920_v61 = vpack.c.bf16 %v201_v59, %v192_v58  ;;  %v191_v63 = vld [vmem:[#allocation8 + $0x150] sm:$0xff]  ;;  %v210_v3 = vld [vmem:[#allocation8 + $0x1e8] sm:$0xff]  ;;  %v209_v7 = vld [vmem:[#allocation8 + $0x1e0] sm:$0xff] }
  0xa5   :  { %364 = vmatmul.mubr.f32.gmra.mrb[2].mxu1 %v18140_v32  ;;  %15907 = vmatpush1.bf16.msra.mxu0 %v15906_v15  ;;  %v219_v4 = vld [vmem:[#allocation8 + $0x230] sm:$0xff]  ;;  %v218_v8 = vld [vmem:[#allocation8 + $0x228] sm:$0xff]  ;;  %v228_v9 = vld [vmem:[#allocation8 + $0x278] sm:$0xff] }
  0xa6   :  { %15855 = vmatpush1.bf16.msra.mxu1 %v15854_v34  ;;  %369 = vmatprep.mubr.f32.mxu1 %v17966_v0  ;;  %v268_v34 = vld [vmem:[#allocation8 + $0x3b8] sm:$0xff]  ;;  %v237_v10 = vld [vmem:[#allocation8 + $0x2c0] sm:$0xff]  ;;  %v15926_v11 = vpack.c.bf16 %v218_v8, %v209_v7  ;;  %v227_v13 = vld [vmem:[#allocation8 + $0x270] sm:$0xff] }
  0xa7   :  { %15857 = vmatprep.subr.bf16.mxu1 %v15856_v38  ;;  %15909 = vmatprep.subr.bf16.mxu0 %v15908_v24  ;;  %v15874_v38 = vpack.c.bf16 %v268_v34, %v259_v33  ;;  %v15928_v12 = vpack.c.bf16 %v237_v10, %v228_v9  ;;  %v236_v15 = vld [vmem:[#allocation8 + $0x2b8] sm:$0xff]  ;;  %v255_v17 = vld [vmem:[#allocation8 + $0x350] sm:$0xff]  ;;  %v254_v22 = vld [vmem:[#allocation8 + $0x348] sm:$0xff] }
  0xa8   :  { %v15930_v19 = vpack.c.bf16 %v236_v15, %v227_v13  ;;  %v264_v23 = vld [vmem:[#allocation8 + $0x398] sm:$0xff]  ;;  %v273_v24 = vld [vmem:[#allocation8 + $0x3e0] sm:$0xff]  ;;  %v282_v30 = vld [vmem:[#allocation8 + $0x428] sm:$0xff] }
  0xa9   :  { %370 = vmatmul.mubr.f32.gmra.mrb[4].mxu1 %v18145_v47  ;;  %15911 = vmatpush1.bf16.msra.mxu0 %v15910_v28  ;;  %v15936_v26 = vpack.c.bf16 %v273_v24, %v264_v23  ;;  %v263_v28 = vld [vmem:[#allocation8 + $0x390] sm:$0xff]  ;;  %v281_v35 = vld [vmem:[#allocation8 + $0x420] sm:$0xff]  ;;  %v290_v36 = vld [vmem:[#allocation8 + $0x468] sm:$0xff] }
  0xaa   :  { %15859 = vmatpush1.bf16.msra.mxu1 %v15858_v50  ;;  %375 = vmatprep.mubr.f32.mxu1 %v17966_v0  ;;  %v15912_v50 = vpack.c.bf16 %v165_v45, %v156_v44  ;;  %v166_v40 = vld [vmem:[#allocation8 + $0x88] sm:$0xff]  ;;  %v175_v43 = vld [vmem:[#allocation8 + $0xd0] sm:$0xff]  ;;  %v184_v44 = vld [vmem:[#allocation8 + $0x118] sm:$0xff] }
  0xab   :  { %15861 = vmatprep.subr.bf16.mxu1 %v15860_v54  ;;  %v183_v54 = vld [vmem:[#allocation8 + $0x110] sm:$0xff]  ;;  %v15948_v45 = vpack.c.bf16 %v184_v44, %v175_v43  ;;  %v256_v58 = vld [vmem:[#allocation8 + $0x358] sm:$0xff] }
  0xac   :  { %584 = vmatmul.mubr.f32.vlgmr.msra.gmra.mrb[0].mxu0 %v18136_v18  ;;  %v15916_v55 = vpack.c.bf16 %v183_v54, %v174_v53  ;;  %v211_v52 = vld [vmem:[#allocation8 + $0x1f0] sm:$0xff]  ;;  %v220_v53 = vld [vmem:[#allocation8 + $0x238] sm:$0xff] }
  0xad   :  { %376 = vmatmul.mubr.f32.gmra.mrb[6].mxu1 %v18150_v62  ;;  %589 = vmatprep.mubr.f32.mxu0 %v17966_v0  ;;  %v15956_v54 = vpack.c.bf16 %v220_v53, %v211_v52  ;;  %v247_v57 = vld [vmem:[#allocation8 + $0x310] sm:$0xff] }
  0xae   :  { %15863 = vmatpush1.bf16.msra.mxu1 %v15862_v2  ;;  %381 = vmatprep.mubr.f32.mxu1 %v17966_v0  ;;  %v200_v2 = vld [vmem:[#allocation8 + $0x198] sm:$0xff]  ;;  %v15964_v59 = vpack.c.bf16 %v256_v58, %v247_v57  ;;  %v944_v57 = vld [vmem:[#allocation6 + $0x30] sm:$0xff] }
  0xaf   :  { %15865 = vmatprep.subr.bf16.mxu1 %v15864_v6  ;;  %v15922_v5 = vpack.c.bf16 %v200_v2, %v191_v63  ;;  %v15924_v6 = vpack.c.bf16 %v219_v4, %v210_v3  ;;  %v283_v2 = vld [vmem:[#allocation8 + $0x430] sm:$0xff]  ;;  %v292_v3 = vld [vmem:[#allocation8 + $0x478] sm:$0xff] }
  0xb0   :  { %590 = vmatmul.mubr.f32.gmra.mrb[2].mxu0 %v18140_v32  ;;  %v15972_v4 = vpack.c.bf16 %v292_v3, %v283_v2 }
  0xb1   :  { %382 = vmatmul.mubr.f32.gmra.mrb[8].mxu1 %v18155_v14  ;;  %595 = vmatprep.mubr.f32.mxu0 %v17966_v0 }
  0xb2   :  { %15867 = vmatpush1.bf16.msra.mxu1 %v15866_v16  ;;  %387 = vmatprep.mubr.f32.mxu1 %v17966_v0  ;;  %v246_v16 = vld [vmem:[#allocation8 + $0x308] sm:$0xff] }
  0xb3   :  { %15869 = vmatprep.subr.bf16.mxu1 %v15868_v21  ;;  %v15932_v20 = vpack.c.bf16 %v255_v17, %v246_v16  ;;  %v245_v21 = vld [vmem:[#allocation8 + $0x300] sm:$0xff] }
  0xb4   :  { %596 = vmatmul.mubr.f32.gmra.mrb[4].mxu0 %v18145_v47  ;;  %v15934_v25 = vpack.c.bf16 %v254_v22, %v245_v21 }
  0xb5   :  { %388 = vmatmul.mubr.f32.gmra.mrb[10].mxu1 %v18160_v27  ;;  %601 = vmatprep.mubr.f32.mxu0 %v17966_v0 }
  0xb6   :  { %15871 = vmatpush1.bf16.msra.mxu1 %v15870_v29  ;;  %393 = vmatprep.mubr.f32.mxu1 %v17966_v0  ;;  %v272_v29 = vld [vmem:[#allocation8 + $0x3d8] sm:$0xff] }
  0xb7   :  { %15873 = vmatprep.subr.bf16.mxu1 %v15872_v31  ;;  %v291_v31 = vld [vmem:[#allocation8 + $0x470] sm:$0xff]  ;;  %v15938_v33 = vpack.c.bf16 %v272_v29, %v263_v28 }
  0xb8   :  { %602 = vmatmul.mubr.f32.gmra.mrb[6].mxu0 %v18150_v62  ;;  %v15940_v34 = vpack.c.bf16 %v291_v31, %v282_v30 }
  0xb9   :  { %394 = vmatmul.mubr.f32.gmra.mrb[12].mxu1 %v18165_v37  ;;  %607 = vmatprep.mubr.f32.mxu0 %v17966_v0 }
  0xba   :  { %15875 = vmatpush1.bf16.msra.mxu1 %v15874_v38  ;;  %399 = vmatprep.mubr.f32.mxu1 %v17966_v0  ;;  %v157_v38 = vld [vmem:[#allocation8 + $0x40] sm:$0xff] }
  0xbb   :  { %15877 = vmatprep.subr.bf16.mxu1 %v15876_v41  ;;  %v15942_v41 = vpack.c.bf16 %v290_v36, %v281_v35  ;;  %v15944_v42 = vpack.c.bf16 %v166_v40, %v157_v38  ;;  %v940_v38 = vld [vmem:[#allocation6 + $0x10] sm:$0xff] }
  0xbc   :  { %608 = vmatmul.mubr.f32.gmra.mrb[8].mxu0 %v18155_v14 }
  0xbd   :  { %400 = vmatmul.mubr.f32.gmra.mrb[14].mxu1 %v18171_v46  ;;  %613 = vmatprep.mubr.f32.mxu0 %v17966_v0 }
  0xbe   :  { %15879 = vmatpush1.bf16.msra.mxu1 %v15878_v48  ;;  %470 = vmatprep.mubr.f32.mxu1 %v17966_v0  ;;  %v193_v48 = vld [vmem:[#allocation8 + $0x160] sm:$0xff] }
  0xbf   :  { %15913 = vmatprep.subr.bf16.mxu1 %v15912_v50  ;;  %v202_v50 = vld [vmem:[#allocation8 + $0x1a8] sm:$0xff] }
  0xc0   :  { %614 = vmatmul.mubr.f32.gmra.mrb[10].mxu0 %v18160_v27  ;;  %v15952_v51 = vpack.c.bf16 %v202_v50, %v193_v48  ;;  %v942_v50 = vld [vmem:[#allocation6 + $0x20] sm:$0xff] }
  0xc1   :  { %471 = vmatmul.mubr.f32.vlgmr.msra.gmra.mrb[16].mxu1 %v18136_v18  ;;  %619 = vmatprep.mubr.f32.mxu0 %v17966_v0 }
  0xc2   :  { %476 = vmatprep.mubr.f32.mxu1 %v17966_v0  ;;  %15915 = vmatpush1.bf16.msra.mxu1 %v15914_v1  ;;  %v229_v1 = vld [vmem:[#allocation8 + $0x280] sm:$0xff] }
  0xc3   :  { %15917 = vmatprep.subr.bf16.mxu1 %v15916_v55  ;;  %v238_v55 = vld [vmem:[#allocation8 + $0x2c8] sm:$0xff] }
  0xc4   :  { %620 = vmatmul.mubr.f32.gmra.mrb[12].mxu0 %v18165_v37  ;;  %v15960_v56 = vpack.c.bf16 %v238_v55, %v229_v1  ;;  %v943_v1 = vld [vmem:[#allocation6 + $0x28] sm:$0xff] }
  0xc5   :  { %477 = vmatmul.mubr.f32.gmra.mrb[18].mxu1 %v18140_v32  ;;  %625 = vmatprep.mubr.f32.mxu0 %v17966_v0 }
  0xc6   :  { %482 = vmatprep.mubr.f32.mxu1 %v17966_v0  ;;  %15919 = vmatpush1.bf16.msra.mxu1 %v15918_v60  ;;  %v265_v60 = vld [vmem:[#allocation8 + $0x3a0] sm:$0xff] }
  0xc7   :  { %15921 = vmatprep.subr.bf16.mxu1 %v15920_v61  ;;  %v274_v61 = vld [vmem:[#allocation8 + $0x3e8] sm:$0xff] }
  0xc8   :  { %626 = vmatmul.mubr.f32.gmra.mrb[14].mxu0 %v18171_v46  ;;  %v15968_v63 = vpack.c.bf16 %v274_v61, %v265_v60  ;;  %v945_v60 = vld [vmem:[#allocation6 + $0x38] sm:$0xff] }
  0xc9   :  { %483 = vmatmul.mubr.f32.gmra.mrb[20].mxu1 %v18145_v47 }
  0xca   :  { %488 = vmatprep.mubr.f32.mxu1 %v17966_v0  ;;  %15923 = vmatpush1.bf16.msra.mxu1 %v15922_v5  ;;  %v938_v5 = vld [vmem:[#allocation6] sm:$0xff] }
  0xcb   :  { %15925 = vmatprep.subr.bf16.mxu1 %v15924_v6 }
  0xcd   :  { %489 = vmatmul.mubr.f32.gmra.mrb[22].mxu1 %v18150_v62 }
  0xce   :  { %494 = vmatprep.mubr.f32.mxu1 %v17966_v0  ;;  %15927 = vmatpush1.bf16.msra.mxu1 %v15926_v11 }
  0xcf   :  { %15929 = vmatprep.subr.bf16.mxu1 %v15928_v12 }
  0xd1   :  { %495 = vmatmul.mubr.f32.gmra.mrb[24].mxu1 %v18155_v14 }
  0xd2   :  { %500 = vmatprep.mubr.f32.mxu1 %v17966_v0  ;;  %15931 = vmatpush1.bf16.msra.mxu1 %v15930_v19 }
  0xd3   :  { %15933 = vmatprep.subr.bf16.mxu1 %v15932_v20 }
  0xd5   :  { %501 = vmatmul.mubr.f32.gmra.mrb[26].mxu1 %v18160_v27 }
  0xd6   :  { %506 = vmatprep.mubr.f32.mxu1 %v17966_v0  ;;  %15935 = vmatpush1.bf16.msra.mxu1 %v15934_v25 }
  0xd7   :  { %15937 = vmatprep.subr.bf16.mxu1 %v15936_v26 }
  0xd9   :  { %507 = vmatmul.mubr.f32.gmra.mrb[28].mxu1 %v18165_v37 }
  0xda   :  { %512 = vmatprep.mubr.f32.mxu1 %v17966_v0  ;;  %15939 = vmatpush1.bf16.msra.mxu1 %v15938_v33 }
  0xdb   :  { %15941 = vmatprep.subr.bf16.mxu1 %v15940_v34  ;;  %v939_v34 = vld [vmem:[#allocation6 + $0x8] sm:$0xff] }
  0xdd   :  { %513 = vmatmul.mubr.f32.gmra.mrb[30].mxu1 %v18171_v46 }
  0xde   :  { %15943 = vmatpush1.bf16.msra.mxu1 %v15942_v41  ;;  %696 = vmatprep.mubr.f32.mxu1 %v17966_v0 }
  0xdf   :  { %15945 = vmatprep.subr.bf16.mxu1 %v15944_v42 }
  0xe1   :  { %697 = vmatmul.mubr.f32.vlgmr.msra.gmra.mrb[32].mxu1 %v18136_v18 }
  0xe2   :  { %702 = vmatprep.mubr.f32.mxu1 %v17966_v0  ;;  %15947 = vmatpush3.bf16.msra.mxu1 %v15944_v42  ;;  %v941_v42 = vld [vmem:[#allocation6 + $0x18] sm:$0xff] }
  0xe3   :  { %15949 = vmatprep.subr.bf16.mxu1 %v15948_v45 }
  0xe5   :  { %703 = vmatmul.mubr.f32.gmra.mrb[34].mxu1 %v18140_v32 }
  0xe6   :  { %708 = vmatprep.mubr.f32.mxu1 %v17966_v0  ;;  %15951 = vmatpush3.bf16.msra.mxu1 %v15948_v45 }
  0xe7   :  { %15953 = vmatprep.subr.bf16.mxu1 %v15952_v51 }
  0xe9   :  { %709 = vmatmul.mubr.f32.gmra.mrb[36].mxu1 %v18145_v47 }
  0xea   :  { %714 = vmatprep.mubr.f32.mxu1 %v17966_v0  ;;  %15955 = vmatpush3.bf16.msra.mxu1 %v15952_v51 }
  0xeb   :  { %15957 = vmatprep.subr.bf16.mxu1 %v15956_v54 }
  0xed   :  { %715 = vmatmul.mubr.f32.gmra.mrb[38].mxu1 %v18150_v62 }
  0xee   :  { %720 = vmatprep.mubr.f32.mxu1 %v17966_v0  ;;  %15959 = vmatpush3.bf16.msra.mxu1 %v15956_v54 }
  0xef   :  { %15961 = vmatprep.subr.bf16.mxu1 %v15960_v56 }
  0xf1   :  { %721 = vmatmul.mubr.f32.gmra.mrb[40].mxu1 %v18155_v14 }
  0xf2   :  { %726 = vmatprep.mubr.f32.mxu1 %v17966_v0  ;;  %15963 = vmatpush3.bf16.msra.mxu1 %v15960_v56 }
  0xf3   :  { %15965 = vmatprep.subr.bf16.mxu1 %v15964_v59 }
  0xf5   :  { %727 = vmatmul.mubr.f32.gmra.mrb[42].mxu1 %v18160_v27 }
  0xf6   :  { %732 = vmatprep.mubr.f32.mxu1 %v17966_v0  ;;  %15967 = vmatpush3.bf16.msra.mxu1 %v15964_v59 }
  0xf7   :  { %15969 = vmatprep.subr.bf16.mxu1 %v15968_v63 }
  0xf9   :  { %733 = vmatmul.mubr.f32.gmra.mrb[44].mxu1 %v18165_v37 }
  0xfa   :  { %738 = vmatprep.mubr.f32.mxu1 %v17966_v0  ;;  %15971 = vmatpush3.bf16.msra.mxu1 %v15968_v63 }
  0xfb   :  { %15973 = vmatprep.subr.bf16.mxu1 %v15972_v4 }
  0xfd   :  { %739 = vmatmul.mubr.f32.gmra.mrb[46].mxu1 %v18171_v46 }
  0xfe   :  { %15975 = vmatpush3.bf16.msra.mxu1 %v15972_v4  ;;  %14208 = vmatprep.mubr.f32.mxu1 %v18136_v18  ;;  %v1109_v4 = vld [vmem:[#allocation6 + $0x40] sm:$0xff] }
 0x101   :  { %14209 = vmatmul.mubr.f32.vlgmr.msra.gmra.mrb[48].mxu1 %v18140_v32 }
 0x102   :  { %14211 = vmatprep.mubr.f32.mxu1 %v18145_v47 }
 0x105   :  { %14212 = vmatmul.mubr.f32.gmra.mrb[50].mxu1 %v18150_v62 }
 0x106   :  { %14214 = vmatprep.mubr.f32.mxu1 %v18155_v14 }
 0x109   :  { %14215 = vmatmul.mubr.f32.gmra.mrb[52].mxu1 %v18160_v27 }
 0x10a   :  { %14217 = vmatprep.mubr.f32.mxu1 %v18165_v37 }
 0x10d   :  { %14218 = vmatmul.mubr.f32.gmra.mrb[54].mxu1 %v18171_v46 }
 0x10e   :  { %14236 = vmatprep.mubr.msk.f32.mxu1 %vm954_vm0, %v938_v5 }
 0x174   :  { %v359_v6 = vpop.f32.mrb[0].mxu1 }
 0x175   :  { %v361_v18 = vpop.f32.mrb[1].mxu1 }
 0x178   :  { %v365_v7 = vpop.f32.mrb[2].mxu1 }
 0x179   :  { %v15976_v32 = vpack.c.bf16 %v365_v7, %v359_v6  ;;  %v367_v8 = vpop.f32.mrb[3].mxu1  ;;  %v2556_v7 = vld [vmem:[#allocation11] sm:$0xff] }
 0x17a   :  { %v15992_v47 = vpack.c.bf16 %v367_v8, %v361_v18 }
 0x17b   :  { %15977 = vmatprep.subr.bf16.mxu1 %v15976_v32 }
 0x17c   :  { %v371_v62 = vpop.f32.mrb[4].mxu1  ;;  %15979 = vmatpush3.bf16.msra.mxu1 %v15976_v32  ;;  %v2557_v32 = vld [vmem:[#allocation11 + $0x8] sm:$0xff] }
 0x17d   :  { %v373_v14 = vpop.f32.mrb[5].mxu1 }
 0x17f   :  { %v585_v17 = vpop.f32.mrb[0].mxu0 }
 0x180   :  { %v377_v9 = vpop.f32.mrb[6].mxu1  ;;  %v587_v20 = vpop.f32.mrb[1].mxu0 }
 0x181   :  { %v15980_v27 = vpack.c.bf16 %v377_v9, %v371_v62  ;;  %v379_v10 = vpop.f32.mrb[7].mxu1  ;;  %v2558_v9 = vld [vmem:[#allocation11 + $0x10] sm:$0xff] }
 0x182   :  { %v15996_v37 = vpack.c.bf16 %v379_v10, %v373_v14  ;;  %v16120_v14 = vpack.c.bf16 %v2557_v32, %v2556_v7  ;;  %v1286_v7 = vld [vmem:[#allocation6 + $0xb8] sm:$0xff] }
 0x183   :  { %15981 = vmatprep.subr.bf16.mxu1 %v15980_v27  ;;  %v591_v22 = vpop.f32.mrb[2].mxu0 }
 0x184   :  { %v383_v46 = vpop.f32.mrb[8].mxu1  ;;  %15983 = vmatpush3.bf16.msra.mxu1 %v15980_v27  ;;  %v18230_v24 = vpack.c.bf16 %v591_v22, %v585_v17  ;;  %v593_v25 = vpop.f32.mrb[3].mxu0  ;;  %v2559_v27 = vld [vmem:[#allocation11 + $0x18] sm:$0xff]  ;;  %16121 = vmatprep.subr.bf16.mxu0 %v16120_v14  ;;  %v1113_v22 = vld [vmem:[#allocation6 + $0x60] sm:$0xff] }
 0x185   :  { %v385_v11 = vpop.f32.mrb[9].mxu1  ;;  %v18232_v29 = vpack.c.bf16 %v593_v25, %v587_v20  ;;  %16123 = vmatpush3.bf16.msra.mxu0 %v16120_v14  ;;  %v1450_v14 = vld [vmem:[#allocation6 + $0xc8] sm:$0xff] }
 0x187   :  { %v597_v31 = vpop.f32.mrb[4].mxu0 }
 0x188   :  { %v389_v12 = vpop.f32.mrb[10].mxu1  ;;  %v599_v35 = vpop.f32.mrb[5].mxu0 }
 0x189   :  { %v15984_v13 = vpack.c.bf16 %v389_v12, %v383_v46  ;;  %v391_v15 = vpop.f32.mrb[11].mxu1  ;;  %v16124_v46 = vpack.c.bf16 %v2559_v27, %v2558_v9  ;;  %v2561_v12 = vld [vmem:[#allocation11 + $0x28] sm:$0xff]  ;;  %v1451_v27 = vld [vmem:[#allocation6 + $0xd0] sm:$0xff] }
 0x18a   :  { %v16000_v16 = vpack.c.bf16 %v391_v15, %v385_v11  ;;  %v2560_v11 = vld [vmem:[#allocation11 + $0x20] sm:$0xff] }
 0x18b   :  { %15985 = vmatprep.subr.bf16.mxu1 %v15984_v13  ;;  %v603_v40 = vpop.f32.mrb[6].mxu0  ;;  %16125 = vmatprep.subr.bf16.mxu0 %v16124_v46  ;;  %v16128_v25 = vpack.c.bf16 %v2561_v12, %v2560_v11  ;;  %v1453_v11 = vld [vmem:[#allocation6 + $0xe0] sm:$0xff] }
 0x18c   :  { %v395_v19 = vpop.f32.mrb[12].mxu1  ;;  %15987 = vmatpush3.bf16.msra.mxu1 %v15984_v13  ;;  %v18236_v43 = vpack.c.bf16 %v603_v40, %v597_v31  ;;  %v605_v44 = vpop.f32.mrb[7].mxu0  ;;  %16127 = vmatpush3.bf16.msra.mxu0 %v16124_v46  ;;  %v2565_v40 = vld [vmem:[#allocation11 + $0x48] sm:$0xff] }
 0x18d   :  { %v397_v21 = vpop.f32.mrb[13].mxu1  ;;  %v18238_v51 = vpack.c.bf16 %v605_v44, %v599_v35  ;;  %v1115_v35 = vld [vmem:[#allocation6 + $0x70] sm:$0xff]  ;;  %16129 = vmatprep.subr.bf16.mxu0 %v16128_v25 }
 0x18f   :  { %v609_v53 = vpop.f32.mrb[8].mxu0 }
 0x190   :  { %v401_v23 = vpop.f32.mrb[14].mxu1  ;;  %v611_v55 = vpop.f32.mrb[9].mxu0  ;;  %16131 = vmatpush3.bf16.msra.mxu0 %v16128_v25  ;;  %v1619_v25 = vld [vmem:[#allocation6 + $0x100] sm:$0xff] }
 0x191   :  { %v15988_v26 = vpack.c.bf16 %v401_v23, %v395_v19  ;;  %v403_v28 = vpop.f32.mrb[15].mxu1 }
 0x192   :  { %v16004_v30 = vpack.c.bf16 %v403_v28, %v397_v21  ;;  %v2562_v28 = vld [vmem:[#allocation11 + $0x30] sm:$0xff] }
 0x193   :  { %15989 = vmatprep.subr.bf16.mxu1 %v15988_v26  ;;  %v615_v58 = vpop.f32.mrb[10].mxu0 }
 0x194   :  { %v472_v33 = vpop.f32.mrb[16].mxu1  ;;  %15991 = vmatpush3.bf16.msra.mxu1 %v15988_v26  ;;  %v18246_v61 = vpack.c.bf16 %v615_v58, %v609_v53  ;;  %v617_v63 = vpop.f32.mrb[11].mxu0 }
 0x195   :  { %v474_v36 = vpop.f32.mrb[17].mxu1  ;;  %15993 = vmatprep.subr.bf16.mxu1 %v15992_v47  ;;  %v18248_v5 = vpack.c.bf16 %v617_v63, %v611_v55  ;;  %v1281_v55 = vld [vmem:[#allocation6 + $0x90] sm:$0xff] }
 0x197   :  { %14237 = vmatmul.mubr.msk.f32.vlgmr.msra.gmra.mrb[56].mxu1 %vm954_vm0, %v939_v34  ;;  %v621_v18 = vpop.f32.mrb[12].mxu0 }
 0x198   :  { %v478_v41 = vpop.f32.mrb[18].mxu1  ;;  %15995 = vmatpush3.bf16.msra.mxu1 %v15992_v47  ;;  %14239 = vmatprep.mubr.msk.f32.mxu1 %vm954_vm0, %v940_v38  ;;  %v1110_v47 = vld [vmem:[#allocation6 + $0x48] sm:$0xff]  ;;  %v623_v62 = vpop.f32.mrb[13].mxu0  ;;  %v2564_v38 = vld [vmem:[#allocation11 + $0x40] sm:$0xff] }
 0x199   :  { %v16008_v45 = vpack.c.bf16 %v478_v41, %v472_v33  ;;  %v480_v48 = vpop.f32.mrb[19].mxu1  ;;  %15997 = vmatprep.subr.bf16.mxu1 %v15996_v37  ;;  %v1114_v33 = vld [vmem:[#allocation6 + $0x68] sm:$0xff]  ;;  %v16136_v53 = vpack.c.bf16 %v2565_v40, %v2564_v38 }
 0x19a   :  { %v18240_v52 = vpack.c.bf16 %v480_v48, %v474_v36  ;;  %v1279_v48 = vld [vmem:[#allocation6 + $0x80] sm:$0xff] }
 0x19b   :  { %14240 = vmatmul.mubr.msk.f32.gmra.mrb[58].mxu1 %vm954_vm0, %v941_v42  ;;  %v627_v13 = vpop.f32.mrb[14].mxu0  ;;  %v1116_v42 = vld [vmem:[#allocation6 + $0x78] sm:$0xff] }
 0x19c   :  { %v484_v54 = vpop.f32.mrb[20].mxu1  ;;  %15999 = vmatpush3.bf16.msra.mxu1 %v15996_v37  ;;  %14242 = vmatprep.mubr.msk.f32.mxu1 %vm954_vm0, %v942_v50  ;;  %v1111_v37 = vld [vmem:[#allocation6 + $0x50] sm:$0xff]  ;;  %v18256_v17 = vpack.c.bf16 %v627_v13, %v621_v18  ;;  %v629_v19 = vpop.f32.mrb[15].mxu0 }
 0x19d   :  { %v486_v56 = vpop.f32.mrb[21].mxu1  ;;  %16001 = vmatprep.subr.bf16.mxu1 %v16000_v16  ;;  %v18258_v23 = vpack.c.bf16 %v629_v19, %v623_v62  ;;  %v1455_v19 = vld [vmem:[#allocation6 + $0xf0] sm:$0xff] }
 0x19f   :  { %14243 = vmatmul.mubr.msk.f32.gmra.mrb[60].mxu1 %vm954_vm0, %v943_v1 }
 0x1a0   :  { %v490_v59 = vpop.f32.mrb[22].mxu1  ;;  %16003 = vmatpush3.bf16.msra.mxu1 %v16000_v16  ;;  %14245 = vmatprep.mubr.msk.f32.mxu1 %vm954_vm0, %v944_v57  ;;  %v1112_v16 = vld [vmem:[#allocation6 + $0x58] sm:$0xff] }
 0x1a1   :  { %v16012_v2 = vpack.c.bf16 %v490_v59, %v484_v54  ;;  %v492_v3 = vpop.f32.mrb[23].mxu1  ;;  %16005 = vmatprep.subr.bf16.mxu1 %v16004_v30  ;;  %v1280_v54 = vld [vmem:[#allocation6 + $0x88] sm:$0xff]  ;;  %v1282_v57 = vld [vmem:[#allocation6 + $0x98] sm:$0xff]  ;;  %v1283_v59 = vld [vmem:[#allocation6 + $0xa0] sm:$0xff] }
 0x1a2   :  { %v18250_v6 = vpack.c.bf16 %v492_v3, %v486_v56 }
 0x1a3   :  { %14246 = vmatmul.mubr.msk.f32.gmra.mrb[62].mxu1 %vm954_vm0, %v945_v60 }
 0x1a4   :  { %v496_v8 = vpop.f32.mrb[24].mxu1  ;;  %16007 = vmatpush3.bf16.msra.mxu1 %v16004_v30  ;;  %14264 = vmatprep.mubr.msk.f32.mxu1 %vm954_vm0, %v1109_v4  ;;  %v2563_v30 = vld [vmem:[#allocation11 + $0x38] sm:$0xff]  ;;  %v1285_v4 = vld [vmem:[#allocation6 + $0xb0] sm:$0xff] }
 0x1a5   :  { %v498_v10 = vpop.f32.mrb[25].mxu1  ;;  %16009 = vmatprep.subr.bf16.mxu1 %v16008_v45  ;;  %v16132_v36 = vpack.c.bf16 %v2563_v30, %v2562_v28  ;;  %v1620_v30 = vld [vmem:[#allocation6 + $0x108] sm:$0xff] }
 0x1a7   :  { %14265 = vmatmul.mubr.msk.f32.vlgmr.msra.gmra.mrb[56].mxu1 %vm954_vm0, %v1110_v47  ;;  %16133 = vmatprep.subr.bf16.mxu0 %v16132_v36 }
 0x1a8   :  { %v502_v15 = vpop.f32.mrb[26].mxu1  ;;  %16011 = vmatpush3.bf16.msra.mxu1 %v16008_v45  ;;  %14267 = vmatprep.mubr.msk.f32.mxu1 %vm954_vm0, %v1111_v37  ;;  %v1452_v37 = vld [vmem:[#allocation6 + $0xd8] sm:$0xff] }
 0x1a9   :  { %v16016_v20 = vpack.c.bf16 %v502_v15, %v496_v8  ;;  %v504_v21 = vpop.f32.mrb[27].mxu1  ;;  %16013 = vmatprep.subr.bf16.mxu1 %v16012_v2  ;;  %16135 = vmatpush3.bf16.msra.mxu0 %v16132_v36  ;;  %v1449_v8 = vld [vmem:[#allocation6 + $0xc0] sm:$0xff] }
 0x1aa   :  { %v16032_v26 = vpack.c.bf16 %v504_v21, %v498_v10  ;;  %16137 = vmatprep.subr.bf16.mxu0 %v16136_v53  ;;  %v1456_v21 = vld [vmem:[#allocation6 + $0xf8] sm:$0xff] }
 0x1ab   :  { %14268 = vmatmul.mubr.msk.f32.gmra.mrb[58].mxu1 %vm954_vm0, %v1112_v16  ;;  %v1454_v16 = vld [vmem:[#allocation6 + $0xe8] sm:$0xff] }
 0x1ac   :  { %v508_v31 = vpop.f32.mrb[28].mxu1  ;;  %16015 = vmatpush3.bf16.msra.mxu1 %v16012_v2  ;;  %14270 = vmatprep.mubr.msk.f32.mxu1 %vm954_vm0, %v1113_v22 }
 0x1ad   :  { %v510_v34 = vpop.f32.mrb[29].mxu1  ;;  %16017 = vmatprep.subr.bf16.mxu1 %v16016_v20  ;;  %16139 = vmatpush3.bf16.msra.mxu0 %v16136_v53 }
 0x1af   :  { %14271 = vmatmul.mubr.msk.f32.gmra.mrb[60].mxu1 %vm954_vm0, %v1114_v33 }
 0x1b0   :  { %v514_v41 = vpop.f32.mrb[30].mxu1  ;;  %16019 = vmatpush3.bf16.msra.mxu1 %v16016_v20  ;;  %14273 = vmatprep.mubr.msk.f32.mxu1 %vm954_vm0, %v1115_v35  ;;  %v1622_v35 = vld [vmem:[#allocation6 + $0x118] sm:$0xff] }
 0x1b1   :  { %v16020_v44 = vpack.c.bf16 %v514_v41, %v508_v31  ;;  %v516_v45 = vpop.f32.mrb[31].mxu1  ;;  %v1621_v31 = vld [vmem:[#allocation6 + $0x110] sm:$0xff]  ;;  %v1624_v41 = vld [vmem:[#allocation6 + $0x128] sm:$0xff] }
 0x1b2   :  { %v16036_v50 = vpack.c.bf16 %v516_v45, %v510_v34 }
 0x1b3   :  { %14274 = vmatmul.mubr.msk.f32.gmra.mrb[62].mxu1 %vm954_vm0, %v1116_v42  ;;  %16021 = vmatprep.subr.bf16.mxu1 %v16020_v44 }
 0x1b4   :  { %16023 = vmatpush3.bf16.msra.mxu1 %v16020_v44  ;;  %14292 = vmatprep.mubr.msk.f32.mxu1 %vm954_vm0, %v1279_v48  ;;  %v698_v1 = vpop.f32.mrb[32].mxu1  ;;  %v1626_v48 = vld [vmem:[#allocation6 + $0x138] sm:$0xff] }
 0x1b5   :  { %16025 = vmatprep.subr.bf16.mxu1 %v18240_v52  ;;  %v700_v56 = vpop.f32.mrb[33].mxu1 }
 0x1b7   :  { %14293 = vmatmul.mubr.msk.f32.vlgmr.msra.gmra.mrb[56].mxu1 %vm954_vm0, %v1280_v54 }
 0x1b8   :  { %16027 = vmatpush3.bf16.msra.mxu1 %v18240_v52  ;;  %14295 = vmatprep.mubr.msk.f32.mxu1 %vm954_vm0, %v1281_v55  ;;  %v704_v58 = vpop.f32.mrb[34].mxu1  ;;  %v1284_v52 = vld [vmem:[#allocation6 + $0xa8] sm:$0xff]  ;;  %v1792_v55 = vld [vmem:[#allocation6 + $0x158] sm:$0xff] }
 0x1b9   :  { %16029 = vmatprep.subr.bf16.mxu1 %v18250_v6  ;;  %v18271_v60 = vpack.c.bf16 %v704_v58, %v698_v1  ;;  %v706_v63 = vpop.f32.mrb[35].mxu1  ;;  %v1790_v1 = vld [vmem:[#allocation6 + $0x148] sm:$0xff]  ;;  %v1796_v58 = vld [vmem:[#allocation6 + $0x178] sm:$0xff] }
 0x1ba   :  { %v18273_v2 = vpack.c.bf16 %v706_v63, %v700_v56  ;;  %v1793_v56 = vld [vmem:[#allocation6 + $0x160] sm:$0xff]  ;;  %v1961_v63 = vld [vmem:[#allocation6 + $0x190] sm:$0xff] }
 0x1bb   :  { %14296 = vmatmul.mubr.msk.f32.gmra.mrb[58].mxu1 %vm954_vm0, %v1282_v57  ;;  %v1795_v57 = vld [vmem:[#allocation6 + $0x170] sm:$0xff] }
 0x1bc   :  { %16031 = vmatpush3.bf16.msra.mxu1 %v18250_v6  ;;  %14298 = vmatprep.mubr.msk.f32.mxu1 %vm954_vm0, %v1283_v59  ;;  %v710_v3 = vpop.f32.mrb[36].mxu1  ;;  %v1959_v59 = vld [vmem:[#allocation6 + $0x180] sm:$0xff] }
 0x1bd   :  { %16033 = vmatprep.subr.bf16.mxu1 %v16032_v26  ;;  %v712_v18 = vpop.f32.mrb[37].mxu1 }
 0x1bf   :  { %14299 = vmatmul.mubr.msk.f32.gmra.mrb[60].mxu1 %vm954_vm0, %v1284_v52  ;;  %v1962_v52 = vld [vmem:[#allocation6 + $0x198] sm:$0xff] }
 0x1c0   :  { %16035 = vmatpush3.bf16.msra.mxu1 %v16032_v26  ;;  %14301 = vmatprep.mubr.msk.f32.mxu1 %vm954_vm0, %v1285_v4  ;;  %v716_v32 = vpop.f32.mrb[38].mxu1  ;;  %v1964_v4 = vld [vmem:[#allocation6 + $0x1a8] sm:$0xff] }
 0x1c1   :  { %16037 = vmatprep.subr.bf16.mxu1 %v16036_v50  ;;  %v18280_v47 = vpack.c.bf16 %v716_v32, %v710_v3  ;;  %v718_v62 = vpop.f32.mrb[39].mxu1  ;;  %v1963_v3 = vld [vmem:[#allocation6 + $0x1a0] sm:$0xff]  ;;  %v2130_v32 = vld [vmem:[#allocation6 + $0x1c8] sm:$0xff] }
 0x1c2   :  { %v18282_v6 = vpack.c.bf16 %v718_v62, %v712_v18  ;;  %v1965_v18 = vld [vmem:[#allocation6 + $0x1b0] sm:$0xff]  ;;  %v2133_v62 = vld [vmem:[#allocation6 + $0x1e0] sm:$0xff] }
 0x1c3   :  { %14302 = vmatmul.mubr.msk.f32.gmra.mrb[62].mxu1 %vm954_vm0, %v1286_v7  ;;  %v2129_v7 = vld [vmem:[#allocation6 + $0x1c0] sm:$0xff] }
 0x1c4   :  { %16039 = vmatpush3.bf16.msra.mxu1 %v16036_v50  ;;  %14320 = vmatprep.mubr.msk.f32.mxu1 %vm954_vm0, %v1449_v8  ;;  %v722_v9 = vpop.f32.mrb[40].mxu1  ;;  %v2131_v8 = vld [vmem:[#allocation6 + $0x1d0] sm:$0xff] }
 0x1c5   :  { %16041 = vmatprep.subr.bf16.mxu1 %v18230_v24  ;;  %v724_v10 = vpop.f32.mrb[41].mxu1 }
 0x1c7   :  { %14321 = vmatmul.mubr.msk.f32.vlgmr.msra.gmra.mrb[56].mxu1 %vm954_vm0, %v1450_v14  ;;  %v2135_v14 = vld [vmem:[#allocation6 + $0x1f0] sm:$0xff] }
 0x1c8   :  { %16043 = vmatpush3.bf16.msra.mxu1 %v18230_v24  ;;  %14323 = vmatprep.mubr.msk.f32.mxu1 %vm954_vm0, %v1451_v27  ;;  %v728_v46 = vpop.f32.mrb[42].mxu1  ;;  %v2730_v27 = vld [vmem:[#allocation8 + $0x508] sm:$0xff] }
 0x1c9   :  { %16045 = vmatprep.subr.bf16.mxu1 %v18236_v43  ;;  %v18291_v12 = vpack.c.bf16 %v728_v46, %v722_v9  ;;  %v730_v13 = vpop.f32.mrb[43].mxu1  ;;  %v2721_v9 = vld [vmem:[#allocation8 + $0x4c0] sm:$0xff] }
 0x1ca   :  { %v18293_v15 = vpack.c.bf16 %v730_v13, %v724_v10  ;;  %v2136_v10 = vld [vmem:[#allocation6 + $0x1f8] sm:$0xff]  ;;  %v16280_v46 = vpack.c.bf16 %v2730_v27, %v2721_v9  ;;  %v2300_v13 = vld [vmem:[#allocation6 + $0x208] sm:$0xff]  ;;  %v18401_v27 = vld [vmem:[#allocation8 + $0x480] sm:$0xff] }
 0x1cb   :  { %14324 = vmatmul.mubr.msk.f32.gmra.mrb[58].mxu1 %vm954_vm0, %v1452_v37  ;;  %v2299_v37 = vld [vmem:[#allocation6 + $0x200] sm:$0xff] }
 0x1cc   :  { %16047 = vmatpush3.bf16.msra.mxu1 %v18236_v43  ;;  %14326 = vmatprep.mubr.msk.f32.mxu1 %vm954_vm0, %v1453_v11  ;;  %v734_v24 = vpop.f32.mrb[44].mxu1  ;;  %v2739_v11 = vld [vmem:[#allocation8 + $0x550] sm:$0xff] }
 0x1cd   :  { %16049 = vmatprep.subr.bf16.mxu1 %v18246_v61  ;;  %v736_v20 = vpop.f32.mrb[45].mxu1 }
 0x1cf   :  { %14327 = vmatmul.mubr.msk.f32.gmra.mrb[60].mxu1 %vm954_vm0, %v1454_v16 }
 0x1d0   :  { %16051 = vmatpush3.bf16.msra.mxu1 %v18246_v61  ;;  %14329 = vmatprep.mubr.msk.f32.mxu1 %vm954_vm0, %v1455_v19  ;;  %v740_v22 = vpop.f32.mrb[46].mxu1  ;;  %v2766_v19 = vld [vmem:[#allocation8 + $0x628] sm:$0xff] }
 0x1d1   :  { %16053 = vmatprep.subr.bf16.mxu1 %v18256_v17  ;;  %v18303_v43 = vpack.c.bf16 %v740_v22, %v734_v24  ;;  %v742_v26 = vpop.f32.mrb[47].mxu1  ;;  %v2757_v24 = vld [vmem:[#allocation8 + $0x5e0] sm:$0xff] }
 0x1d2   :  { %v18305_v28 = vpack.c.bf16 %v742_v26, %v736_v20  ;;  %v2302_v20 = vld [vmem:[#allocation6 + $0x218] sm:$0xff]  ;;  %v16288_v22 = vpack.c.bf16 %v2766_v19, %v2757_v24  ;;  %v2304_v26 = vld [vmem:[#allocation6 + $0x228] sm:$0xff] }
 0x1d3   :  { %14330 = vmatmul.mubr.msk.f32.gmra.mrb[62].mxu1 %vm954_vm0, %v1456_v21  ;;  %v2303_v21 = vld [vmem:[#allocation6 + $0x220] sm:$0xff]  ;;  %v2485_v24 = vld [vmem:[#allocation9 + $0x28] sm:$0xff] }
 0x1d4   :  { %16055 = vmatpush3.bf16.msra.mxu1 %v18256_v17  ;;  %14348 = vmatprep.mubr.msk.f32.mxu1 %vm954_vm0, %v1619_v25  ;;  %v14210_v61 = vpop.f32.mrb[48].mxu1  ;;  %v1623_v17 = vld [vmem:[#allocation6 + $0x120] sm:$0xff]  ;;  %v2775_v25 = vld [vmem:[#allocation8 + $0x670] sm:$0xff] }
 0x1d5   :  { %16057 = vmatprep.subr.bf16.mxu1 %v18232_v29  ;;  %v811_v33 = vpop.f32.mrb[49].mxu1 }
 0x1d6   :  { %v18311_v34 = vpack.c.bf16 %v14210_v61, %v811_v33  ;;  %v2306_v61 = vld [vmem:[#allocation6 + $0x238] sm:$0xff]  ;;  %v2802_v33 = vld [vmem:[#allocation8 + $0x748] sm:$0xff] }
 0x1d7   :  { %14349 = vmatmul.mubr.msk.f32.vlgmr.msra.gmra.mrb[56].mxu1 %vm954_vm0, %v1620_v30 }
 0x1d8   :  { %16059 = vmatpush3.bf16.msra.mxu1 %v18232_v29  ;;  %14351 = vmatprep.mubr.msk.f32.mxu1 %vm954_vm0, %v1621_v31  ;;  %v14213_v36 = vpop.f32.mrb[50].mxu1  ;;  %v1625_v29 = vld [vmem:[#allocation6 + $0x130] sm:$0xff]  ;;  %v2793_v31 = vld [vmem:[#allocation8 + $0x700] sm:$0xff] }
 0x1d9   :  { %16061 = vmatprep.subr.bf16.mxu1 %v18238_v51  ;;  %v821_v38 = vpop.f32.mrb[51].mxu1 }
 0x1da   :  { %v18317_v40 = vpack.c.bf16 %v14213_v36, %v821_v38  ;;  %v2567_v36 = vld [vmem:[#allocation11 + $0x58] sm:$0xff]  ;;  %v2811_v38 = vld [vmem:[#allocation8 + $0x790] sm:$0xff] }
 0x1db   :  { %14352 = vmatmul.mubr.msk.f32.gmra.mrb[58].mxu1 %vm954_vm0, %v1622_v35  ;;  %v2566_v35 = vld [vmem:[#allocation11 + $0x50] sm:$0xff] }
 0x1dc   :  { %16063 = vmatpush3.bf16.msra.mxu1 %v18238_v51  ;;  %14354 = vmatprep.mubr.msk.f32.mxu1 %vm954_vm0, %v1623_v17  ;;  %v14216_v42 = vpop.f32.mrb[52].mxu1  ;;  %v1789_v51 = vld [vmem:[#allocation6 + $0x140] sm:$0xff]  ;;  %v16140_v17 = vpack.c.bf16 %v2567_v36, %v2566_v35 }
 0x1dd   :  { %16065 = vmatprep.subr.bf16.mxu1 %v18248_v5  ;;  %v831_v44 = vpop.f32.mrb[53].mxu1 }
 0x1de   :  { %v18323_v45 = vpack.c.bf16 %v14216_v42, %v831_v44  ;;  %16141 = vmatprep.subr.bf16.mxu0 %v16140_v17  ;;  %v2568_v42 = vld [vmem:[#allocation11 + $0x60] sm:$0xff] }
 0x1df   :  { %14355 = vmatmul.mubr.msk.f32.gmra.mrb[60].mxu1 %vm954_vm0, %v1624_v41  ;;  %16143 = vmatpush3.bf16.msra.mxu0 %v16140_v17 }
 0x1e0   :  { %16067 = vmatpush3.bf16.msra.mxu1 %v18248_v5  ;;  %14357 = vmatprep.mubr.msk.f32.mxu1 %vm954_vm0, %v1625_v29  ;;  %v14219_v50 = vpop.f32.mrb[54].mxu1  ;;  %v1791_v5 = vld [vmem:[#allocation6 + $0x150] sm:$0xff]  ;;  %v2569_v29 = vld [vmem:[#allocation11 + $0x68] sm:$0xff] }
 0x1e1   :  { %16069 = vmatprep.subr.bf16.mxu1 %v18258_v23  ;;  %v841_v53 = vpop.f32.mrb[55].mxu1  ;;  %v16144_v44 = vpack.c.bf16 %v2569_v29, %v2568_v42 }
 0x1e2   :  { %v18329_v54 = vpack.c.bf16 %v14219_v50, %v841_v53  ;;  %v2571_v53 = vld [vmem:[#allocation11 + $0x78] sm:$0xff] }
 0x1e3   :  { %14358 = vmatmul.mubr.msk.f32.gmra.mrb[62].mxu1 %vm954_vm0, %v1626_v48  ;;  %v2838_v48 = vld [vmem:[#allocation8 + $0x868] sm:$0xff]  ;;  %16145 = vmatprep.subr.bf16.mxu0 %v16144_v44 }
 0x1e4   :  { %16071 = vmatpush3.bf16.msra.mxu1 %v18258_v23  ;;  %14376 = vmatprep.mubr.msk.f32.mxu1 %vm954_vm0, %v1789_v51  ;;  %v1794_v23 = vld [vmem:[#allocation6 + $0x168] sm:$0xff]  ;;  %v2570_v51 = vld [vmem:[#allocation11 + $0x70] sm:$0xff] }
 0x1e5   :  { %16073 = vmatprep.subr.bf16.mxu1 %v18271_v60  ;;  %16147 = vmatpush3.bf16.msra.mxu0 %v16144_v44 }
 0x1e7   :  { %14377 = vmatmul.mubr.msk.f32.vlgmr.msra.gmra.mrb[56].mxu1 %vm954_vm0, %v1790_v1  ;;  %v2847_v1 = vld [vmem:[#allocation8 + $0x8b0] sm:$0xff] }
 0x1e8   :  { %16075 = vmatpush3.bf16.msra.mxu1 %v18271_v60  ;;  %14379 = vmatprep.mubr.msk.f32.mxu1 %vm954_vm0, %v1791_v5  ;;  %v1960_v60 = vld [vmem:[#allocation6 + $0x188] sm:$0xff]  ;;  %v2856_v5 = vld [vmem:[#allocation8 + $0x8f8] sm:$0xff] }
 0x1e9   :  { %16077 = vmatprep.subr.bf16.mxu1 %v18280_v47 }
 0x1eb   :  { %14380 = vmatmul.mubr.msk.f32.gmra.mrb[58].mxu1 %vm954_vm0, %v1792_v55  ;;  %v16308_v55 = vpack.c.bf16 %v2856_v5, %v2847_v1  ;;  %v2486_v1 = vld [vmem:[#allocation9 + $0x30] sm:$0xff] }
 0x1ec   :  { %16079 = vmatpush3.bf16.msra.mxu1 %v18280_v47  ;;  %14382 = vmatprep.mubr.msk.f32.mxu1 %vm954_vm0, %v1793_v56  ;;  %v2132_v47 = vld [vmem:[#allocation6 + $0x1d8] sm:$0xff]  ;;  %v2714_v56 = vld [vmem:[#allocation8 + $0x488] sm:$0xff] }
 0x1ed   :  { %16081 = vmatprep.subr.bf16.mxu1 %v18291_v12 }
 0x1ef   :  { %14383 = vmatmul.mubr.msk.f32.gmra.mrb[60].mxu1 %vm954_vm0, %v1794_v23  ;;  %v2723_v23 = vld [vmem:[#allocation8 + $0x4d0] sm:$0xff] }
 0x1f0   :  { %16083 = vmatpush3.bf16.msra.mxu1 %v18291_v12  ;;  %14385 = vmatprep.mubr.msk.f32.mxu1 %vm954_vm0, %v1795_v57  ;;  %v2748_v12 = vld [vmem:[#allocation8 + $0x598] sm:$0xff]  ;;  %v16152_v57 = vpack.c.bf16 %v2723_v23, %v2714_v56 }
 0x1f1   :  { %16085 = vmatprep.subr.bf16.mxu1 %v18303_v43  ;;  %v16284_v16 = vpack.c.bf16 %v2748_v12, %v2739_v11  ;;  %v17782_v12 = vld [vmem:[%s19388_s0] sm:$0xff] }
 0x1f3   :  { %14386 = vmatmul.mubr.msk.f32.gmra.mrb[62].mxu1 %vm954_vm0, %v1796_v58  ;;  %v128_v58 = vld [vmem:[%s19389_s1] sm:$0xff] }
 0x1f4   :  { %16087 = vmatpush3.bf16.msra.mxu1 %v18303_v43  ;;  %14404 = vmatprep.mubr.msk.f32.mxu1 %vm954_vm0, %v1959_v59  ;;  %v2784_v43 = vld [vmem:[#allocation8 + $0x6b8] sm:$0xff]  ;;  %v18394_v59 = vrot.slane %v128_v58, %v139_v49 }
 0x1f5   :  { %16089 = vmatprep.subr.bf16.mxu1 %v18273_v2  ;;  %v16292_v30 = vpack.c.bf16 %v2784_v43, %v2775_v25  ;;  %v2740_v58 = vld [vmem:[#allocation8 + $0x558] sm:$0xff] }
 0x1f7   :  { %14405 = vmatmul.mubr.msk.f32.vlgmr.msra.gmra.mrb[56].mxu1 %vm954_vm0, %v1960_v60 }
 0x1f8   :  { %16091 = vmatpush3.bf16.msra.mxu1 %v18273_v2  ;;  %14407 = vmatprep.mubr.msk.f32.mxu1 %vm954_vm0, %v1961_v63  ;;  %v1966_v2 = vld [vmem:[#allocation6 + $0x1b8] sm:$0xff]  ;;  %v2481_v63 = vld [vmem:[#allocation9 + $0x8] sm:$0xff] }
 0x1f9   :  { %16093 = vmatprep.subr.bf16.mxu1 %v18282_v6 }
 0x1fb   :  { %14408 = vmatmul.mubr.msk.f32.gmra.mrb[58].mxu1 %vm954_vm0, %v1962_v52 }
 0x1fc   :  { %16095 = vmatpush3.bf16.msra.mxu1 %v18282_v6  ;;  %14410 = vmatprep.mubr.msk.f32.mxu1 %vm954_vm0, %v1963_v3  ;;  %v2134_v6 = vld [vmem:[#allocation6 + $0x1e8] sm:$0xff] }
 0x1fd   :  { %16097 = vmatprep.subr.bf16.mxu1 %v18293_v15 }
 0x1ff   :  { %14411 = vmatmul.mubr.msk.f32.gmra.mrb[60].mxu1 %vm954_vm0, %v1964_v4  ;;  %v2480_v4 = vld [vmem:[#allocation9] sm:$0xff] }
 0x200   :  { %16099 = vmatpush3.bf16.msra.mxu1 %v18293_v15  ;;  %14413 = vmatprep.mubr.msk.f32.mxu1 %vm954_vm0, %v1965_v18  ;;  %v2301_v15 = vld [vmem:[#allocation6 + $0x210] sm:$0xff] }
 0x201   :  { %16101 = vmatprep.subr.bf16.mxu1 %v18305_v28 }
 0x203   :  { %14414 = vmatmul.mubr.msk.f32.gmra.mrb[62].mxu1 %vm954_vm0, %v1966_v2 }
 0x204   :  { %16103 = vmatpush3.bf16.msra.mxu1 %v18305_v28  ;;  %14432 = vmatprep.mubr.msk.f32.mxu1 %vm954_vm0, %v2129_v7  ;;  %v2305_v28 = vld [vmem:[#allocation6 + $0x230] sm:$0xff]  ;;  %v2546_v7 = vsub.s32 5, %v18125_v39 }
 0x205   :  { %16105 = vmatprep.subr.bf16.mxu1 %v18311_v34 }
 0x207   :  { %14433 = vmatmul.mubr.msk.f32.vlgmr.msra.gmra.mrb[56].mxu1 %vm954_vm0, %v2130_v32  ;;  %v2702_v32 = vsub.s32 1, %v18125_v39 }
 0x208   :  { %16107 = vmatpush3.bf16.msra.mxu1 %v18311_v34  ;;  %14435 = vmatprep.mubr.msk.f32.mxu1 %vm954_vm0, %v2131_v8  ;;  %v16296_v34 = vpack.c.bf16 %v2802_v33, %v2793_v31 }
 0x209   :  { %16109 = vmatprep.subr.bf16.mxu1 %v18317_v40 }
 0x20b   :  { %14436 = vmatmul.mubr.msk.f32.gmra.mrb[58].mxu1 %vm954_vm0, %v2132_v47 }
 0x20c   :  { %16111 = vmatpush3.bf16.msra.mxu1 %v18317_v40  ;;  %14438 = vmatprep.mubr.msk.f32.mxu1 %vm954_vm0, %v2133_v62  ;;  %v2820_v40 = vld [vmem:[#allocation8 + $0x7d8] sm:$0xff] }
 0x20d   :  { %16113 = vmatprep.subr.bf16.mxu1 %v18323_v45  ;;  %v16300_v41 = vpack.c.bf16 %v2820_v40, %v2811_v38  ;;  %v2483_v62 = vld [vmem:[#allocation9 + $0x18] sm:$0xff] }
 0x20f   :  { %14439 = vmatmul.mubr.msk.f32.gmra.mrb[60].mxu1 %vm954_vm0, %v2134_v6  ;;  %v2482_v6 = vld [vmem:[#allocation9 + $0x10] sm:$0xff] }
 0x210   :  { %16115 = vmatpush3.bf16.msra.mxu1 %v18323_v45  ;;  %14441 = vmatprep.mubr.msk.f32.mxu1 %vm954_vm0, %v2135_v14  ;;  %v2829_v45 = vld [vmem:[#allocation8 + $0x820] sm:$0xff] }
 0x211   :  { %16117 = vmatprep.subr.bf16.mxu1 %v18329_v54  ;;  %v16304_v50 = vpack.c.bf16 %v2838_v48, %v2829_v45  ;;  %v2487_v48 = vld [vmem:[#allocation9 + $0x38] sm:$0xff] }
 0x213   :  { %14442 = vmatmul.mubr.msk.f32.gmra.mrb[62].mxu1 %vm954_vm0, %v2136_v10  ;;  %v2722_v10 = vld [vmem:[#allocation8 + $0x4c8] sm:$0xff] }
 0x214   :  { %16119 = vmatpush3.bf16.msra.mxu1 %v18329_v54  ;;  %14460 = vmatprep.mubr.msk.f32.mxu1 %vm954_vm0, %v2299_v37  ;;  %v16148_v54 = vpack.c.bf16 %v2571_v53, %v2570_v51  ;;  %v16154_v43 = vpack.c.bf16 %v2722_v10, %v18401_v27 }
 0x215   :  { %16281 = vmatprep.subr.bf16.mxu1 %v16280_v46 }
 0x216   :  { %16149 = vmatprep.subr.bf16.mxu0 %v16148_v54 }
 0x217   :  { %14461 = vmatmul.mubr.msk.f32.vlgmr.msra.gmra.mrb[56].mxu1 %vm954_vm0, %v2300_v13  ;;  %16151 = vmatpush3.bf16.msra.mxu0 %v16148_v54  ;;  %v18407_v13 = vrot.slane %v17782_v12, %v2546_v7  ;;  %v2759_v7 = vld [vmem:[#allocation8 + $0x5f0] sm:$0xff] }
 0x218   :  { %14463 = vmatprep.mubr.msk.f32.mxu1 %vm954_vm0, %v2301_v15  ;;  %16283 = vmatpush3.bf16.msra.mxu1 %v16280_v46  ;;  %v18411_v15 = vrot.slane %v17782_v12, %v2702_v32 }
 0x219   :  { %16285 = vmatprep.subr.bf16.mxu1 %v16284_v16  ;;  %16153 = vmatprep.subr.bf16.mxu0 %v16152_v57  ;;  %v2731_v57 = vld [vmem:[#allocation8 + $0x510] sm:$0xff] }
 0x21b   :  { %14464 = vmatmul.mubr.msk.f32.gmra.mrb[58].mxu1 %vm954_vm0, %v2302_v20 }
 0x21c   :  { %14466 = vmatprep.mubr.msk.f32.mxu1 %vm954_vm0, %v2303_v21  ;;  %16287 = vmatpush3.bf16.msra.mxu1 %v16284_v16 }
 0x21d   :  { %16289 = vmatprep.subr.bf16.mxu1 %v16288_v22 }
 0x21f   :  { %14467 = vmatmul.mubr.msk.f32.gmra.mrb[60].mxu1 %vm954_vm0, %v2304_v26  ;;  %v2732_v26 = vld [vmem:[#allocation8 + $0x518] sm:$0xff] }
 0x220   :  { %14469 = vmatprep.mubr.msk.f32.mxu1 %vm954_vm0, %v2305_v28  ;;  %16291 = vmatpush3.bf16.msra.mxu1 %v16288_v22  ;;  %v2484_v22 = vld [vmem:[#allocation9 + $0x20] sm:$0xff] }
 0x221   :  { %16293 = vmatprep.subr.bf16.mxu1 %v16292_v30  ;;  %v2741_v28 = vld [vmem:[#allocation8 + $0x560] sm:$0xff] }
 0x222   :  { %v16156_v40 = vpack.c.bf16 %v2741_v28, %v2732_v26 }
 0x223   :  { %14470 = vmatmul.mubr.msk.f32.gmra.mrb[62].mxu1 %vm954_vm0, %v2306_v61 }
 0x224   :  { %16295 = vmatpush3.bf16.msra.mxu1 %v16292_v30 }
 0x225   :  { %16297 = vmatprep.subr.bf16.mxu1 %v16296_v34 }
 0x228   :  { %16299 = vmatpush3.bf16.msra.mxu1 %v16296_v34 }
 0x229   :  { %16301 = vmatprep.subr.bf16.mxu1 %v16300_v41 }
 0x22c   :  { %16303 = vmatpush3.bf16.msra.mxu1 %v16300_v41 }
 0x22d   :  { %16305 = vmatprep.subr.bf16.mxu1 %v16304_v50 }
 0x230   :  { %16307 = vmatpush3.bf16.msra.mxu1 %v16304_v50 }
 0x231   :  { %16309 = vmatprep.subr.bf16.mxu1 %v16308_v55 }
 0x234   :  { %16311 = vmatpush3.bf16.msra.mxu1 %v16308_v55 }
 0x2ea   :  { %v14462_v60 = vpop.f32.mrb[56].mxu1 }
 0x2eb   :  { %v2473_v52 = vmul.f32 %v14462_v60, %v18394_v59  ;;  %v2405_v3 = vpop.f32.mrb[57].mxu1 }
 0x2ec   :  { %v2472_v18 = vmul.f32 %v18394_v59, %v2405_v3 }
 0x2ed   :  { %v2489_v2 = vadd.f32 %v2481_v63, %v2473_v52 }
 0x2ee   :  { %v2488_v8 = vadd.f32 %v2480_v4, %v2472_v18  ;;  %v14465_v47 = vpop.f32.mrb[58].mxu1 }
 0x2ef   :  { %vm2497_vm1 = vcmp.ge.f32.partialorder %v2489_v2, 0.0  ;;  %v2505_v49 = vmul.f32 0.2, %v2489_v2  ;;  %v2475_v14 = vmul.f32 %v14465_v47, %v18394_v59  ;;  %v2415_v9 = vpop.f32.mrb[59].mxu1 }
 0x2f0   :  { %vm2496_vm2 = vcmp.ge.f32.partialorder %v2488_v8, 0.0  ;;  %v2504_v37 = vmul.f32 0.2, %v2488_v8  ;;  %v2474_v46 = vmul.f32 %v18394_v59, %v2415_v9 }
 0x2f1   :  { %v2513_v11 = vsel %vm2497_vm1, %v2489_v2, %v2505_v49  ;;  %v2491_v16 = vadd.f32 %v2483_v62, %v2475_v14  ;;  %v2750_v2 = vld [vmem:[#allocation8 + $0x5a8] sm:$0xff] }
 0x2f2   :  { %v2521_v19 = vmul.f32 1.4142135, %v2513_v11  ;;  %v2490_v20 = vadd.f32 %v2482_v6, %v2474_v46  ;;  %v14468_v21 = vpop.f32.mrb[60].mxu1  ;;  %v2512_v25 = vsel %vm2496_vm2, %v2488_v8, %v2504_v37  ;;  %v16158_v6 = vpack.c.bf16 %v2740_v58, %v2731_v57  ;;  %v2812_v57 = vld [vmem:[#allocation8 + $0x798] sm:$0xff]  ;;  %v2831_v58 = vld [vmem:[#allocation8 + $0x830] sm:$0xff] }
 0x2f3   :  { %vm2499_vm3 = vcmp.ge.f32.partialorder %v2491_v16, 0.0  ;;  %v2507_v30 = vmul.f32 0.2, %v2491_v16  ;;  %v2477_v61 = vmul.f32 %v14468_v21, %v18394_v59  ;;  %v2425_v31 = vpop.f32.mrb[61].mxu1  ;;  %v2520_v33 = vmul.f32 1.4142135, %v2512_v25 }
 0x2f4   :  { %v12886_v34 = vclamps-f32 %v2521_v19, 256.0  ;;  %vm2498_vm4 = vcmp.ge.f32.partialorder %v2490_v20, 0.0  ;;  %v2506_v35 = vmul.f32 0.2, %v2490_v20  ;;  %v2476_v36 = vmul.f32 %v18394_v59, %v2425_v31  ;;  %v2768_v21 = vld [vmem:[#allocation8 + $0x638] sm:$0xff] }
 0x2f5   :  { %v2493_v17 = vadd.f32 %v2485_v24, %v2477_v61  ;;  %v12885_v38 = vclamps-f32 %v2520_v33, 256.0  ;;  %v2515_v41 = vsel %vm2499_vm3, %v2491_v16, %v2507_v30  ;;  %v16160_v10 = vpack.c.bf16 %v2759_v7, %v2750_v2  ;;  %v2749_v16 = vld [vmem:[#allocation8 + $0x5a0] sm:$0xff]  ;;  %v2758_v24 = vld [vmem:[#allocation8 + $0x5e8] sm:$0xff]  ;;  %v2839_v7 = vld [vmem:[#allocation8 + $0x870] sm:$0xff] }
 0x2f6   :  { %v2549_v42 = vmul.f32 %v12886_v34, %v18407_v13  ;;  %v18418_v29 = vmul.f32 %v12886_v34, %v18411_v15  ;;  %v2492_v44 = vadd.f32 %v2484_v22, %v2476_v36  ;;  %v14471_v45 = vpop.f32.mrb[62].mxu1  ;;  %v2514_v50 = vsel %vm2498_vm4, %v2490_v20, %v2506_v35  ;;  %v2777_v22 = vld [vmem:[#allocation8 + $0x680] sm:$0xff]  ;;  %v2767_v36 = vld [vmem:[#allocation8 + $0x630] sm:$0xff] }
 0x2f7   :  { %vm2501_vm5 = vcmp.ge.f32.partialorder %v2493_v17, 0.0  ;;  %v2509_v51 = vmul.f32 0.2, %v2493_v17  ;;  %v2479_v53 = vmul.f32 %v14471_v45, %v18394_v59  ;;  %v2435_v54 = vpop.f32.mrb[63].mxu1  ;;  %v2548_v5 = vmul.f32 %v12885_v38, %v18407_v13 }
 0x2f8   :  { %vm2500_vm6 = vcmp.ge.f32.partialorder %v2492_v44, 0.0  ;;  %v2508_v55 = vmul.f32 0.2, %v2492_v44  ;;  %v2478_v56 = vmul.f32 %v18394_v59, %v2435_v54  ;;  %v18424_v23 = vmul.f32 %v12885_v38, %v18411_v15  ;;  %v2804_v54 = vld [vmem:[#allocation8 + $0x758] sm:$0xff] }
 0x2f9   :  { %v2495_v60 = vadd.f32 %v2487_v48, %v2479_v53  ;;  %14504 = vmatprep.mubr.f32.mxu0 %v2548_v5  ;;  %v2522_v63 = vmul.f32 1.4142135, %v2514_v50  ;;  %v2523_v52 = vmul.f32 1.4142135, %v2515_v41  ;;  %v2517_v3 = vsel %vm2501_vm5, %v2493_v17, %v2509_v51  ;;  %v2776_v17 = vld [vmem:[#allocation8 + $0x678] sm:$0xff]  ;;  %v2786_v41 = vld [vmem:[#allocation8 + $0x6c8] sm:$0xff] }
 0x2fa   :  { %v2494_v4 = vadd.f32 %v2486_v1, %v2478_v56  ;;  %14548 = vmatprep.mubr.f32.mxu1 %v18424_v23  ;;  %14505 = vmatmul.mubr.f32.vlgmr.msra.gmra.mrb[16].mxu0 %v2549_v42  ;;  %v2516_v18 = vsel %vm2500_vm6, %v2492_v44, %v2508_v55  ;;  %v2525_v8 = vmul.f32 1.4142135, %v2517_v3  ;;  %v16162_v30 = vpack.c.bf16 %v2758_v24, %v2749_v16  ;;  %v2795_v42 = vld [vmem:[#allocation8 + $0x710] sm:$0xff]  ;;  %v2785_v51 = vld [vmem:[#allocation8 + $0x6c0] sm:$0xff]  ;;  %v2794_v53 = vld [vmem:[#allocation8 + $0x708] sm:$0xff] }
 0x2fb   :  { %v2511_v59 = vmul.f32 0.2, %v2495_v60  ;;  %16155 = vmatpush1.bf16.msra.mxu0 %v16154_v43  ;;  %14549 = vmatmul.mubr.f32.vlgmr.msra.gmra.mrb[64].mxu1 %v18418_v29  ;;  %v12887_v47 = vclamps-f32 %v2522_v63, 256.0  ;;  %v12888_v62 = vclamps-f32 %v2523_v52, 256.0  ;;  %vm2503_vm7 = vcmp.ge.f32.partialorder %v2495_v60, 0.0  ;;  %v2813_v1 = vld [vmem:[#allocation8 + $0x7a0] sm:$0xff] }
 0x2fc   :  { %vm2502_vm8 = vcmp.ge.f32.partialorder %v2494_v4, 0.0  ;;  %v2510_v49 = vmul.f32 0.2, %v2494_v4  ;;  %16157 = vmatprep.subr.bf16.mxu0 %v16156_v40  ;;  %v2524_v14 = vmul.f32 1.4142135, %v2516_v18  ;;  %v12890_v37 = vclamps-f32 %v2525_v8, 256.0 }
 0x2fd   :  { %v2550_v9 = vmul.f32 %v12887_v47, %v18407_v13  ;;  %v18431_v27 = vmul.f32 %v12887_v47, %v18411_v15  ;;  %v2551_v46 = vmul.f32 %v12888_v62, %v18407_v13  ;;  %v18435_v11 = vmul.f32 %v12888_v62, %v18411_v15  ;;  %v2803_v56 = vld [vmem:[#allocation8 + $0x750] sm:$0xff]  ;;  %v2821_v63 = vld [vmem:[#allocation8 + $0x7e0] sm:$0xff]  ;;  %v2830_v52 = vld [vmem:[#allocation8 + $0x828] sm:$0xff] }
 0x2fe   :  { %v12889_v12 = vclamps-f32 %v2524_v14, 256.0  ;;  %v2518_v19 = vsel %vm2502_vm8, %v2494_v4, %v2510_v49  ;;  %v2519_v25 = vsel %vm2503_vm7, %v2495_v60, %v2511_v59  ;;  %v2553_v31 = vmul.f32 %v12890_v37, %v18407_v13  ;;  %v2840_v3 = vld [vmem:[#allocation8 + $0x878] sm:$0xff]  ;;  %v2849_v4 = vld [vmem:[#allocation8 + $0x8c0] sm:$0xff]  ;;  %v2715_v49 = vld [vmem:[#allocation8 + $0x490] sm:$0xff] }
 0x2ff   :  { %14507 = vmatprep.mubr.f32.mxu0 %v2550_v9  ;;  %14551 = vmatprep.mubr.f32.mxu1 %v18431_v27  ;;  %v2526_v20 = vmul.f32 1.4142135, %v2518_v19  ;;  %v2527_v28 = vmul.f32 1.4142135, %v2519_v25  ;;  %v18446_v33 = vmul.f32 %v12890_v37, %v18411_v15  ;;  %v16164_v34 = vpack.c.bf16 %v2777_v22, %v2768_v21  ;;  %v2848_v8 = vld [vmem:[#allocation8 + $0x8b8] sm:$0xff]  ;;  %v2725_v47 = vld [vmem:[#allocation8 + $0x4e0] sm:$0xff] }
 0x300   :  { %14508 = vmatmul.mubr.f32.gmra.mrb[18].mxu0 %v2551_v46  ;;  %14552 = vmatmul.mubr.f32.gmra.mrb[66].mxu1 %v18435_v11  ;;  %v2552_v43 = vmul.f32 %v12889_v12, %v18407_v13  ;;  %v18442_v26 = vmul.f32 %v12889_v12, %v18411_v15  ;;  %v16166_v44 = vpack.c.bf16 %v2776_v17, %v2767_v36  ;;  %v2716_v59 = vld [vmem:[#allocation8 + $0x498] sm:$0xff]  ;;  %v2734_v9 = vld [vmem:[#allocation8 + $0x528] sm:$0xff]  ;;  %v2733_v12 = vld [vmem:[#allocation8 + $0x520] sm:$0xff] }
 0x301   :  { %16159 = vmatpush1.bf16.msra.mxu0 %v16158_v6  ;;  %v12891_v61 = vclamps-f32 %v2526_v20, 256.0  ;;  %v12892_v35 = vclamps-f32 %v2527_v28, 256.0  ;;  %v16168_v50 = vpack.c.bf16 %v2795_v42, %v2786_v41  ;;  %v16170_v5 = vpack.c.bf16 %v2794_v53, %v2785_v51  ;;  %v2724_v14 = vld [vmem:[#allocation8 + $0x4d8] sm:$0xff]  ;;  %v2742_v16 = vld [vmem:[#allocation8 + $0x568] sm:$0xff]  ;;  %v2761_v19 = vld [vmem:[#allocation8 + $0x600] sm:$0xff] }
 0x302   :  { %14510 = vmatprep.mubr.f32.mxu0 %v2552_v43  ;;  %16161 = vmatprep.subr.bf16.mxu0 %v16160_v10  ;;  %v16172_v55 = vpack.c.bf16 %v2813_v1, %v2804_v54  ;;  %v16178_v18 = vpack.c.bf16 %v2830_v52, %v2821_v63  ;;  %v16180_v2 = vpack.c.bf16 %v2849_v4, %v2840_v3  ;;  %v2743_v10 = vld [vmem:[#allocation8 + $0x570] sm:$0xff]  ;;  %v2752_v24 = vld [vmem:[#allocation8 + $0x5b8] sm:$0xff]  ;;  %v2770_v43 = vld [vmem:[#allocation8 + $0x648] sm:$0xff] }
 0x303   :  { %14554 = vmatprep.mubr.f32.mxu1 %v18442_v26  ;;  %v2554_v38 = vmul.f32 %v12891_v61, %v18407_v13  ;;  %v18451_v40 = vmul.f32 %v12891_v61, %v18411_v15  ;;  %v2555_v45 = vmul.f32 %v12892_v35, %v18407_v13  ;;  %v18457_v48 = vmul.f32 %v12892_v35, %v18411_v15  ;;  %v2822_v13 = vld [vmem:[#allocation8 + $0x7e8] sm:$0xff]  ;;  %v2751_v22 = vld [vmem:[#allocation8 + $0x5b0] sm:$0xff]  ;;  %v2760_v25 = vld [vmem:[#allocation8 + $0x5f8] sm:$0xff] }
 0x304   :  { %14511 = vmatmul.mubr.f32.gmra.mrb[20].mxu0 %v2553_v31  ;;  %14555 = vmatmul.mubr.f32.gmra.mrb[68].mxu1 %v18446_v33  ;;  %v16174_v15 = vpack.c.bf16 %v2812_v57, %v2803_v56  ;;  %v16176_v60 = vpack.c.bf16 %v2831_v58, %v2822_v13  ;;  %v16182_v62 = vpack.c.bf16 %v2848_v8, %v2839_v7  ;;  %v2779_v28 = vld [vmem:[#allocation8 + $0x690] sm:$0xff]  ;;  %v2769_v31 = vld [vmem:[#allocation8 + $0x640] sm:$0xff]  ;;  %v2788_v35 = vld [vmem:[#allocation8 + $0x6d8] sm:$0xff] }
 0x305   :  { %16163 = vmatpush1.bf16.msra.mxu0 %v16162_v30  ;;  %14513 = vmatprep.mubr.f32.mxu0 %v2554_v38  ;;  %v16184_v6 = vpack.c.bf16 %v2725_v47, %v2716_v59  ;;  %v16186_v37 = vpack.c.bf16 %v2724_v14, %v2715_v49  ;;  %v16188_v46 = vpack.c.bf16 %v2743_v10, %v2734_v9  ;;  %v2797_v36 = vld [vmem:[#allocation8 + $0x720] sm:$0xff]  ;;  %v2787_v41 = vld [vmem:[#allocation8 + $0x6d0] sm:$0xff]  ;;  %v2796_v42 = vld [vmem:[#allocation8 + $0x718] sm:$0xff] }
 0x306   :  { %16165 = vmatprep.subr.bf16.mxu0 %v16164_v34  ;;  %14557 = vmatprep.mubr.f32.mxu1 %v18451_v40  ;;  %v16190_v20 = vpack.c.bf16 %v2742_v16, %v2733_v12  ;;  %v16192_v21 = vpack.c.bf16 %v2761_v19, %v2752_v24  ;;  %v16194_v30 = vpack.c.bf16 %v2760_v25, %v2751_v22  ;;  %v2778_v34 = vld [vmem:[#allocation8 + $0x688] sm:$0xff]  ;;  %v2805_v53 = vld [vmem:[#allocation8 + $0x760] sm:$0xff]  ;;  %v2824_v1 = vld [vmem:[#allocation8 + $0x7f8] sm:$0xff] }
 0x307   :  { %v16196_v61 = vpack.c.bf16 %v2779_v28, %v2770_v43  ;;  %v16198_v17 = vpack.c.bf16 %v2778_v34, %v2769_v31  ;;  %v16200_v38 = vpack.c.bf16 %v2797_v36, %v2788_v35  ;;  %v2814_v54 = vld [vmem:[#allocation8 + $0x7a8] sm:$0xff]  ;;  %v2823_v57 = vld [vmem:[#allocation8 + $0x7f0] sm:$0xff]  ;;  %v2832_v13 = vld [vmem:[#allocation8 + $0x838] sm:$0xff] }
 0x308   :  { %14514 = vmatmul.mubr.f32.gmra.mrb[22].mxu0 %v2555_v45  ;;  %14558 = vmatmul.mubr.f32.gmra.mrb[70].mxu1 %v18457_v48  ;;  %v2815_v45 = vld [vmem:[#allocation8 + $0x7b0] sm:$0xff]  ;;  %v2842_v58 = vld [vmem:[#allocation8 + $0x888] sm:$0xff]  ;;  %v2841_v52 = vld [vmem:[#allocation8 + $0x880] sm:$0xff] }
 0x309   :  { %16167 = vmatpush1.bf16.msra.mxu0 %v16166_v44  ;;  %2921 = vmatprep.mubr.f32.mxu0 %v17966_v0  ;;  %v2806_v44 = vld [vmem:[#allocation8 + $0x768] sm:$0xff]  ;;  %v2717_v8 = vld [vmem:[#allocation8 + $0x4a0] sm:$0xff]  ;;  %v2736_v47 = vld [vmem:[#allocation8 + $0x538] sm:$0xff] }
 0x30a   :  { %16169 = vmatprep.subr.bf16.mxu0 %v16168_v50  ;;  %v16202_v50 = vpack.c.bf16 %v2796_v42, %v2787_v41  ;;  %v16204_v51 = vpack.c.bf16 %v2815_v45, %v2806_v44  ;;  %v2850_v3 = vld [vmem:[#allocation8 + $0x8c8] sm:$0xff]  ;;  %v2735_v14 = vld [vmem:[#allocation8 + $0x530] sm:$0xff]  ;;  %v2744_v9 = vld [vmem:[#allocation8 + $0x578] sm:$0xff] }
 0x30b   :  { %v2718_v4 = vld [vmem:[#allocation8 + $0x4a8] sm:$0xff]  ;;  %v2753_v16 = vld [vmem:[#allocation8 + $0x5c0] sm:$0xff]  ;;  %v2772_v19 = vld [vmem:[#allocation8 + $0x658] sm:$0xff] }
 0x30c   :  { %v2726_v59 = vld [vmem:[#allocation8 + $0x4e8] sm:$0xff]  ;;  %v2771_v25 = vld [vmem:[#allocation8 + $0x650] sm:$0xff]  ;;  %v2780_v43 = vld [vmem:[#allocation8 + $0x698] sm:$0xff] }
 0x30d   :  { %16171 = vmatpush1.bf16.msra.mxu0 %v16170_v5  ;;  %v2833_v5 = vld [vmem:[#allocation8 + $0x840] sm:$0xff]  ;;  %v2754_v10 = vld [vmem:[#allocation8 + $0x5c8] sm:$0xff]  ;;  %v2808_v36 = vld [vmem:[#allocation8 + $0x778] sm:$0xff] }
 0x30e   :  { %16173 = vmatprep.subr.bf16.mxu0 %v16172_v55  ;;  %v16206_v55 = vpack.c.bf16 %v2814_v54, %v2805_v53  ;;  %v16208_v56 = vpack.c.bf16 %v2833_v5, %v2824_v1  ;;  %v2762_v24 = vld [vmem:[#allocation8 + $0x608] sm:$0xff]  ;;  %v2789_v34 = vld [vmem:[#allocation8 + $0x6e0] sm:$0xff]  ;;  %v2807_v42 = vld [vmem:[#allocation8 + $0x770] sm:$0xff] }
 0x30f   :  { %v2790_v28 = vld [vmem:[#allocation8 + $0x6e8] sm:$0xff]  ;;  %v2816_v44 = vld [vmem:[#allocation8 + $0x7b8] sm:$0xff]  ;;  %v2825_v54 = vld [vmem:[#allocation8 + $0x800] sm:$0xff] }
 0x310   :  { %v2798_v35 = vld [vmem:[#allocation8 + $0x728] sm:$0xff]  ;;  %v2844_v5 = vld [vmem:[#allocation8 + $0x898] sm:$0xff] }
 0x311   :  { %16175 = vmatpush1.bf16.msra.mxu0 %v16174_v15  ;;  %v2851_v15 = vld [vmem:[#allocation8 + $0x8d0] sm:$0xff]  ;;  %v2826_v45 = vld [vmem:[#allocation8 + $0x808] sm:$0xff] }
 0x312   :  { %16177 = vmatprep.subr.bf16.mxu0 %v16176_v60  ;;  %v16210_v60 = vpack.c.bf16 %v2832_v13, %v2823_v57  ;;  %v16212_v63 = vpack.c.bf16 %v2851_v15, %v2842_v58  ;;  %v2834_v1 = vld [vmem:[#allocation8 + $0x848] sm:$0xff]  ;;  %v2843_v13 = vld [vmem:[#allocation8 + $0x890] sm:$0xff]  ;;  %v2852_v58 = vld [vmem:[#allocation8 + $0x8d8] sm:$0xff] }
 0x313   :  { %v2720_v15 = vld [vmem:[#allocation8 + $0x4b8] sm:$0xff] }
 0x315   :  { %16179 = vmatpush1.bf16.msra.mxu0 %v16178_v18  ;;  %v2727_v18 = vld [vmem:[#allocation8 + $0x4f0] sm:$0xff] }
 0x316   :  { %16181 = vmatprep.subr.bf16.mxu0 %v16180_v2  ;;  %v16214_v2 = vpack.c.bf16 %v2850_v3, %v2841_v52  ;;  %v16216_v7 = vpack.c.bf16 %v2727_v18, %v2718_v4  ;;  %v2719_v3 = vld [vmem:[#allocation8 + $0x4b0] sm:$0xff]  ;;  %v2728_v4 = vld [vmem:[#allocation8 + $0x4f8] sm:$0xff]  ;;  %v2738_v18 = vld [vmem:[#allocation8 + $0x548] sm:$0xff] }
 0x319   :  { %16183 = vmatpush1.bf16.msra.mxu0 %v16182_v62  ;;  %v2745_v62 = vld [vmem:[#allocation8 + $0x580] sm:$0xff] }
 0x31a   :  { %16185 = vmatprep.subr.bf16.mxu0 %v16184_v6  ;;  %v16218_v6 = vpack.c.bf16 %v2726_v59, %v2717_v8  ;;  %v16220_v49 = vpack.c.bf16 %v2745_v62, %v2736_v47  ;;  %v2737_v59 = vld [vmem:[#allocation8 + $0x540] sm:$0xff]  ;;  %v2746_v47 = vld [vmem:[#allocation8 + $0x588] sm:$0xff]  ;;  %v2756_v62 = vld [vmem:[#allocation8 + $0x5d8] sm:$0xff] }
 0x31c   :  { %2922 = vmatmul.mubr.f32.vlgmr.msra.gmra.mrb[24].mxu0 %v18424_v23 }
 0x31d   :  { %16187 = vmatpush1.bf16.msra.mxu0 %v16186_v37  ;;  %2927 = vmatprep.mubr.f32.mxu0 %v17966_v0  ;;  %v2763_v37 = vld [vmem:[#allocation8 + $0x610] sm:$0xff] }
 0x31e   :  { %16189 = vmatprep.subr.bf16.mxu0 %v16188_v46  ;;  %v16222_v46 = vpack.c.bf16 %v2744_v9, %v2735_v14  ;;  %v16224_v12 = vpack.c.bf16 %v2763_v37, %v2754_v10  ;;  %v2755_v9 = vld [vmem:[#allocation8 + $0x5d0] sm:$0xff]  ;;  %v2764_v10 = vld [vmem:[#allocation8 + $0x618] sm:$0xff]  ;;  %v2774_v37 = vld [vmem:[#allocation8 + $0x668] sm:$0xff] }
 0x320   :  { %2928 = vmatmul.mubr.f32.gmra.mrb[26].mxu0 %v18418_v29 }
 0x321   :  { %16191 = vmatpush1.bf16.msra.mxu0 %v16190_v20  ;;  %2933 = vmatprep.mubr.f32.mxu0 %v17966_v0  ;;  %v2781_v20 = vld [vmem:[#allocation8 + $0x6a0] sm:$0xff] }
 0x322   :  { %16193 = vmatprep.subr.bf16.mxu0 %v16192_v21  ;;  %v16226_v21 = vpack.c.bf16 %v2762_v24, %v2753_v16  ;;  %v16228_v22 = vpack.c.bf16 %v2781_v20, %v2772_v19  ;;  %v2773_v24 = vld [vmem:[#allocation8 + $0x660] sm:$0xff]  ;;  %v2782_v19 = vld [vmem:[#allocation8 + $0x6a8] sm:$0xff]  ;;  %v2792_v20 = vld [vmem:[#allocation8 + $0x6f8] sm:$0xff] }
 0x324   :  { %2934 = vmatmul.mubr.f32.gmra.mrb[28].mxu0 %v18431_v27 }
 0x325   :  { %16195 = vmatpush1.bf16.msra.mxu0 %v16194_v30  ;;  %2939 = vmatprep.mubr.f32.mxu0 %v17966_v0  ;;  %v2799_v30 = vld [vmem:[#allocation8 + $0x730] sm:$0xff] }
 0x326   :  { %16197 = vmatprep.subr.bf16.mxu0 %v16196_v61  ;;  %v16230_v61 = vpack.c.bf16 %v2780_v43, %v2771_v25  ;;  %v16232_v31 = vpack.c.bf16 %v2799_v30, %v2790_v28  ;;  %v2791_v43 = vld [vmem:[#allocation8 + $0x6f0] sm:$0xff]  ;;  %v2800_v28 = vld [vmem:[#allocation8 + $0x738] sm:$0xff]  ;;  %v2810_v30 = vld [vmem:[#allocation8 + $0x788] sm:$0xff] }
 0x328   :  { %2940 = vmatmul.mubr.f32.gmra.mrb[30].mxu0 %v18435_v11 }
 0x329   :  { %16199 = vmatpush1.bf16.msra.mxu0 %v16198_v17  ;;  %2945 = vmatprep.mubr.f32.mxu0 %v17966_v0  ;;  %v2817_v17 = vld [vmem:[#allocation8 + $0x7c0] sm:$0xff] }
 0x32a   :  { %16201 = vmatprep.subr.bf16.mxu0 %v16200_v38  ;;  %v16234_v38 = vpack.c.bf16 %v2798_v35, %v2789_v34  ;;  %v16236_v41 = vpack.c.bf16 %v2817_v17, %v2808_v36  ;;  %v2809_v35 = vld [vmem:[#allocation8 + $0x780] sm:$0xff]  ;;  %v2818_v36 = vld [vmem:[#allocation8 + $0x7c8] sm:$0xff]  ;;  %v2828_v17 = vld [vmem:[#allocation8 + $0x818] sm:$0xff] }
 0x32c   :  { %2946 = vmatmul.mubr.f32.gmra.mrb[32].mxu0 %v18442_v26 }
 0x32d   :  { %16203 = vmatpush1.bf16.msra.mxu0 %v16202_v50  ;;  %2951 = vmatprep.mubr.f32.mxu0 %v17966_v0  ;;  %v2835_v50 = vld [vmem:[#allocation8 + $0x850] sm:$0xff] }
 0x32e   :  { %16205 = vmatprep.subr.bf16.mxu0 %v16204_v51  ;;  %v16238_v51 = vpack.c.bf16 %v2816_v44, %v2807_v42  ;;  %v16240_v53 = vpack.c.bf16 %v2835_v50, %v2826_v45  ;;  %v2827_v44 = vld [vmem:[#allocation8 + $0x810] sm:$0xff]  ;;  %v2836_v45 = vld [vmem:[#allocation8 + $0x858] sm:$0xff]  ;;  %v2846_v50 = vld [vmem:[#allocation8 + $0x8a8] sm:$0xff] }
 0x330   :  { %2952 = vmatmul.mubr.f32.gmra.mrb[34].mxu0 %v18446_v33 }
 0x331   :  { %16207 = vmatpush1.bf16.msra.mxu0 %v16206_v55  ;;  %2957 = vmatprep.mubr.f32.mxu0 %v17966_v0  ;;  %v2853_v55 = vld [vmem:[#allocation8 + $0x8e0] sm:$0xff] }
 0x332   :  { %16209 = vmatprep.subr.bf16.mxu0 %v16208_v56  ;;  %v16242_v56 = vpack.c.bf16 %v2834_v1, %v2825_v54  ;;  %v16244_v57 = vpack.c.bf16 %v2853_v55, %v2844_v5  ;;  %v2845_v1 = vld [vmem:[#allocation8 + $0x8a0] sm:$0xff]  ;;  %v2854_v5 = vld [vmem:[#allocation8 + $0x8e8] sm:$0xff] }
 0x333   :  { %v16278_v55 = vpack.c.bf16 %v2854_v5, %v2845_v1 }
 0x334   :  { %2958 = vmatmul.mubr.f32.gmra.mrb[36].mxu0 %v18451_v40 }
 0x335   :  { %16211 = vmatpush1.bf16.msra.mxu0 %v16210_v60  ;;  %2963 = vmatprep.mubr.f32.mxu0 %v17966_v0  ;;  %v2729_v60 = vld [vmem:[#allocation8 + $0x500] sm:$0xff] }
 0x336   :  { %16213 = vmatprep.subr.bf16.mxu0 %v16212_v63  ;;  %v16246_v63 = vpack.c.bf16 %v2852_v58, %v2843_v13  ;;  %v16248_v52 = vpack.c.bf16 %v2729_v60, %v2720_v15 }
 0x338   :  { %2964 = vmatmul.mubr.f32.gmra.mrb[38].mxu0 %v18457_v48 }
 0x339   :  { %16215 = vmatpush1.bf16.msra.mxu0 %v16214_v2  ;;  %3034 = vmatprep.mubr.f32.mxu0 %v17966_v0  ;;  %v2747_v2 = vld [vmem:[#allocation8 + $0x590] sm:$0xff] }
 0x33a   :  { %16217 = vmatprep.subr.bf16.mxu0 %v16216_v7  ;;  %v16250_v7 = vpack.c.bf16 %v2728_v4, %v2719_v3  ;;  %v16252_v8 = vpack.c.bf16 %v2747_v2, %v2738_v18 }
 0x33c   :  { %3035 = vmatmul.mubr.f32.vlgmr.msra.gmra.mrb[40].mxu0 %v18424_v23 }
 0x33d   :  { %16219 = vmatpush1.bf16.msra.mxu0 %v16218_v6  ;;  %3040 = vmatprep.mubr.f32.mxu0 %v17966_v0  ;;  %v2765_v6 = vld [vmem:[#allocation8 + $0x620] sm:$0xff] }
 0x33e   :  { %16221 = vmatprep.subr.bf16.mxu0 %v16220_v49  ;;  %v16254_v49 = vpack.c.bf16 %v2746_v47, %v2737_v59  ;;  %v16256_v14 = vpack.c.bf16 %v2765_v6, %v2756_v62 }
 0x340   :  { %3041 = vmatmul.mubr.f32.gmra.mrb[42].mxu0 %v18418_v29 }
 0x341   :  { %16223 = vmatpush1.bf16.msra.mxu0 %v16222_v46  ;;  %3046 = vmatprep.mubr.f32.mxu0 %v17966_v0  ;;  %v2783_v46 = vld [vmem:[#allocation8 + $0x6b0] sm:$0xff] }
 0x342   :  { %16225 = vmatprep.subr.bf16.mxu0 %v16224_v12  ;;  %v16258_v12 = vpack.c.bf16 %v2764_v10, %v2755_v9  ;;  %v16260_v16 = vpack.c.bf16 %v2783_v46, %v2774_v37 }
 0x344   :  { %3047 = vmatmul.mubr.f32.gmra.mrb[44].mxu0 %v18431_v27 }
 0x345   :  { %16227 = vmatpush1.bf16.msra.mxu0 %v16226_v21  ;;  %3052 = vmatprep.mubr.f32.mxu0 %v17966_v0  ;;  %v2801_v21 = vld [vmem:[#allocation8 + $0x740] sm:$0xff] }
 0x346   :  { %16229 = vmatprep.subr.bf16.mxu0 %v16228_v22  ;;  %v16262_v22 = vpack.c.bf16 %v2782_v19, %v2773_v24  ;;  %v16264_v25 = vpack.c.bf16 %v2801_v21, %v2792_v20 }
 0x348   :  { %3053 = vmatmul.mubr.f32.gmra.mrb[46].mxu0 %v18435_v11 }
 0x349   :  { %16231 = vmatpush1.bf16.msra.mxu0 %v16230_v61  ;;  %3058 = vmatprep.mubr.f32.mxu0 %v17966_v0  ;;  %v2819_v61 = vld [vmem:[#allocation8 + $0x7d0] sm:$0xff] }
 0x34a   :  { %16233 = vmatprep.subr.bf16.mxu0 %v16232_v31  ;;  %v16266_v31 = vpack.c.bf16 %v2800_v28, %v2791_v43  ;;  %v16268_v34 = vpack.c.bf16 %v2819_v61, %v2810_v30 }
 0x34c   :  { %3059 = vmatmul.mubr.f32.gmra.mrb[48].mxu0 %v18442_v26 }
 0x34d   :  { %16235 = vmatpush1.bf16.msra.mxu0 %v16234_v38  ;;  %3064 = vmatprep.mubr.f32.mxu0 %v17966_v0  ;;  %v2837_v38 = vld [vmem:[#allocation8 + $0x860] sm:$0xff] }
 0x34e   :  { %16237 = vmatprep.subr.bf16.mxu0 %v16236_v41  ;;  %v16270_v41 = vpack.c.bf16 %v2818_v36, %v2809_v35  ;;  %v16272_v42 = vpack.c.bf16 %v2837_v38, %v2828_v17 }
 0x350   :  { %3065 = vmatmul.mubr.f32.gmra.mrb[50].mxu0 %v18446_v33 }
 0x351   :  { %16239 = vmatpush1.bf16.msra.mxu0 %v16238_v51  ;;  %3070 = vmatprep.mubr.f32.mxu0 %v17966_v0  ;;  %v2855_v51 = vld [vmem:[#allocation8 + $0x8f0] sm:$0xff] }
 0x352   :  { %16241 = vmatprep.subr.bf16.mxu0 %v16240_v53  ;;  %v16274_v53 = vpack.c.bf16 %v2836_v45, %v2827_v44  ;;  %v16276_v54 = vpack.c.bf16 %v2855_v51, %v2846_v50 }
 0x354   :  { %3071 = vmatmul.mubr.f32.gmra.mrb[52].mxu0 %v18451_v40 }
 0x355   :  { %16243 = vmatpush1.bf16.msra.mxu0 %v16242_v56  ;;  %3076 = vmatprep.mubr.f32.mxu0 %v17966_v0 }
 0x356   :  { %16245 = vmatprep.subr.bf16.mxu0 %v16244_v57 }
 0x358   :  { %3077 = vmatmul.mubr.f32.gmra.mrb[54].mxu0 %v18457_v48 }
 0x359   :  { %16247 = vmatpush1.bf16.msra.mxu0 %v16246_v63  ;;  %3147 = vmatprep.mubr.f32.mxu0 %v17966_v0 }
 0x35a   :  { %16249 = vmatprep.subr.bf16.mxu0 %v16248_v52 }
 0x35c   :  { %3148 = vmatmul.mubr.f32.vlgmr.msra.gmra.mrb[56].mxu0 %v18424_v23 }
 0x35d   :  { %16251 = vmatpush1.bf16.msra.mxu0 %v16250_v7  ;;  %3153 = vmatprep.mubr.f32.mxu0 %v17966_v0 }
 0x35e   :  { %16253 = vmatprep.subr.bf16.mxu0 %v16252_v8 }
 0x360   :  { %3154 = vmatmul.mubr.f32.gmra.mrb[58].mxu0 %v18418_v29 }
 0x361   :  { %16255 = vmatpush1.bf16.msra.mxu0 %v16254_v49  ;;  %3159 = vmatprep.mubr.f32.mxu0 %v17966_v0 }
 0x362   :  { %16257 = vmatprep.subr.bf16.mxu0 %v16256_v14 }
 0x364   :  { %3160 = vmatmul.mubr.f32.gmra.mrb[60].mxu0 %v18431_v27 }
 0x365   :  { %16259 = vmatpush1.bf16.msra.mxu0 %v16258_v12  ;;  %3165 = vmatprep.mubr.f32.mxu0 %v17966_v0 }
 0x366   :  { %16261 = vmatprep.subr.bf16.mxu0 %v16260_v16 }
 0x368   :  { %3166 = vmatmul.mubr.f32.gmra.mrb[62].mxu0 %v18435_v11 }
 0x369   :  { %16263 = vmatpush1.bf16.msra.mxu0 %v16262_v22  ;;  %3171 = vmatprep.mubr.f32.mxu0 %v17966_v0 }
 0x36a   :  { %16265 = vmatprep.subr.bf16.mxu0 %v16264_v25 }
 0x36c   :  { %3172 = vmatmul.mubr.f32.gmra.mrb[64].mxu0 %v18442_v26 }
 0x36d   :  { %16267 = vmatpush1.bf16.msra.mxu0 %v16266_v31  ;;  %3177 = vmatprep.mubr.f32.mxu0 %v17966_v0 }
 0x36e   :  { %16269 = vmatprep.subr.bf16.mxu0 %v16268_v34 }
 0x370   :  { %3178 = vmatmul.mubr.f32.gmra.mrb[66].mxu0 %v18446_v33 }
 0x371   :  { %16271 = vmatpush1.bf16.msra.mxu0 %v16270_v41  ;;  %3183 = vmatprep.mubr.f32.mxu0 %v17966_v0 }
 0x372   :  { %16273 = vmatprep.subr.bf16.mxu0 %v16272_v42 }
 0x374   :  { %3184 = vmatmul.mubr.f32.gmra.mrb[68].mxu0 %v18451_v40 }
 0x375   :  { %16275 = vmatpush1.bf16.msra.mxu0 %v16274_v53  ;;  %3189 = vmatprep.mubr.f32.mxu0 %v17966_v0 }
 0x376   :  { %16277 = vmatprep.subr.bf16.mxu0 %v16276_v54 }
 0x378   :  { %3190 = vmatmul.mubr.f32.gmra.mrb[70].mxu0 %v18457_v48 }
 0x379   :  { %16279 = vmatpush1.bf16.msra.mxu0 %v16278_v55  ;;  %3260 = vmatprep.mubr.f32.mxu0 %v17966_v0 }
 0x37c   :  { %3261 = vmatmul.mubr.f32.vlgmr.msra.gmra.mrb[72].mxu0 %v18424_v23  ;;  %v3503_v23 = vld [vmem:[#allocation6 + $0x240] sm:$0xff] }
 0x37d   :  { %3266 = vmatprep.mubr.f32.mxu0 %v17966_v0  ;;  %14576 = vmatprep.mubr.msk.f32.mxu1 %vm954_vm0, %v3503_v23 }
 0x380   :  { %3267 = vmatmul.mubr.f32.gmra.mrb[74].mxu0 %v18418_v29  ;;  %v12893_v29 = vld [vmem:[#allocation12] ss:$0 sm:$0xff] }
 0x381   :  { %3272 = vmatprep.mubr.f32.mxu0 %v17966_v0 }
 0x384   :  { %3273 = vmatmul.mubr.f32.gmra.mrb[76].mxu0 %v18431_v27 }
 0x385   :  { %3278 = vmatprep.mubr.f32.mxu0 %v17966_v0 }
 0x388   :  { %3279 = vmatmul.mubr.f32.gmra.mrb[78].mxu0 %v18435_v11 }
 0x389   :  { %3284 = vmatprep.mubr.f32.mxu0 %v17966_v0 }
 0x38c   :  { %3285 = vmatmul.mubr.f32.gmra.mrb[80].mxu0 %v18442_v26 }
 0x38d   :  { %3290 = vmatprep.mubr.f32.mxu0 %v17966_v0 }
 0x390   :  { %3291 = vmatmul.mubr.f32.gmra.mrb[82].mxu0 %v18446_v33 }
 0x391   :  { %3296 = vmatprep.mubr.f32.mxu0 %v17966_v0 }
 0x394   :  { %3297 = vmatmul.mubr.f32.gmra.mrb[84].mxu0 %v18451_v40 }
 0x395   :  { %3302 = vmatprep.mubr.f32.mxu0 %v17966_v0 }
 0x398   :  { %3303 = vmatmul.mubr.f32.gmra.mrb[86].mxu0 %v18457_v48 }
 0x399   :  { %5338 = vmatprep.mubr.f32.mxu0 %v17966_v0 }
 0x3cd   :  { %v14506_v27 = vpop.f32.mrb[16].mxu0 }
 0x3ce   :  { %v2651_v11 = vadd.f32 %v14506_v27, %v12893_v29  ;;  %v14550_v26 = vpop.f32.mrb[64].mxu1  ;;  %v2645_v56 = vpop.f32.mrb[17].mxu0 }
 0x3cf   :  { %v2646_v57 = vadd.f32 %v12893_v29, %v2645_v56  ;;  %v3375_v33 = vpop.f32.mrb[65].mxu1 }
 0x3d0   :  { %v12895_v13 = vclamps-f32 %v2651_v11, 256.0  ;;  %v18526_v58 = vpack.c.bf16 %v14550_v26, %v3375_v33 }
 0x3d1   :  { %v12894_v15 = vclamps-f32 %v2646_v57, 256.0  ;;  %v3504_v57 = vld [vmem:[#allocation6 + $0x248] sm:$0xff] }
 0x3d3   :  { %v18528_v60 = vpack.c.bf16 %v12895_v13, %v12894_v15  ;;  %v14509_v40 = vpop.f32.mrb[18].mxu0  ;;  %v14553_v63 = vpop.f32.mrb[66].mxu1  ;;  %v3505_v13 = vld [vmem:[#allocation6 + $0x250] sm:$0xff] }
 0x3d4   :  { %v2661_v52 = vadd.f32 %v14509_v40, %v12893_v29  ;;  %v2655_v3 = vpop.f32.mrb[19].mxu0  ;;  %v3385_v48 = vpop.f32.mrb[67].mxu1  ;;  %v3506_v40 = vld [vmem:[#allocation6 + $0x258] sm:$0xff] }
 0x3d5   :  { %v2656_v4 = vadd.f32 %v12893_v29, %v2655_v3  ;;  %v18530_v18 = vpack.c.bf16 %v14553_v63, %v3385_v48  ;;  %v3507_v3 = vld [vmem:[#allocation6 + $0x260] sm:$0xff] }
 0x3d6   :  { %v12897_v2 = vclamps-f32 %v2661_v52, 256.0 }
 0x3d7   :  { %v12896_v7 = vclamps-f32 %v2656_v4, 256.0  ;;  %v14512_v8 = vpop.f32.mrb[20].mxu0  ;;  %v14556_v59 = vpop.f32.mrb[68].mxu1 }
 0x3d8   :  { %v2671_v47 = vadd.f32 %v14512_v8, %v12893_v29  ;;  %v2665_v62 = vpop.f32.mrb[21].mxu0  ;;  %v3395_v6 = vpop.f32.mrb[69].mxu1  ;;  %v3509_v8 = vld [vmem:[#allocation6 + $0x270] sm:$0xff] }
 0x3d9   :  { %v18532_v49 = vpack.c.bf16 %v12897_v2, %v12896_v7  ;;  %v2666_v14 = vadd.f32 %v12893_v29, %v2665_v62  ;;  %v18534_v9 = vpack.c.bf16 %v14556_v59, %v3395_v6  ;;  %v3508_v2 = vld [vmem:[#allocation6 + $0x268] sm:$0xff] }
 0x3da   :  { %v12899_v10 = vclamps-f32 %v2671_v47, 256.0  ;;  %v3510_v47 = vld [vmem:[#allocation6 + $0x278] sm:$0xff] }
 0x3db   :  { %v12898_v37 = vclamps-f32 %v2666_v14, 256.0  ;;  %v14515_v46 = vpop.f32.mrb[22].mxu0  ;;  %v14559_v12 = vpop.f32.mrb[70].mxu1  ;;  %v3673_v14 = vld [vmem:[#allocation6 + $0x280] sm:$0xff] }
 0x3dc   :  { %v2681_v16 = vadd.f32 %v14515_v46, %v12893_v29  ;;  %v2675_v24 = vpop.f32.mrb[23].mxu0  ;;  %v3405_v19 = vpop.f32.mrb[71].mxu1  ;;  %v5131_v46 = vld [vmem:[#allocation8 + $0x908] sm:$0xff] }
 0x3dd   :  { %v18536_v20 = vpack.c.bf16 %v12899_v10, %v12898_v37  ;;  %v2676_v21 = vadd.f32 %v12893_v29, %v2675_v24  ;;  %v18538_v22 = vpack.c.bf16 %v14559_v12, %v3405_v19  ;;  %v3674_v37 = vld [vmem:[#allocation6 + $0x288] sm:$0xff]  ;;  %v5140_v12 = vld [vmem:[#allocation8 + $0x950] sm:$0xff] }
 0x3de   :  { %v12901_v25 = vclamps-f32 %v2681_v16, 256.0  ;;  %v5130_v16 = vld [vmem:[#allocation8 + $0x900] sm:$0xff]  ;;  %v16456_v19 = vpack.c.bf16 %v5140_v12, %v5131_v46  ;;  %v3845_v46 = vld [vmem:[#allocation6 + $0x2d0] sm:$0xff] }
 0x3df   :  { %v12900_v43 = vclamps-f32 %v2676_v21, 256.0  ;;  %v5139_v21 = vld [vmem:[#allocation8 + $0x948] sm:$0xff] }
 0x3e0   :  { %16457 = vmatprep.subr.bf16.mxu0 %v16456_v19 }
 0x3e1   :  { %v18540_v28 = vpack.c.bf16 %v12901_v25, %v12900_v43  ;;  %v5149_v25 = vld [vmem:[#allocation8 + $0x998] sm:$0xff]  ;;  %v5158_v43 = vld [vmem:[#allocation8 + $0x9e0] sm:$0xff] }
 0x3ef   :  { %v2923_v30 = vpop.f32.mrb[24].mxu0 }
 0x3f0   :  { %v2925_v61 = vpop.f32.mrb[25].mxu0 }
 0x3f3   :  { %v2929_v31 = vpop.f32.mrb[26].mxu0 }
 0x3f4   :  { %v16312_v34 = vpack.c.bf16 %v2929_v31, %v2923_v30  ;;  %v2931_v35 = vpop.f32.mrb[27].mxu0  ;;  %v16458_v31 = vpack.c.bf16 %v5139_v21, %v5130_v16 }
 0x3f5   :  { %v16328_v36 = vpack.c.bf16 %v2931_v35, %v2925_v61  ;;  %v3675_v61 = vld [vmem:[#allocation6 + $0x290] sm:$0xff] }
 0x3f6   :  { %16313 = vmatprep.subr.bf16.mxu1 %v16312_v34  ;;  %v5148_v35 = vld [vmem:[#allocation8 + $0x990] sm:$0xff]  ;;  %16459 = vmatpush1.bf16.msra.mxu0 %v16458_v31 }
 0x3f7   :  { %v2935_v17 = vpop.f32.mrb[28].mxu0  ;;  %16315 = vmatpush3.bf16.msra.mxu1 %v16312_v34  ;;  %v16460_v34 = vpack.c.bf16 %v5158_v43, %v5149_v25  ;;  %v3847_v25 = vld [vmem:[#allocation6 + $0x2e0] sm:$0xff]  ;;  %v3849_v31 = vld [vmem:[#allocation6 + $0x2f0] sm:$0xff] }
 0x3f8   :  { %v2937_v38 = vpop.f32.mrb[29].mxu0 }
 0x3f9   :  { %16461 = vmatprep.subr.bf16.mxu0 %v16460_v34 }
 0x3fb   :  { %v2941_v41 = vpop.f32.mrb[30].mxu0 }
 0x3fc   :  { %v16316_v42 = vpack.c.bf16 %v2941_v41, %v2935_v17  ;;  %v2943_v44 = vpop.f32.mrb[31].mxu0  ;;  %v5167_v17 = vld [vmem:[#allocation8 + $0xa28] sm:$0xff] }
 0x3fd   :  { %v16332_v45 = vpack.c.bf16 %v2943_v44, %v2937_v38  ;;  %v5176_v38 = vld [vmem:[#allocation8 + $0xa70] sm:$0xff]  ;;  %v3676_v44 = vld [vmem:[#allocation6 + $0x298] sm:$0xff] }
 0x3fe   :  { %16317 = vmatprep.subr.bf16.mxu1 %v16316_v42 }
 0x3ff   :  { %v2947_v50 = vpop.f32.mrb[32].mxu0  ;;  %16319 = vmatpush3.bf16.msra.mxu1 %v16316_v42 }
 0x400   :  { %v2949_v51 = vpop.f32.mrb[33].mxu0 }
 0x403   :  { %v2953_v53 = vpop.f32.mrb[34].mxu0 }
 0x404   :  { %v16320_v54 = vpack.c.bf16 %v2953_v53, %v2947_v50  ;;  %v2955_v1 = vpop.f32.mrb[35].mxu0  ;;  %v5175_v50 = vld [vmem:[#allocation8 + $0xa68] sm:$0xff] }
 0x405   :  { %v16336_v5 = vpack.c.bf16 %v2955_v1, %v2949_v51  ;;  %v16464_v1 = vpack.c.bf16 %v5176_v38, %v5167_v17  ;;  %v4013_v38 = vld [vmem:[#allocation6 + $0x300] sm:$0xff] }
 0x406   :  { %16321 = vmatprep.subr.bf16.mxu1 %v16320_v54 }
 0x407   :  { %v2959_v55 = vpop.f32.mrb[36].mxu0  ;;  %16323 = vmatpush3.bf16.msra.mxu1 %v16320_v54  ;;  %v3677_v54 = vld [vmem:[#allocation6 + $0x2a0] sm:$0xff] }
 0x408   :  { %v2961_v23 = vpop.f32.mrb[37].mxu0 }
 0x40b   :  { %v2965_v29 = vpop.f32.mrb[38].mxu0 }
 0x40c   :  { %v16324_v27 = vpack.c.bf16 %v2965_v29, %v2959_v55  ;;  %v2967_v11 = vpop.f32.mrb[39].mxu0  ;;  %v5185_v55 = vld [vmem:[#allocation8 + $0xab8] sm:$0xff] }
 0x40d   :  { %v16340_v26 = vpack.c.bf16 %v2967_v11, %v2961_v23  ;;  %v5194_v23 = vld [vmem:[#allocation8 + $0xb00] sm:$0xff]  ;;  %v3678_v11 = vld [vmem:[#allocation6 + $0x2a8] sm:$0xff] }
 0x40e   :  { %16325 = vmatprep.subr.bf16.mxu1 %v16324_v27 }
 0x40f   :  { %v3036_v56 = vpop.f32.mrb[40].mxu0  ;;  %16327 = vmatpush3.bf16.msra.mxu1 %v16324_v27 }
 0x410   :  { %v3038_v33 = vpop.f32.mrb[41].mxu0  ;;  %16329 = vmatprep.subr.bf16.mxu1 %v16328_v36 }
 0x412   :  { %14577 = vmatmul.mubr.msk.f32.vlgmr.msra.gmra.mrb[72].mxu1 %vm954_vm0, %v3504_v57  ;;  %v16468_v57 = vpack.c.bf16 %v5194_v23, %v5185_v55  ;;  %v4018_v23 = vld [vmem:[#allocation6 + $0x328] sm:$0xff] }
 0x413   :  { %v3042_v15 = vpop.f32.mrb[42].mxu0  ;;  %16331 = vmatpush3.bf16.msra.mxu1 %v16328_v36  ;;  %14579 = vmatprep.mubr.msk.f32.mxu1 %vm954_vm0, %v3505_v13  ;;  %v5157_v36 = vld [vmem:[#allocation8 + $0x9d8] sm:$0xff] }
 0x414   :  { %v16344_v63 = vpack.c.bf16 %v3042_v15, %v3036_v56  ;;  %v3044_v52 = vpop.f32.mrb[43].mxu0  ;;  %16333 = vmatprep.subr.bf16.mxu1 %v16332_v45  ;;  %v16462_v41 = vpack.c.bf16 %v5157_v36, %v5148_v35  ;;  %v3679_v56 = vld [vmem:[#allocation6 + $0x2b0] sm:$0xff]  ;;  %v5193_v13 = vld [vmem:[#allocation8 + $0xaf8] sm:$0xff]  ;;  %v5203_v15 = vld [vmem:[#allocation8 + $0xb48] sm:$0xff] }
 0x415   :  { %v18544_v48 = vpack.c.bf16 %v3044_v52, %v3038_v33  ;;  %v5184_v33 = vld [vmem:[#allocation8 + $0xab0] sm:$0xff]  ;;  %v3680_v52 = vld [vmem:[#allocation6 + $0x2b8] sm:$0xff] }
 0x416   :  { %14580 = vmatmul.mubr.msk.f32.gmra.mrb[74].mxu1 %vm954_vm0, %v3506_v40  ;;  %16463 = vmatpush1.bf16.msra.mxu0 %v16462_v41  ;;  %v5212_v40 = vld [vmem:[#allocation8 + $0xb90] sm:$0xff]  ;;  %v3850_v35 = vld [vmem:[#allocation6 + $0x2f8] sm:$0xff] }
 0x417   :  { %v3048_v4 = vpop.f32.mrb[44].mxu0  ;;  %16335 = vmatpush3.bf16.msra.mxu1 %v16332_v45  ;;  %14582 = vmatprep.mubr.msk.f32.mxu1 %vm954_vm0, %v3507_v3  ;;  %v5166_v45 = vld [vmem:[#allocation8 + $0xa20] sm:$0xff] }
 0x418   :  { %v3050_v7 = vpop.f32.mrb[45].mxu0  ;;  %16337 = vmatprep.subr.bf16.mxu1 %v16336_v5  ;;  %v16466_v29 = vpack.c.bf16 %v5175_v50, %v5166_v45  ;;  %16465 = vmatprep.subr.bf16.mxu0 %v16464_v1  ;;  %v4015_v45 = vld [vmem:[#allocation6 + $0x310] sm:$0xff]  ;;  %v4017_v1 = vld [vmem:[#allocation6 + $0x320] sm:$0xff] }
 0x41a   :  { %14583 = vmatmul.mubr.msk.f32.gmra.mrb[76].mxu1 %vm954_vm0, %v3508_v2  ;;  %16467 = vmatpush1.bf16.msra.mxu0 %v16466_v29  ;;  %v3843_v2 = vld [vmem:[#allocation6 + $0x2c0] sm:$0xff] }
 0x41b   :  { %v3054_v59 = vpop.f32.mrb[46].mxu0  ;;  %16339 = vmatpush3.bf16.msra.mxu1 %v16336_v5  ;;  %14585 = vmatprep.mubr.msk.f32.mxu1 %vm954_vm0, %v3509_v8 }
 0x41c   :  { %v16348_v62 = vpack.c.bf16 %v3054_v59, %v3048_v4  ;;  %v3056_v6 = vpop.f32.mrb[47].mxu0  ;;  %16341 = vmatprep.subr.bf16.mxu1 %v16340_v26  ;;  %16469 = vmatprep.subr.bf16.mxu0 %v16468_v57  ;;  %v16472_v59 = vpack.c.bf16 %v5212_v40, %v5203_v15  ;;  %v4184_v40 = vld [vmem:[#allocation6 + $0x348] sm:$0xff] }
 0x41d   :  { %v18550_v10 = vpack.c.bf16 %v3056_v6, %v3050_v7  ;;  %v16470_v7 = vpack.c.bf16 %v5193_v13, %v5184_v33  ;;  %v4183_v33 = vld [vmem:[#allocation6 + $0x340] sm:$0xff] }
 0x41e   :  { %14586 = vmatmul.mubr.msk.f32.gmra.mrb[78].mxu1 %vm954_vm0, %v3510_v47  ;;  %v5202_v47 = vld [vmem:[#allocation8 + $0xb40] sm:$0xff] }
 0x41f   :  { %v3060_v24 = vpop.f32.mrb[48].mxu0  ;;  %16343 = vmatpush3.bf16.msra.mxu1 %v16340_v26  ;;  %14604 = vmatprep.mubr.msk.f32.mxu1 %vm954_vm0, %v3673_v14  ;;  %v3844_v14 = vld [vmem:[#allocation6 + $0x2c8] sm:$0xff] }
 0x420   :  { %v3062_v30 = vpop.f32.mrb[49].mxu0  ;;  %16345 = vmatprep.subr.bf16.mxu1 %v16344_v63  ;;  %16471 = vmatpush1.bf16.msra.mxu0 %v16470_v7 }
 0x421   :  { %16473 = vmatprep.subr.bf16.mxu0 %v16472_v59 }
 0x422   :  { %14605 = vmatmul.mubr.msk.f32.vlgmr.msra.gmra.mrb[72].mxu1 %vm954_vm0, %v3674_v37 }
 0x423   :  { %v3066_v42 = vpop.f32.mrb[50].mxu0  ;;  %16347 = vmatpush3.bf16.msra.mxu1 %v16344_v63  ;;  %14607 = vmatprep.mubr.msk.f32.mxu1 %vm954_vm0, %v3675_v61  ;;  %v3848_v61 = vld [vmem:[#allocation6 + $0x2e8] sm:$0xff] }
 0x424   :  { %v16352_v51 = vpack.c.bf16 %v3066_v42, %v3060_v24  ;;  %v3068_v53 = vpop.f32.mrb[51].mxu0  ;;  %16349 = vmatprep.subr.bf16.mxu1 %v16348_v62  ;;  %v3846_v24 = vld [vmem:[#allocation6 + $0x2d8] sm:$0xff]  ;;  %v4014_v42 = vld [vmem:[#allocation6 + $0x308] sm:$0xff] }
 0x425   :  { %v18556_v5 = vpack.c.bf16 %v3068_v53, %v3062_v30 }
 0x426   :  { %14608 = vmatmul.mubr.msk.f32.gmra.mrb[74].mxu1 %vm954_vm0, %v3676_v44 }
 0x427   :  { %v3072_v27 = vpop.f32.mrb[52].mxu0  ;;  %16351 = vmatpush3.bf16.msra.mxu1 %v16348_v62  ;;  %14610 = vmatprep.mubr.msk.f32.mxu1 %vm954_vm0, %v3677_v54  ;;  %v5211_v62 = vld [vmem:[#allocation8 + $0xb88] sm:$0xff] }
 0x428   :  { %v3074_v26 = vpop.f32.mrb[53].mxu0  ;;  %16353 = vmatprep.subr.bf16.mxu1 %v16352_v51  ;;  %v16474_v12 = vpack.c.bf16 %v5211_v62, %v5202_v47  ;;  %v4188_v62 = vld [vmem:[#allocation6 + $0x368] sm:$0xff] }
 0x42a   :  { %14611 = vmatmul.mubr.msk.f32.gmra.mrb[76].mxu1 %vm954_vm0, %v3678_v11  ;;  %16475 = vmatpush1.bf16.msra.mxu0 %v16474_v12 }
 0x42b   :  { %v3078_v63 = vpop.f32.mrb[54].mxu0  ;;  %16355 = vmatpush3.bf16.msra.mxu1 %v16352_v51  ;;  %14613 = vmatprep.mubr.msk.f32.mxu1 %vm954_vm0, %v3679_v56  ;;  %v4016_v51 = vld [vmem:[#allocation6 + $0x318] sm:$0xff] }
 0x42c   :  { %v16356_v3 = vpack.c.bf16 %v3078_v63, %v3072_v27  ;;  %v3080_v4 = vpop.f32.mrb[55].mxu0  ;;  %v4019_v27 = vld [vmem:[#allocation6 + $0x330] sm:$0xff] }
 0x42d   :  { %v16372_v8 = vpack.c.bf16 %v3080_v4, %v3074_v26  ;;  %v4020_v26 = vld [vmem:[#allocation6 + $0x338] sm:$0xff] }
 0x42e   :  { %14614 = vmatmul.mubr.msk.f32.gmra.mrb[78].mxu1 %vm954_vm0, %v3680_v52  ;;  %16357 = vmatprep.subr.bf16.mxu1 %v16356_v3  ;;  %v4185_v52 = vld [vmem:[#allocation6 + $0x350] sm:$0xff]  ;;  %v4186_v4 = vld [vmem:[#allocation6 + $0x358] sm:$0xff] }
 0x42f   :  { %v3149_v6 = vpop.f32.mrb[56].mxu0  ;;  %16359 = vmatpush3.bf16.msra.mxu1 %v16356_v3  ;;  %14632 = vmatprep.mubr.msk.f32.mxu1 %vm954_vm0, %v3843_v2 }
 0x430   :  { %v3151_v37 = vpop.f32.mrb[57].mxu0  ;;  %16361 = vmatprep.subr.bf16.mxu1 %v18544_v48 }
 0x432   :  { %14633 = vmatmul.mubr.msk.f32.vlgmr.msra.gmra.mrb[72].mxu1 %vm954_vm0, %v3844_v14  ;;  %v4189_v14 = vld [vmem:[#allocation6 + $0x370] sm:$0xff] }
 0x433   :  { %v3155_v16 = vpop.f32.mrb[58].mxu0  ;;  %16363 = vmatpush3.bf16.msra.mxu1 %v18544_v48  ;;  %14635 = vmatprep.mubr.msk.f32.mxu1 %vm954_vm0, %v3845_v46  ;;  %v4190_v46 = vld [vmem:[#allocation6 + $0x378] sm:$0xff] }
 0x434   :  { %v16376_v19 = vpack.c.bf16 %v3155_v16, %v3149_v6  ;;  %v3157_v21 = vpop.f32.mrb[59].mxu0  ;;  %16365 = vmatprep.subr.bf16.mxu1 %v18550_v10 }
 0x435   :  { %v18569_v43 = vpack.c.bf16 %v3157_v21, %v3151_v37 }
 0x436   :  { %14636 = vmatmul.mubr.msk.f32.gmra.mrb[74].mxu1 %vm954_vm0, %v3846_v24  ;;  %v4353_v24 = vld [vmem:[#allocation6 + $0x380] sm:$0xff] }
 0x437   :  { %v3161_v30 = vpop.f32.mrb[60].mxu0  ;;  %16367 = vmatpush3.bf16.msra.mxu1 %v18550_v10  ;;  %14638 = vmatprep.mubr.msk.f32.mxu1 %vm954_vm0, %v3847_v25  ;;  %v4354_v25 = vld [vmem:[#allocation6 + $0x388] sm:$0xff] }
 0x438   :  { %v3163_v48 = vpop.f32.mrb[61].mxu0  ;;  %16369 = vmatprep.subr.bf16.mxu1 %v18556_v5 }
 0x43a   :  { %14639 = vmatmul.mubr.msk.f32.gmra.mrb[76].mxu1 %vm954_vm0, %v3848_v61 }
 0x43b   :  { %v3167_v34 = vpop.f32.mrb[62].mxu0  ;;  %16371 = vmatpush3.bf16.msra.mxu1 %v18556_v5  ;;  %14641 = vmatprep.mubr.msk.f32.mxu1 %vm954_vm0, %v3849_v31 }
 0x43c   :  { %v16380_v36 = vpack.c.bf16 %v3167_v34, %v3161_v30  ;;  %v3169_v17 = vpop.f32.mrb[63].mxu0  ;;  %16373 = vmatprep.subr.bf16.mxu1 %v16372_v8  ;;  %v4355_v30 = vld [vmem:[#allocation6 + $0x390] sm:$0xff] }
 0x43d   :  { %v16396_v10 = vpack.c.bf16 %v3169_v17, %v3163_v48  ;;  %v4356_v48 = vld [vmem:[#allocation6 + $0x398] sm:$0xff] }
 0x43e   :  { %14642 = vmatmul.mubr.msk.f32.gmra.mrb[78].mxu1 %vm954_vm0, %v3850_v35  ;;  %v4357_v35 = vld [vmem:[#allocation6 + $0x3a0] sm:$0xff] }
 0x43f   :  { %v3173_v41 = vpop.f32.mrb[64].mxu0  ;;  %16375 = vmatpush3.bf16.msra.mxu1 %v16372_v8  ;;  %14660 = vmatprep.mubr.msk.f32.mxu1 %vm954_vm0, %v4013_v38  ;;  %v4187_v8 = vld [vmem:[#allocation6 + $0x360] sm:$0xff]  ;;  %v4358_v38 = vld [vmem:[#allocation6 + $0x3a8] sm:$0xff] }
 0x440   :  { %v3175_v44 = vpop.f32.mrb[65].mxu0  ;;  %16377 = vmatprep.subr.bf16.mxu1 %v16376_v19 }
 0x442   :  { %14661 = vmatmul.mubr.msk.f32.vlgmr.msra.gmra.mrb[72].mxu1 %vm954_vm0, %v4014_v42 }
 0x443   :  { %v3179_v50 = vpop.f32.mrb[66].mxu0  ;;  %16379 = vmatpush3.bf16.msra.mxu1 %v16376_v19  ;;  %14663 = vmatprep.mubr.msk.f32.mxu1 %vm954_vm0, %v4015_v45 }
 0x444   :  { %v16384_v53 = vpack.c.bf16 %v3179_v50, %v3173_v41  ;;  %v3181_v54 = vpop.f32.mrb[67].mxu0  ;;  %16381 = vmatprep.subr.bf16.mxu1 %v16380_v36  ;;  %v4359_v41 = vld [vmem:[#allocation6 + $0x3b0] sm:$0xff] }
 0x445   :  { %v16400_v5 = vpack.c.bf16 %v3181_v54, %v3175_v44  ;;  %v4360_v44 = vld [vmem:[#allocation6 + $0x3b8] sm:$0xff]  ;;  %v4524_v54 = vld [vmem:[#allocation6 + $0x3c8] sm:$0xff] }
 0x446   :  { %14664 = vmatmul.mubr.msk.f32.gmra.mrb[74].mxu1 %vm954_vm0, %v4016_v51  ;;  %v4523_v51 = vld [vmem:[#allocation6 + $0x3c0] sm:$0xff] }
 0x447   :  { %v3185_v55 = vpop.f32.mrb[68].mxu0  ;;  %16383 = vmatpush3.bf16.msra.mxu1 %v16380_v36  ;;  %14666 = vmatprep.mubr.msk.f32.mxu1 %vm954_vm0, %v4017_v1  ;;  %v4525_v1 = vld [vmem:[#allocation6 + $0x3d0] sm:$0xff] }
 0x448   :  { %v3187_v29 = vpop.f32.mrb[69].mxu0  ;;  %16385 = vmatprep.subr.bf16.mxu1 %v16384_v53 }
 0x44a   :  { %14667 = vmatmul.mubr.msk.f32.gmra.mrb[76].mxu1 %vm954_vm0, %v4018_v23  ;;  %v4528_v23 = vld [vmem:[#allocation6 + $0x3e8] sm:$0xff] }
 0x44b   :  { %v3191_v11 = vpop.f32.mrb[70].mxu0  ;;  %16387 = vmatpush3.bf16.msra.mxu1 %v16384_v53  ;;  %14669 = vmatprep.mubr.msk.f32.mxu1 %vm954_vm0, %v4019_v27  ;;  %v4530_v27 = vld [vmem:[#allocation6 + $0x3f8] sm:$0xff] }
 0x44c   :  { %v16388_v56 = vpack.c.bf16 %v3191_v11, %v3185_v55  ;;  %v3193_v57 = vpop.f32.mrb[71].mxu0  ;;  %v4527_v55 = vld [vmem:[#allocation6 + $0x3e0] sm:$0xff] }
 0x44d   :  { %v16404_v13 = vpack.c.bf16 %v3193_v57, %v3187_v29  ;;  %v4529_v29 = vld [vmem:[#allocation6 + $0x3f0] sm:$0xff]  ;;  %v4693_v11 = vld [vmem:[#allocation6 + $0x400] sm:$0xff]  ;;  %v4696_v57 = vld [vmem:[#allocation6 + $0x418] sm:$0xff] }
 0x44e   :  { %14670 = vmatmul.mubr.msk.f32.gmra.mrb[78].mxu1 %vm954_vm0, %v4020_v26  ;;  %16389 = vmatprep.subr.bf16.mxu1 %v16388_v56  ;;  %v4694_v26 = vld [vmem:[#allocation6 + $0x408] sm:$0xff] }
 0x44f   :  { %v3262_v15 = vpop.f32.mrb[72].mxu0  ;;  %16391 = vmatpush3.bf16.msra.mxu1 %v16388_v56  ;;  %14688 = vmatprep.mubr.msk.f32.mxu1 %vm954_vm0, %v4183_v33  ;;  %v4695_v56 = vld [vmem:[#allocation6 + $0x410] sm:$0xff]  ;;  %v4697_v33 = vld [vmem:[#allocation6 + $0x420] sm:$0xff] }
 0x450   :  { %v3264_v63 = vpop.f32.mrb[73].mxu0  ;;  %16393 = vmatprep.subr.bf16.mxu1 %v18569_v43 }
 0x452   :  { %14689 = vmatmul.mubr.msk.f32.vlgmr.msra.gmra.mrb[72].mxu1 %vm954_vm0, %v4184_v40  ;;  %v4863_v40 = vld [vmem:[#allocation6 + $0x440] sm:$0xff] }
 0x453   :  { %v3268_v3 = vpop.f32.mrb[74].mxu0  ;;  %16395 = vmatpush3.bf16.msra.mxu1 %v18569_v43  ;;  %14691 = vmatprep.mubr.msk.f32.mxu1 %vm954_vm0, %v4185_v52  ;;  %v4866_v52 = vld [vmem:[#allocation6 + $0x458] sm:$0xff] }
 0x454   :  { %v16408_v2 = vpack.c.bf16 %v3268_v3, %v3262_v15  ;;  %v3270_v7 = vpop.f32.mrb[75].mxu0  ;;  %16397 = vmatprep.subr.bf16.mxu1 %v16396_v10  ;;  %v4699_v15 = vld [vmem:[#allocation6 + $0x430] sm:$0xff]  ;;  %v4868_v3 = vld [vmem:[#allocation6 + $0x468] sm:$0xff] }
 0x455   :  { %v16424_v59 = vpack.c.bf16 %v3270_v7, %v3264_v63  ;;  %v4865_v63 = vld [vmem:[#allocation6 + $0x450] sm:$0xff]  ;;  %v5230_v7 = vld [vmem:[#allocation8 + $0xc20] sm:$0xff] }
 0x456   :  { %14692 = vmatmul.mubr.msk.f32.gmra.mrb[74].mxu1 %vm954_vm0, %v4186_v4  ;;  %v4869_v4 = vld [vmem:[#allocation6 + $0x470] sm:$0xff] }
 0x457   :  { %v3274_v47 = vpop.f32.mrb[76].mxu0  ;;  %16399 = vmatpush3.bf16.msra.mxu1 %v16396_v10  ;;  %14694 = vmatprep.mubr.msk.f32.mxu1 %vm954_vm0, %v4187_v8 }
 0x458   :  { %v3276_v6 = vpop.f32.mrb[77].mxu0  ;;  %16401 = vmatprep.subr.bf16.mxu1 %v16400_v5 }
 0x45a   :  { %14695 = vmatmul.mubr.msk.f32.gmra.mrb[76].mxu1 %vm954_vm0, %v4188_v62 }
 0x45b   :  { %v3280_v37 = vpop.f32.mrb[78].mxu0  ;;  %16403 = vmatpush3.bf16.msra.mxu1 %v16400_v5  ;;  %14697 = vmatprep.mubr.msk.f32.mxu1 %vm954_vm0, %v4189_v14  ;;  %v4526_v5 = vld [vmem:[#allocation6 + $0x3d8] sm:$0xff]  ;;  %v5248_v14 = vld [vmem:[#allocation8 + $0xcb0] sm:$0xff] }
 0x45c   :  { %v16412_v12 = vpack.c.bf16 %v3280_v37, %v3274_v47  ;;  %v3282_v16 = vpop.f32.mrb[79].mxu0  ;;  %16405 = vmatprep.subr.bf16.mxu1 %v16404_v13  ;;  %v5229_v47 = vld [vmem:[#allocation8 + $0xc18] sm:$0xff] }
 0x45d   :  { %v16428_v19 = vpack.c.bf16 %v3282_v16, %v3276_v6  ;;  %v5239_v6 = vld [vmem:[#allocation8 + $0xc68] sm:$0xff] }
 0x45e   :  { %14698 = vmatmul.mubr.msk.f32.gmra.mrb[78].mxu1 %vm954_vm0, %v4190_v46  ;;  %v16480_v37 = vpack.c.bf16 %v5248_v14, %v5239_v6  ;;  %v5238_v46 = vld [vmem:[#allocation8 + $0xc60] sm:$0xff] }
 0x45f   :  { %v3286_v21 = vpop.f32.mrb[80].mxu0  ;;  %16407 = vmatpush3.bf16.msra.mxu1 %v16404_v13  ;;  %14716 = vmatprep.mubr.msk.f32.mxu1 %vm954_vm0, %v4353_v24  ;;  %v4698_v13 = vld [vmem:[#allocation6 + $0x428] sm:$0xff]  ;;  %v5257_v24 = vld [vmem:[#allocation8 + $0xcf8] sm:$0xff] }
 0x460   :  { %v3288_v43 = vpop.f32.mrb[81].mxu0  ;;  %16409 = vmatprep.subr.bf16.mxu1 %v16408_v2 }
 0x462   :  { %14717 = vmatmul.mubr.msk.f32.vlgmr.msra.gmra.mrb[72].mxu1 %vm954_vm0, %v4354_v25  ;;  %v5256_v25 = vld [vmem:[#allocation8 + $0xcf0] sm:$0xff] }
 0x463   :  { %v3292_v61 = vpop.f32.mrb[82].mxu0  ;;  %16411 = vmatpush3.bf16.msra.mxu1 %v16408_v2  ;;  %14719 = vmatprep.mubr.msk.f32.mxu1 %vm954_vm0, %v4355_v30  ;;  %v5221_v2 = vld [vmem:[#allocation8 + $0xbd8] sm:$0xff] }
 0x464   :  { %v16416_v31 = vpack.c.bf16 %v3292_v61, %v3286_v21  ;;  %v3294_v34 = vpop.f32.mrb[83].mxu0  ;;  %16413 = vmatprep.subr.bf16.mxu1 %v16412_v12  ;;  %v16476_v8 = vpack.c.bf16 %v5230_v7, %v5221_v2  ;;  %v5133_v61 = vld [vmem:[#allocation8 + $0x918] sm:$0xff]  ;;  %v5160_v2 = vld [vmem:[#allocation8 + $0x9f0] sm:$0xff] }
 0x465   :  { %v16432_v36 = vpack.c.bf16 %v3294_v34, %v3288_v43  ;;  %v5265_v43 = vld [vmem:[#allocation8 + $0xd38] sm:$0xff]  ;;  %v17783_v34 = vld [vmem:[%s19389_s1] sm:$0xff] }
 0x466   :  { %14720 = vmatmul.mubr.msk.f32.gmra.mrb[74].mxu1 %vm954_vm0, %v4356_v48  ;;  %16477 = vmatprep.subr.bf16.mxu0 %v16476_v8  ;;  %v16486_v30 = vpack.c.bf16 %v5265_v43, %v5256_v25  ;;  %v5142_v48 = vld [vmem:[#allocation8 + $0x960] sm:$0xff]  ;;  %v5050_v8 = vld [vmem:[#allocation9 + $0x68] sm:$0xff] }
 0x467   :  { %v3298_v17 = vpop.f32.mrb[84].mxu0  ;;  %16415 = vmatpush3.bf16.msra.mxu1 %v16412_v12  ;;  %14722 = vmatprep.mubr.msk.f32.mxu1 %vm954_vm0, %v4357_v35  ;;  %v5247_v12 = vld [vmem:[#allocation8 + $0xca8] sm:$0xff]  ;;  %v18642_v35 = vrot.slane %v17783_v34, %v2702_v32 }
 0x468   :  { %v3300_v10 = vpop.f32.mrb[85].mxu0  ;;  %16417 = vmatprep.subr.bf16.mxu1 %v16416_v31  ;;  %v16482_v16 = vpack.c.bf16 %v5247_v12, %v5238_v46 }
 0x46a   :  { %14723 = vmatmul.mubr.msk.f32.gmra.mrb[76].mxu1 %vm954_vm0, %v4358_v38 }
 0x46b   :  { %v3304_v42 = vpop.f32.mrb[86].mxu0  ;;  %16419 = vmatpush3.bf16.msra.mxu1 %v16416_v31  ;;  %14725 = vmatprep.mubr.msk.f32.mxu1 %vm954_vm0, %v4359_v41  ;;  %v16488_v31 = vpack.c.bf16 %v5142_v48, %v5133_v61  ;;  %v5045_v41 = vld [vmem:[#allocation9 + $0x40] sm:$0xff] }
 0x46c   :  { %v16420_v45 = vpack.c.bf16 %v3304_v42, %v3298_v17  ;;  %v3306_v50 = vpop.f32.mrb[87].mxu0  ;;  %v5046_v17 = vld [vmem:[#allocation9 + $0x48] sm:$0xff]  ;;  %v5178_v61 = vld [vmem:[#allocation8 + $0xa80] sm:$0xff] }
 0x46d   :  { %v16436_v53 = vpack.c.bf16 %v3306_v50, %v3300_v10 }
 0x46e   :  { %14726 = vmatmul.mubr.msk.f32.gmra.mrb[78].mxu1 %vm954_vm0, %v4360_v44  ;;  %16421 = vmatprep.subr.bf16.mxu1 %v16420_v45 }
 0x46f   :  { %16423 = vmatpush3.bf16.msra.mxu1 %v16420_v45  ;;  %14744 = vmatprep.mubr.msk.f32.mxu1 %vm954_vm0, %v4523_v51  ;;  %v5048_v51 = vld [vmem:[#allocation9 + $0x58] sm:$0xff] }
 0x470   :  { %16425 = vmatprep.subr.bf16.mxu1 %v16424_v59 }
 0x472   :  { %14745 = vmatmul.mubr.msk.f32.vlgmr.msra.gmra.mrb[72].mxu1 %vm954_vm0, %v4524_v54  ;;  %v5119_v54 = vsub.s32 2, %v18125_v39 }
 0x473   :  { %16427 = vmatpush3.bf16.msra.mxu1 %v16424_v59  ;;  %14747 = vmatprep.mubr.msk.f32.mxu1 %vm954_vm0, %v4525_v1  ;;  %v5220_v59 = vld [vmem:[#allocation8 + $0xbd0] sm:$0xff] }
 0x474   :  { %16429 = vmatprep.subr.bf16.mxu1 %v16428_v19  ;;  %v16478_v62 = vpack.c.bf16 %v5229_v47, %v5220_v59 }
 0x476   :  { %14748 = vmatmul.mubr.msk.f32.gmra.mrb[74].mxu1 %vm954_vm0, %v4526_v5  ;;  %16479 = vmatpush1.bf16.msra.mxu0 %v16478_v62  ;;  %v5047_v5 = vld [vmem:[#allocation9 + $0x50] sm:$0xff] }
 0x477   :  { %16431 = vmatpush3.bf16.msra.mxu1 %v16428_v19  ;;  %14750 = vmatprep.mubr.msk.f32.mxu1 %vm954_vm0, %v4527_v55  ;;  %v5266_v19 = vld [vmem:[#allocation8 + $0xd40] sm:$0xff] }
 0x478   :  { %16433 = vmatprep.subr.bf16.mxu1 %v16432_v36  ;;  %16481 = vmatprep.subr.bf16.mxu0 %v16480_v37  ;;  %v16484_v21 = vpack.c.bf16 %v5266_v19, %v5257_v24  ;;  %v5150_v24 = vld [vmem:[#allocation8 + $0x9a0] sm:$0xff]  ;;  %v5159_v19 = vld [vmem:[#allocation8 + $0x9e8] sm:$0xff] }
 0x479   :  { %v16494_v34 = vpack.c.bf16 %v5159_v19, %v5150_v24  ;;  %v5250_v24 = vld [vmem:[#allocation8 + $0xcc0] sm:$0xff] }
 0x47a   :  { %14751 = vmatmul.mubr.msk.f32.gmra.mrb[76].mxu1 %vm954_vm0, %v4528_v23  ;;  %16483 = vmatpush1.bf16.msra.mxu0 %v16482_v16 }
 0x47b   :  { %16435 = vmatpush3.bf16.msra.mxu1 %v16432_v36  ;;  %14753 = vmatprep.mubr.msk.f32.mxu1 %vm954_vm0, %v4529_v29 }
 0x47c   :  { %16437 = vmatprep.subr.bf16.mxu1 %v16436_v53  ;;  %16485 = vmatprep.subr.bf16.mxu0 %v16484_v21 }
 0x47e   :  { %14754 = vmatmul.mubr.msk.f32.gmra.mrb[78].mxu1 %vm954_vm0, %v4530_v27  ;;  %16487 = vmatpush1.bf16.msra.mxu0 %v16486_v30  ;;  %v5169_v30 = vld [vmem:[#allocation8 + $0xa38] sm:$0xff] }
 0x47f   :  { %16439 = vmatpush3.bf16.msra.mxu1 %v16436_v53  ;;  %14772 = vmatprep.mubr.msk.f32.mxu1 %vm954_vm0, %v4693_v11 }
 0x480   :  { %16441 = vmatprep.subr.bf16.mxu1 %v18526_v58  ;;  %16489 = vmatprep.subr.bf16.mxu0 %v16488_v31  ;;  %v5051_v31 = vld [vmem:[#allocation9 + $0x70] sm:$0xff] }
 0x482   :  { %14773 = vmatmul.mubr.msk.f32.vlgmr.msra.gmra.mrb[72].mxu1 %vm954_vm0, %v4694_v26 }
 0x483   :  { %16443 = vmatpush3.bf16.msra.mxu1 %v18526_v58  ;;  %14775 = vmatprep.mubr.msk.f32.mxu1 %vm954_vm0, %v4695_v56  ;;  %v4700_v58 = vld [vmem:[#allocation6 + $0x438] sm:$0xff] }
 0x484   :  { %16445 = vmatprep.subr.bf16.mxu1 %v18530_v18 }
 0x486   :  { %14776 = vmatmul.mubr.msk.f32.gmra.mrb[74].mxu1 %vm954_vm0, %v4696_v57 }
 0x487   :  { %16447 = vmatpush3.bf16.msra.mxu1 %v18530_v18  ;;  %14778 = vmatprep.mubr.msk.f32.mxu1 %vm954_vm0, %v4697_v33  ;;  %v4864_v18 = vld [vmem:[#allocation6 + $0x448] sm:$0xff]  ;;  %v5049_v33 = vld [vmem:[#allocation9 + $0x60] sm:$0xff] }
 0x488   :  { %16449 = vmatprep.subr.bf16.mxu1 %v18534_v9 }
 0x48a   :  { %14779 = vmatmul.mubr.msk.f32.gmra.mrb[76].mxu1 %vm954_vm0, %v4698_v13  ;;  %v5132_v13 = vld [vmem:[#allocation8 + $0x910] sm:$0xff] }
 0x48b   :  { %16451 = vmatpush3.bf16.msra.mxu1 %v18534_v9  ;;  %14781 = vmatprep.mubr.msk.f32.mxu1 %vm954_vm0, %v4699_v15  ;;  %v4867_v9 = vld [vmem:[#allocation6 + $0x460] sm:$0xff] }
 0x48c   :  { %16453 = vmatprep.subr.bf16.mxu1 %v18538_v22  ;;  %v17784_v15 = vld [vmem:[%s19388_s0] sm:$0xff] }
 0x48e   :  { %14782 = vmatmul.mubr.msk.f32.gmra.mrb[78].mxu1 %vm954_vm0, %v4700_v58  ;;  %v18654_v58 = vrot.slane %v17784_v15, %v5119_v54 }
 0x48f   :  { %16455 = vmatpush3.bf16.msra.mxu1 %v18538_v22  ;;  %14800 = vmatprep.mubr.msk.f32.mxu1 %vm954_vm0, %v4863_v40  ;;  %v4870_v22 = vld [vmem:[#allocation6 + $0x478] sm:$0xff] }
 0x492   :  { %14801 = vmatmul.mubr.msk.f32.vlgmr.msra.gmra.mrb[72].mxu1 %vm954_vm0, %v4864_v18 }
 0x493   :  { %14803 = vmatprep.mubr.msk.f32.mxu1 %vm954_vm0, %v4865_v63 }
 0x496   :  { %14804 = vmatmul.mubr.msk.f32.gmra.mrb[74].mxu1 %vm954_vm0, %v4866_v52  ;;  %v5141_v52 = vld [vmem:[#allocation8 + $0x958] sm:$0xff] }
 0x497   :  { %14806 = vmatprep.mubr.msk.f32.mxu1 %vm954_vm0, %v4867_v9  ;;  %v16490_v6 = vpack.c.bf16 %v5141_v52, %v5132_v13  ;;  %v5214_v13 = vld [vmem:[#allocation8 + $0xba0] sm:$0xff] }
 0x49a   :  { %14807 = vmatmul.mubr.msk.f32.gmra.mrb[76].mxu1 %vm954_vm0, %v4868_v3 }
 0x49b   :  { %14809 = vmatprep.mubr.msk.f32.mxu1 %vm954_vm0, %v4869_v4 }
 0x49e   :  { %14810 = vmatmul.mubr.msk.f32.gmra.mrb[78].mxu1 %vm954_vm0, %v4870_v22  ;;  %v5151_v22 = vld [vmem:[#allocation8 + $0x9a8] sm:$0xff] }
 0x49f   :  { %v16492_v16 = vpack.c.bf16 %v5160_v2, %v5151_v22  ;;  %v5223_v2 = vld [vmem:[#allocation8 + $0xbe8] sm:$0xff] }
 0x565   :  { %v14802_v36 = vpop.f32.mrb[72].mxu1 }
 0x566   :  { %v5037_v38 = vmul.f32 %v14802_v36, %v18642_v35  ;;  %v4969_v10 = vpop.f32.mrb[73].mxu1 }
 0x567   :  { %v5036_v42 = vmul.f32 %v18642_v35, %v4969_v10  ;;  %v16496_v10 = vpack.c.bf16 %v5178_v61, %v5169_v30  ;;  %v5240_v61 = vld [vmem:[#allocation8 + $0xc70] sm:$0xff] }
 0x568   :  { %v5054_v44 = vadd.f32 %v5046_v17, %v5037_v38 }
 0x569   :  { %v5053_v45 = vadd.f32 %v5045_v41, %v5036_v42  ;;  %v14805_v50 = vpop.f32.mrb[74].mxu1  ;;  %v5168_v41 = vld [vmem:[#allocation8 + $0xa30] sm:$0xff]  ;;  %v5177_v42 = vld [vmem:[#allocation8 + $0xa78] sm:$0xff] }
 0x56a   :  { %vm5062_vm9 = vcmp.ge.f32.partialorder %v5054_v44, 0.0  ;;  %v5070_v53 = vmul.f32 0.2, %v5054_v44  ;;  %v5039_v1 = vmul.f32 %v14805_v50, %v18642_v35  ;;  %v4979_v32 = vpop.f32.mrb[75].mxu1 }
 0x56b   :  { %vm5061_vm10 = vcmp.ge.f32.partialorder %v5053_v45, 0.0  ;;  %v5069_v55 = vmul.f32 0.2, %v5053_v45  ;;  %v5038_v23 = vmul.f32 %v18642_v35, %v4979_v32  ;;  %v5052_v32 = vld [vmem:[#allocation9 + $0x78] sm:$0xff] }
 0x56c   :  { %v5078_v29 = vsel %vm5062_vm9, %v5054_v44, %v5070_v53  ;;  %v5056_v27 = vadd.f32 %v5048_v51, %v5039_v1  ;;  %v5187_v53 = vld [vmem:[#allocation8 + $0xac8] sm:$0xff]  ;;  %v5196_v1 = vld [vmem:[#allocation8 + $0xb10] sm:$0xff] }
 0x56d   :  { %v5086_v11 = vmul.f32 1.4142135, %v5078_v29  ;;  %v5077_v26 = vsel %vm5061_vm10, %v5053_v45, %v5069_v55  ;;  %v5055_v56 = vadd.f32 %v5047_v5, %v5038_v23  ;;  %v14808_v57 = vpop.f32.mrb[76].mxu1  ;;  %v16498_v5 = vpack.c.bf16 %v5177_v42, %v5168_v41  ;;  %v5258_v42 = vld [vmem:[#allocation8 + $0xd00] sm:$0xff] }
 0x56e   :  { %v5085_v40 = vmul.f32 1.4142135, %v5077_v26  ;;  %v5072_v18 = vmul.f32 0.2, %v5056_v27  ;;  %v4989_v63 = vpop.f32.mrb[77].mxu1  ;;  %v5041_v3 = vmul.f32 %v14808_v57, %v18642_v35  ;;  %vm5064_vm12 = vcmp.ge.f32.partialorder %v5056_v27, 0.0 }
 0x56f   :  { %vm5063_vm11 = vcmp.ge.f32.partialorder %v5055_v56, 0.0  ;;  %v5071_v9 = vmul.f32 0.2, %v5055_v56  ;;  %v5040_v4 = vmul.f32 %v18642_v35, %v4989_v63  ;;  %v12975_v14 = vclamps-f32 %v5086_v11, 256.0  ;;  %v5186_v11 = vld [vmem:[#allocation8 + $0xac0] sm:$0xff] }
 0x570   :  { %v12974_v7 = vclamps-f32 %v5085_v40, 256.0  ;;  %v5080_v21 = vsel %vm5064_vm12, %v5056_v27, %v5072_v18  ;;  %v5058_v25 = vadd.f32 %v5050_v8, %v5041_v3  ;;  %v16500_v27 = vpack.c.bf16 %v5196_v1, %v5187_v53  ;;  %v5213_v3 = vld [vmem:[#allocation8 + $0xb98] sm:$0xff] }
 0x571   :  { %v5079_v59 = vsel %vm5063_vm11, %v5055_v56, %v5071_v9  ;;  %v5057_v47 = vadd.f32 %v5049_v33, %v5040_v4  ;;  %v14811_v62 = vpop.f32.mrb[78].mxu1  ;;  %v18665_v36 = vmul.f32 %v12975_v14, %v18654_v58  ;;  %v5088_v17 = vmul.f32 1.4142135, %v5080_v21  ;;  %v5205_v33 = vld [vmem:[#allocation8 + $0xb58] sm:$0xff]  ;;  %v5204_v9 = vld [vmem:[#allocation8 + $0xb50] sm:$0xff]  ;;  %v5222_v14 = vld [vmem:[#allocation8 + $0xbe0] sm:$0xff] }
 0x572   :  { %v18659_v37 = vmul.f32 %v12974_v7, %v18654_v58  ;;  %v5087_v46 = vmul.f32 1.4142135, %v5079_v59  ;;  %v4999_v12 = vpop.f32.mrb[79].mxu1  ;;  %v5074_v44 = vmul.f32 0.2, %v5058_v25  ;;  %v5043_v50 = vmul.f32 %v14811_v62, %v18642_v35  ;;  %v5232_v7 = vld [vmem:[#allocation8 + $0xc30] sm:$0xff] }
 0x573   :  { %v5073_v43 = vmul.f32 0.2, %v5057_v47  ;;  %vm5065_vm13 = vcmp.ge.f32.partialorder %v5057_v47, 0.0  ;;  %v5042_v48 = vmul.f32 %v18642_v35, %v4999_v12  ;;  %vm5066_vm14 = vcmp.ge.f32.partialorder %v5058_v25, 0.0  ;;  %v5195_v35 = vld [vmem:[#allocation8 + $0xb08] sm:$0xff] }
 0x574   :  { %5339 = vmatmul.mubr.f32.vlgmr.msra.gmra.mrb[88].mxu0 %v18659_v37  ;;  %v12976_v38 = vclamps-f32 %v5087_v46, 256.0  ;;  %v12977_v55 = vclamps-f32 %v5088_v17, 256.0  ;;  %v5082_v26 = vsel %vm5066_vm14, %v5058_v25, %v5074_v44  ;;  %v5060_v56 = vadd.f32 %v5052_v32, %v5043_v50  ;;  %v5231_v46 = vld [vmem:[#allocation8 + $0xc28] sm:$0xff]  ;;  %v5144_v50 = vld [vmem:[#allocation8 + $0x970] sm:$0xff]  ;;  %v5134_v32 = vld [vmem:[#allocation8 + $0x920] sm:$0xff] }
 0x575   :  { %16491 = vmatpush1.bf16.msra.mxu0 %v16490_v6  ;;  %5344 = vmatprep.mubr.f32.mxu0 %v17966_v0  ;;  %v5081_v45 = vsel %vm5065_vm13, %v5057_v47, %v5073_v43  ;;  %v5059_v51 = vadd.f32 %v5051_v31, %v5042_v48  ;;  %v16502_v15 = vpack.c.bf16 %v5195_v35, %v5186_v11  ;;  %v5090_v18 = vmul.f32 1.4142135, %v5082_v26  ;;  %v5249_v48 = vld [vmem:[#allocation8 + $0xcb8] sm:$0xff]  ;;  %v5259_v31 = vld [vmem:[#allocation8 + $0xd08] sm:$0xff]  ;;  %v5152_v35 = vld [vmem:[#allocation8 + $0x9b0] sm:$0xff] }
 0x576   :  { %16493 = vmatprep.subr.bf16.mxu0 %v16492_v16  ;;  %v18671_v23 = vmul.f32 %v12976_v38, %v18654_v58  ;;  %v5089_v29 = vmul.f32 1.4142135, %v5081_v45  ;;  %v18676_v40 = vmul.f32 %v12977_v55, %v18654_v58  ;;  %v16504_v52 = vpack.c.bf16 %v5214_v13, %v5205_v33  ;;  %v5241_v16 = vld [vmem:[#allocation8 + $0xc78] sm:$0xff]  ;;  %v5267_v44 = vld [vmem:[#allocation8 + $0xd48] sm:$0xff]  ;;  %v5170_v13 = vld [vmem:[#allocation8 + $0xa40] sm:$0xff] }
 0x577   :  { %v5075_v57 = vmul.f32 0.2, %v5059_v51  ;;  %vm5067_vm15 = vcmp.ge.f32.partialorder %v5059_v51, 0.0  ;;  %v5076_v4 = vmul.f32 0.2, %v5060_v56  ;;  %vm5068_vm1 = vcmp.ge.f32.partialorder %v5060_v56, 0.0 }
 0x578   :  { %5345 = vmatmul.mubr.f32.gmra.mrb[90].mxu0 %v18665_v36  ;;  %v12978_v63 = vclamps-f32 %v5089_v29, 256.0  ;;  %v16506_v8 = vpack.c.bf16 %v5213_v3, %v5204_v9  ;;  %v12979_v59 = vclamps-f32 %v5090_v18, 256.0  ;;  %v16508_v6 = vpack.c.bf16 %v5232_v7, %v5223_v2  ;;  %v5135_v45 = vld [vmem:[#allocation8 + $0x928] sm:$0xff]  ;;  %v5153_v55 = vld [vmem:[#allocation8 + $0x9b8] sm:$0xff]  ;;  %v5162_v29 = vld [vmem:[#allocation8 + $0xa00] sm:$0xff] }
 0x579   :  { %16495 = vmatpush1.bf16.msra.mxu0 %v16494_v34  ;;  %5350 = vmatprep.mubr.f32.mxu0 %v17966_v0  ;;  %v5083_v22 = vsel %vm5067_vm15, %v5059_v51, %v5075_v57  ;;  %v5084_v12 = vsel %vm5068_vm1, %v5060_v56, %v5076_v4  ;;  %v16510_v19 = vpack.c.bf16 %v5231_v46, %v5222_v14  ;;  %v5268_v34 = vld [vmem:[#allocation8 + $0xd50] sm:$0xff]  ;;  %v5161_v26 = vld [vmem:[#allocation8 + $0x9f8] sm:$0xff]  ;;  %v5171_v56 = vld [vmem:[#allocation8 + $0xa48] sm:$0xff] }
 0x57a   :  { %16497 = vmatprep.subr.bf16.mxu0 %v16496_v10  ;;  %v18681_v47 = vmul.f32 %v12978_v63, %v18654_v58  ;;  %v5091_v62 = vmul.f32 1.4142135, %v5083_v22  ;;  %v18686_v21 = vmul.f32 %v12979_v59, %v18654_v58  ;;  %v5092_v25 = vmul.f32 1.4142135, %v5084_v12  ;;  %v5180_v57 = vld [vmem:[#allocation8 + $0xa90] sm:$0xff]  ;;  %v5189_v18 = vld [vmem:[#allocation8 + $0xad8] sm:$0xff] }
 0x57b   :  { %v16512_v30 = vpack.c.bf16 %v5250_v24, %v5241_v16  ;;  %v16514_v17 = vpack.c.bf16 %v5249_v48, %v5240_v61  ;;  %v16516_v41 = vpack.c.bf16 %v5268_v34, %v5259_v31  ;;  %v16518_v51 = vpack.c.bf16 %v5267_v44, %v5258_v42  ;;  %v5198_v63 = vld [vmem:[#allocation8 + $0xb20] sm:$0xff]  ;;  %v5188_v3 = vld [vmem:[#allocation8 + $0xad0] sm:$0xff]  ;;  %v5197_v4 = vld [vmem:[#allocation8 + $0xb18] sm:$0xff] }
 0x57c   :  { %5351 = vmatmul.mubr.f32.gmra.mrb[92].mxu0 %v18671_v23  ;;  %v12980_v43 = vclamps-f32 %v5091_v62, 256.0  ;;  %v12981_v38 = vclamps-f32 %v5092_v25, 256.0  ;;  %v16520_v1 = vpack.c.bf16 %v5144_v50, %v5135_v45  ;;  %v16524_v11 = vpack.c.bf16 %v5162_v29, %v5153_v55  ;;  %v5207_v22 = vld [vmem:[#allocation8 + $0xb68] sm:$0xff]  ;;  %v5216_v2 = vld [vmem:[#allocation8 + $0xbb0] sm:$0xff]  ;;  %v5206_v59 = vld [vmem:[#allocation8 + $0xb60] sm:$0xff] }
 0x57d   :  { %16499 = vmatpush1.bf16.msra.mxu0 %v16498_v5  ;;  %5356 = vmatprep.mubr.f32.mxu0 %v17966_v0  ;;  %v5143_v5 = vld [vmem:[#allocation8 + $0x968] sm:$0xff]  ;;  %v16528_v33 = vpack.c.bf16 %v5180_v57, %v5171_v56  ;;  %v16532_v9 = vpack.c.bf16 %v5198_v63, %v5189_v18  ;;  %v16534_v7 = vpack.c.bf16 %v5197_v4, %v5188_v3  ;;  %v5234_v14 = vld [vmem:[#allocation8 + $0xc40] sm:$0xff]  ;;  %v5224_v16 = vld [vmem:[#allocation8 + $0xbf0] sm:$0xff] }
 0x57e   :  { %16501 = vmatprep.subr.bf16.mxu0 %v16500_v27  ;;  %v18691_v10 = vmul.f32 %v12980_v43, %v18654_v58  ;;  %v18696_v53 = vmul.f32 %v12981_v38, %v18654_v58  ;;  %v16522_v27 = vpack.c.bf16 %v5143_v5, %v5134_v32  ;;  %v16526_v58 = vpack.c.bf16 %v5161_v26, %v5152_v35  ;;  %v5215_v62 = vld [vmem:[#allocation8 + $0xba8] sm:$0xff]  ;;  %v5233_v24 = vld [vmem:[#allocation8 + $0xc38] sm:$0xff]  ;;  %v5252_v25 = vld [vmem:[#allocation8 + $0xcd0] sm:$0xff] }
 0x57f   :  { %v16538_v46 = vpack.c.bf16 %v5215_v62, %v5206_v59  ;;  %v16542_v43 = vpack.c.bf16 %v5233_v24, %v5224_v16  ;;  %v5242_v61 = vld [vmem:[#allocation8 + $0xc80] sm:$0xff]  ;;  %v5251_v48 = vld [vmem:[#allocation8 + $0xcc8] sm:$0xff]  ;;  %v5261_v31 = vld [vmem:[#allocation8 + $0xd18] sm:$0xff] }
 0x580   :  { %5357 = vmatmul.mubr.f32.gmra.mrb[94].mxu0 %v18676_v40  ;;  %v5270_v34 = vld [vmem:[#allocation8 + $0xd60] sm:$0xff]  ;;  %v5269_v42 = vld [vmem:[#allocation8 + $0xd58] sm:$0xff]  ;;  %v5155_v5 = vld [vmem:[#allocation8 + $0x9c8] sm:$0xff] }
 0x581   :  { %16503 = vmatpush1.bf16.msra.mxu0 %v16502_v15  ;;  %5362 = vmatprep.mubr.f32.mxu0 %v17966_v0  ;;  %v5179_v15 = vld [vmem:[#allocation8 + $0xa88] sm:$0xff]  ;;  %v16548_v38 = vpack.c.bf16 %v5270_v34, %v5261_v31  ;;  %v5137_v44 = vld [vmem:[#allocation8 + $0x938] sm:$0xff]  ;;  %v5146_v45 = vld [vmem:[#allocation8 + $0x980] sm:$0xff] }
 0x582   :  { %16505 = vmatprep.subr.bf16.mxu0 %v16504_v52  ;;  %v16530_v52 = vpack.c.bf16 %v5179_v15, %v5170_v13  ;;  %v5145_v32 = vld [vmem:[#allocation8 + $0x978] sm:$0xff]  ;;  %v5164_v55 = vld [vmem:[#allocation8 + $0xa10] sm:$0xff]  ;;  %v5163_v35 = vld [vmem:[#allocation8 + $0xa08] sm:$0xff] }
 0x583   :  { %v5173_v26 = vld [vmem:[#allocation8 + $0xa58] sm:$0xff]  ;;  %v5182_v56 = vld [vmem:[#allocation8 + $0xaa0] sm:$0xff]  ;;  %v5191_v15 = vld [vmem:[#allocation8 + $0xae8] sm:$0xff] }
 0x584   :  { %5363 = vmatmul.mubr.f32.gmra.mrb[96].mxu0 %v18681_v47  ;;  %v5181_v13 = vld [vmem:[#allocation8 + $0xa98] sm:$0xff]  ;;  %v5200_v18 = vld [vmem:[#allocation8 + $0xb30] sm:$0xff]  ;;  %v5199_v3 = vld [vmem:[#allocation8 + $0xb28] sm:$0xff] }
 0x585   :  { %16507 = vmatpush1.bf16.msra.mxu0 %v16506_v8  ;;  %5368 = vmatprep.mubr.f32.mxu0 %v17966_v0  ;;  %v16536_v8 = vpack.c.bf16 %v5216_v2, %v5207_v22  ;;  %v5209_v4 = vld [vmem:[#allocation8 + $0xb78] sm:$0xff]  ;;  %v5218_v22 = vld [vmem:[#allocation8 + $0xbc0] sm:$0xff]  ;;  %v5227_v62 = vld [vmem:[#allocation8 + $0xc08] sm:$0xff] }
 0x586   :  { %16509 = vmatprep.subr.bf16.mxu0 %v16508_v6  ;;  %v5225_v6 = vld [vmem:[#allocation8 + $0xbf8] sm:$0xff]  ;;  %v5235_v16 = vld [vmem:[#allocation8 + $0xc48] sm:$0xff]  ;;  %v5272_v31 = vld [vmem:[#allocation8 + $0xd70] sm:$0xff] }
 0x587   :  { %v16540_v12 = vpack.c.bf16 %v5234_v14, %v5225_v6  ;;  %v5217_v59 = vld [vmem:[#allocation8 + $0xbb8] sm:$0xff]  ;;  %v5236_v6 = vld [vmem:[#allocation8 + $0xc50] sm:$0xff] }
 0x588   :  { %5369 = vmatmul.mubr.f32.gmra.mrb[98].mxu0 %v18686_v21  ;;  %v5245_v24 = vld [vmem:[#allocation8 + $0xc98] sm:$0xff] }
 0x589   :  { %16511 = vmatpush1.bf16.msra.mxu0 %v16510_v19  ;;  %5374 = vmatprep.mubr.f32.mxu0 %v17966_v0  ;;  %v5243_v19 = vld [vmem:[#allocation8 + $0xc88] sm:$0xff] }
 0x58a   :  { %16513 = vmatprep.subr.bf16.mxu0 %v16512_v30  ;;  %v16544_v30 = vpack.c.bf16 %v5252_v25, %v5243_v19  ;;  %v5254_v19 = vld [vmem:[#allocation8 + $0xce0] sm:$0xff] }
 0x58c   :  { %5375 = vmatmul.mubr.f32.gmra.mrb[100].mxu0 %v18691_v10 }
 0x58d   :  { %16515 = vmatpush1.bf16.msra.mxu0 %v16514_v17  ;;  %5380 = vmatprep.mubr.f32.mxu0 %v17966_v0  ;;  %v16546_v17 = vpack.c.bf16 %v5251_v48, %v5242_v61  ;;  %v5253_v61 = vld [vmem:[#allocation8 + $0xcd8] sm:$0xff]  ;;  %v5263_v48 = vld [vmem:[#allocation8 + $0xd28] sm:$0xff] }
 0x58e   :  { %16517 = vmatprep.subr.bf16.mxu0 %v16516_v41  ;;  %v5260_v41 = vld [vmem:[#allocation8 + $0xd10] sm:$0xff] }
 0x58f   :  { %v16550_v50 = vpack.c.bf16 %v5269_v42, %v5260_v41  ;;  %v5271_v41 = vld [vmem:[#allocation8 + $0xd68] sm:$0xff]  ;;  %v5138_v42 = vld [vmem:[#allocation8 + $0x940] sm:$0xff] }
 0x590   :  { %5381 = vmatmul.mubr.f32.gmra.mrb[102].mxu0 %v18696_v53 }
 0x591   :  { %16519 = vmatpush1.bf16.msra.mxu0 %v16518_v51  ;;  %5451 = vmatprep.mubr.f32.mxu0 %v17966_v0  ;;  %v16552_v51 = vpack.c.bf16 %v5146_v45, %v5137_v44  ;;  %v5147_v44 = vld [vmem:[#allocation8 + $0x988] sm:$0xff] }
 0x592   :  { %16521 = vmatprep.subr.bf16.mxu0 %v16520_v1  ;;  %v5136_v1 = vld [vmem:[#allocation8 + $0x930] sm:$0xff] }
 0x593   :  { %v16554_v29 = vpack.c.bf16 %v5145_v32, %v5136_v1  ;;  %v5165_v1 = vld [vmem:[#allocation8 + $0xa18] sm:$0xff] }
 0x594   :  { %5452 = vmatmul.mubr.f32.vlgmr.msra.gmra.mrb[104].mxu0 %v18659_v37 }
 0x595   :  { %16523 = vmatpush1.bf16.msra.mxu0 %v16522_v27  ;;  %5457 = vmatprep.mubr.f32.mxu0 %v17966_v0  ;;  %v16556_v27 = vpack.c.bf16 %v5164_v55, %v5155_v5  ;;  %v5174_v5 = vld [vmem:[#allocation8 + $0xa60] sm:$0xff]  ;;  %v5183_v55 = vld [vmem:[#allocation8 + $0xaa8] sm:$0xff] }
 0x596   :  { %16525 = vmatprep.subr.bf16.mxu0 %v16524_v11  ;;  %v5154_v11 = vld [vmem:[#allocation8 + $0x9c0] sm:$0xff] }
 0x597   :  { %v16558_v57 = vpack.c.bf16 %v5163_v35, %v5154_v11  ;;  %v5201_v11 = vld [vmem:[#allocation8 + $0xb38] sm:$0xff] }
 0x598   :  { %5458 = vmatmul.mubr.f32.gmra.mrb[106].mxu0 %v18665_v36 }
 0x599   :  { %16527 = vmatpush1.bf16.msra.mxu0 %v16526_v58  ;;  %5463 = vmatprep.mubr.f32.mxu0 %v17966_v0  ;;  %v16560_v58 = vpack.c.bf16 %v5182_v56, %v5173_v26  ;;  %v5210_v26 = vld [vmem:[#allocation8 + $0xb80] sm:$0xff]  ;;  %v5219_v56 = vld [vmem:[#allocation8 + $0xbc8] sm:$0xff] }
 0x59a   :  { %16529 = vmatprep.subr.bf16.mxu0 %v16528_v33  ;;  %v5172_v33 = vld [vmem:[#allocation8 + $0xa50] sm:$0xff] }
 0x59b   :  { %v16562_v63 = vpack.c.bf16 %v5181_v13, %v5172_v33  ;;  %v5237_v33 = vld [vmem:[#allocation8 + $0xc58] sm:$0xff] }
 0x59c   :  { %5464 = vmatmul.mubr.f32.gmra.mrb[108].mxu0 %v18671_v23 }
 0x59d   :  { %16531 = vmatpush1.bf16.msra.mxu0 %v16530_v52  ;;  %5469 = vmatprep.mubr.f32.mxu0 %v17966_v0  ;;  %v16564_v52 = vpack.c.bf16 %v5200_v18, %v5191_v15  ;;  %v5246_v15 = vld [vmem:[#allocation8 + $0xca0] sm:$0xff]  ;;  %v5255_v18 = vld [vmem:[#allocation8 + $0xce8] sm:$0xff] }
 0x59e   :  { %16533 = vmatprep.subr.bf16.mxu0 %v16532_v9  ;;  %v5190_v9 = vld [vmem:[#allocation8 + $0xae0] sm:$0xff] }
 0x59f   :  { %v16566_v2 = vpack.c.bf16 %v5199_v3, %v5190_v9  ;;  %v5273_v9 = vld [vmem:[#allocation8 + $0xd78] sm:$0xff]  ;;  %v5920_v3 = vld [vmem:[#allocation6 + $0x480] sm:$0xff] }
 0x5a0   :  { %5470 = vmatmul.mubr.f32.gmra.mrb[110].mxu0 %v18676_v40  ;;  %14872 = vmatprep.mubr.msk.f32.mxu1 %vm954_vm0, %v5920_v3 }
 0x5a1   :  { %16535 = vmatpush1.bf16.msra.mxu0 %v16534_v7  ;;  %5475 = vmatprep.mubr.f32.mxu0 %v17966_v0  ;;  %v16568_v7 = vpack.c.bf16 %v5218_v22, %v5209_v4  ;;  %v7539_v22 = vld [vmem:[#allocation11 + $0x80] sm:$0xff] }
 0x5a2   :  { %16537 = vmatprep.subr.bf16.mxu0 %v16536_v8  ;;  %v5208_v8 = vld [vmem:[#allocation8 + $0xb70] sm:$0xff] }
 0x5a3   :  { %v16570_v14 = vpack.c.bf16 %v5217_v59, %v5208_v8  ;;  %v7541_v8 = vld [vmem:[#allocation11 + $0x90] sm:$0xff]  ;;  %v7542_v59 = vld [vmem:[#allocation11 + $0x98] sm:$0xff] }
 0x5a4   :  { %5476 = vmatmul.mubr.f32.gmra.mrb[112].mxu0 %v18681_v47 }
 0x5a5   :  { %16539 = vmatpush1.bf16.msra.mxu0 %v16538_v46  ;;  %5481 = vmatprep.mubr.f32.mxu0 %v17966_v0  ;;  %v16572_v46 = vpack.c.bf16 %v5236_v6, %v5227_v62  ;;  %v16764_v62 = vpack.c.bf16 %v7542_v59, %v7541_v8  ;;  %v7543_v6 = vld [vmem:[#allocation11 + $0xa0] sm:$0xff]  ;;  %v5926_v59 = vld [vmem:[#allocation6 + $0x4b0] sm:$0xff] }
 0x5a6   :  { %16541 = vmatprep.subr.bf16.mxu0 %v16540_v12  ;;  %v5226_v12 = vld [vmem:[#allocation8 + $0xc00] sm:$0xff] }
 0x5a7   :  { %v16574_v25 = vpack.c.bf16 %v5235_v16, %v5226_v12  ;;  %v7545_v12 = vld [vmem:[#allocation11 + $0xb0] sm:$0xff]  ;;  %v7546_v16 = vld [vmem:[#allocation11 + $0xb8] sm:$0xff] }
 0x5a8   :  { %5482 = vmatmul.mubr.f32.gmra.mrb[114].mxu0 %v18686_v21 }
 0x5a9   :  { %16543 = vmatpush1.bf16.msra.mxu0 %v16542_v43  ;;  %5487 = vmatprep.mubr.f32.mxu0 %v17966_v0  ;;  %v16576_v43 = vpack.c.bf16 %v5254_v19, %v5245_v24  ;;  %v7547_v24 = vld [vmem:[#allocation11 + $0xc0] sm:$0xff]  ;;  %v7548_v19 = vld [vmem:[#allocation11 + $0xc8] sm:$0xff] }
 0x5aa   :  { %16545 = vmatprep.subr.bf16.mxu0 %v16544_v30  ;;  %v5244_v30 = vld [vmem:[#allocation8 + $0xc90] sm:$0xff] }
 0x5ab   :  { %v16578_v34 = vpack.c.bf16 %v5253_v61, %v5244_v30  ;;  %v7553_v61 = vld [vmem:[#allocation11 + $0xf0] sm:$0xff] }
 0x5ac   :  { %5488 = vmatmul.mubr.f32.gmra.mrb[116].mxu0 %v18691_v10 }
 0x5ad   :  { %16547 = vmatpush1.bf16.msra.mxu0 %v16546_v17  ;;  %5493 = vmatprep.mubr.f32.mxu0 %v17966_v0  ;;  %v16580_v17 = vpack.c.bf16 %v5272_v31, %v5263_v48  ;;  %v7554_v48 = vld [vmem:[#allocation11 + $0xf8] sm:$0xff] }
 0x5ae   :  { %16549 = vmatprep.subr.bf16.mxu0 %v16548_v38  ;;  %v5262_v38 = vld [vmem:[#allocation8 + $0xd20] sm:$0xff] }
 0x5af   :  { %v16582_v45 = vpack.c.bf16 %v5271_v41, %v5262_v38 }
 0x5b0   :  { %5494 = vmatmul.mubr.f32.gmra.mrb[118].mxu0 %v18696_v53 }
 0x5b1   :  { %16551 = vmatpush1.bf16.msra.mxu0 %v16550_v50  ;;  %5564 = vmatprep.mubr.f32.mxu0 %v17966_v0  ;;  %v16584_v50 = vpack.c.bf16 %v5147_v44, %v5138_v42 }
 0x5b2   :  { %16553 = vmatprep.subr.bf16.mxu0 %v16552_v51  ;;  %v5156_v51 = vld [vmem:[#allocation8 + $0x9d0] sm:$0xff] }
 0x5b3   :  { %v16588_v32 = vpack.c.bf16 %v5165_v1, %v5156_v51 }
 0x5b4   :  { %5565 = vmatmul.mubr.f32.vlgmr.msra.gmra.mrb[120].mxu0 %v18659_v37 }
 0x5b5   :  { %16555 = vmatpush1.bf16.msra.mxu0 %v16554_v29  ;;  %5570 = vmatprep.mubr.f32.mxu0 %v17966_v0  ;;  %v16592_v29 = vpack.c.bf16 %v5183_v55, %v5174_v5 }
 0x5b6   :  { %16557 = vmatprep.subr.bf16.mxu0 %v16556_v27  ;;  %v5192_v27 = vld [vmem:[#allocation8 + $0xaf0] sm:$0xff] }
 0x5b7   :  { %v16596_v35 = vpack.c.bf16 %v5201_v11, %v5192_v27 }
 0x5b8   :  { %5571 = vmatmul.mubr.f32.gmra.mrb[122].mxu0 %v18665_v36 }
 0x5b9   :  { %16559 = vmatpush1.bf16.msra.mxu0 %v16558_v57  ;;  %5576 = vmatprep.mubr.f32.mxu0 %v17966_v0  ;;  %v16600_v57 = vpack.c.bf16 %v5219_v56, %v5210_v26 }
 0x5ba   :  { %16561 = vmatprep.subr.bf16.mxu0 %v16560_v58  ;;  %v5228_v58 = vld [vmem:[#allocation8 + $0xc10] sm:$0xff] }
 0x5bb   :  { %v16604_v13 = vpack.c.bf16 %v5237_v33, %v5228_v58 }
 0x5bc   :  { %5577 = vmatmul.mubr.f32.gmra.mrb[124].mxu0 %v18671_v23 }
 0x5bd   :  { %16563 = vmatpush1.bf16.msra.mxu0 %v16562_v63  ;;  %5582 = vmatprep.mubr.f32.mxu0 %v17966_v0  ;;  %v16608_v63 = vpack.c.bf16 %v5255_v18, %v5246_v15  ;;  %v5922_v18 = vld [vmem:[#allocation6 + $0x490] sm:$0xff] }
 0x5be   :  { %16565 = vmatprep.subr.bf16.mxu0 %v16564_v52  ;;  %v5264_v52 = vld [vmem:[#allocation8 + $0xd30] sm:$0xff] }
 0x5bf   :  { %v16612_v4 = vpack.c.bf16 %v5273_v9, %v5264_v52  ;;  %v5923_v52 = vld [vmem:[#allocation6 + $0x498] sm:$0xff] }
 0x5c0   :  { %5583 = vmatmul.mubr.f32.gmra.mrb[126].mxu0 %v18676_v40 }
 0x5c1   :  { %16567 = vmatpush1.bf16.msra.mxu0 %v16566_v2  ;;  %5588 = vmatprep.mubr.f32.mxu0 %v17966_v0  ;;  %v7540_v2 = vld [vmem:[#allocation11 + $0x88] sm:$0xff] }
 0x5c2   :  { %16569 = vmatprep.subr.bf16.mxu0 %v16568_v7  ;;  %v16760_v7 = vpack.c.bf16 %v7540_v2, %v7539_v22 }
 0x5c4   :  { %5589 = vmatmul.mubr.f32.gmra.mrb[128].mxu0 %v18681_v47 }
 0x5c5   :  { %16571 = vmatpush1.bf16.msra.mxu0 %v16570_v14  ;;  %5594 = vmatprep.mubr.f32.mxu0 %v17966_v0  ;;  %v7544_v14 = vld [vmem:[#allocation11 + $0xa8] sm:$0xff] }
 0x5c6   :  { %16573 = vmatprep.subr.bf16.mxu0 %v16572_v46  ;;  %v16768_v46 = vpack.c.bf16 %v7544_v14, %v7543_v6  ;;  %v5927_v6 = vld [vmem:[#allocation6 + $0x4b8] sm:$0xff] }
 0x5c8   :  { %5595 = vmatmul.mubr.f32.gmra.mrb[130].mxu0 %v18686_v21 }
 0x5c9   :  { %16575 = vmatpush1.bf16.msra.mxu0 %v16574_v25  ;;  %5600 = vmatprep.mubr.f32.mxu0 %v17966_v0  ;;  %v7550_v25 = vld [vmem:[#allocation11 + $0xd8] sm:$0xff] }
 0x5ca   :  { %16577 = vmatprep.subr.bf16.mxu0 %v16576_v43  ;;  %v7551_v43 = vld [vmem:[#allocation11 + $0xe0] sm:$0xff] }
 0x5cc   :  { %5601 = vmatmul.mubr.f32.gmra.mrb[132].mxu0 %v18691_v10 }
 0x5cd   :  { %16579 = vmatpush1.bf16.msra.mxu0 %v16578_v34  ;;  %5606 = vmatprep.mubr.f32.mxu0 %v17966_v0 }
 0x5ce   :  { %16581 = vmatprep.subr.bf16.mxu0 %v16580_v17 }
 0x5d0   :  { %5607 = vmatmul.mubr.f32.gmra.mrb[134].mxu0 %v18696_v53 }
 0x5d1   :  { %16583 = vmatpush1.bf16.msra.mxu0 %v16582_v45  ;;  %5677 = vmatprep.mubr.f32.mxu0 %v17966_v0 }
 0x5d2   :  { %16585 = vmatprep.subr.bf16.mxu0 %v16584_v50 }
 0x5d4   :  { %5678 = vmatmul.mubr.f32.vlgmr.msra.gmra.mrb[136].mxu0 %v18659_v37 }
 0x5d5   :  { %16587 = vmatpush3.bf16.msra.mxu0 %v16584_v50  ;;  %5683 = vmatprep.mubr.f32.mxu0 %v17966_v0 }
 0x5d6   :  { %16589 = vmatprep.subr.bf16.mxu0 %v16588_v32 }
 0x5d8   :  { %5684 = vmatmul.mubr.f32.gmra.mrb[138].mxu0 %v18665_v36 }
 0x5d9   :  { %16591 = vmatpush3.bf16.msra.mxu0 %v16588_v32  ;;  %5689 = vmatprep.mubr.f32.mxu0 %v17966_v0 }
 0x5da   :  { %16593 = vmatprep.subr.bf16.mxu0 %v16592_v29 }
 0x5dc   :  { %5690 = vmatmul.mubr.f32.gmra.mrb[140].mxu0 %v18671_v23 }
 0x5dd   :  { %16595 = vmatpush3.bf16.msra.mxu0 %v16592_v29  ;;  %5695 = vmatprep.mubr.f32.mxu0 %v17966_v0 }
 0x5de   :  { %16597 = vmatprep.subr.bf16.mxu0 %v16596_v35 }
 0x5e0   :  { %5696 = vmatmul.mubr.f32.gmra.mrb[142].mxu0 %v18676_v40 }
 0x5e1   :  { %16599 = vmatpush3.bf16.msra.mxu0 %v16596_v35  ;;  %5701 = vmatprep.mubr.f32.mxu0 %v17966_v0 }
 0x5e2   :  { %16601 = vmatprep.subr.bf16.mxu0 %v16600_v57 }
 0x5e4   :  { %5702 = vmatmul.mubr.f32.gmra.mrb[144].mxu0 %v18681_v47 }
 0x5e5   :  { %16603 = vmatpush3.bf16.msra.mxu0 %v16600_v57  ;;  %5707 = vmatprep.mubr.f32.mxu0 %v17966_v0 }
 0x5e6   :  { %16605 = vmatprep.subr.bf16.mxu0 %v16604_v13 }
 0x5e8   :  { %5708 = vmatmul.mubr.f32.gmra.mrb[146].mxu0 %v18686_v21 }
 0x5e9   :  { %16607 = vmatpush3.bf16.msra.mxu0 %v16604_v13  ;;  %5713 = vmatprep.mubr.f32.mxu0 %v17966_v0  ;;  %v5921_v13 = vld [vmem:[#allocation6 + $0x488] sm:$0xff] }
 0x5ea   :  { %16609 = vmatprep.subr.bf16.mxu0 %v16608_v63 }
 0x5ec   :  { %5714 = vmatmul.mubr.f32.gmra.mrb[148].mxu0 %v18691_v10 }
 0x5ed   :  { %16611 = vmatpush3.bf16.msra.mxu0 %v16608_v63  ;;  %5719 = vmatprep.mubr.f32.mxu0 %v17966_v0 }
 0x5ee   :  { %16613 = vmatprep.subr.bf16.mxu0 %v16612_v4 }
 0x5f0   :  { %5720 = vmatmul.mubr.f32.gmra.mrb[150].mxu0 %v18696_v53 }
 0x5f1   :  { %16615 = vmatpush3.bf16.msra.mxu0 %v16612_v4  ;;  %14844 = vmatprep.mubr.f32.mxu0 %v18659_v37  ;;  %v16772_v37 = vpack.c.bf16 %v7546_v16, %v7545_v12  ;;  %v5924_v4 = vld [vmem:[#allocation6 + $0x4a0] sm:$0xff] }
 0x5f2   :  { %16761 = vmatprep.subr.bf16.mxu0 %v16760_v7  ;;  %v6090_v12 = vld [vmem:[#allocation6 + $0x4c0] sm:$0xff] }
 0x5f4   :  { %14845 = vmatmul.mubr.f32.vlgmr.msra.gmra.mrb[152].mxu0 %v18665_v36  ;;  %v16776_v36 = vpack.c.bf16 %v7548_v19, %v7547_v24  ;;  %v6091_v24 = vld [vmem:[#allocation6 + $0x4c8] sm:$0xff] }
 0x5f5   :  { %16763 = vmatpush3.bf16.msra.mxu0 %v16760_v7  ;;  %14847 = vmatprep.mubr.f32.mxu0 %v18671_v23  ;;  %v7549_v23 = vld [vmem:[#allocation11 + $0xd0] sm:$0xff]  ;;  %v5925_v7 = vld [vmem:[#allocation6 + $0x4a8] sm:$0xff] }
 0x5f6   :  { %16765 = vmatprep.subr.bf16.mxu0 %v16764_v62 }
 0x5f8   :  { %14848 = vmatmul.mubr.f32.gmra.mrb[154].mxu0 %v18676_v40  ;;  %v16780_v40 = vpack.c.bf16 %v7550_v25, %v7549_v23  ;;  %v6093_v25 = vld [vmem:[#allocation6 + $0x4d8] sm:$0xff] }
 0x5f9   :  { %16767 = vmatpush3.bf16.msra.mxu0 %v16764_v62  ;;  %14850 = vmatprep.mubr.f32.mxu0 %v18681_v47  ;;  %v7552_v47 = vld [vmem:[#allocation11 + $0xe8] sm:$0xff] }
 0x5fa   :  { %16769 = vmatprep.subr.bf16.mxu0 %v16768_v46  ;;  %v16784_v30 = vpack.c.bf16 %v7552_v47, %v7551_v43  ;;  %v6094_v47 = vld [vmem:[#allocation6 + $0x4e0] sm:$0xff] }
 0x5fc   :  { %14851 = vmatmul.mubr.f32.gmra.mrb[156].mxu0 %v18686_v21  ;;  %v16788_v21 = vpack.c.bf16 %v7554_v48, %v7553_v61  ;;  %v6095_v48 = vld [vmem:[#allocation6 + $0x4e8] sm:$0xff] }
 0x5fd   :  { %16771 = vmatpush3.bf16.msra.mxu0 %v16768_v46  ;;  %14853 = vmatprep.mubr.f32.mxu0 %v18691_v10 }
 0x5fe   :  { %16773 = vmatprep.subr.bf16.mxu0 %v16772_v37 }
 0x600   :  { %14854 = vmatmul.mubr.f32.gmra.mrb[158].mxu0 %v18696_v53 }
 0x601   :  { %16775 = vmatpush3.bf16.msra.mxu0 %v16772_v37 }
 0x602   :  { %16777 = vmatprep.subr.bf16.mxu0 %v16776_v36 }
 0x605   :  { %16779 = vmatpush3.bf16.msra.mxu0 %v16776_v36  ;;  %v6092_v36 = vld [vmem:[#allocation6 + $0x4d0] sm:$0xff] }
 0x606   :  { %16781 = vmatprep.subr.bf16.mxu0 %v16780_v40 }
 0x609   :  { %16783 = vmatpush3.bf16.msra.mxu0 %v16780_v40 }
 0x60a   :  { %16785 = vmatprep.subr.bf16.mxu0 %v16784_v30 }
 0x60d   :  { %16787 = vmatpush3.bf16.msra.mxu0 %v16784_v30 }
 0x60e   :  { %16789 = vmatprep.subr.bf16.mxu0 %v16788_v21 }
 0x611   :  { %16791 = vmatpush3.bf16.msra.mxu0 %v16788_v21 }
 0x612   :  { %16793 = vmatprep.subr.bf16.mxu0 %v18528_v60 }
 0x647   :  { %v5340_v10 = vpop.f32.mrb[88].mxu0 }
 0x648   :  { %v5342_v53 = vpop.f32.mrb[89].mxu0 }
 0x64b   :  { %v5346_v31 = vpop.f32.mrb[90].mxu0 }
 0x64c   :  { %v16616_v34 = vpack.c.bf16 %v5346_v31, %v5340_v10  ;;  %v5348_v17 = vpop.f32.mrb[91].mxu0  ;;  %v6096_v10 = vld [vmem:[#allocation6 + $0x4f0] sm:$0xff]  ;;  %v6097_v31 = vld [vmem:[#allocation6 + $0x4f8] sm:$0xff] }
 0x64d   :  { %v16632_v38 = vpack.c.bf16 %v5348_v17, %v5342_v53 }
 0x64e   :  { %16617 = vmatprep.subr.bf16.mxu1 %v16616_v34 }
 0x64f   :  { %v5352_v41 = vpop.f32.mrb[92].mxu0  ;;  %16619 = vmatpush3.bf16.msra.mxu1 %v16616_v34 }
 0x650   :  { %v5354_v42 = vpop.f32.mrb[93].mxu0 }
 0x653   :  { %v5358_v44 = vpop.f32.mrb[94].mxu0 }
 0x654   :  { %v16620_v45 = vpack.c.bf16 %v5358_v44, %v5352_v41  ;;  %v5360_v50 = vpop.f32.mrb[95].mxu0  ;;  %v6261_v44 = vld [vmem:[#allocation6 + $0x508] sm:$0xff] }
 0x655   :  { %v16636_v51 = vpack.c.bf16 %v5360_v50, %v5354_v42  ;;  %v6262_v50 = vld [vmem:[#allocation6 + $0x510] sm:$0xff] }
 0x656   :  { %16621 = vmatprep.subr.bf16.mxu1 %v16620_v45 }
 0x657   :  { %v5364_v1 = vpop.f32.mrb[96].mxu0  ;;  %16623 = vmatpush3.bf16.msra.mxu1 %v16620_v45 }
 0x658   :  { %v5366_v32 = vpop.f32.mrb[97].mxu0 }
 0x65b   :  { %v5370_v5 = vpop.f32.mrb[98].mxu0 }
 0x65c   :  { %v16624_v55 = vpack.c.bf16 %v5370_v5, %v5364_v1  ;;  %v5372_v29 = vpop.f32.mrb[99].mxu0  ;;  %v6263_v1 = vld [vmem:[#allocation6 + $0x518] sm:$0xff] }
 0x65d   :  { %v16640_v27 = vpack.c.bf16 %v5372_v29, %v5366_v32 }
 0x65e   :  { %16625 = vmatprep.subr.bf16.mxu1 %v16624_v55 }
 0x65f   :  { %v5376_v11 = vpop.f32.mrb[100].mxu0  ;;  %16627 = vmatpush3.bf16.msra.mxu1 %v16624_v55  ;;  %v6264_v55 = vld [vmem:[#allocation6 + $0x520] sm:$0xff] }
 0x660   :  { %v5378_v35 = vpop.f32.mrb[101].mxu0 }
 0x663   :  { %v5382_v26 = vpop.f32.mrb[102].mxu0 }
 0x664   :  { %v16628_v56 = vpack.c.bf16 %v5382_v26, %v5376_v11  ;;  %v5384_v57 = vpop.f32.mrb[103].mxu0  ;;  %v6265_v11 = vld [vmem:[#allocation6 + $0x528] sm:$0xff]  ;;  %v6266_v26 = vld [vmem:[#allocation6 + $0x530] sm:$0xff] }
 0x665   :  { %v16644_v58 = vpack.c.bf16 %v5384_v57, %v5378_v35  ;;  %v6267_v57 = vld [vmem:[#allocation6 + $0x538] sm:$0xff] }
 0x666   :  { %16629 = vmatprep.subr.bf16.mxu1 %v16628_v56 }
 0x667   :  { %v5453_v33 = vpop.f32.mrb[104].mxu0  ;;  %16631 = vmatpush3.bf16.msra.mxu1 %v16628_v56 }
 0x668   :  { %v5455_v15 = vpop.f32.mrb[105].mxu0  ;;  %16633 = vmatprep.subr.bf16.mxu1 %v16632_v38 }
 0x66a   :  { %14873 = vmatmul.mubr.msk.f32.vlgmr.msra.gmra.mrb[80].mxu1 %vm954_vm0, %v5921_v13  ;;  %v6430_v13 = vld [vmem:[#allocation6 + $0x540] sm:$0xff] }
 0x66b   :  { %v5459_v63 = vpop.f32.mrb[106].mxu0  ;;  %16635 = vmatpush3.bf16.msra.mxu1 %v16632_v38  ;;  %14875 = vmatprep.mubr.msk.f32.mxu1 %vm954_vm0, %v5922_v18  ;;  %v6260_v38 = vld [vmem:[#allocation6 + $0x500] sm:$0xff] }
 0x66c   :  { %v16648_v9 = vpack.c.bf16 %v5459_v63, %v5453_v33  ;;  %v5461_v3 = vpop.f32.mrb[107].mxu0  ;;  %16637 = vmatprep.subr.bf16.mxu1 %v16636_v51  ;;  %v6431_v63 = vld [vmem:[#allocation6 + $0x548] sm:$0xff] }
 0x66d   :  { %v18759_v22 = vpack.c.bf16 %v5461_v3, %v5455_v15 }
 0x66e   :  { %14876 = vmatmul.mubr.msk.f32.gmra.mrb[82].mxu1 %vm954_vm0, %v5923_v52 }
 0x66f   :  { %v5465_v2 = vpop.f32.mrb[108].mxu0  ;;  %16639 = vmatpush3.bf16.msra.mxu1 %v16636_v51  ;;  %14878 = vmatprep.mubr.msk.f32.mxu1 %vm954_vm0, %v5924_v4  ;;  %v6433_v4 = vld [vmem:[#allocation6 + $0x558] sm:$0xff] }
 0x670   :  { %v5467_v8 = vpop.f32.mrb[109].mxu0  ;;  %16641 = vmatprep.subr.bf16.mxu1 %v16640_v27 }
 0x672   :  { %14879 = vmatmul.mubr.msk.f32.gmra.mrb[84].mxu1 %vm954_vm0, %v5925_v7  ;;  %v6434_v7 = vld [vmem:[#allocation6 + $0x560] sm:$0xff] }
 0x673   :  { %v5471_v62 = vpop.f32.mrb[110].mxu0  ;;  %16643 = vmatpush3.bf16.msra.mxu1 %v16640_v27  ;;  %14881 = vmatprep.mubr.msk.f32.mxu1 %vm954_vm0, %v5926_v59 }
 0x674   :  { %v16652_v14 = vpack.c.bf16 %v5471_v62, %v5465_v2  ;;  %v5473_v46 = vpop.f32.mrb[111].mxu0  ;;  %16645 = vmatprep.subr.bf16.mxu1 %v16644_v58  ;;  %v6435_v62 = vld [vmem:[#allocation6 + $0x568] sm:$0xff] }
 0x675   :  { %v16668_v16 = vpack.c.bf16 %v5473_v46, %v5467_v8 }
 0x676   :  { %14882 = vmatmul.mubr.msk.f32.gmra.mrb[86].mxu1 %vm954_vm0, %v5927_v6 }
 0x677   :  { %v5477_v37 = vpop.f32.mrb[112].mxu0  ;;  %16647 = vmatpush3.bf16.msra.mxu1 %v16644_v58  ;;  %14900 = vmatprep.mubr.msk.f32.mxu1 %vm954_vm0, %v6090_v12  ;;  %v6437_v12 = vld [vmem:[#allocation6 + $0x578] sm:$0xff] }
 0x678   :  { %v5479_v19 = vpop.f32.mrb[113].mxu0  ;;  %16649 = vmatprep.subr.bf16.mxu1 %v16648_v9 }
 0x67a   :  { %14901 = vmatmul.mubr.msk.f32.vlgmr.msra.gmra.mrb[80].mxu1 %vm954_vm0, %v6091_v24  ;;  %v6600_v24 = vld [vmem:[#allocation6 + $0x580] sm:$0xff] }
 0x67b   :  { %v5483_v23 = vpop.f32.mrb[114].mxu0  ;;  %16651 = vmatpush3.bf16.msra.mxu1 %v16648_v9  ;;  %14903 = vmatprep.mubr.msk.f32.mxu1 %vm954_vm0, %v6092_v36  ;;  %v6432_v9 = vld [vmem:[#allocation6 + $0x550] sm:$0xff] }
 0x67c   :  { %v16656_v40 = vpack.c.bf16 %v5483_v23, %v5477_v37  ;;  %v5485_v43 = vpop.f32.mrb[115].mxu0  ;;  %16653 = vmatprep.subr.bf16.mxu1 %v16652_v14  ;;  %v6601_v23 = vld [vmem:[#allocation6 + $0x588] sm:$0xff] }
 0x67d   :  { %v16672_v30 = vpack.c.bf16 %v5485_v43, %v5479_v19 }
 0x67e   :  { %14904 = vmatmul.mubr.msk.f32.gmra.mrb[82].mxu1 %vm954_vm0, %v6093_v25 }
 0x67f   :  { %v5489_v61 = vpop.f32.mrb[116].mxu0  ;;  %16655 = vmatpush3.bf16.msra.mxu1 %v16652_v14  ;;  %14906 = vmatprep.mubr.msk.f32.mxu1 %vm954_vm0, %v6094_v47  ;;  %v6436_v14 = vld [vmem:[#allocation6 + $0x570] sm:$0xff]  ;;  %v6603_v47 = vld [vmem:[#allocation6 + $0x598] sm:$0xff] }
 0x680   :  { %v5491_v21 = vpop.f32.mrb[117].mxu0  ;;  %16657 = vmatprep.subr.bf16.mxu1 %v16656_v40 }
 0x682   :  { %14907 = vmatmul.mubr.msk.f32.gmra.mrb[84].mxu1 %vm954_vm0, %v6095_v48  ;;  %v6604_v48 = vld [vmem:[#allocation6 + $0x5a0] sm:$0xff] }
 0x683   :  { %v5495_v53 = vpop.f32.mrb[118].mxu0  ;;  %16659 = vmatpush3.bf16.msra.mxu1 %v16656_v40  ;;  %14909 = vmatprep.mubr.msk.f32.mxu1 %vm954_vm0, %v6096_v10  ;;  %v6602_v40 = vld [vmem:[#allocation6 + $0x590] sm:$0xff] }
 0x684   :  { %v16660_v34 = vpack.c.bf16 %v5495_v53, %v5489_v61  ;;  %v5497_v17 = vpop.f32.mrb[119].mxu0  ;;  %v6605_v53 = vld [vmem:[#allocation6 + $0x5a8] sm:$0xff] }
 0x685   :  { %v16676_v41 = vpack.c.bf16 %v5497_v17, %v5491_v21 }
 0x686   :  { %14910 = vmatmul.mubr.msk.f32.gmra.mrb[86].mxu1 %vm954_vm0, %v6097_v31  ;;  %16661 = vmatprep.subr.bf16.mxu1 %v16660_v34 }
 0x687   :  { %v5566_v42 = vpop.f32.mrb[120].mxu0  ;;  %16663 = vmatpush3.bf16.msra.mxu1 %v16660_v34  ;;  %14928 = vmatprep.mubr.msk.f32.mxu1 %vm954_vm0, %v6260_v38  ;;  %v6606_v34 = vld [vmem:[#allocation6 + $0x5b0] sm:$0xff]  ;;  %v6607_v38 = vld [vmem:[#allocation6 + $0x5b8] sm:$0xff] }
 0x688   :  { %v5568_v45 = vpop.f32.mrb[121].mxu0  ;;  %16665 = vmatprep.subr.bf16.mxu1 %v18759_v22 }
 0x68a   :  { %14929 = vmatmul.mubr.msk.f32.vlgmr.msra.gmra.mrb[80].mxu1 %vm954_vm0, %v6261_v44  ;;  %v6770_v44 = vld [vmem:[#allocation6 + $0x5c0] sm:$0xff] }
 0x68b   :  { %v5572_v51 = vpop.f32.mrb[122].mxu0  ;;  %16667 = vmatpush3.bf16.msra.mxu1 %v18759_v22  ;;  %14931 = vmatprep.mubr.msk.f32.mxu1 %vm954_vm0, %v6262_v50 }
 0x68c   :  { %v16680_v32 = vpack.c.bf16 %v5572_v51, %v5566_v42  ;;  %v5574_v5 = vpop.f32.mrb[123].mxu0  ;;  %16669 = vmatprep.subr.bf16.mxu1 %v16668_v16  ;;  %v6771_v51 = vld [vmem:[#allocation6 + $0x5c8] sm:$0xff] }
 0x68d   :  { %v18779_v29 = vpack.c.bf16 %v5574_v5, %v5568_v45 }
 0x68e   :  { %14932 = vmatmul.mubr.msk.f32.gmra.mrb[82].mxu1 %vm954_vm0, %v6263_v1 }
 0x68f   :  { %v5578_v27 = vpop.f32.mrb[124].mxu0  ;;  %16671 = vmatpush3.bf16.msra.mxu1 %v16668_v16  ;;  %14934 = vmatprep.mubr.msk.f32.mxu1 %vm954_vm0, %v6264_v55  ;;  %v6773_v55 = vld [vmem:[#allocation6 + $0x5d8] sm:$0xff] }
 0x690   :  { %v5580_v35 = vpop.f32.mrb[125].mxu0  ;;  %16673 = vmatprep.subr.bf16.mxu1 %v16672_v30 }
 0x692   :  { %14935 = vmatmul.mubr.msk.f32.gmra.mrb[84].mxu1 %vm954_vm0, %v6265_v11  ;;  %v6774_v11 = vld [vmem:[#allocation6 + $0x5e0] sm:$0xff] }
 0x693   :  { %v5584_v56 = vpop.f32.mrb[126].mxu0  ;;  %16675 = vmatpush3.bf16.msra.mxu1 %v16672_v30  ;;  %14937 = vmatprep.mubr.msk.f32.mxu1 %vm954_vm0, %v6266_v26 }
 0x694   :  { %v16684_v58 = vpack.c.bf16 %v5584_v56, %v5578_v27  ;;  %v5586_v33 = vpop.f32.mrb[127].mxu0  ;;  %16677 = vmatprep.subr.bf16.mxu1 %v16676_v41  ;;  %v6775_v56 = vld [vmem:[#allocation6 + $0x5e8] sm:$0xff] }
 0x695   :  { %v16700_v15 = vpack.c.bf16 %v5586_v33, %v5580_v35 }
 0x696   :  { %14938 = vmatmul.mubr.msk.f32.gmra.mrb[86].mxu1 %vm954_vm0, %v6267_v57 }
 0x697   :  { %v5590_v18 = vpop.f32.mrb[128].mxu0  ;;  %16679 = vmatpush3.bf16.msra.mxu1 %v16676_v41  ;;  %14956 = vmatprep.mubr.msk.f32.mxu1 %vm954_vm0, %v6430_v13  ;;  %v6777_v13 = vld [vmem:[#allocation6 + $0x5f8] sm:$0xff] }
 0x698   :  { %v5592_v52 = vpop.f32.mrb[129].mxu0  ;;  %16681 = vmatprep.subr.bf16.mxu1 %v16680_v32 }
 0x69a   :  { %14957 = vmatmul.mubr.msk.f32.vlgmr.msra.gmra.mrb[80].mxu1 %vm954_vm0, %v6431_v63  ;;  %v6940_v63 = vld [vmem:[#allocation6 + $0x600] sm:$0xff] }
 0x69b   :  { %v5596_v3 = vpop.f32.mrb[130].mxu0  ;;  %16683 = vmatpush3.bf16.msra.mxu1 %v16680_v32  ;;  %14959 = vmatprep.mubr.msk.f32.mxu1 %vm954_vm0, %v6432_v9  ;;  %v6772_v32 = vld [vmem:[#allocation6 + $0x5d0] sm:$0xff] }
 0x69c   :  { %v16688_v22 = vpack.c.bf16 %v5596_v3, %v5590_v18  ;;  %v5598_v2 = vpop.f32.mrb[131].mxu0  ;;  %16685 = vmatprep.subr.bf16.mxu1 %v16684_v58  ;;  %v6941_v3 = vld [vmem:[#allocation6 + $0x608] sm:$0xff] }
 0x69d   :  { %v16704_v8 = vpack.c.bf16 %v5598_v2, %v5592_v52 }
 0x69e   :  { %14960 = vmatmul.mubr.msk.f32.gmra.mrb[82].mxu1 %vm954_vm0, %v6433_v4 }
 0x69f   :  { %v5602_v59 = vpop.f32.mrb[132].mxu0  ;;  %16687 = vmatpush3.bf16.msra.mxu1 %v16684_v58  ;;  %14962 = vmatprep.mubr.msk.f32.mxu1 %vm954_vm0, %v6434_v7  ;;  %v6776_v58 = vld [vmem:[#allocation6 + $0x5f0] sm:$0xff] }
 0x6a0   :  { %v5604_v6 = vpop.f32.mrb[133].mxu0  ;;  %16689 = vmatprep.subr.bf16.mxu1 %v16688_v22 }
 0x6a2   :  { %14963 = vmatmul.mubr.msk.f32.gmra.mrb[84].mxu1 %vm954_vm0, %v6435_v62  ;;  %v6944_v62 = vld [vmem:[#allocation6 + $0x620] sm:$0xff] }
 0x6a3   :  { %v5608_v46 = vpop.f32.mrb[134].mxu0  ;;  %16691 = vmatpush3.bf16.msra.mxu1 %v16688_v22  ;;  %14965 = vmatprep.mubr.msk.f32.mxu1 %vm954_vm0, %v6436_v14  ;;  %v6942_v22 = vld [vmem:[#allocation6 + $0x610] sm:$0xff] }
 0x6a4   :  { %v16692_v16 = vpack.c.bf16 %v5608_v46, %v5602_v59  ;;  %v5610_v37 = vpop.f32.mrb[135].mxu0  ;;  %v6945_v46 = vld [vmem:[#allocation6 + $0x628] sm:$0xff] }
 0x6a5   :  { %v16708_v19 = vpack.c.bf16 %v5610_v37, %v5604_v6 }
 0x6a6   :  { %14966 = vmatmul.mubr.msk.f32.gmra.mrb[86].mxu1 %vm954_vm0, %v6437_v12  ;;  %16693 = vmatprep.subr.bf16.mxu1 %v16692_v16 }
 0x6a7   :  { %v5679_v36 = vpop.f32.mrb[136].mxu0  ;;  %16695 = vmatpush3.bf16.msra.mxu1 %v16692_v16  ;;  %14984 = vmatprep.mubr.msk.f32.mxu1 %vm954_vm0, %v6600_v24  ;;  %v6946_v16 = vld [vmem:[#allocation6 + $0x630] sm:$0xff] }
 0x6a8   :  { %v5681_v25 = vpop.f32.mrb[137].mxu0  ;;  %16697 = vmatprep.subr.bf16.mxu1 %v18779_v29 }
 0x6aa   :  { %14985 = vmatmul.mubr.msk.f32.vlgmr.msra.gmra.mrb[80].mxu1 %vm954_vm0, %v6601_v23  ;;  %v7110_v23 = vld [vmem:[#allocation6 + $0x640] sm:$0xff] }
 0x6ab   :  { %v5685_v43 = vpop.f32.mrb[138].mxu0  ;;  %16699 = vmatpush3.bf16.msra.mxu1 %v18779_v29  ;;  %14987 = vmatprep.mubr.msk.f32.mxu1 %vm954_vm0, %v6602_v40  ;;  %v7111_v40 = vld [vmem:[#allocation6 + $0x648] sm:$0xff] }
 0x6ac   :  { %v16712_v30 = vpack.c.bf16 %v5685_v43, %v5679_v36  ;;  %v5687_v61 = vpop.f32.mrb[139].mxu0  ;;  %16701 = vmatprep.subr.bf16.mxu1 %v16700_v15  ;;  %v7112_v43 = vld [vmem:[#allocation6 + $0x650] sm:$0xff] }
 0x6ad   :  { %v18799_v21 = vpack.c.bf16 %v5687_v61, %v5681_v25  ;;  %v7115_v61 = vld [vmem:[#allocation6 + $0x668] sm:$0xff] }
 0x6ae   :  { %14988 = vmatmul.mubr.msk.f32.gmra.mrb[82].mxu1 %vm954_vm0, %v6603_v47  ;;  %v7113_v47 = vld [vmem:[#allocation6 + $0x658] sm:$0xff] }
 0x6af   :  { %v5691_v10 = vpop.f32.mrb[140].mxu0  ;;  %16703 = vmatpush3.bf16.msra.mxu1 %v16700_v15  ;;  %14990 = vmatprep.mubr.msk.f32.mxu1 %vm954_vm0, %v6604_v48  ;;  %v7116_v48 = vld [vmem:[#allocation6 + $0x670] sm:$0xff] }
 0x6b0   :  { %v5693_v31 = vpop.f32.mrb[141].mxu0  ;;  %16705 = vmatprep.subr.bf16.mxu1 %v16704_v8 }
 0x6b2   :  { %14991 = vmatmul.mubr.msk.f32.gmra.mrb[84].mxu1 %vm954_vm0, %v6605_v53  ;;  %v7117_v53 = vld [vmem:[#allocation6 + $0x678] sm:$0xff] }
 0x6b3   :  { %v5697_v17 = vpop.f32.mrb[142].mxu0  ;;  %16707 = vmatpush3.bf16.msra.mxu1 %v16704_v8  ;;  %14993 = vmatprep.mubr.msk.f32.mxu1 %vm954_vm0, %v6606_v34  ;;  %v6943_v8 = vld [vmem:[#allocation6 + $0x618] sm:$0xff] }
 0x6b4   :  { %v16716_v41 = vpack.c.bf16 %v5697_v17, %v5691_v10  ;;  %v5699_v42 = vpop.f32.mrb[143].mxu0  ;;  %16709 = vmatprep.subr.bf16.mxu1 %v16708_v19  ;;  %v7842_v10 = vld [vmem:[#allocation8 + $0xe00] sm:$0xff]  ;;  %v7832_v17 = vld [vmem:[#allocation8 + $0xdb0] sm:$0xff] }
 0x6b5   :  { %v16732_v45 = vpack.c.bf16 %v5699_v42, %v5693_v31  ;;  %v7280_v31 = vld [vmem:[#allocation6 + $0x680] sm:$0xff]  ;;  %v7860_v42 = vld [vmem:[#allocation8 + $0xe90] sm:$0xff] }
 0x6b6   :  { %14994 = vmatmul.mubr.msk.f32.gmra.mrb[86].mxu1 %vm954_vm0, %v6607_v38  ;;  %v7841_v38 = vld [vmem:[#allocation8 + $0xdf8] sm:$0xff] }
 0x6b7   :  { %v5703_v50 = vpop.f32.mrb[144].mxu0  ;;  %16711 = vmatpush3.bf16.msra.mxu1 %v16708_v19  ;;  %15012 = vmatprep.mubr.msk.f32.mxu1 %vm954_vm0, %v6770_v44  ;;  %v6947_v19 = vld [vmem:[#allocation6 + $0x638] sm:$0xff]  ;;  %v7281_v44 = vld [vmem:[#allocation6 + $0x688] sm:$0xff] }
 0x6b8   :  { %v5705_v1 = vpop.f32.mrb[145].mxu0  ;;  %16713 = vmatprep.subr.bf16.mxu1 %v16712_v30 }
 0x6ba   :  { %15013 = vmatmul.mubr.msk.f32.vlgmr.msra.gmra.mrb[80].mxu1 %vm954_vm0, %v6771_v51 }
 0x6bb   :  { %v5709_v5 = vpop.f32.mrb[146].mxu0  ;;  %16715 = vmatpush3.bf16.msra.mxu1 %v16712_v30  ;;  %15015 = vmatprep.mubr.msk.f32.mxu1 %vm954_vm0, %v6772_v32  ;;  %v7114_v30 = vld [vmem:[#allocation6 + $0x660] sm:$0xff]  ;;  %v7859_v32 = vld [vmem:[#allocation8 + $0xe88] sm:$0xff] }
 0x6bc   :  { %v16720_v29 = vpack.c.bf16 %v5709_v5, %v5703_v50  ;;  %v5711_v27 = vpop.f32.mrb[147].mxu0  ;;  %16717 = vmatprep.subr.bf16.mxu1 %v16716_v41  ;;  %v7282_v50 = vld [vmem:[#allocation6 + $0x690] sm:$0xff]  ;;  %v7869_v5 = vld [vmem:[#allocation8 + $0xed8] sm:$0xff] }
 0x6bd   :  { %v16736_v35 = vpack.c.bf16 %v5711_v27, %v5705_v1  ;;  %v7850_v1 = vld [vmem:[#allocation8 + $0xe40] sm:$0xff] }
 0x6be   :  { %15016 = vmatmul.mubr.msk.f32.gmra.mrb[82].mxu1 %vm954_vm0, %v6773_v55  ;;  %v7878_v55 = vld [vmem:[#allocation8 + $0xf20] sm:$0xff]  ;;  %v16910_v27 = vpack.c.bf16 %v7859_v32, %v7850_v1  ;;  %v7465_v1 = vld [vmem:[#allocation9 + $0x98] sm:$0xff] }
 0x6bf   :  { %v5715_v26 = vpop.f32.mrb[148].mxu0  ;;  %16719 = vmatpush3.bf16.msra.mxu1 %v16716_v41  ;;  %15018 = vmatprep.mubr.msk.f32.mxu1 %vm954_vm0, %v6774_v11  ;;  %v7851_v41 = vld [vmem:[#allocation8 + $0xe48] sm:$0xff]  ;;  %v7284_v11 = vld [vmem:[#allocation6 + $0x6a0] sm:$0xff] }
 0x6c0   :  { %v5717_v57 = vpop.f32.mrb[149].mxu0  ;;  %16721 = vmatprep.subr.bf16.mxu1 %v16720_v29  ;;  %v16908_v51 = vpack.c.bf16 %v7860_v42, %v7851_v41 }
 0x6c2   :  { %15019 = vmatmul.mubr.msk.f32.gmra.mrb[84].mxu1 %vm954_vm0, %v6775_v56  ;;  %v7877_v56 = vld [vmem:[#allocation8 + $0xf18] sm:$0xff] }
 0x6c3   :  { %v5721_v33 = vpop.f32.mrb[150].mxu0  ;;  %16723 = vmatpush3.bf16.msra.mxu1 %v16720_v29  ;;  %15021 = vmatprep.mubr.msk.f32.mxu1 %vm954_vm0, %v6776_v58  ;;  %v7283_v29 = vld [vmem:[#allocation6 + $0x698] sm:$0xff]  ;;  %v7896_v58 = vld [vmem:[#allocation8 + $0xfb0] sm:$0xff] }
 0x6c4   :  { %v16724_v15 = vpack.c.bf16 %v5721_v33, %v5715_v26  ;;  %v5723_v18 = vpop.f32.mrb[151].mxu0  ;;  %v7868_v26 = vld [vmem:[#allocation8 + $0xed0] sm:$0xff]  ;;  %v7285_v33 = vld [vmem:[#allocation6 + $0x6a8] sm:$0xff] }
 0x6c5   :  { %v16740_v52 = vpack.c.bf16 %v5723_v18, %v5717_v57  ;;  %v7887_v57 = vld [vmem:[#allocation8 + $0xf68] sm:$0xff] }
 0x6c6   :  { %15022 = vmatmul.mubr.msk.f32.gmra.mrb[86].mxu1 %vm954_vm0, %v6777_v13  ;;  %16725 = vmatprep.subr.bf16.mxu1 %v16724_v15  ;;  %v16914_v13 = vpack.c.bf16 %v7877_v56, %v7868_v26  ;;  %v16916_v18 = vpack.c.bf16 %v7896_v58, %v7887_v57 }
 0x6c7   :  { %v14846_v9 = vpop.f32.mrb[152].mxu0  ;;  %16727 = vmatpush3.bf16.msra.mxu1 %v16724_v15  ;;  %15040 = vmatprep.mubr.msk.f32.mxu1 %vm954_vm0, %v6940_v63  ;;  %v7286_v15 = vld [vmem:[#allocation6 + $0x6b0] sm:$0xff]  ;;  %v7886_v63 = vld [vmem:[#allocation8 + $0xf60] sm:$0xff] }
 0x6c8   :  { %v5792_v4 = vpop.f32.mrb[153].mxu0  ;;  %16729 = vmatprep.subr.bf16.mxu1 %v18799_v21 }
 0x6c9   :  { %v16744_v2 = vpack.c.bf16 %v14846_v9, %v5792_v4  ;;  %v7905_v9 = vld [vmem:[#allocation8 + $0xff8] sm:$0xff] }
 0x6ca   :  { %15041 = vmatmul.mubr.msk.f32.vlgmr.msra.gmra.mrb[80].mxu1 %vm954_vm0, %v6941_v3  ;;  %v7914_v3 = vld [vmem:[#allocation8 + $0x1040] sm:$0xff]  ;;  %v7287_v4 = vld [vmem:[#allocation6 + $0x6b8] sm:$0xff] }
 0x6cb   :  { %v14849_v7 = vpop.f32.mrb[154].mxu0  ;;  %16731 = vmatpush3.bf16.msra.mxu1 %v18799_v21  ;;  %15043 = vmatprep.mubr.msk.f32.mxu1 %vm954_vm0, %v6942_v22  ;;  %v7833_v21 = vld [vmem:[#allocation8 + $0xdb8] sm:$0xff] }
 0x6cc   :  { %v5802_v59 = vpop.f32.mrb[155].mxu0  ;;  %16733 = vmatprep.subr.bf16.mxu1 %v16732_v45  ;;  %v16904_v34 = vpack.c.bf16 %v7842_v10, %v7833_v21  ;;  %v17785_v21 = vld [vmem:[%s19389_s1] sm:$0xff] }
 0x6cd   :  { %v16748_v6 = vpack.c.bf16 %v14849_v7, %v5802_v59  ;;  %v7904_v7 = vld [vmem:[#allocation8 + $0xff0] sm:$0xff]  ;;  %v7452_v10 = vrot.slane %v17785_v21, %v5119_v54 }
 0x6ce   :  { %15044 = vmatmul.mubr.msk.f32.gmra.mrb[82].mxu1 %vm954_vm0, %v6943_v8  ;;  %v7913_v8 = vld [vmem:[#allocation8 + $0x1038] sm:$0xff] }
 0x6cf   :  { %v14852_v14 = vpop.f32.mrb[156].mxu0  ;;  %16735 = vmatpush3.bf16.msra.mxu1 %v16732_v45  ;;  %15046 = vmatprep.mubr.msk.f32.mxu1 %vm954_vm0, %v6944_v62  ;;  %v16906_v45 = vpack.c.bf16 %v7841_v38, %v7832_v17  ;;  %v16922_v59 = vpack.c.bf16 %v7913_v8, %v7904_v7  ;;  %v7923_v62 = vld [vmem:[#allocation8 + $0x1088] sm:$0xff]  ;;  %v7462_v38 = vld [vmem:[#allocation9 + $0x80] sm:$0xff] }
 0x6d0   :  { %v5812_v12 = vpop.f32.mrb[157].mxu0  ;;  %16737 = vmatprep.subr.bf16.mxu1 %v16736_v35 }
 0x6d1   :  { %v16752_v37 = vpack.c.bf16 %v14852_v14, %v5812_v12  ;;  %v7931_v12 = vld [vmem:[#allocation8 + $0x10c8] sm:$0xff] }
 0x6d2   :  { %15047 = vmatmul.mubr.msk.f32.gmra.mrb[84].mxu1 %vm954_vm0, %v6945_v46  ;;  %v7922_v46 = vld [vmem:[#allocation8 + $0x1080] sm:$0xff] }
 0x6d3   :  { %v14855_v24 = vpop.f32.mrb[158].mxu0  ;;  %16739 = vmatpush3.bf16.msra.mxu1 %v16736_v35  ;;  %15049 = vmatprep.mubr.msk.f32.mxu1 %vm954_vm0, %v6946_v16  ;;  %v16912_v35 = vpack.c.bf16 %v7878_v55, %v7869_v5  ;;  %v16926_v16 = vpack.c.bf16 %v7931_v12, %v7922_v46  ;;  %v7469_v46 = vld [vmem:[#allocation9 + $0xb8] sm:$0xff] }
 0x6d4   :  { %v5822_v36 = vpop.f32.mrb[159].mxu0  ;;  %16741 = vmatprep.subr.bf16.mxu1 %v16740_v52 }
 0x6d5   :  { %v16756_v25 = vpack.c.bf16 %v14855_v24, %v5822_v36  ;;  %v7950_v24 = vld [vmem:[#allocation8 + $0x1160] sm:$0xff]  ;;  %v7940_v36 = vld [vmem:[#allocation8 + $0x1110] sm:$0xff] }
 0x6d6   :  { %15050 = vmatmul.mubr.msk.f32.gmra.mrb[86].mxu1 %vm954_vm0, %v6947_v19 }
 0x6d7   :  { %16743 = vmatpush3.bf16.msra.mxu1 %v16740_v52  ;;  %15068 = vmatprep.mubr.msk.f32.mxu1 %vm954_vm0, %v7110_v23  ;;  %v7895_v52 = vld [vmem:[#allocation8 + $0xfa8] sm:$0xff]  ;;  %v7949_v23 = vld [vmem:[#allocation8 + $0x1158] sm:$0xff] }
 0x6d8   :  { %16745 = vmatprep.subr.bf16.mxu1 %v16744_v2  ;;  %v16918_v22 = vpack.c.bf16 %v7895_v52, %v7886_v63 }
 0x6da   :  { %15069 = vmatmul.mubr.msk.f32.vlgmr.msra.gmra.mrb[80].mxu1 %vm954_vm0, %v7111_v40  ;;  %v7959_v40 = vld [vmem:[#allocation8 + $0x11a8] sm:$0xff] }
 0x6db   :  { %16747 = vmatpush3.bf16.msra.mxu1 %v16744_v2  ;;  %15071 = vmatprep.mubr.msk.f32.mxu1 %vm954_vm0, %v7112_v43  ;;  %v16920_v2 = vpack.c.bf16 %v7914_v3, %v7905_v9  ;;  %v7968_v43 = vld [vmem:[#allocation8 + $0x11f0] sm:$0xff] }
 0x6dc   :  { %16749 = vmatprep.subr.bf16.mxu1 %v16748_v6 }
 0x6de   :  { %15072 = vmatmul.mubr.msk.f32.gmra.mrb[82].mxu1 %vm954_vm0, %v7113_v47  ;;  %v16932_v47 = vpack.c.bf16 %v7968_v43, %v7959_v40 }
 0x6df   :  { %16751 = vmatpush3.bf16.msra.mxu1 %v16748_v6  ;;  %15074 = vmatprep.mubr.msk.f32.mxu1 %vm954_vm0, %v7114_v30  ;;  %v7932_v6 = vld [vmem:[#allocation8 + $0x10d0] sm:$0xff]  ;;  %v7958_v30 = vld [vmem:[#allocation8 + $0x11a0] sm:$0xff] }
 0x6e0   :  { %16753 = vmatprep.subr.bf16.mxu1 %v16752_v37  ;;  %v16924_v14 = vpack.c.bf16 %v7932_v6, %v7923_v62 }
 0x6e2   :  { %15075 = vmatmul.mubr.msk.f32.gmra.mrb[84].mxu1 %vm954_vm0, %v7115_v61  ;;  %v7967_v61 = vld [vmem:[#allocation8 + $0x11e8] sm:$0xff] }
 0x6e3   :  { %16755 = vmatpush3.bf16.msra.mxu1 %v16752_v37  ;;  %15077 = vmatprep.mubr.msk.f32.mxu1 %vm954_vm0, %v7116_v48  ;;  %v7941_v37 = vld [vmem:[#allocation8 + $0x1118] sm:$0xff]  ;;  %v16934_v48 = vpack.c.bf16 %v7967_v61, %v7958_v30 }
 0x6e4   :  { %16757 = vmatprep.subr.bf16.mxu1 %v16756_v25  ;;  %v16928_v19 = vpack.c.bf16 %v7950_v24, %v7941_v37 }
 0x6e6   :  { %15078 = vmatmul.mubr.msk.f32.gmra.mrb[86].mxu1 %vm954_vm0, %v7117_v53 }
 0x6e7   :  { %16759 = vmatpush3.bf16.msra.mxu1 %v16756_v25  ;;  %15096 = vmatprep.mubr.msk.f32.mxu1 %vm954_vm0, %v7280_v31  ;;  %v16930_v25 = vpack.c.bf16 %v7949_v23, %v7940_v36  ;;  %v7463_v31 = vld [vmem:[#allocation9 + $0x88] sm:$0xff]  ;;  %v7468_v36 = vld [vmem:[#allocation9 + $0xb0] sm:$0xff] }
 0x6e8   :  { %16905 = vmatprep.subr.bf16.mxu1 %v16904_v34 }
 0x6ea   :  { %15097 = vmatmul.mubr.msk.f32.vlgmr.msra.gmra.mrb[80].mxu1 %vm954_vm0, %v7281_v44  ;;  %v7528_v44 = vsub.s32 6, %v18125_v39 }
 0x6eb   :  { %15099 = vmatprep.mubr.msk.f32.mxu1 %vm954_vm0, %v7282_v50  ;;  %16907 = vmatpush1.bf16.msra.mxu1 %v16906_v45  ;;  %v7815_v45 = vsub.s32 3, %v18125_v39 }
 0x6ec   :  { %16909 = vmatprep.subr.bf16.mxu1 %v16908_v51 }
 0x6ee   :  { %15100 = vmatmul.mubr.msk.f32.gmra.mrb[82].mxu1 %vm954_vm0, %v7283_v29  ;;  %v7464_v29 = vld [vmem:[#allocation9 + $0x90] sm:$0xff] }
 0x6ef   :  { %15102 = vmatprep.mubr.msk.f32.mxu1 %vm954_vm0, %v7284_v11  ;;  %16911 = vmatpush1.bf16.msra.mxu1 %v16910_v27 }
 0x6f0   :  { %16913 = vmatprep.subr.bf16.mxu1 %v16912_v35  ;;  %v17786_v35 = vld [vmem:[%s19388_s0] sm:$0xff] }
 0x6f1   :  { %v18851_v26 = vrot.slane %v17786_v35, %v7528_v44  ;;  %v18855_v58 = vrot.slane %v17786_v35, %v7815_v45  ;;  %v7836_v35 = vld [vmem:[#allocation8 + $0xdd0] sm:$0xff] }
 0x6f2   :  { %15103 = vmatmul.mubr.msk.f32.gmra.mrb[84].mxu1 %vm954_vm0, %v7285_v33 }
 0x6f3   :  { %15105 = vmatprep.mubr.msk.f32.mxu1 %vm954_vm0, %v7286_v15  ;;  %16915 = vmatpush1.bf16.msra.mxu1 %v16914_v13  ;;  %v7467_v15 = vld [vmem:[#allocation9 + $0xa8] sm:$0xff] }
 0x6f4   :  { %16917 = vmatprep.subr.bf16.mxu1 %v16916_v18  ;;  %v7466_v18 = vld [vmem:[#allocation9 + $0xa0] sm:$0xff] }
 0x6f6   :  { %15106 = vmatmul.mubr.msk.f32.gmra.mrb[86].mxu1 %vm954_vm0, %v7287_v4 }
 0x6f7   :  { %16919 = vmatpush1.bf16.msra.mxu1 %v16918_v22  ;;  %8373 = vmatprep.mubr.f32.mxu1 %v17966_v0 }
 0x6f8   :  { %16921 = vmatprep.subr.bf16.mxu1 %v16920_v2 }
 0x6fb   :  { %16923 = vmatpush1.bf16.msra.mxu1 %v16922_v59 }
 0x6fc   :  { %16925 = vmatprep.subr.bf16.mxu1 %v16924_v14 }
 0x6ff   :  { %16927 = vmatpush1.bf16.msra.mxu1 %v16926_v16 }
 0x700   :  { %16929 = vmatprep.subr.bf16.mxu1 %v16928_v19 }
 0x703   :  { %16931 = vmatpush1.bf16.msra.mxu1 %v16930_v25 }
 0x704   :  { %16933 = vmatprep.subr.bf16.mxu1 %v16932_v47 }
 0x707   :  { %16935 = vmatpush1.bf16.msra.mxu1 %v16934_v48 }
 0x7bd   :  { %v15098_v53 = vpop.f32.mrb[80].mxu1 }
 0x7be   :  { %v7454_v34 = vmul.f32 %v15098_v53, %v7452_v10  ;;  %v7386_v17 = vpop.f32.mrb[81].mxu1 }
 0x7bf   :  { %v7453_v41 = vmul.f32 %v7452_v10, %v7386_v17 }
 0x7c0   :  { %v7471_v42 = vadd.f32 %v7463_v31, %v7454_v34 }
 0x7c1   :  { %v7470_v50 = vadd.f32 %v7462_v38, %v7453_v41  ;;  %v15101_v51 = vpop.f32.mrb[82].mxu1 }
 0x7c2   :  { %vm7479_vm2 = vcmp.ge.f32.partialorder %v7471_v42, 0.0  ;;  %v7487_v32 = vmul.f32 0.2, %v7471_v42  ;;  %v7456_v5 = vmul.f32 %v15101_v51, %v7452_v10  ;;  %v7396_v55 = vpop.f32.mrb[83].mxu1 }
 0x7c3   :  { %vm7478_vm3 = vcmp.ge.f32.partialorder %v7470_v50, 0.0  ;;  %v7486_v54 = vmul.f32 0.2, %v7470_v50  ;;  %v7455_v27 = vmul.f32 %v7452_v10, %v7396_v55 }
 0x7c4   :  { %v7495_v11 = vsel %vm7479_vm2, %v7471_v42, %v7487_v32  ;;  %v7473_v56 = vadd.f32 %v7465_v1, %v7456_v5 }
 0x7c5   :  { %v7503_v57 = vmul.f32 1.4142135, %v7495_v11  ;;  %v7472_v33 = vadd.f32 %v7464_v29, %v7455_v27  ;;  %v15104_v13 = vpop.f32.mrb[84].mxu1  ;;  %v7494_v63 = vsel %vm7478_vm3, %v7470_v50, %v7486_v54  ;;  %v7827_v11 = vld [vmem:[#allocation8 + $0xd88] sm:$0xff] }
 0x7c6   :  { %vm7481_vm4 = vcmp.ge.f32.partialorder %v7473_v56, 0.0  ;;  %v7489_v52 = vmul.f32 0.2, %v7473_v56  ;;  %v7458_v9 = vmul.f32 %v15104_v13, %v7452_v10  ;;  %v7406_v3 = vpop.f32.mrb[85].mxu1  ;;  %v7502_v4 = vmul.f32 1.4142135, %v7494_v63 }
 0x7c7   :  { %v13055_v22 = vclamps-f32 %v7503_v57, 256.0  ;;  %vm7480_vm5 = vcmp.ge.f32.partialorder %v7472_v33, 0.0  ;;  %v7488_v2 = vmul.f32 0.2, %v7472_v33  ;;  %v7457_v7 = vmul.f32 %v7452_v10, %v7406_v3  ;;  %v7826_v63 = vld [vmem:[#allocation8 + $0xd80] sm:$0xff] }
 0x7c8   :  { %v7475_v8 = vadd.f32 %v7467_v15, %v7458_v9  ;;  %v13054_v59 = vclamps-f32 %v7502_v4, 256.0  ;;  %v7497_v16 = vsel %vm7481_vm4, %v7473_v56, %v7489_v52  ;;  %v16808_v13 = vpack.c.bf16 %v7836_v35, %v7827_v11  ;;  %v7835_v52 = vld [vmem:[#allocation8 + $0xdc8] sm:$0xff]  ;;  %v7854_v9 = vld [vmem:[#allocation8 + $0xe60] sm:$0xff]  ;;  %v7953_v11 = vld [vmem:[#allocation8 + $0x1178] sm:$0xff] }
 0x7c9   :  { %v7531_v62 = vmul.f32 %v13055_v22, %v18851_v26  ;;  %v7474_v6 = vadd.f32 %v7466_v18, %v7457_v7  ;;  %v15107_v14 = vpop.f32.mrb[86].mxu1  ;;  %v7496_v12 = vsel %vm7480_vm5, %v7472_v33, %v7488_v2  ;;  %v7505_v61 = vmul.f32 1.4142135, %v7497_v16  ;;  %v5109_v18 = vld [vmem:[#allocation14] sm:$0xff]  ;;  %v5110_v4 = vld [vmem:[#allocation14 + $0x8] sm:$0xff] }
 0x7ca   :  { %vm7483_vm6 = vcmp.ge.f32.partialorder %v7475_v8, 0.0  ;;  %v7491_v37 = vmul.f32 0.2, %v7475_v8  ;;  %v7460_v24 = vmul.f32 %v15107_v14, %v7452_v10  ;;  %v7416_v19 = vpop.f32.mrb[87].mxu1  ;;  %v7530_v23 = vmul.f32 %v13054_v59, %v18851_v26  ;;  %v7844_v7 = vld [vmem:[#allocation8 + $0xe10] sm:$0xff]  ;;  %v7862_v16 = vld [vmem:[#allocation8 + $0xea0] sm:$0xff] }
 0x7cb   :  { %vm7482_vm7 = vcmp.ge.f32.partialorder %v7474_v6, 0.0  ;;  %v7490_v25 = vmul.f32 0.2, %v7474_v6  ;;  %v7459_v40 = vmul.f32 %v7452_v10, %v7416_v19  ;;  %v18861_v43 = vmul.f32 %v13054_v59, %v18855_v58  ;;  %v7872_v59 = vld [vmem:[#allocation8 + $0xef0] sm:$0xff]  ;;  %v7890_v19 = vld [vmem:[#allocation8 + $0xf80] sm:$0xff] }
 0x7cc   :  { %v7477_v47 = vadd.f32 %v7469_v46, %v7460_v24  ;;  %15140 = vmatprep.mubr.f32.mxu0 %v7530_v23  ;;  %v7504_v30 = vmul.f32 1.4142135, %v7496_v12  ;;  %v7499_v48 = vsel %vm7483_vm6, %v7475_v8, %v7491_v37  ;;  %v18867_v34 = vmul.f32 %v13055_v22, %v18855_v58  ;;  %v7853_v8 = vld [vmem:[#allocation8 + $0xe58] sm:$0xff]  ;;  %v5113_v46 = vld [vmem:[#allocation14 + $0x20] sm:$0xff]  ;;  %v5114_v23 = vld [vmem:[#allocation14 + $0x28] sm:$0xff] }
 0x7cd   :  { %v7476_v21 = vadd.f32 %v7468_v36, %v7459_v40  ;;  %8374 = vmatmul.mubr.f32.vlgmr.msra.gmra.mrb[88].mxu1 %v18861_v43  ;;  %15141 = vmatmul.mubr.f32.vlgmr.msra.gmra.mrb[160].mxu0 %v7531_v62  ;;  %v7498_v53 = vsel %vm7482_vm7, %v7474_v6, %v7490_v25  ;;  %v18864_v31 = vmul.f32 1.4142135, %v7499_v48  ;;  %v13057_v38 = vclamps-f32 %v7505_v61, 256.0  ;;  %v5112_v6 = vld [vmem:[#allocation14 + $0x18] sm:$0xff]  ;;  %v7871_v37 = vld [vmem:[#allocation8 + $0xee8] sm:$0xff]  ;;  %v5115_v40 = vld [vmem:[#allocation14 + $0x30] sm:$0xff] }
 0x7ce   :  { %v7493_v17 = vmul.f32 0.2, %v7477_v47  ;;  %16795 = vmatpush3.bf16.msra.mxu0 %v18528_v60  ;;  %8379 = vmatprep.mubr.f32.mxu1 %v17966_v0  ;;  %v13056_v10 = vclamps-f32 %v7504_v30, 256.0  ;;  %vm7485_vm8 = vcmp.ge.f32.partialorder %v7477_v47, 0.0  ;;  %v7506_v42 = vmul.f32 1.4142135, %v7498_v53 }
 0x7cf   :  { %vm7484_vm9 = vcmp.ge.f32.partialorder %v7476_v21, 0.0  ;;  %v7492_v41 = vmul.f32 0.2, %v7476_v21  ;;  %16797 = vmatprep.subr.bf16.mxu0 %v18532_v49  ;;  %v7533_v50 = vmul.f32 %v13057_v38, %v18851_v26  ;;  %v13059_v1 = vclamps-f32 %v18864_v31, 256.0  ;;  %v7881_v24 = vld [vmem:[#allocation8 + $0xf38] sm:$0xff]  ;;  %v7880_v30 = vld [vmem:[#allocation8 + $0xf30] sm:$0xff] }
 0x7d0   :  { %v7532_v44 = vmul.f32 %v13056_v10, %v18851_v26  ;;  %v13058_v51 = vclamps-f32 %v7506_v42, 256.0  ;;  %v7501_v5 = vsel %vm7485_vm8, %v7477_v47, %v7493_v17  ;;  %v18878_v55 = vmul.f32 %v13056_v10, %v18855_v58  ;;  %v7889_v61 = vld [vmem:[#allocation8 + $0xf78] sm:$0xff]  ;;  %v7899_v48 = vld [vmem:[#allocation8 + $0xfc8] sm:$0xff]  ;;  %v7962_v35 = vld [vmem:[#allocation8 + $0x11c0] sm:$0xff] }
 0x7d1   :  { %8380 = vmatmul.mubr.f32.gmra.mrb[90].mxu1 %v18867_v34  ;;  %v7500_v60 = vsel %vm7484_vm9, %v7476_v21, %v7492_v41  ;;  %v18882_v54 = vmul.f32 1.4142135, %v7501_v5  ;;  %v18892_v33 = vmul.f32 %v13057_v38, %v18855_v58  ;;  %v16810_v22 = vpack.c.bf16 %v7835_v52, %v7826_v63  ;;  %v7908_v21 = vld [vmem:[#allocation8 + $0x1010] sm:$0xff]  ;;  %v5116_v31 = vld [vmem:[#allocation14 + $0x38] sm:$0xff]  ;;  %v7907_v41 = vld [vmem:[#allocation8 + $0x1008] sm:$0xff] }
 0x7d2   :  { %15143 = vmatprep.mubr.f32.mxu0 %v7532_v44  ;;  %16799 = vmatpush3.bf16.msra.mxu0 %v18532_v49  ;;  %v7508_v32 = vmul.f32 1.4142135, %v7500_v60  ;;  %v7534_v29 = vmul.f32 %v13058_v51, %v18851_v26  ;;  %v7535_v49 = vmul.f32 %v13059_v1, %v18851_v26  ;;  %v18900_v3 = vmul.f32 %v13058_v51, %v18855_v58  ;;  %v7898_v38 = vld [vmem:[#allocation8 + $0xfc0] sm:$0xff]  ;;  %v7917_v42 = vld [vmem:[#allocation8 + $0x1058] sm:$0xff]  ;;  %v7916_v51 = vld [vmem:[#allocation8 + $0x1050] sm:$0xff] }
 0x7d3   :  { %15144 = vmatmul.mubr.f32.gmra.mrb[162].mxu0 %v7533_v50  ;;  %16801 = vmatprep.subr.bf16.mxu0 %v18536_v20  ;;  %v13061_v56 = vclamps-f32 %v18882_v54, 256.0  ;;  %v18906_v62 = vmul.f32 %v13059_v1, %v18855_v58  ;;  %v16814_v14 = vpack.c.bf16 %v7853_v8, %v7844_v7  ;;  %v16818_v25 = vpack.c.bf16 %v7871_v37, %v7862_v16  ;;  %v7926_v44 = vld [vmem:[#allocation8 + $0x10a0] sm:$0xff]  ;;  %v7925_v1 = vld [vmem:[#allocation8 + $0x1098] sm:$0xff]  ;;  %v7935_v60 = vld [vmem:[#allocation8 + $0x10e8] sm:$0xff] }
 0x7d4   :  { %8385 = vmatprep.mubr.f32.mxu1 %v17966_v0  ;;  %v13060_v27 = vclamps-f32 %v7508_v32, 256.0  ;;  %15146 = vmatprep.mubr.f32.mxu0 %v7534_v29  ;;  %v16820_v47 = vpack.c.bf16 %v7890_v19, %v7881_v24  ;;  %v16822_v17 = vpack.c.bf16 %v7889_v61, %v7880_v30  ;;  %v16824_v10 = vpack.c.bf16 %v7908_v21, %v7899_v48  ;;  %v7944_v32 = vld [vmem:[#allocation8 + $0x1130] sm:$0xff]  ;;  %v7934_v54 = vld [vmem:[#allocation8 + $0x10e0] sm:$0xff]  ;;  %v7855_v8 = vld [vmem:[#allocation8 + $0xe68] sm:$0xff] }
 0x7d5   :  { %8386 = vmatmul.mubr.f32.gmra.mrb[92].mxu1 %v18878_v55  ;;  %v7537_v15 = vmul.f32 %v13061_v56, %v18851_v26  ;;  %v18920_v53 = vmul.f32 %v13061_v56, %v18855_v58  ;;  %v16828_v50 = vpack.c.bf16 %v7926_v44, %v7917_v42  ;;  %v16830_v5 = vpack.c.bf16 %v7925_v1, %v7916_v51  ;;  %v7846_v7 = vld [vmem:[#allocation8 + $0xe20] sm:$0xff]  ;;  %v7883_v16 = vld [vmem:[#allocation8 + $0xf48] sm:$0xff]  ;;  %v7892_v37 = vld [vmem:[#allocation8 + $0xf90] sm:$0xff] }
 0x7d6   :  { %16803 = vmatpush3.bf16.msra.mxu0 %v18536_v20  ;;  %8391 = vmatprep.mubr.f32.mxu1 %v17966_v0  ;;  %v7536_v57 = vmul.f32 %v13060_v27, %v18851_v26  ;;  %v7845_v20 = vld [vmem:[#allocation8 + $0xe18] sm:$0xff]  ;;  %v18913_v36 = vmul.f32 %v13060_v27, %v18855_v58  ;;  %v16826_v58 = vpack.c.bf16 %v7907_v41, %v7898_v38  ;;  %v7943_v27 = vld [vmem:[#allocation8 + $0x1128] sm:$0xff]  ;;  %v7900_v48 = vld [vmem:[#allocation8 + $0xfd0] sm:$0xff] }
 0x7d7   :  { %15147 = vmatmul.mubr.f32.gmra.mrb[164].mxu0 %v7535_v49  ;;  %16805 = vmatprep.subr.bf16.mxu0 %v18540_v28  ;;  %v5111_v26 = vld [vmem:[#allocation14 + $0x10] sm:$0xff]  ;;  %v16812_v2 = vpack.c.bf16 %v7854_v9, %v7845_v20  ;;  %v16832_v29 = vpack.c.bf16 %v7944_v32, %v7935_v60  ;;  %v16834_v49 = vpack.c.bf16 %v7943_v27, %v7934_v54  ;;  %v7918_v41 = vld [vmem:[#allocation8 + $0x1060] sm:$0xff]  ;;  %v7927_v42 = vld [vmem:[#allocation8 + $0x10a8] sm:$0xff] }
 0x7d8   :  { %15149 = vmatprep.mubr.f32.mxu0 %v7536_v57  ;;  %v16836_v56 = vpack.c.bf16 %v7962_v35, %v7953_v11  ;;  %v7952_v57 = vld [vmem:[#allocation8 + $0x1170] sm:$0xff]  ;;  %v7837_v9 = vld [vmem:[#allocation8 + $0xdd8] sm:$0xff]  ;;  %v16852_v19 = vpack.c.bf16 %v7892_v37, %v7883_v16  ;;  %v7955_v32 = vld [vmem:[#allocation8 + $0x1188] sm:$0xff] }
 0x7d9   :  { %8392 = vmatmul.mubr.f32.gmra.mrb[94].mxu1 %v18892_v33  ;;  %v7828_v20 = vld [vmem:[#allocation8 + $0xd90] sm:$0xff]  ;;  %v7909_v21 = vld [vmem:[#allocation8 + $0x1018] sm:$0xff]  ;;  %v7954_v27 = vld [vmem:[#allocation8 + $0x1180] sm:$0xff] }
 0x7da   :  { %16807 = vmatpush3.bf16.msra.mxu0 %v18540_v28  ;;  %8397 = vmatprep.mubr.f32.mxu1 %v17966_v0  ;;  %v7863_v28 = vld [vmem:[#allocation8 + $0xea8] sm:$0xff]  ;;  %v7937_v44 = vld [vmem:[#allocation8 + $0x10f8] sm:$0xff]  ;;  %v7936_v1 = vld [vmem:[#allocation8 + $0x10f0] sm:$0xff] }
 0x7db   :  { %15150 = vmatmul.mubr.f32.gmra.mrb[166].mxu0 %v7537_v15  ;;  %16809 = vmatprep.subr.bf16.mxu0 %v16808_v13  ;;  %v16816_v12 = vpack.c.bf16 %v7872_v59, %v7863_v28  ;;  %v7961_v13 = vld [vmem:[#allocation8 + $0x11b8] sm:$0xff]  ;;  %v7874_v59 = vld [vmem:[#allocation8 + $0xf00] sm:$0xff]  ;;  %v7963_v11 = vld [vmem:[#allocation8 + $0x11c8] sm:$0xff] }
 0x7dc   :  { %15168 = vmatprep.mubr.msk.f32.mxu0 %vm954_vm0, %v5109_v18  ;;  %v7829_v15 = vld [vmem:[#allocation8 + $0xd98] sm:$0xff]  ;;  %v7838_v18 = vld [vmem:[#allocation8 + $0xde0] sm:$0xff]  ;;  %v16838_v63 = vpack.c.bf16 %v7961_v13, %v7952_v57  ;;  %v7831_v35 = vld [vmem:[#allocation8 + $0xda8] sm:$0xff] }
 0x7dd   :  { %8398 = vmatmul.mubr.f32.gmra.mrb[96].mxu1 %v18900_v3  ;;  %v16840_v52 = vpack.c.bf16 %v7838_v18, %v7829_v15  ;;  %v7865_v28 = vld [vmem:[#allocation8 + $0xeb8] sm:$0xff]  ;;  %v7830_v13 = vld [vmem:[#allocation8 + $0xda0] sm:$0xff]  ;;  %v7839_v15 = vld [vmem:[#allocation8 + $0xde8] sm:$0xff] }
 0x7de   :  { %8403 = vmatprep.mubr.f32.mxu1 %v17966_v0  ;;  %v7945_v60 = vld [vmem:[#allocation8 + $0x1138] sm:$0xff]  ;;  %v7903_v37 = vld [vmem:[#allocation8 + $0xfe8] sm:$0xff] }
 0x7df   :  { %15169 = vmatmul.mubr.msk.f32.vlgmr.msra.gmra.mrb[168].mxu0 %vm954_vm0, %v5110_v4  ;;  %v7847_v4 = vld [vmem:[#allocation8 + $0xe28] sm:$0xff]  ;;  %v7849_v18 = vld [vmem:[#allocation8 + $0xe38] sm:$0xff] }
 0x7e0   :  { %16811 = vmatpush1.bf16.msra.mxu0 %v16810_v22  ;;  %15171 = vmatprep.mubr.msk.f32.mxu0 %vm954_vm0, %v5111_v26  ;;  %v7856_v22 = vld [vmem:[#allocation8 + $0xe70] sm:$0xff]  ;;  %v16842_v26 = vpack.c.bf16 %v7837_v9, %v7828_v20  ;;  %v7893_v16 = vld [vmem:[#allocation8 + $0xf98] sm:$0xff] }
 0x7e1   :  { %16813 = vmatprep.subr.bf16.mxu0 %v16812_v2  ;;  %8404 = vmatmul.mubr.f32.gmra.mrb[98].mxu1 %v18906_v62  ;;  %v16844_v2 = vpack.c.bf16 %v7856_v22, %v7847_v4  ;;  %v7848_v9 = vld [vmem:[#allocation8 + $0xe30] sm:$0xff]  ;;  %v7857_v4 = vld [vmem:[#allocation8 + $0xe78] sm:$0xff]  ;;  %v7867_v22 = vld [vmem:[#allocation8 + $0xec8] sm:$0xff] }
 0x7e2   :  { %8409 = vmatprep.mubr.f32.mxu1 %v17966_v0 }
 0x7e3   :  { %15172 = vmatmul.mubr.msk.f32.gmra.mrb[170].mxu0 %vm954_vm0, %v5112_v6  ;;  %v16846_v6 = vpack.c.bf16 %v7855_v8, %v7846_v7  ;;  %v7866_v8 = vld [vmem:[#allocation8 + $0xec0] sm:$0xff] }
 0x7e4   :  { %16815 = vmatpush1.bf16.msra.mxu0 %v16814_v14  ;;  %15174 = vmatprep.mubr.msk.f32.mxu0 %vm954_vm0, %v5113_v46  ;;  %v16848_v14 = vpack.c.bf16 %v7874_v59, %v7865_v28  ;;  %v7864_v46 = vld [vmem:[#allocation8 + $0xeb0] sm:$0xff]  ;;  %v7875_v28 = vld [vmem:[#allocation8 + $0xf08] sm:$0xff]  ;;  %v7885_v59 = vld [vmem:[#allocation8 + $0xf58] sm:$0xff] }
 0x7e5   :  { %16817 = vmatprep.subr.bf16.mxu0 %v16816_v12  ;;  %8410 = vmatmul.mubr.f32.gmra.mrb[100].mxu1 %v18913_v36  ;;  %v7873_v12 = vld [vmem:[#allocation8 + $0xef8] sm:$0xff] }
 0x7e6   :  { %8415 = vmatprep.mubr.f32.mxu1 %v17966_v0  ;;  %v16850_v24 = vpack.c.bf16 %v7873_v12, %v7864_v46  ;;  %v7884_v12 = vld [vmem:[#allocation8 + $0xf50] sm:$0xff] }
 0x7e7   :  { %15175 = vmatmul.mubr.msk.f32.gmra.mrb[172].mxu0 %vm954_vm0, %v5114_v23  ;;  %v7882_v23 = vld [vmem:[#allocation8 + $0xf40] sm:$0xff] }
 0x7e8   :  { %16819 = vmatpush1.bf16.msra.mxu0 %v16818_v25  ;;  %15177 = vmatprep.mubr.msk.f32.mxu0 %vm954_vm0, %v5115_v40  ;;  %v7891_v25 = vld [vmem:[#allocation8 + $0xf88] sm:$0xff]  ;;  %v7901_v40 = vld [vmem:[#allocation8 + $0xfd8] sm:$0xff] }
 0x7e9   :  { %16821 = vmatprep.subr.bf16.mxu0 %v16820_v47  ;;  %8416 = vmatmul.mubr.f32.gmra.mrb[102].mxu1 %v18920_v53  ;;  %v7910_v47 = vld [vmem:[#allocation8 + $0x1020] sm:$0xff]  ;;  %v16854_v30 = vpack.c.bf16 %v7891_v25, %v7882_v23 }
 0x7ea   :  { %10443 = vmatprep.mubr.f32.mxu1 %v17966_v0  ;;  %v16856_v61 = vpack.c.bf16 %v7910_v47, %v7901_v40  ;;  %v7902_v25 = vld [vmem:[#allocation8 + $0xfe0] sm:$0xff]  ;;  %v7911_v40 = vld [vmem:[#allocation8 + $0x1028] sm:$0xff]  ;;  %v7921_v47 = vld [vmem:[#allocation8 + $0x1078] sm:$0xff] }
 0x7eb   :  { %15178 = vmatmul.mubr.msk.f32.gmra.mrb[174].mxu0 %vm954_vm0, %v5116_v31  ;;  %v7919_v31 = vld [vmem:[#allocation8 + $0x1068] sm:$0xff] }
 0x7ec   :  { %16823 = vmatpush1.bf16.msra.mxu0 %v16822_v17  ;;  %8034 = vmatprep.mubr.f32.mxu0 %v17966_v0  ;;  %v7928_v17 = vld [vmem:[#allocation8 + $0x10b0] sm:$0xff] }
 0x7ed   :  { %16825 = vmatprep.subr.bf16.mxu0 %v16824_v10  ;;  %v16858_v10 = vpack.c.bf16 %v7909_v21, %v7900_v48  ;;  %v16860_v38 = vpack.c.bf16 %v7928_v17, %v7919_v31  ;;  %v7920_v21 = vld [vmem:[#allocation8 + $0x1070] sm:$0xff]  ;;  %v7929_v31 = vld [vmem:[#allocation8 + $0x10b8] sm:$0xff]  ;;  %v7939_v17 = vld [vmem:[#allocation8 + $0x1108] sm:$0xff] }
 0x7f0   :  { %16827 = vmatpush1.bf16.msra.mxu0 %v16826_v58  ;;  %v7946_v58 = vld [vmem:[#allocation8 + $0x1140] sm:$0xff] }
 0x7f1   :  { %16829 = vmatprep.subr.bf16.mxu0 %v16828_v50  ;;  %v16862_v50 = vpack.c.bf16 %v7927_v42, %v7918_v41  ;;  %v16864_v51 = vpack.c.bf16 %v7946_v58, %v7937_v44  ;;  %v7938_v42 = vld [vmem:[#allocation8 + $0x1100] sm:$0xff]  ;;  %v7947_v44 = vld [vmem:[#allocation8 + $0x1148] sm:$0xff]  ;;  %v7957_v58 = vld [vmem:[#allocation8 + $0x1198] sm:$0xff] }
 0x7f4   :  { %16831 = vmatpush1.bf16.msra.mxu0 %v16830_v5  ;;  %v7964_v5 = vld [vmem:[#allocation8 + $0x11d0] sm:$0xff] }
 0x7f5   :  { %16833 = vmatprep.subr.bf16.mxu0 %v16832_v29  ;;  %v16866_v29 = vpack.c.bf16 %v7945_v60, %v7936_v1  ;;  %v16868_v54 = vpack.c.bf16 %v7964_v5, %v7955_v32  ;;  %v7956_v60 = vld [vmem:[#allocation8 + $0x1190] sm:$0xff]  ;;  %v7965_v32 = vld [vmem:[#allocation8 + $0x11d8] sm:$0xff]  ;;  %v7834_v5 = vld [vmem:[#allocation8 + $0xdc0] sm:$0xff] }
 0x7f8   :  { %16835 = vmatpush1.bf16.msra.mxu0 %v16834_v49  ;;  %v7840_v49 = vld [vmem:[#allocation8 + $0xdf0] sm:$0xff] }
 0x7f9   :  { %16837 = vmatprep.subr.bf16.mxu0 %v16836_v56  ;;  %v16870_v56 = vpack.c.bf16 %v7963_v11, %v7954_v27  ;;  %v16872_v57 = vpack.c.bf16 %v7840_v49, %v7831_v35  ;;  %v7852_v11 = vld [vmem:[#allocation8 + $0xe50] sm:$0xff]  ;;  %v7861_v35 = vld [vmem:[#allocation8 + $0xe98] sm:$0xff] }
 0x7fa   :  { %v16940_v49 = vpack.c.bf16 %v7861_v35, %v7852_v11 }
 0x7fc   :  { %16839 = vmatpush1.bf16.msra.mxu0 %v16838_v63  ;;  %v7858_v63 = vld [vmem:[#allocation8 + $0xe80] sm:$0xff] }
 0x7fd   :  { %16841 = vmatprep.subr.bf16.mxu0 %v16840_v52  ;;  %v16874_v52 = vpack.c.bf16 %v7839_v15, %v7830_v13  ;;  %v16876_v20 = vpack.c.bf16 %v7858_v63, %v7849_v18  ;;  %v7888_v15 = vld [vmem:[#allocation8 + $0xf70] sm:$0xff]  ;;  %v7897_v18 = vld [vmem:[#allocation8 + $0xfb8] sm:$0xff] }
 0x7fe   :  { %v16948_v63 = vpack.c.bf16 %v7897_v18, %v7888_v15 }
 0x7ff   :  { %8035 = vmatmul.mubr.f32.vlgmr.msra.gmra.mrb[176].mxu0 %v18861_v43 }
 0x800   :  { %16843 = vmatpush1.bf16.msra.mxu0 %v16842_v26  ;;  %8040 = vmatprep.mubr.f32.mxu0 %v17966_v0  ;;  %v7876_v26 = vld [vmem:[#allocation8 + $0xf10] sm:$0xff] }
 0x801   :  { %16845 = vmatprep.subr.bf16.mxu0 %v16844_v2  ;;  %v16878_v2 = vpack.c.bf16 %v7857_v4, %v7848_v9  ;;  %v16880_v7 = vpack.c.bf16 %v7876_v26, %v7867_v22  ;;  %v7924_v4 = vld [vmem:[#allocation8 + $0x1090] sm:$0xff]  ;;  %v7933_v22 = vld [vmem:[#allocation8 + $0x10d8] sm:$0xff] }
 0x802   :  { %v16956_v26 = vpack.c.bf16 %v7933_v22, %v7924_v4 }
 0x803   :  { %8041 = vmatmul.mubr.f32.gmra.mrb[178].mxu0 %v18867_v34 }
 0x804   :  { %16847 = vmatpush1.bf16.msra.mxu0 %v16846_v6  ;;  %8046 = vmatprep.mubr.f32.mxu0 %v17966_v0  ;;  %v7894_v6 = vld [vmem:[#allocation8 + $0xfa0] sm:$0xff] }
 0x805   :  { %16849 = vmatprep.subr.bf16.mxu0 %v16848_v14  ;;  %v16882_v14 = vpack.c.bf16 %v7875_v28, %v7866_v8  ;;  %v16884_v46 = vpack.c.bf16 %v7894_v6, %v7885_v59  ;;  %v7960_v28 = vld [vmem:[#allocation8 + $0x11b0] sm:$0xff]  ;;  %v7969_v59 = vld [vmem:[#allocation8 + $0x11f8] sm:$0xff] }
 0x806   :  { %v16964_v6 = vpack.c.bf16 %v7969_v59, %v7960_v28 }
 0x807   :  { %8047 = vmatmul.mubr.f32.gmra.mrb[180].mxu0 %v18878_v55 }
 0x808   :  { %16851 = vmatpush1.bf16.msra.mxu0 %v16850_v24  ;;  %8052 = vmatprep.mubr.f32.mxu0 %v17966_v0  ;;  %v7912_v24 = vld [vmem:[#allocation8 + $0x1030] sm:$0xff] }
 0x809   :  { %16853 = vmatprep.subr.bf16.mxu0 %v16852_v19  ;;  %v16886_v19 = vpack.c.bf16 %v7893_v16, %v7884_v12  ;;  %v16888_v23 = vpack.c.bf16 %v7912_v24, %v7903_v37 }
 0x80b   :  { %8053 = vmatmul.mubr.f32.gmra.mrb[182].mxu0 %v18892_v33 }
 0x80c   :  { %16855 = vmatpush1.bf16.msra.mxu0 %v16854_v30  ;;  %8058 = vmatprep.mubr.f32.mxu0 %v17966_v0  ;;  %v7930_v30 = vld [vmem:[#allocation8 + $0x10c0] sm:$0xff] }
 0x80d   :  { %16857 = vmatprep.subr.bf16.mxu0 %v16856_v61  ;;  %v16890_v61 = vpack.c.bf16 %v7911_v40, %v7902_v25  ;;  %v16892_v48 = vpack.c.bf16 %v7930_v30, %v7921_v47 }
 0x80f   :  { %8059 = vmatmul.mubr.f32.gmra.mrb[184].mxu0 %v18900_v3 }
 0x810   :  { %16859 = vmatpush1.bf16.msra.mxu0 %v16858_v10  ;;  %8064 = vmatprep.mubr.f32.mxu0 %v17966_v0  ;;  %v7948_v10 = vld [vmem:[#allocation8 + $0x1150] sm:$0xff] }
 0x811   :  { %16861 = vmatprep.subr.bf16.mxu0 %v16860_v38  ;;  %v16894_v38 = vpack.c.bf16 %v7929_v31, %v7920_v21  ;;  %v16896_v41 = vpack.c.bf16 %v7948_v10, %v7939_v17 }
 0x813   :  { %8065 = vmatmul.mubr.f32.gmra.mrb[186].mxu0 %v18906_v62 }
 0x814   :  { %16863 = vmatpush1.bf16.msra.mxu0 %v16862_v50  ;;  %8070 = vmatprep.mubr.f32.mxu0 %v17966_v0  ;;  %v7966_v50 = vld [vmem:[#allocation8 + $0x11e0] sm:$0xff] }
 0x815   :  { %16865 = vmatprep.subr.bf16.mxu0 %v16864_v51  ;;  %v16898_v51 = vpack.c.bf16 %v7947_v44, %v7938_v42  ;;  %v16900_v1 = vpack.c.bf16 %v7966_v50, %v7957_v58 }
 0x817   :  { %8071 = vmatmul.mubr.f32.gmra.mrb[188].mxu0 %v18913_v36 }
 0x818   :  { %16867 = vmatpush1.bf16.msra.mxu0 %v16866_v29  ;;  %8076 = vmatprep.mubr.f32.mxu0 %v17966_v0  ;;  %v7843_v29 = vld [vmem:[#allocation8 + $0xe08] sm:$0xff] }
 0x819   :  { %16869 = vmatprep.subr.bf16.mxu0 %v16868_v54  ;;  %v16902_v54 = vpack.c.bf16 %v7965_v32, %v7956_v60  ;;  %v16936_v27 = vpack.c.bf16 %v7843_v29, %v7834_v5 }
 0x81b   :  { %8077 = vmatmul.mubr.f32.gmra.mrb[190].mxu0 %v18920_v53 }
 0x81c   :  { %16871 = vmatpush1.bf16.msra.mxu0 %v16870_v56  ;;  %8147 = vmatprep.mubr.f32.mxu0 %v17966_v0  ;;  %v7870_v56 = vld [vmem:[#allocation8 + $0xee0] sm:$0xff] }
 0x81d   :  { %16873 = vmatprep.subr.bf16.mxu0 %v16872_v57  ;;  %v7879_v57 = vld [vmem:[#allocation8 + $0xf28] sm:$0xff] }
 0x81e   :  { %v16944_v13 = vpack.c.bf16 %v7879_v57, %v7870_v56 }
 0x81f   :  { %8148 = vmatmul.mubr.f32.vlgmr.msra.gmra.mrb[192].mxu0 %v18861_v43 }
 0x820   :  { %16875 = vmatpush1.bf16.msra.mxu0 %v16874_v52  ;;  %8153 = vmatprep.mubr.f32.mxu0 %v17966_v0  ;;  %v7906_v52 = vld [vmem:[#allocation8 + $0x1000] sm:$0xff] }
 0x821   :  { %16877 = vmatprep.subr.bf16.mxu0 %v16876_v20  ;;  %v7915_v20 = vld [vmem:[#allocation8 + $0x1048] sm:$0xff] }
 0x822   :  { %v16952_v9 = vpack.c.bf16 %v7915_v20, %v7906_v52 }
 0x823   :  { %8154 = vmatmul.mubr.f32.gmra.mrb[194].mxu0 %v18867_v34 }
 0x824   :  { %16879 = vmatpush1.bf16.msra.mxu0 %v16878_v2  ;;  %8159 = vmatprep.mubr.f32.mxu0 %v17966_v0  ;;  %v7942_v2 = vld [vmem:[#allocation8 + $0x1120] sm:$0xff] }
 0x825   :  { %16881 = vmatprep.subr.bf16.mxu0 %v16880_v7  ;;  %v7951_v7 = vld [vmem:[#allocation8 + $0x1168] sm:$0xff] }
 0x826   :  { %v16960_v8 = vpack.c.bf16 %v7951_v7, %v7942_v2 }
 0x827   :  { %8160 = vmatmul.mubr.f32.gmra.mrb[196].mxu0 %v18878_v55 }
 0x828   :  { %16883 = vmatpush1.bf16.msra.mxu0 %v16882_v14  ;;  %8165 = vmatprep.mubr.f32.mxu0 %v17966_v0  ;;  %v8616_v14 = vld [vmem:[#allocation6 + $0x6c0] sm:$0xff] }
 0x829   :  { %16885 = vmatprep.subr.bf16.mxu0 %v16884_v46 }
 0x82b   :  { %8166 = vmatmul.mubr.f32.gmra.mrb[198].mxu0 %v18892_v33 }
 0x82c   :  { %16887 = vmatpush1.bf16.msra.mxu0 %v16886_v19  ;;  %8171 = vmatprep.mubr.f32.mxu0 %v17966_v0 }
 0x82d   :  { %16889 = vmatprep.subr.bf16.mxu0 %v16888_v23 }
 0x82f   :  { %8172 = vmatmul.mubr.f32.gmra.mrb[200].mxu0 %v18900_v3 }
 0x830   :  { %16891 = vmatpush1.bf16.msra.mxu0 %v16890_v61  ;;  %8177 = vmatprep.mubr.f32.mxu0 %v17966_v0 }
 0x831   :  { %16893 = vmatprep.subr.bf16.mxu0 %v16892_v48 }
 0x833   :  { %8178 = vmatmul.mubr.f32.gmra.mrb[202].mxu0 %v18906_v62 }
 0x834   :  { %16895 = vmatpush1.bf16.msra.mxu0 %v16894_v38  ;;  %8183 = vmatprep.mubr.f32.mxu0 %v17966_v0 }
 0x835   :  { %16897 = vmatprep.subr.bf16.mxu0 %v16896_v41 }
 0x837   :  { %8184 = vmatmul.mubr.f32.gmra.mrb[204].mxu0 %v18913_v36 }
 0x838   :  { %16899 = vmatpush1.bf16.msra.mxu0 %v16898_v51  ;;  %8189 = vmatprep.mubr.f32.mxu0 %v17966_v0 }
 0x839   :  { %16901 = vmatprep.subr.bf16.mxu0 %v16900_v1 }
 0x83b   :  { %8190 = vmatmul.mubr.f32.gmra.mrb[206].mxu0 %v18920_v53 }
 0x83c   :  { %16903 = vmatpush1.bf16.msra.mxu0 %v16902_v54  ;;  %8260 = vmatprep.mubr.f32.mxu0 %v17966_v0 }
 0x83d   :  { %16937 = vmatprep.subr.bf16.mxu0 %v16936_v27 }
 0x83f   :  { %8261 = vmatmul.mubr.f32.vlgmr.msra.gmra.mrb[208].mxu0 %v18861_v43 }
 0x840   :  { %16939 = vmatpush3.bf16.msra.mxu0 %v16936_v27  ;;  %8266 = vmatprep.mubr.f32.mxu0 %v17966_v0 }
 0x841   :  { %16941 = vmatprep.subr.bf16.mxu0 %v16940_v49 }
 0x843   :  { %8267 = vmatmul.mubr.f32.gmra.mrb[210].mxu0 %v18867_v34 }
 0x844   :  { %16943 = vmatpush3.bf16.msra.mxu0 %v16940_v49  ;;  %8272 = vmatprep.mubr.f32.mxu0 %v17966_v0 }
 0x845   :  { %16945 = vmatprep.subr.bf16.mxu0 %v16944_v13 }
 0x847   :  { %8273 = vmatmul.mubr.f32.gmra.mrb[212].mxu0 %v18878_v55 }
 0x848   :  { %16947 = vmatpush3.bf16.msra.mxu0 %v16944_v13  ;;  %8278 = vmatprep.mubr.f32.mxu0 %v17966_v0 }
 0x849   :  { %16949 = vmatprep.subr.bf16.mxu0 %v16948_v63 }
 0x84b   :  { %8279 = vmatmul.mubr.f32.gmra.mrb[214].mxu0 %v18892_v33 }
 0x84c   :  { %16951 = vmatpush3.bf16.msra.mxu0 %v16948_v63  ;;  %8284 = vmatprep.mubr.f32.mxu0 %v17966_v0 }
 0x84d   :  { %16953 = vmatprep.subr.bf16.mxu0 %v16952_v9 }
 0x84f   :  { %8285 = vmatmul.mubr.f32.gmra.mrb[216].mxu0 %v18900_v3 }
 0x850   :  { %16955 = vmatpush3.bf16.msra.mxu0 %v16952_v9  ;;  %8290 = vmatprep.mubr.f32.mxu0 %v17966_v0 }
 0x851   :  { %16957 = vmatprep.subr.bf16.mxu0 %v16956_v26 }
 0x853   :  { %8291 = vmatmul.mubr.f32.gmra.mrb[218].mxu0 %v18906_v62 }
 0x854   :  { %16959 = vmatpush3.bf16.msra.mxu0 %v16956_v26  ;;  %8296 = vmatprep.mubr.f32.mxu0 %v17966_v0 }
 0x855   :  { %16961 = vmatprep.subr.bf16.mxu0 %v16960_v8 }
 0x857   :  { %8297 = vmatmul.mubr.f32.gmra.mrb[220].mxu0 %v18913_v36 }
 0x858   :  { %16963 = vmatpush3.bf16.msra.mxu0 %v16960_v8  ;;  %8302 = vmatprep.mubr.f32.mxu0 %v17966_v0 }
 0x859   :  { %16965 = vmatprep.subr.bf16.mxu0 %v16964_v6 }
 0x85b   :  { %8303 = vmatmul.mubr.f32.gmra.mrb[222].mxu0 %v18920_v53 }
 0x85c   :  { %16967 = vmatpush3.bf16.msra.mxu0 %v16964_v6  ;;  %15212 = vmatprep.mubr.f32.mxu0 %v18861_v43 }
 0x85f   :  { %15213 = vmatmul.mubr.f32.vlgmr.msra.gmra.mrb[224].mxu0 %v18867_v34 }
 0x860   :  { %15215 = vmatprep.mubr.f32.mxu0 %v18878_v55 }
 0x863   :  { %15216 = vmatmul.mubr.f32.gmra.mrb[226].mxu0 %v18892_v33 }
 0x864   :  { %15218 = vmatprep.mubr.f32.mxu0 %v18900_v3 }
 0x867   :  { %15219 = vmatmul.mubr.f32.gmra.mrb[228].mxu0 %v18906_v62 }
 0x868   :  { %15221 = vmatprep.mubr.f32.mxu0 %v18913_v36  ;;  %v13062_v36 = vld [vmem:[#allocation12 + $0x1] ss:$0 sm:$0xff] }
 0x86b   :  { %15222 = vmatmul.mubr.f32.gmra.mrb[230].mxu0 %v18920_v53 }
 0x86c   :  { %15240 = vmatprep.mubr.msk.f32.mxu0 %vm954_vm0, %v8616_v14 }
 0x8a0   :  { %v8375_v46 = vpop.f32.mrb[88].mxu1  ;;  %v15142_v12 = vpop.f32.mrb[160].mxu0 }
 0x8a1   :  { %v8377_v43 = vpop.f32.mrb[89].mxu1  ;;  %v7629_v16 = vpop.f32.mrb[161].mxu0  ;;  %v7635_v40 = vadd.f32 %v15142_v12, %v13062_v36 }
 0x8a2   :  { %v7630_v61 = vadd.f32 %v13062_v36, %v7629_v16 }
 0x8a3   :  { %v13064_v10 = vclamps-f32 %v7635_v40, 256.0 }
 0x8a4   :  { %v8381_v34 = vpop.f32.mrb[90].mxu1  ;;  %v13063_v42 = vclamps-f32 %v7630_v61, 256.0 }
 0x8a5   :  { %v18984_v37 = vpack.c.bf16 %v8381_v34, %v8375_v46  ;;  %v8383_v55 = vpop.f32.mrb[91].mxu1 }
 0x8a6   :  { %v15145_v33 = vpop.f32.mrb[162].mxu0  ;;  %v18986_v24 = vpack.c.bf16 %v8383_v55, %v8377_v43 }
 0x8a7   :  { %v7639_v3 = vpop.f32.mrb[163].mxu0  ;;  %v7645_v38 = vadd.f32 %v15145_v33, %v13062_v36 }
 0x8a8   :  { %v8387_v62 = vpop.f32.mrb[92].mxu1  ;;  %v7640_v44 = vadd.f32 %v13062_v36, %v7639_v3 }
 0x8a9   :  { %v8389_v19 = vpop.f32.mrb[93].mxu1  ;;  %v13066_v32 = vclamps-f32 %v7645_v38, 256.0 }
 0x8aa   :  { %v15148_v23 = vpop.f32.mrb[164].mxu0  ;;  %v13065_v27 = vclamps-f32 %v7640_v44, 256.0 }
 0x8ab   :  { %v7649_v53 = vpop.f32.mrb[165].mxu0  ;;  %v7655_v5 = vadd.f32 %v15148_v23, %v13062_v36 }
 0x8ac   :  { %v8393_v25 = vpop.f32.mrb[94].mxu1  ;;  %v7650_v11 = vadd.f32 %v13062_v36, %v7649_v53 }
 0x8ad   :  { %v18988_v47 = vpack.c.bf16 %v8393_v25, %v8387_v62  ;;  %v8395_v30 = vpop.f32.mrb[95].mxu1  ;;  %v13068_v18 = vclamps-f32 %v7655_v5, 256.0  ;;  %v8617_v5 = vld [vmem:[#allocation6 + $0x6c8] sm:$0xff] }
 0x8ae   :  { %v15151_v48 = vpop.f32.mrb[166].mxu0  ;;  %v18990_v21 = vpack.c.bf16 %v8395_v30, %v8389_v19  ;;  %v13067_v20 = vclamps-f32 %v7650_v11, 256.0 }
 0x8af   :  { %v7659_v31 = vpop.f32.mrb[167].mxu0  ;;  %v7665_v63 = vadd.f32 %v15151_v48, %v13062_v36 }
 0x8b0   :  { %v8399_v17 = vpop.f32.mrb[96].mxu1  ;;  %v7660_v9 = vadd.f32 %v13062_v36, %v7659_v31 }
 0x8b1   :  { %v8401_v41 = vpop.f32.mrb[97].mxu1  ;;  %v13070_v8 = vclamps-f32 %v7665_v63, 256.0 }
 0x8b2   :  { %v15170_v58 = vpop.f32.mrb[168].mxu0  ;;  %v13069_v6 = vclamps-f32 %v7660_v9, 256.0 }
 0x8b3   :  { %v18992_v50 = vadd.f32 %v15170_v58, %v13064_v10  ;;  %v7774_v51 = vpop.f32.mrb[169].mxu0 }
 0x8b4   :  { %v18994_v1 = vadd.f32 %v13063_v42, %v7774_v51  ;;  %v8405_v60 = vpop.f32.mrb[98].mxu1 }
 0x8b5   :  { %v18996_v29 = vpack.c.bf16 %v8405_v60, %v8399_v17  ;;  %v8407_v54 = vpop.f32.mrb[99].mxu1 }
 0x8b6   :  { %v15173_v35 = vpop.f32.mrb[170].mxu0  ;;  %v18998_v49 = vpack.c.bf16 %v8407_v54, %v8401_v41 }
 0x8b7   :  { %v19000_v56 = vadd.f32 %v15173_v35, %v13066_v32  ;;  %v7784_v57 = vpop.f32.mrb[171].mxu0  ;;  %v8619_v35 = vld [vmem:[#allocation6 + $0x6d8] sm:$0xff] }
 0x8b8   :  { %v19002_v13 = vadd.f32 %v13065_v27, %v7784_v57  ;;  %v8411_v15 = vpop.f32.mrb[100].mxu1  ;;  %v8618_v27 = vld [vmem:[#allocation6 + $0x6d0] sm:$0xff] }
 0x8b9   :  { %v8413_v52 = vpop.f32.mrb[101].mxu1 }
 0x8ba   :  { %v15176_v4 = vpop.f32.mrb[172].mxu0 }
 0x8bb   :  { %v19004_v22 = vadd.f32 %v15176_v4, %v13068_v18  ;;  %v7794_v26 = vpop.f32.mrb[173].mxu0  ;;  %v8620_v18 = vld [vmem:[#allocation6 + $0x6e0] sm:$0xff]  ;;  %v8622_v4 = vld [vmem:[#allocation6 + $0x6f0] sm:$0xff] }
 0x8bc   :  { %v19006_v2 = vadd.f32 %v13067_v20, %v7794_v26  ;;  %v8417_v7 = vpop.f32.mrb[102].mxu1  ;;  %v8621_v20 = vld [vmem:[#allocation6 + $0x6e8] sm:$0xff] }
 0x8bd   :  { %v19008_v28 = vpack.c.bf16 %v8417_v7, %v8411_v15  ;;  %v8419_v59 = vpop.f32.mrb[103].mxu1  ;;  %v8623_v7 = vld [vmem:[#allocation6 + $0x6f8] sm:$0xff] }
 0x8be   :  { %v15179_v14 = vpop.f32.mrb[174].mxu0  ;;  %v19010_v46 = vpack.c.bf16 %v8419_v59, %v8413_v52 }
 0x8bf   :  { %v19012_v12 = vadd.f32 %v15179_v14, %v13070_v8  ;;  %v7804_v43 = vpop.f32.mrb[175].mxu0 }
 0x8c0   :  { %v19014_v16 = vadd.f32 %v13069_v6, %v7804_v43  ;;  %v8786_v6 = vld [vmem:[#allocation6 + $0x700] sm:$0xff]  ;;  %v8787_v43 = vld [vmem:[#allocation6 + $0x708] sm:$0xff] }
 0x8d2   :  { %v8036_v34 = vpop.f32.mrb[176].mxu0 }
 0x8d3   :  { %v8038_v55 = vpop.f32.mrb[177].mxu0 }
 0x8d6   :  { %v8042_v33 = vpop.f32.mrb[178].mxu0 }
 0x8d7   :  { %v16968_v3 = vpack.c.bf16 %v8042_v33, %v8036_v34  ;;  %v8044_v62 = vpop.f32.mrb[179].mxu0  ;;  %v10236_v34 = vld [vmem:[#allocation8 + $0x1208] sm:$0xff]  ;;  %v10235_v33 = vld [vmem:[#allocation8 + $0x1200] sm:$0xff] }
 0x8d8   :  { %v16984_v19 = vpack.c.bf16 %v8044_v62, %v8038_v55  ;;  %v10245_v55 = vld [vmem:[#allocation8 + $0x1250] sm:$0xff] }
 0x8d9   :  { %16969 = vmatprep.subr.bf16.mxu0 %v16968_v3  ;;  %v17112_v62 = vpack.c.bf16 %v10245_v55, %v10236_v34 }
 0x8da   :  { %v8048_v36 = vpop.f32.mrb[180].mxu0  ;;  %16971 = vmatpush3.bf16.msra.mxu0 %v16968_v3 }
 0x8db   :  { %v8050_v23 = vpop.f32.mrb[181].mxu0  ;;  %17113 = vmatprep.subr.bf16.mxu1 %v17112_v62  ;;  %v8957_v62 = vld [vmem:[#allocation6 + $0x748] sm:$0xff] }
 0x8de   :  { %v8054_v53 = vpop.f32.mrb[182].mxu0 }
 0x8df   :  { %v16972_v25 = vpack.c.bf16 %v8054_v53, %v8048_v36  ;;  %v8056_v40 = vpop.f32.mrb[183].mxu0  ;;  %v10254_v36 = vld [vmem:[#allocation8 + $0x1298] sm:$0xff] }
 0x8e0   :  { %v16988_v30 = vpack.c.bf16 %v8056_v40, %v8050_v23  ;;  %v10263_v23 = vld [vmem:[#allocation8 + $0x12e0] sm:$0xff] }
 0x8e1   :  { %16973 = vmatprep.subr.bf16.mxu0 %v16972_v25 }
 0x8e2   :  { %v8060_v61 = vpop.f32.mrb[184].mxu0  ;;  %16975 = vmatpush3.bf16.msra.mxu0 %v16972_v25  ;;  %v8788_v25 = vld [vmem:[#allocation6 + $0x710] sm:$0xff] }
 0x8e3   :  { %v8062_v48 = vpop.f32.mrb[185].mxu0 }
 0x8e6   :  { %v8066_v31 = vpop.f32.mrb[186].mxu0 }
 0x8e7   :  { %v16976_v17 = vpack.c.bf16 %v8066_v31, %v8060_v61  ;;  %v8068_v10 = vpop.f32.mrb[187].mxu0  ;;  %v10253_v61 = vld [vmem:[#allocation8 + $0x1290] sm:$0xff]  ;;  %v10272_v31 = vld [vmem:[#allocation8 + $0x1328] sm:$0xff] }
 0x8e8   :  { %v16992_v38 = vpack.c.bf16 %v8068_v10, %v8062_v48  ;;  %v10262_v48 = vld [vmem:[#allocation8 + $0x12d8] sm:$0xff] }
 0x8e9   :  { %16977 = vmatprep.subr.bf16.mxu0 %v16976_v17  ;;  %v17118_v10 = vpack.c.bf16 %v10262_v48, %v10253_v61 }
 0x8ea   :  { %v8072_v41 = vpop.f32.mrb[188].mxu0  ;;  %16979 = vmatpush3.bf16.msra.mxu0 %v16976_v17  ;;  %v10281_v17 = vld [vmem:[#allocation8 + $0x1370] sm:$0xff] }
 0x8eb   :  { %v8074_v42 = vpop.f32.mrb[189].mxu0 }
 0x8ee   :  { %v8078_v44 = vpop.f32.mrb[190].mxu0 }
 0x8ef   :  { %v16980_v58 = vpack.c.bf16 %v8078_v44, %v8072_v41  ;;  %v8080_v51 = vpop.f32.mrb[191].mxu0  ;;  %v8789_v41 = vld [vmem:[#allocation6 + $0x718] sm:$0xff]  ;;  %v10280_v44 = vld [vmem:[#allocation8 + $0x1368] sm:$0xff] }
 0x8f0   :  { %v16996_v60 = vpack.c.bf16 %v8080_v51, %v8074_v42  ;;  %v10271_v42 = vld [vmem:[#allocation8 + $0x1320] sm:$0xff] }
 0x8f1   :  { %16981 = vmatprep.subr.bf16.mxu0 %v16980_v58 }
 0x8f2   :  { %v8149_v32 = vpop.f32.mrb[192].mxu0  ;;  %16983 = vmatpush3.bf16.msra.mxu0 %v16980_v58 }
 0x8f3   :  { %v8151_v54 = vpop.f32.mrb[193].mxu0  ;;  %16985 = vmatprep.subr.bf16.mxu0 %v16984_v19 }
 0x8f5   :  { %15241 = vmatmul.mubr.msk.f32.vlgmr.msra.gmra.mrb[232].mxu0 %vm954_vm0, %v8617_v5 }
 0x8f6   :  { %v8155_v11 = vpop.f32.mrb[194].mxu0  ;;  %16987 = vmatpush3.bf16.msra.mxu0 %v16984_v19  ;;  %15243 = vmatprep.mubr.msk.f32.mxu0 %vm954_vm0, %v8618_v27  ;;  %v10244_v19 = vld [vmem:[#allocation8 + $0x1248] sm:$0xff]  ;;  %v10299_v27 = vld [vmem:[#allocation8 + $0x1400] sm:$0xff] }
 0x8f7   :  { %v17000_v57 = vpack.c.bf16 %v8155_v11, %v8149_v32  ;;  %v8157_v15 = vpop.f32.mrb[195].mxu0  ;;  %16989 = vmatprep.subr.bf16.mxu0 %v16988_v30  ;;  %v17114_v40 = vpack.c.bf16 %v10244_v19, %v10235_v33  ;;  %v17120_v32 = vpack.c.bf16 %v10281_v17, %v10272_v31  ;;  %v17122_v11 = vpack.c.bf16 %v10280_v44, %v10271_v42  ;;  %v8961_v31 = vld [vmem:[#allocation6 + $0x768] sm:$0xff]  ;;  %v9126_v44 = vld [vmem:[#allocation6 + $0x780] sm:$0xff] }
 0x8f8   :  { %v19018_v63 = vpack.c.bf16 %v8157_v15, %v8151_v54  ;;  %v10290_v54 = vld [vmem:[#allocation8 + $0x13b8] sm:$0xff] }
 0x8f9   :  { %15244 = vmatmul.mubr.msk.f32.gmra.mrb[234].mxu0 %vm954_vm0, %v8619_v35  ;;  %17115 = vmatpush1.bf16.msra.mxu1 %v17114_v40 }
 0x8fa   :  { %v8161_v52 = vpop.f32.mrb[196].mxu0  ;;  %16991 = vmatpush3.bf16.msra.mxu0 %v16988_v30  ;;  %15246 = vmatprep.mubr.msk.f32.mxu0 %vm954_vm0, %v8620_v18  ;;  %v17116_v30 = vpack.c.bf16 %v10263_v23, %v10254_v36  ;;  %v8792_v18 = vld [vmem:[#allocation6 + $0x730] sm:$0xff] }
 0x8fb   :  { %v8163_v9 = vpop.f32.mrb[197].mxu0  ;;  %16993 = vmatprep.subr.bf16.mxu0 %v16992_v38  ;;  %v8958_v36 = vld [vmem:[#allocation6 + $0x750] sm:$0xff] }
 0x8fc   :  { %17117 = vmatprep.subr.bf16.mxu1 %v17116_v30  ;;  %v8960_v30 = vld [vmem:[#allocation6 + $0x760] sm:$0xff] }
 0x8fd   :  { %15247 = vmatmul.mubr.msk.f32.gmra.mrb[236].mxu0 %vm954_vm0, %v8621_v20  ;;  %17119 = vmatpush1.bf16.msra.mxu1 %v17118_v10  ;;  %v10289_v20 = vld [vmem:[#allocation8 + $0x13b0] sm:$0xff] }
 0x8fe   :  { %v8167_v26 = vpop.f32.mrb[198].mxu0  ;;  %16995 = vmatpush3.bf16.msra.mxu0 %v16992_v38  ;;  %15249 = vmatprep.mubr.msk.f32.mxu0 %vm954_vm0, %v8622_v4  ;;  %v10308_v4 = vld [vmem:[#allocation8 + $0x1448] sm:$0xff] }
 0x8ff   :  { %v17004_v8 = vpack.c.bf16 %v8167_v26, %v8161_v52  ;;  %v8169_v59 = vpop.f32.mrb[199].mxu0  ;;  %16997 = vmatprep.subr.bf16.mxu0 %v16996_v60  ;;  %17121 = vmatprep.subr.bf16.mxu1 %v17120_v32  ;;  %v17124_v52 = vpack.c.bf16 %v10299_v27, %v10290_v54  ;;  %v10317_v26 = vld [vmem:[#allocation8 + $0x1490] sm:$0xff]  ;;  %v9129_v54 = vld [vmem:[#allocation6 + $0x798] sm:$0xff] }
 0x900   :  { %v19024_v14 = vpack.c.bf16 %v8169_v59, %v8163_v9  ;;  %v10298_v9 = vld [vmem:[#allocation8 + $0x13f8] sm:$0xff]  ;;  %v17128_v33 = vpack.c.bf16 %v10317_v26, %v10308_v4  ;;  %v9128_v32 = vld [vmem:[#allocation6 + $0x790] sm:$0xff] }
 0x901   :  { %15250 = vmatmul.mubr.msk.f32.gmra.mrb[238].mxu0 %vm954_vm0, %v8623_v7  ;;  %17123 = vmatpush1.bf16.msra.mxu1 %v17122_v11  ;;  %v17126_v34 = vpack.c.bf16 %v10298_v9, %v10289_v20  ;;  %v9132_v20 = vld [vmem:[#allocation6 + $0x7b0] sm:$0xff]  ;;  %v9133_v4 = vld [vmem:[#allocation6 + $0x7b8] sm:$0xff] }
 0x902   :  { %v8173_v3 = vpop.f32.mrb[200].mxu0  ;;  %16999 = vmatpush3.bf16.msra.mxu0 %v16996_v60  ;;  %15268 = vmatprep.mubr.msk.f32.mxu0 %vm954_vm0, %v8786_v6  ;;  %v8790_v60 = vld [vmem:[#allocation6 + $0x720] sm:$0xff] }
 0x903   :  { %v8175_v53 = vpop.f32.mrb[201].mxu0  ;;  %17001 = vmatprep.subr.bf16.mxu0 %v17000_v57  ;;  %17125 = vmatprep.subr.bf16.mxu1 %v17124_v52 }
 0x905   :  { %15269 = vmatmul.mubr.msk.f32.vlgmr.msra.gmra.mrb[232].mxu0 %vm954_vm0, %v8787_v43  ;;  %v8956_v43 = vld [vmem:[#allocation6 + $0x740] sm:$0xff]  ;;  %17127 = vmatpush1.bf16.msra.mxu1 %v17126_v34 }
 0x906   :  { %v8179_v38 = vpop.f32.mrb[202].mxu0  ;;  %17003 = vmatpush3.bf16.msra.mxu0 %v17000_v57  ;;  %15271 = vmatprep.mubr.msk.f32.mxu0 %vm954_vm0, %v8788_v25  ;;  %v8791_v57 = vld [vmem:[#allocation6 + $0x728] sm:$0xff] }
 0x907   :  { %v17008_v58 = vpack.c.bf16 %v8179_v38, %v8173_v3  ;;  %v8181_v51 = vpop.f32.mrb[203].mxu0  ;;  %17005 = vmatprep.subr.bf16.mxu0 %v17004_v8  ;;  %17129 = vmatprep.subr.bf16.mxu1 %v17128_v33  ;;  %v8963_v38 = vld [vmem:[#allocation6 + $0x778] sm:$0xff] }
 0x908   :  { %v17024_v5 = vpack.c.bf16 %v8181_v51, %v8175_v53  ;;  %v8959_v53 = vld [vmem:[#allocation6 + $0x758] sm:$0xff]  ;;  %v9127_v51 = vld [vmem:[#allocation6 + $0x788] sm:$0xff] }
 0x909   :  { %15272 = vmatmul.mubr.msk.f32.gmra.mrb[234].mxu0 %vm954_vm0, %v8789_v41 }
 0x90a   :  { %v8185_v35 = vpop.f32.mrb[204].mxu0  ;;  %17007 = vmatpush3.bf16.msra.mxu0 %v17004_v8  ;;  %15274 = vmatprep.mubr.msk.f32.mxu0 %vm954_vm0, %v8790_v60  ;;  %v8793_v8 = vld [vmem:[#allocation6 + $0x738] sm:$0xff] }
 0x90b   :  { %v8187_v15 = vpop.f32.mrb[205].mxu0  ;;  %17009 = vmatprep.subr.bf16.mxu0 %v17008_v58 }
 0x90d   :  { %15275 = vmatmul.mubr.msk.f32.gmra.mrb[236].mxu0 %vm954_vm0, %v8791_v57 }
 0x90e   :  { %v8191_v7 = vpop.f32.mrb[206].mxu0  ;;  %17011 = vmatpush3.bf16.msra.mxu0 %v17008_v58  ;;  %15277 = vmatprep.mubr.msk.f32.mxu0 %vm954_vm0, %v8792_v18  ;;  %v9131_v18 = vld [vmem:[#allocation6 + $0x7a8] sm:$0xff] }
 0x90f   :  { %v17012_v59 = vpack.c.bf16 %v8191_v7, %v8185_v35  ;;  %v8193_v6 = vpop.f32.mrb[207].mxu0  ;;  %v9130_v35 = vld [vmem:[#allocation6 + $0x7a0] sm:$0xff] }
 0x910   :  { %v17028_v55 = vpack.c.bf16 %v8193_v6, %v8187_v15 }
 0x911   :  { %15278 = vmatmul.mubr.msk.f32.gmra.mrb[238].mxu0 %vm954_vm0, %v8793_v8  ;;  %17013 = vmatprep.subr.bf16.mxu0 %v17012_v59  ;;  %v9296_v8 = vld [vmem:[#allocation6 + $0x7c0] sm:$0xff] }
 0x912   :  { %v8262_v3 = vpop.f32.mrb[208].mxu0  ;;  %17015 = vmatpush3.bf16.msra.mxu0 %v17012_v59  ;;  %15296 = vmatprep.mubr.msk.f32.mxu0 %vm954_vm0, %v8956_v43  ;;  %v9297_v43 = vld [vmem:[#allocation6 + $0x7c8] sm:$0xff] }
 0x913   :  { %v8264_v19 = vpop.f32.mrb[209].mxu0  ;;  %17017 = vmatprep.subr.bf16.mxu0 %v19018_v63 }
 0x915   :  { %15297 = vmatmul.mubr.msk.f32.vlgmr.msra.gmra.mrb[232].mxu0 %vm954_vm0, %v8957_v62  ;;  %v9299_v62 = vld [vmem:[#allocation6 + $0x7d8] sm:$0xff] }
 0x916   :  { %v8268_v23 = vpop.f32.mrb[210].mxu0  ;;  %17019 = vmatpush3.bf16.msra.mxu0 %v19018_v63  ;;  %15299 = vmatprep.mubr.msk.f32.mxu0 %vm954_vm0, %v8958_v36  ;;  %v8962_v63 = vld [vmem:[#allocation6 + $0x770] sm:$0xff]  ;;  %v9300_v36 = vld [vmem:[#allocation6 + $0x7e0] sm:$0xff] }
 0x917   :  { %v17032_v25 = vpack.c.bf16 %v8268_v23, %v8262_v3  ;;  %v8270_v40 = vpop.f32.mrb[211].mxu0  ;;  %17021 = vmatprep.subr.bf16.mxu0 %v19024_v14 }
 0x918   :  { %v19041_v61 = vpack.c.bf16 %v8270_v40, %v8264_v19 }
 0x919   :  { %15300 = vmatmul.mubr.msk.f32.gmra.mrb[234].mxu0 %vm954_vm0, %v8959_v53 }
 0x91a   :  { %v8274_v48 = vpop.f32.mrb[212].mxu0  ;;  %17023 = vmatpush3.bf16.msra.mxu0 %v19024_v14  ;;  %15302 = vmatprep.mubr.msk.f32.mxu0 %vm954_vm0, %v8960_v30  ;;  %v9302_v30 = vld [vmem:[#allocation6 + $0x7f0] sm:$0xff] }
 0x91b   :  { %v8276_v17 = vpop.f32.mrb[213].mxu0  ;;  %17025 = vmatprep.subr.bf16.mxu0 %v17024_v5 }
 0x91d   :  { %15303 = vmatmul.mubr.msk.f32.gmra.mrb[236].mxu0 %vm954_vm0, %v8961_v31  ;;  %v9303_v31 = vld [vmem:[#allocation6 + $0x7f8] sm:$0xff] }
 0x91e   :  { %v8280_v10 = vpop.f32.mrb[214].mxu0  ;;  %17027 = vmatpush3.bf16.msra.mxu0 %v17024_v5  ;;  %15305 = vmatprep.mubr.msk.f32.mxu0 %vm954_vm0, %v8962_v63  ;;  %v9466_v63 = vld [vmem:[#allocation6 + $0x800] sm:$0xff] }
 0x91f   :  { %v17036_v41 = vpack.c.bf16 %v8280_v10, %v8274_v48  ;;  %v8282_v42 = vpop.f32.mrb[215].mxu0  ;;  %17029 = vmatprep.subr.bf16.mxu0 %v17028_v55 }
 0x920   :  { %v17052_v58 = vpack.c.bf16 %v8282_v42, %v8276_v17  ;;  %v9469_v42 = vld [vmem:[#allocation6 + $0x818] sm:$0xff] }
 0x921   :  { %15306 = vmatmul.mubr.msk.f32.gmra.mrb[238].mxu0 %vm954_vm0, %v8963_v38  ;;  %v9467_v38 = vld [vmem:[#allocation6 + $0x808] sm:$0xff] }
 0x922   :  { %v8286_v14 = vpop.f32.mrb[216].mxu0  ;;  %17031 = vmatpush3.bf16.msra.mxu0 %v17028_v55  ;;  %15324 = vmatprep.mubr.msk.f32.mxu0 %vm954_vm0, %v9126_v44  ;;  %v9298_v55 = vld [vmem:[#allocation6 + $0x7d0] sm:$0xff]  ;;  %v9470_v44 = vld [vmem:[#allocation6 + $0x820] sm:$0xff] }
 0x923   :  { %v8288_v60 = vpop.f32.mrb[217].mxu0  ;;  %17033 = vmatprep.subr.bf16.mxu0 %v17032_v25 }
 0x925   :  { %15325 = vmatmul.mubr.msk.f32.vlgmr.msra.gmra.mrb[232].mxu0 %vm954_vm0, %v9127_v51  ;;  %v9636_v51 = vld [vmem:[#allocation6 + $0x840] sm:$0xff] }
 0x926   :  { %v8292_v5 = vpop.f32.mrb[218].mxu0  ;;  %17035 = vmatpush3.bf16.msra.mxu0 %v17032_v25  ;;  %15327 = vmatprep.mubr.msk.f32.mxu0 %vm954_vm0, %v9128_v32  ;;  %v9301_v25 = vld [vmem:[#allocation6 + $0x7e8] sm:$0xff]  ;;  %v9640_v32 = vld [vmem:[#allocation6 + $0x860] sm:$0xff] }
 0x927   :  { %v17040_v27 = vpack.c.bf16 %v8292_v5, %v8286_v14  ;;  %v8294_v11 = vpop.f32.mrb[219].mxu0  ;;  %17037 = vmatprep.subr.bf16.mxu0 %v17036_v41  ;;  %v9472_v14 = vld [vmem:[#allocation6 + $0x830] sm:$0xff] }
 0x928   :  { %v17056_v57 = vpack.c.bf16 %v8294_v11, %v8288_v60  ;;  %v9638_v60 = vld [vmem:[#allocation6 + $0x850] sm:$0xff]  ;;  %v9810_v11 = vld [vmem:[#allocation6 + $0x8a0] sm:$0xff] }
 0x929   :  { %15328 = vmatmul.mubr.msk.f32.gmra.mrb[234].mxu0 %vm954_vm0, %v9129_v54  ;;  %v9642_v5 = vld [vmem:[#allocation6 + $0x870] sm:$0xff]  ;;  %v9806_v54 = vld [vmem:[#allocation6 + $0x880] sm:$0xff] }
 0x92a   :  { %v8298_v15 = vpop.f32.mrb[220].mxu0  ;;  %17039 = vmatpush3.bf16.msra.mxu0 %v17036_v41  ;;  %15330 = vmatprep.mubr.msk.f32.mxu0 %vm954_vm0, %v9130_v35  ;;  %v9468_v41 = vld [vmem:[#allocation6 + $0x810] sm:$0xff] }
 0x92b   :  { %v8300_v52 = vpop.f32.mrb[221].mxu0  ;;  %17041 = vmatprep.subr.bf16.mxu0 %v17040_v27  ;;  %v9812_v35 = vld [vmem:[#allocation6 + $0x8b0] sm:$0xff] }
 0x92d   :  { %15331 = vmatmul.mubr.msk.f32.gmra.mrb[236].mxu0 %vm954_vm0, %v9131_v18  ;;  %v9977_v18 = vld [vmem:[#allocation6 + $0x8c8] sm:$0xff] }
 0x92e   :  { %v8304_v9 = vpop.f32.mrb[222].mxu0  ;;  %17043 = vmatpush3.bf16.msra.mxu0 %v17040_v27  ;;  %15333 = vmatprep.mubr.msk.f32.mxu0 %vm954_vm0, %v9132_v20  ;;  %v9808_v27 = vld [vmem:[#allocation6 + $0x890] sm:$0xff]  ;;  %v9979_v20 = vld [vmem:[#allocation6 + $0x8d8] sm:$0xff] }
 0x92f   :  { %v17044_v26 = vpack.c.bf16 %v8304_v9, %v8298_v15  ;;  %v8306_v7 = vpop.f32.mrb[223].mxu0  ;;  %v9976_v15 = vld [vmem:[#allocation6 + $0x8c0] sm:$0xff] }
 0x930   :  { %v17060_v59 = vpack.c.bf16 %v8306_v7, %v8300_v52  ;;  %v9978_v52 = vld [vmem:[#allocation6 + $0x8d0] sm:$0xff]  ;;  %v9980_v9 = vld [vmem:[#allocation6 + $0x8e0] sm:$0xff]  ;;  %v9983_v7 = vld [vmem:[#allocation6 + $0x8f8] sm:$0xff] }
 0x931   :  { %15334 = vmatmul.mubr.msk.f32.gmra.mrb[238].mxu0 %vm954_vm0, %v9133_v4  ;;  %17045 = vmatprep.subr.bf16.mxu0 %v17044_v26  ;;  %v9981_v4 = vld [vmem:[#allocation6 + $0x8e8] sm:$0xff] }
 0x932   :  { %v15214_v6 = vpop.f32.mrb[224].mxu0  ;;  %17047 = vmatpush3.bf16.msra.mxu0 %v17044_v26  ;;  %15352 = vmatprep.mubr.msk.f32.mxu0 %vm954_vm0, %v9296_v8  ;;  %v9982_v26 = vld [vmem:[#allocation6 + $0x8f0] sm:$0xff]  ;;  %v10307_v8 = vld [vmem:[#allocation8 + $0x1440] sm:$0xff] }
 0x933   :  { %v8488_v34 = vpop.f32.mrb[225].mxu0  ;;  %17049 = vmatprep.subr.bf16.mxu0 %v19041_v61 }
 0x934   :  { %v19059_v33 = vpack.c.bf16 %v15214_v6, %v8488_v34  ;;  %v10335_v34 = vld [vmem:[#allocation8 + $0x1520] sm:$0xff] }
 0x935   :  { %15353 = vmatmul.mubr.msk.f32.vlgmr.msra.gmra.mrb[232].mxu0 %vm954_vm0, %v9297_v43  ;;  %v10326_v43 = vld [vmem:[#allocation8 + $0x14d8] sm:$0xff] }
 0x936   :  { %v15217_v3 = vpop.f32.mrb[226].mxu0  ;;  %17051 = vmatpush3.bf16.msra.mxu0 %v19041_v61  ;;  %15355 = vmatprep.mubr.msk.f32.mxu0 %vm954_vm0, %v9298_v55  ;;  %v17132_v55 = vpack.c.bf16 %v10335_v34, %v10326_v43 }
 0x937   :  { %v8498_v19 = vpop.f32.mrb[227].mxu0  ;;  %17053 = vmatprep.subr.bf16.mxu0 %v17052_v58 }
 0x938   :  { %v19064_v23 = vpack.c.bf16 %v15217_v3, %v8498_v19  ;;  %v10334_v3 = vld [vmem:[#allocation8 + $0x1518] sm:$0xff]  ;;  %v10344_v19 = vld [vmem:[#allocation8 + $0x1568] sm:$0xff] }
 0x939   :  { %15356 = vmatmul.mubr.msk.f32.gmra.mrb[234].mxu0 %vm954_vm0, %v9299_v62 }
 0x93a   :  { %v15220_v53 = vpop.f32.mrb[228].mxu0  ;;  %17055 = vmatpush3.bf16.msra.mxu0 %v17052_v58  ;;  %15358 = vmatprep.mubr.msk.f32.mxu0 %vm954_vm0, %v9300_v36  ;;  %v9471_v58 = vld [vmem:[#allocation6 + $0x828] sm:$0xff]  ;;  %v10353_v36 = vld [vmem:[#allocation8 + $0x15b0] sm:$0xff] }
 0x93b   :  { %v8508_v40 = vpop.f32.mrb[229].mxu0  ;;  %17057 = vmatprep.subr.bf16.mxu0 %v17056_v57 }
 0x93c   :  { %v19068_v48 = vpack.c.bf16 %v15220_v53, %v8508_v40  ;;  %v10343_v53 = vld [vmem:[#allocation8 + $0x1560] sm:$0xff] }
 0x93d   :  { %15359 = vmatmul.mubr.msk.f32.gmra.mrb[236].mxu0 %vm954_vm0, %v9301_v25  ;;  %v10352_v25 = vld [vmem:[#allocation8 + $0x15a8] sm:$0xff] }
 0x93e   :  { %v15223_v61 = vpop.f32.mrb[230].mxu0  ;;  %17059 = vmatpush3.bf16.msra.mxu0 %v17056_v57  ;;  %15361 = vmatprep.mubr.msk.f32.mxu0 %vm954_vm0, %v9302_v30  ;;  %v9813_v57 = vld [vmem:[#allocation6 + $0x8b8] sm:$0xff]  ;;  %v17138_v40 = vpack.c.bf16 %v10352_v25, %v10343_v53 }
 0x93f   :  { %v8518_v17 = vpop.f32.mrb[231].mxu0  ;;  %17061 = vmatprep.subr.bf16.mxu0 %v17060_v59  ;;  %v10362_v30 = vld [vmem:[#allocation8 + $0x15f8] sm:$0xff] }
 0x940   :  { %v19072_v10 = vpack.c.bf16 %v15223_v61, %v8518_v17  ;;  %v10370_v17 = vld [vmem:[#allocation8 + $0x1638] sm:$0xff] }
 0x941   :  { %15362 = vmatmul.mubr.msk.f32.gmra.mrb[238].mxu0 %vm954_vm0, %v9303_v31  ;;  %v10361_v31 = vld [vmem:[#allocation8 + $0x15f0] sm:$0xff] }
 0x942   :  { %17063 = vmatpush3.bf16.msra.mxu0 %v17060_v59  ;;  %15380 = vmatprep.mubr.msk.f32.mxu0 %vm954_vm0, %v9466_v63  ;;  %v10316_v59 = vld [vmem:[#allocation8 + $0x1488] sm:$0xff]  ;;  %v17142_v63 = vpack.c.bf16 %v10370_v17, %v10361_v31  ;;  %v10255_v17 = vld [vmem:[#allocation8 + $0x12a0] sm:$0xff] }
 0x943   :  { %17065 = vmatprep.subr.bf16.mxu0 %v18984_v37  ;;  %v17130_v6 = vpack.c.bf16 %v10316_v59, %v10307_v8 }
 0x945   :  { %15381 = vmatmul.mubr.msk.f32.vlgmr.msra.gmra.mrb[232].mxu0 %vm954_vm0, %v9467_v38  ;;  %17131 = vmatpush1.bf16.msra.mxu1 %v17130_v6  ;;  %v10247_v38 = vld [vmem:[#allocation8 + $0x1260] sm:$0xff]  ;;  %v10246_v6 = vld [vmem:[#allocation8 + $0x1258] sm:$0xff] }
 0x946   :  { %17067 = vmatpush3.bf16.msra.mxu0 %v18984_v37  ;;  %15383 = vmatprep.mubr.msk.f32.mxu0 %vm954_vm0, %v9468_v41  ;;  %v9473_v37 = vld [vmem:[#allocation6 + $0x838] sm:$0xff] }
 0x947   :  { %17069 = vmatprep.subr.bf16.mxu0 %v18988_v47  ;;  %17133 = vmatprep.subr.bf16.mxu1 %v17132_v55 }
 0x949   :  { %15384 = vmatmul.mubr.msk.f32.gmra.mrb[234].mxu0 %vm954_vm0, %v9469_v42  ;;  %v17787_v42 = vld [vmem:[%s19389_s1] sm:$0xff] }
 0x94a   :  { %17071 = vmatpush3.bf16.msra.mxu0 %v18988_v47  ;;  %15386 = vmatprep.mubr.msk.f32.mxu0 %vm954_vm0, %v9470_v44  ;;  %v9637_v47 = vld [vmem:[#allocation6 + $0x848] sm:$0xff]  ;;  %v19136_v44 = vrot.slane %v17787_v42, %v7815_v45  ;;  %v10274_v42 = vld [vmem:[#allocation8 + $0x1338] sm:$0xff] }
 0x94b   :  { %17073 = vmatprep.subr.bf16.mxu0 %v18996_v29 }
 0x94d   :  { %15387 = vmatmul.mubr.msk.f32.gmra.mrb[236].mxu0 %vm954_vm0, %v9471_v58 }
 0x94e   :  { %17075 = vmatpush3.bf16.msra.mxu0 %v18996_v29  ;;  %15389 = vmatprep.mubr.msk.f32.mxu0 %vm954_vm0, %v9472_v14  ;;  %v9639_v29 = vld [vmem:[#allocation6 + $0x858] sm:$0xff]  ;;  %v10159_v14 = vld [vmem:[#allocation9 + $0xc8] sm:$0xff] }
 0x94f   :  { %17077 = vmatprep.subr.bf16.mxu0 %v19008_v28 }
 0x951   :  { %15390 = vmatmul.mubr.msk.f32.gmra.mrb[238].mxu0 %vm954_vm0, %v9473_v37 }
 0x952   :  { %17079 = vmatpush3.bf16.msra.mxu0 %v19008_v28  ;;  %15408 = vmatprep.mubr.msk.f32.mxu0 %vm954_vm0, %v9636_v51  ;;  %v9641_v28 = vld [vmem:[#allocation6 + $0x868] sm:$0xff] }
 0x953   :  { %17081 = vmatprep.subr.bf16.mxu0 %v18986_v24 }
 0x955   :  { %15409 = vmatmul.mubr.msk.f32.vlgmr.msra.gmra.mrb[232].mxu0 %vm954_vm0, %v9637_v47  ;;  %v10158_v47 = vld [vmem:[#allocation9 + $0xc0] sm:$0xff] }
 0x956   :  { %17083 = vmatpush3.bf16.msra.mxu0 %v18986_v24  ;;  %15411 = vmatprep.mubr.msk.f32.mxu0 %vm954_vm0, %v9638_v60  ;;  %v9643_v24 = vld [vmem:[#allocation6 + $0x878] sm:$0xff] }
 0x957   :  { %17085 = vmatprep.subr.bf16.mxu0 %v18990_v21 }
 0x959   :  { %15412 = vmatmul.mubr.msk.f32.gmra.mrb[234].mxu0 %vm954_vm0, %v9639_v29 }
 0x95a   :  { %17087 = vmatpush3.bf16.msra.mxu0 %v18990_v21  ;;  %15414 = vmatprep.mubr.msk.f32.mxu0 %vm954_vm0, %v9640_v32  ;;  %v9807_v21 = vld [vmem:[#allocation6 + $0x888] sm:$0xff] }
 0x95b   :  { %17089 = vmatprep.subr.bf16.mxu0 %v18998_v49 }
 0x95d   :  { %15415 = vmatmul.mubr.msk.f32.gmra.mrb[236].mxu0 %vm954_vm0, %v9641_v28 }
 0x95e   :  { %17091 = vmatpush3.bf16.msra.mxu0 %v18998_v49  ;;  %15417 = vmatprep.mubr.msk.f32.mxu0 %vm954_vm0, %v9642_v5  ;;  %v9809_v49 = vld [vmem:[#allocation6 + $0x898] sm:$0xff] }
 0x95f   :  { %17093 = vmatprep.subr.bf16.mxu0 %v19010_v46  ;;  %v10161_v5 = vld [vmem:[#allocation9 + $0xd8] sm:$0xff] }
 0x961   :  { %15418 = vmatmul.mubr.msk.f32.gmra.mrb[238].mxu0 %vm954_vm0, %v9643_v24 }
 0x962   :  { %17095 = vmatpush3.bf16.msra.mxu0 %v19010_v46  ;;  %15436 = vmatprep.mubr.msk.f32.mxu0 %vm954_vm0, %v9806_v54  ;;  %v9811_v46 = vld [vmem:[#allocation6 + $0x8a8] sm:$0xff]  ;;  %v10224_v54 = vsub.s32 4, %v18125_v39 }
 0x963   :  { %17097 = vmatprep.subr.bf16.mxu0 %v19059_v33 }
 0x965   :  { %15437 = vmatmul.mubr.msk.f32.vlgmr.msra.gmra.mrb[232].mxu0 %vm954_vm0, %v9807_v21 }
 0x966   :  { %17099 = vmatpush3.bf16.msra.mxu0 %v19059_v33  ;;  %15439 = vmatprep.mubr.msk.f32.mxu0 %vm954_vm0, %v9808_v27  ;;  %v10325_v33 = vld [vmem:[#allocation8 + $0x14d0] sm:$0xff] }
 0x967   :  { %17101 = vmatprep.subr.bf16.mxu0 %v19064_v23  ;;  %v17134_v62 = vpack.c.bf16 %v10334_v3, %v10325_v33  ;;  %v10160_v27 = vld [vmem:[#allocation9 + $0xd0] sm:$0xff]  ;;  %v10256_v33 = vld [vmem:[#allocation8 + $0x12a8] sm:$0xff] }
 0x968   :  { %v10265_v3 = vld [vmem:[#allocation8 + $0x12f0] sm:$0xff] }
 0x969   :  { %15440 = vmatmul.mubr.msk.f32.gmra.mrb[234].mxu0 %vm954_vm0, %v9809_v49  ;;  %17135 = vmatpush1.bf16.msra.mxu1 %v17134_v62  ;;  %v17148_v31 = vpack.c.bf16 %v10265_v3, %v10256_v33  ;;  %v10309_v3 = vld [vmem:[#allocation8 + $0x1450] sm:$0xff] }
 0x96a   :  { %17103 = vmatpush3.bf16.msra.mxu0 %v19064_v23  ;;  %15442 = vmatprep.mubr.msk.f32.mxu0 %vm954_vm0, %v9810_v11  ;;  %v17136_v23 = vpack.c.bf16 %v10353_v36, %v10344_v19  ;;  %v10163_v19 = vld [vmem:[#allocation9 + $0xe8] sm:$0xff] }
 0x96b   :  { %17105 = vmatprep.subr.bf16.mxu0 %v19068_v48 }
 0x96c   :  { %17137 = vmatprep.subr.bf16.mxu1 %v17136_v23 }
 0x96d   :  { %15443 = vmatmul.mubr.msk.f32.gmra.mrb[236].mxu0 %vm954_vm0, %v9811_v46  ;;  %17139 = vmatpush1.bf16.msra.mxu1 %v17138_v40 }
 0x96e   :  { %17107 = vmatpush3.bf16.msra.mxu0 %v19068_v48  ;;  %15445 = vmatprep.mubr.msk.f32.mxu0 %vm954_vm0, %v9812_v35  ;;  %v10371_v48 = vld [vmem:[#allocation8 + $0x1640] sm:$0xff] }
 0x96f   :  { %17109 = vmatprep.subr.bf16.mxu0 %v19072_v10  ;;  %v17140_v61 = vpack.c.bf16 %v10371_v48, %v10362_v30 }
 0x971   :  { %15446 = vmatmul.mubr.msk.f32.gmra.mrb[238].mxu0 %vm954_vm0, %v9813_v57  ;;  %17141 = vmatprep.subr.bf16.mxu1 %v17140_v61 }
 0x972   :  { %17111 = vmatpush3.bf16.msra.mxu0 %v19072_v10  ;;  %15464 = vmatprep.mubr.msk.f32.mxu0 %vm954_vm0, %v9976_v15  ;;  %v10238_v10 = vld [vmem:[#allocation8 + $0x1218] sm:$0xff] }
 0x973   :  { %17143 = vmatpush1.bf16.msra.mxu1 %v17142_v63  ;;  %v17144_v41 = vpack.c.bf16 %v10247_v38, %v10238_v10  ;;  %v10264_v63 = vld [vmem:[#allocation8 + $0x12e8] sm:$0xff] }
 0x975   :  { %15465 = vmatmul.mubr.msk.f32.vlgmr.msra.gmra.mrb[232].mxu0 %vm954_vm0, %v9977_v18  ;;  %17145 = vmatprep.subr.bf16.mxu1 %v17144_v41 }
 0x976   :  { %15467 = vmatprep.mubr.msk.f32.mxu0 %vm954_vm0, %v9978_v52 }
 0x979   :  { %15468 = vmatmul.mubr.msk.f32.gmra.mrb[234].mxu0 %vm954_vm0, %v9979_v20  ;;  %v10162_v20 = vld [vmem:[#allocation9 + $0xe0] sm:$0xff] }
 0x97a   :  { %15470 = vmatprep.mubr.msk.f32.mxu0 %vm954_vm0, %v9980_v9  ;;  %v10237_v9 = vld [vmem:[#allocation8 + $0x1210] sm:$0xff] }
 0x97b   :  { %v17146_v25 = vpack.c.bf16 %v10246_v6, %v10237_v9 }
 0x97d   :  { %15471 = vmatmul.mubr.msk.f32.gmra.mrb[236].mxu0 %vm954_vm0, %v9981_v4  ;;  %v17788_v4 = vld [vmem:[%s19388_s0] sm:$0xff] }
 0x97e   :  { %15473 = vmatprep.mubr.msk.f32.mxu0 %vm954_vm0, %v9982_v26  ;;  %v19148_v26 = vrot.slane %v17788_v4, %v10224_v54 }
 0x981   :  { %15474 = vmatmul.mubr.msk.f32.gmra.mrb[238].mxu0 %vm954_vm0, %v9983_v7 }
 0xa48   :  { %v15466_v58 = vpop.f32.mrb[232].mxu0 }
 0xa49   :  { %v10150_v37 = vmul.f32 %v15466_v58, %v19136_v44  ;;  %v10082_v51 = vpop.f32.mrb[233].mxu0  ;;  %v10283_v58 = vld [vmem:[#allocation8 + $0x1380] sm:$0xff] }
 0xa4a   :  { %v10149_v60 = vmul.f32 %v19136_v44, %v10082_v51  ;;  %v17150_v51 = vpack.c.bf16 %v10264_v63, %v10255_v17  ;;  %v10327_v17 = vld [vmem:[#allocation8 + $0x14e0] sm:$0xff]  ;;  %v10336_v63 = vld [vmem:[#allocation8 + $0x1528] sm:$0xff] }
 0xa4b   :  { %v10167_v29 = vadd.f32 %v10159_v14, %v10150_v37  ;;  %v10164_v37 = vld [vmem:[#allocation9 + $0xf0] sm:$0xff] }
 0xa4c   :  { %v10166_v32 = vadd.f32 %v10158_v47, %v10149_v60  ;;  %v15469_v28 = vpop.f32.mrb[234].mxu0 }
 0xa4d   :  { %vm10175_vm10 = vcmp.ge.f32.partialorder %v10167_v29, 0.0  ;;  %v10183_v24 = vmul.f32 0.2, %v10167_v29  ;;  %v10152_v21 = vmul.f32 %v15469_v28, %v19136_v44  ;;  %v10092_v45 = vpop.f32.mrb[235].mxu0  ;;  %v10273_v28 = vld [vmem:[#allocation8 + $0x1330] sm:$0xff] }
 0xa4e   :  { %vm10174_vm11 = vcmp.ge.f32.partialorder %v10166_v32, 0.0  ;;  %v10182_v49 = vmul.f32 0.2, %v10166_v32  ;;  %v10151_v11 = vmul.f32 %v19136_v44, %v10092_v45 }
 0xa4f   :  { %v10191_v46 = vsel %vm10175_vm10, %v10167_v29, %v10183_v24  ;;  %v10169_v35 = vadd.f32 %v10161_v5, %v10152_v21  ;;  %v10282_v5 = vld [vmem:[#allocation8 + $0x1378] sm:$0xff] }
 0xa50   :  { %v10199_v57 = vmul.f32 1.4142135, %v10191_v46  ;;  %v10190_v15 = vsel %vm10174_vm11, %v10166_v32, %v10182_v49  ;;  %v10168_v18 = vadd.f32 %v10160_v27, %v10151_v11  ;;  %v15472_v52 = vpop.f32.mrb[236].mxu0  ;;  %v17152_v32 = vpack.c.bf16 %v10283_v58, %v10274_v42  ;;  %v10292_v49 = vld [vmem:[#allocation8 + $0x13c8] sm:$0xff]  ;;  %v10301_v11 = vld [vmem:[#allocation8 + $0x1410] sm:$0xff]  ;;  %v10165_v46 = vld [vmem:[#allocation9 + $0xf8] sm:$0xff] }
 0xa51   :  { %v10198_v7 = vmul.f32 1.4142135, %v10190_v15  ;;  %v10185_v8 = vmul.f32 0.2, %v10169_v35  ;;  %v10102_v59 = vpop.f32.mrb[237].mxu0  ;;  %v10154_v34 = vmul.f32 %v15472_v52, %v19136_v44  ;;  %vm10177_vm13 = vcmp.ge.f32.partialorder %v10169_v35, 0.0 }
 0xa52   :  { %vm10176_vm12 = vcmp.ge.f32.partialorder %v10168_v18, 0.0  ;;  %v10184_v43 = vmul.f32 0.2, %v10168_v18  ;;  %v10153_v55 = vmul.f32 %v19136_v44, %v10102_v59  ;;  %v13152_v40 = vclamps-f32 %v10199_v57, 256.0  ;;  %v10319_v59 = vld [vmem:[#allocation8 + $0x14a0] sm:$0xff] }
 0xa53   :  { %v13151_v62 = vclamps-f32 %v10198_v7, 256.0  ;;  %v10193_v10 = vsel %vm10177_vm13, %v10169_v35, %v10185_v8  ;;  %v10171_v38 = vadd.f32 %v10163_v19, %v10154_v34  ;;  %v17154_v35 = vpack.c.bf16 %v10282_v5, %v10273_v28  ;;  %v10310_v8 = vld [vmem:[#allocation8 + $0x1458] sm:$0xff]  ;;  %v10373_v28 = vld [vmem:[#allocation8 + $0x1650] sm:$0xff] }
 0xa54   :  { %v10192_v36 = vsel %vm10176_vm12, %v10168_v18, %v10184_v43  ;;  %v10170_v23 = vadd.f32 %v10162_v20, %v10153_v55  ;;  %v15475_v53 = vpop.f32.mrb[238].mxu0  ;;  %v19159_v47 = vmul.f32 %v13152_v40, %v19148_v26  ;;  %v10201_v60 = vmul.f32 1.4142135, %v10193_v10  ;;  %v10291_v20 = vld [vmem:[#allocation8 + $0x13c0] sm:$0xff] }
 0xa55   :  { %v19153_v30 = vmul.f32 %v13151_v62, %v19148_v26  ;;  %v10200_v48 = vmul.f32 1.4142135, %v10192_v36  ;;  %v10112_v61 = vpop.f32.mrb[239].mxu0  ;;  %v10187_v24 = vmul.f32 0.2, %v10171_v38  ;;  %v10156_v45 = vmul.f32 %v15475_v53, %v19136_v44  ;;  %v10318_v62 = vld [vmem:[#allocation8 + $0x1498] sm:$0xff] }
 0xa56   :  { %v10186_v41 = vmul.f32 0.2, %v10170_v23  ;;  %vm10178_vm14 = vcmp.ge.f32.partialorder %v10170_v23, 0.0  ;;  %v10155_v14 = vmul.f32 %v19136_v44, %v10112_v61  ;;  %vm10179_vm15 = vcmp.ge.f32.partialorder %v10171_v38, 0.0  ;;  %v10300_v44 = vld [vmem:[#allocation8 + $0x1408] sm:$0xff]  ;;  %v10337_v53 = vld [vmem:[#allocation8 + $0x1530] sm:$0xff] }
 0xa57   :  { %10444 = vmatmul.mubr.f32.vlgmr.msra.gmra.mrb[104].mxu1 %v19153_v30  ;;  %v13153_v29 = vclamps-f32 %v10200_v48, 256.0  ;;  %v13154_v57 = vclamps-f32 %v10201_v60, 256.0  ;;  %v17156_v52 = vpack.c.bf16 %v10301_v11, %v10292_v49  ;;  %v10195_v9 = vsel %vm10179_vm15, %v10171_v38, %v10187_v24  ;;  %v10346_v38 = vld [vmem:[#allocation8 + $0x1578] sm:$0xff]  ;;  %v10345_v60 = vld [vmem:[#allocation8 + $0x1570] sm:$0xff]  ;;  %v10372_v49 = vld [vmem:[#allocation8 + $0x1648] sm:$0xff] }
 0xa58   :  { %17147 = vmatpush1.bf16.msra.mxu1 %v17146_v25  ;;  %10449 = vmatprep.mubr.f32.mxu1 %v17966_v0  ;;  %v10194_v21 = vsel %vm10178_vm14, %v10170_v23, %v10186_v41  ;;  %v10172_v27 = vadd.f32 %v10164_v37, %v10155_v14  ;;  %v10173_v4 = vadd.f32 %v10165_v46, %v10156_v45  ;;  %v10203_v34 = vmul.f32 1.4142135, %v10195_v9  ;;  %v10328_v23 = vld [vmem:[#allocation8 + $0x14e8] sm:$0xff]  ;;  %v10355_v41 = vld [vmem:[#allocation8 + $0x15c0] sm:$0xff]  ;;  %v10249_v46 = vld [vmem:[#allocation8 + $0x1270] sm:$0xff] }
 0xa59   :  { %17149 = vmatprep.subr.bf16.mxu1 %v17148_v31  ;;  %v19165_v15 = vmul.f32 %v13153_v29, %v19148_v26  ;;  %v10202_v18 = vmul.f32 1.4142135, %v10194_v21  ;;  %v17158_v6 = vpack.c.bf16 %v10300_v44, %v10291_v20  ;;  %v19170_v43 = vmul.f32 %v13154_v57, %v19148_v26  ;;  %v10354_v29 = vld [vmem:[#allocation8 + $0x15b8] sm:$0xff]  ;;  %v10240_v11 = vld [vmem:[#allocation8 + $0x1228] sm:$0xff]  ;;  %v10267_v9 = vld [vmem:[#allocation8 + $0x1300] sm:$0xff] }
 0xa5a   :  { %v10188_v7 = vmul.f32 0.2, %v10172_v27  ;;  %vm10180_vm1 = vcmp.ge.f32.partialorder %v10172_v27, 0.0  ;;  %v17160_v33 = vpack.c.bf16 %v10319_v59, %v10310_v8  ;;  %v10189_v19 = vmul.f32 0.2, %v10173_v4  ;;  %v10248_v20 = vld [vmem:[#allocation8 + $0x1268] sm:$0xff] }
 0xa5b   :  { %10450 = vmatmul.mubr.f32.gmra.mrb[106].mxu1 %v19159_v47  ;;  %v13155_v55 = vclamps-f32 %v10202_v18, 256.0  ;;  %vm10181_vm2 = vcmp.ge.f32.partialorder %v10173_v4, 0.0  ;;  %v17162_v25 = vpack.c.bf16 %v10318_v62, %v10309_v3  ;;  %v13156_v40 = vclamps-f32 %v10203_v34, 256.0  ;;  %v10258_v44 = vld [vmem:[#allocation8 + $0x12b8] sm:$0xff]  ;;  %v10257_v8 = vld [vmem:[#allocation8 + $0x12b0] sm:$0xff]  ;;  %v10284_v3 = vld [vmem:[#allocation8 + $0x1388] sm:$0xff] }
 0xa5c   :  { %17151 = vmatpush1.bf16.msra.mxu1 %v17150_v51  ;;  %10455 = vmatprep.mubr.f32.mxu1 %v17966_v0  ;;  %v10196_v36 = vsel %vm10180_vm1, %v10172_v27, %v10188_v7  ;;  %v17164_v31 = vpack.c.bf16 %v10337_v53, %v10328_v23  ;;  %v10197_v10 = vsel %vm10181_vm2, %v10173_v4, %v10189_v19  ;;  %v10363_v27 = vld [vmem:[#allocation8 + $0x1600] sm:$0xff]  ;;  %v10266_v59 = vld [vmem:[#allocation8 + $0x12f8] sm:$0xff]  ;;  %v10285_v34 = vld [vmem:[#allocation8 + $0x1390] sm:$0xff] }
 0xa5d   :  { %17153 = vmatprep.subr.bf16.mxu1 %v17152_v32  ;;  %v19175_v48 = vmul.f32 %v13155_v55, %v19148_v26  ;;  %v10204_v61 = vmul.f32 1.4142135, %v10196_v36  ;;  %v17166_v42 = vpack.c.bf16 %v10336_v63, %v10327_v17  ;;  %v19180_v58 = vmul.f32 %v13156_v40, %v19148_v26  ;;  %v10364_v32 = vld [vmem:[#allocation8 + $0x1608] sm:$0xff]  ;;  %v10294_v62 = vld [vmem:[#allocation8 + $0x13d8] sm:$0xff]  ;;  %v10303_v19 = vld [vmem:[#allocation8 + $0x1420] sm:$0xff] }
 0xa5e   :  { %v10205_v14 = vmul.f32 1.4142135, %v10197_v10  ;;  %v17168_v51 = vpack.c.bf16 %v10355_v41, %v10346_v38  ;;  %v17170_v5 = vpack.c.bf16 %v10354_v29, %v10345_v60  ;;  %v17172_v45 = vpack.c.bf16 %v10373_v28, %v10364_v32  ;;  %v10293_v53 = vld [vmem:[#allocation8 + $0x13d0] sm:$0xff]  ;;  %v10312_v40 = vld [vmem:[#allocation8 + $0x1468] sm:$0xff]  ;;  %v10311_v63 = vld [vmem:[#allocation8 + $0x1460] sm:$0xff] }
 0xa5f   :  { %10456 = vmatmul.mubr.f32.gmra.mrb[108].mxu1 %v19165_v15  ;;  %v13157_v37 = vclamps-f32 %v10204_v61, 256.0  ;;  %v17176_v18 = vpack.c.bf16 %v10249_v46, %v10240_v11  ;;  %v17180_v7 = vpack.c.bf16 %v10267_v9, %v10258_v44  ;;  %v17188_v23 = vpack.c.bf16 %v10303_v19, %v10294_v62  ;;  %v10321_v61 = vld [vmem:[#allocation8 + $0x14b0] sm:$0xff]  ;;  %v10320_v10 = vld [vmem:[#allocation8 + $0x14a8] sm:$0xff]  ;;  %v10330_v38 = vld [vmem:[#allocation8 + $0x14f8] sm:$0xff] }
 0xa60   :  { %17155 = vmatpush1.bf16.msra.mxu1 %v17154_v35  ;;  %10461 = vmatprep.mubr.f32.mxu1 %v17966_v0  ;;  %v13158_v24 = vclamps-f32 %v10205_v14, 256.0  ;;  %v17174_v35 = vpack.c.bf16 %v10372_v49, %v10363_v27  ;;  %v17192_v17 = vpack.c.bf16 %v10321_v61, %v10312_v40  ;;  %v10339_v41 = vld [vmem:[#allocation8 + $0x1540] sm:$0xff]  ;;  %v10348_v60 = vld [vmem:[#allocation8 + $0x1588] sm:$0xff]  ;;  %v10357_v29 = vld [vmem:[#allocation8 + $0x15d0] sm:$0xff] }
 0xa61   :  { %17157 = vmatprep.subr.bf16.mxu1 %v17156_v52  ;;  %v19185_v21 = vmul.f32 %v13157_v37, %v19148_v26  ;;  %v10239_v52 = vld [vmem:[#allocation8 + $0x1220] sm:$0xff]  ;;  %v17196_v14 = vpack.c.bf16 %v10339_v41, %v10330_v38  ;;  %v10329_v37 = vld [vmem:[#allocation8 + $0x14f0] sm:$0xff]  ;;  %v17200_v28 = vpack.c.bf16 %v10357_v29, %v10348_v60 }
 0xa62   :  { %v19190_v57 = vmul.f32 %v13158_v24, %v19148_v26  ;;  %v17178_v4 = vpack.c.bf16 %v10248_v20, %v10239_v52  ;;  %v17182_v26 = vpack.c.bf16 %v10266_v59, %v10257_v8  ;;  %v10356_v24 = vld [vmem:[#allocation8 + $0x15c8] sm:$0xff]  ;;  %v10375_v27 = vld [vmem:[#allocation8 + $0x1660] sm:$0xff]  ;;  %v10365_v46 = vld [vmem:[#allocation8 + $0x1610] sm:$0xff] }
 0xa63   :  { %10462 = vmatmul.mubr.f32.gmra.mrb[110].mxu1 %v19170_v43  ;;  %v10251_v52 = vld [vmem:[#allocation8 + $0x1280] sm:$0xff]  ;;  %v10241_v9 = vld [vmem:[#allocation8 + $0x1230] sm:$0xff] }
 0xa64   :  { %17159 = vmatpush1.bf16.msra.mxu1 %v17158_v6  ;;  %10467 = vmatprep.mubr.f32.mxu1 %v17966_v0  ;;  %v10276_v6 = vld [vmem:[#allocation8 + $0x1348] sm:$0xff]  ;;  %v10269_v8 = vld [vmem:[#allocation8 + $0x1310] sm:$0xff]  ;;  %v10295_v61 = vld [vmem:[#allocation8 + $0x13e0] sm:$0xff] }
 0xa65   :  { %17161 = vmatprep.subr.bf16.mxu1 %v17160_v33  ;;  %v17184_v55 = vpack.c.bf16 %v10285_v34, %v10276_v6  ;;  %v10275_v33 = vld [vmem:[#allocation8 + $0x1340] sm:$0xff]  ;;  %v10277_v19 = vld [vmem:[#allocation8 + $0x1350] sm:$0xff] }
 0xa66   :  { %v17186_v36 = vpack.c.bf16 %v10284_v3, %v10275_v33  ;;  %v10259_v34 = vld [vmem:[#allocation8 + $0x12c0] sm:$0xff]  ;;  %v10313_v41 = vld [vmem:[#allocation8 + $0x1470] sm:$0xff] }
 0xa67   :  { %10468 = vmatmul.mubr.f32.gmra.mrb[112].mxu1 %v19175_v48  ;;  %v10287_v33 = vld [vmem:[#allocation8 + $0x13a0] sm:$0xff] }
 0xa68   :  { %17163 = vmatpush1.bf16.msra.mxu1 %v17162_v25  ;;  %10473 = vmatprep.mubr.f32.mxu1 %v17966_v0  ;;  %v10302_v25 = vld [vmem:[#allocation8 + $0x1418] sm:$0xff]  ;;  %v10331_v29 = vld [vmem:[#allocation8 + $0x1500] sm:$0xff] }
 0xa69   :  { %17165 = vmatprep.subr.bf16.mxu1 %v17164_v31  ;;  %v17190_v31 = vpack.c.bf16 %v10302_v25, %v10293_v53  ;;  %v10305_v53 = vld [vmem:[#allocation8 + $0x1430] sm:$0xff] }
 0xa6b   :  { %10474 = vmatmul.mubr.f32.gmra.mrb[114].mxu1 %v19180_v58 }
 0xa6c   :  { %17167 = vmatpush1.bf16.msra.mxu1 %v17166_v42  ;;  %10479 = vmatprep.mubr.f32.mxu1 %v17966_v0  ;;  %v17194_v42 = vpack.c.bf16 %v10320_v10, %v10311_v63  ;;  %v10323_v63 = vld [vmem:[#allocation8 + $0x14c0] sm:$0xff] }
 0xa6d   :  { %17169 = vmatprep.subr.bf16.mxu1 %v17168_v51  ;;  %v10338_v51 = vld [vmem:[#allocation8 + $0x1538] sm:$0xff] }
 0xa6e   :  { %v17198_v32 = vpack.c.bf16 %v10338_v51, %v10329_v37  ;;  %v10341_v37 = vld [vmem:[#allocation8 + $0x1550] sm:$0xff] }
 0xa6f   :  { %10480 = vmatmul.mubr.f32.gmra.mrb[116].mxu1 %v19185_v21 }
 0xa70   :  { %17171 = vmatpush1.bf16.msra.mxu1 %v17170_v5  ;;  %10485 = vmatprep.mubr.f32.mxu1 %v17966_v0  ;;  %v10347_v5 = vld [vmem:[#allocation8 + $0x1580] sm:$0xff] }
 0xa71   :  { %17173 = vmatprep.subr.bf16.mxu1 %v17172_v45  ;;  %v10366_v45 = vld [vmem:[#allocation8 + $0x1618] sm:$0xff]  ;;  %v17202_v49 = vpack.c.bf16 %v10356_v24, %v10347_v5  ;;  %v10359_v5 = vld [vmem:[#allocation8 + $0x15e0] sm:$0xff] }
 0xa72   :  { %v17204_v11 = vpack.c.bf16 %v10375_v27, %v10366_v45  ;;  %v10349_v27 = vld [vmem:[#allocation8 + $0x1590] sm:$0xff] }
 0xa73   :  { %10486 = vmatmul.mubr.f32.gmra.mrb[118].mxu1 %v19190_v57 }
 0xa74   :  { %17175 = vmatpush1.bf16.msra.mxu1 %v17174_v35  ;;  %10556 = vmatprep.mubr.f32.mxu1 %v17966_v0  ;;  %v10374_v35 = vld [vmem:[#allocation8 + $0x1658] sm:$0xff] }
 0xa75   :  { %17177 = vmatprep.subr.bf16.mxu1 %v17176_v18  ;;  %v10242_v18 = vld [vmem:[#allocation8 + $0x1238] sm:$0xff]  ;;  %v17206_v20 = vpack.c.bf16 %v10374_v35, %v10365_v46  ;;  %v10377_v46 = vld [vmem:[#allocation8 + $0x1670] sm:$0xff] }
 0xa76   :  { %v17208_v44 = vpack.c.bf16 %v10251_v52, %v10242_v18  ;;  %v10367_v52 = vld [vmem:[#allocation8 + $0x1620] sm:$0xff] }
 0xa77   :  { %10557 = vmatmul.mubr.f32.vlgmr.msra.gmra.mrb[120].mxu1 %v19153_v30 }
 0xa78   :  { %17179 = vmatpush1.bf16.msra.mxu1 %v17178_v4  ;;  %10562 = vmatprep.mubr.f32.mxu1 %v17966_v0  ;;  %v10250_v4 = vld [vmem:[#allocation8 + $0x1278] sm:$0xff] }
 0xa79   :  { %17181 = vmatprep.subr.bf16.mxu1 %v17180_v7  ;;  %v10260_v7 = vld [vmem:[#allocation8 + $0x12c8] sm:$0xff]  ;;  %v17210_v59 = vpack.c.bf16 %v10250_v4, %v10241_v9 }
 0xa7a   :  { %v17212_v6 = vpack.c.bf16 %v10269_v8, %v10260_v7  ;;  %v10252_v9 = vld [vmem:[#allocation8 + $0x1288] sm:$0xff]  ;;  %v10261_v8 = vld [vmem:[#allocation8 + $0x12d0] sm:$0xff] }
 0xa7b   :  { %10563 = vmatmul.mubr.f32.gmra.mrb[122].mxu1 %v19159_v47 }
 0xa7c   :  { %17183 = vmatpush1.bf16.msra.mxu1 %v17182_v26  ;;  %10568 = vmatprep.mubr.f32.mxu1 %v17966_v0  ;;  %v10268_v26 = vld [vmem:[#allocation8 + $0x1308] sm:$0xff] }
 0xa7d   :  { %17185 = vmatprep.subr.bf16.mxu1 %v17184_v55  ;;  %v10278_v55 = vld [vmem:[#allocation8 + $0x1358] sm:$0xff]  ;;  %v17214_v3 = vpack.c.bf16 %v10268_v26, %v10259_v34  ;;  %v10279_v34 = vld [vmem:[#allocation8 + $0x1360] sm:$0xff]  ;;  %v10288_v26 = vld [vmem:[#allocation8 + $0x13a8] sm:$0xff] }
 0xa7e   :  { %v17216_v62 = vpack.c.bf16 %v10287_v33, %v10278_v55  ;;  %v17248_v55 = vpack.c.bf16 %v10288_v26, %v10279_v34  ;;  %v10297_v33 = vld [vmem:[#allocation8 + $0x13f0] sm:$0xff]  ;;  %v11030_v34 = vld [vmem:[#allocation6 + $0x928] sm:$0xff] }
 0xa7f   :  { %10569 = vmatmul.mubr.f32.gmra.mrb[124].mxu1 %v19165_v15 }
 0xa80   :  { %17187 = vmatpush1.bf16.msra.mxu1 %v17186_v36  ;;  %10574 = vmatprep.mubr.f32.mxu1 %v17966_v0  ;;  %v10286_v36 = vld [vmem:[#allocation8 + $0x1398] sm:$0xff] }
 0xa81   :  { %17189 = vmatprep.subr.bf16.mxu1 %v17188_v23  ;;  %v10296_v23 = vld [vmem:[#allocation8 + $0x13e8] sm:$0xff]  ;;  %v17218_v25 = vpack.c.bf16 %v10286_v36, %v10277_v19  ;;  %v10315_v19 = vld [vmem:[#allocation8 + $0x1480] sm:$0xff] }
 0xa82   :  { %v17220_v40 = vpack.c.bf16 %v10305_v53, %v10296_v23  ;;  %v10324_v36 = vld [vmem:[#allocation8 + $0x14c8] sm:$0xff]  ;;  %v10333_v53 = vld [vmem:[#allocation8 + $0x1510] sm:$0xff] }
 0xa83   :  { %10575 = vmatmul.mubr.f32.gmra.mrb[126].mxu1 %v19170_v43  ;;  %v17256_v23 = vpack.c.bf16 %v10324_v36, %v10315_v19  ;;  %v11195_v36 = vld [vmem:[#allocation6 + $0x940] sm:$0xff] }
 0xa84   :  { %17191 = vmatpush1.bf16.msra.mxu1 %v17190_v31  ;;  %10580 = vmatprep.mubr.f32.mxu1 %v17966_v0  ;;  %v10304_v31 = vld [vmem:[#allocation8 + $0x1428] sm:$0xff] }
 0xa85   :  { %17193 = vmatprep.subr.bf16.mxu1 %v17192_v17  ;;  %v10314_v17 = vld [vmem:[#allocation8 + $0x1478] sm:$0xff]  ;;  %v17222_v10 = vpack.c.bf16 %v10304_v31, %v10295_v61  ;;  %v10351_v61 = vld [vmem:[#allocation8 + $0x15a0] sm:$0xff]  ;;  %v10360_v31 = vld [vmem:[#allocation8 + $0x15e8] sm:$0xff] }
 0xa86   :  { %v17224_v38 = vpack.c.bf16 %v10323_v63, %v10314_v17  ;;  %v17264_v17 = vpack.c.bf16 %v10360_v31, %v10351_v61  ;;  %v10369_v63 = vld [vmem:[#allocation8 + $0x1630] sm:$0xff]  ;;  %v11196_v31 = vld [vmem:[#allocation6 + $0x948] sm:$0xff] }
 0xa87   :  { %10581 = vmatmul.mubr.f32.gmra.mrb[128].mxu1 %v19175_v48 }
 0xa88   :  { %17195 = vmatpush1.bf16.msra.mxu1 %v17194_v42  ;;  %10586 = vmatprep.mubr.f32.mxu1 %v17966_v0  ;;  %v10322_v42 = vld [vmem:[#allocation8 + $0x14b8] sm:$0xff] }
 0xa89   :  { %17197 = vmatprep.subr.bf16.mxu1 %v17196_v14  ;;  %v10332_v14 = vld [vmem:[#allocation8 + $0x1508] sm:$0xff]  ;;  %v17226_v51 = vpack.c.bf16 %v10322_v42, %v10313_v41 }
 0xa8a   :  { %v17228_v60 = vpack.c.bf16 %v10341_v37, %v10332_v14 }
 0xa8b   :  { %10587 = vmatmul.mubr.f32.gmra.mrb[130].mxu1 %v19180_v58 }
 0xa8c   :  { %17199 = vmatpush1.bf16.msra.mxu1 %v17198_v32  ;;  %10592 = vmatprep.mubr.f32.mxu1 %v17966_v0  ;;  %v10340_v32 = vld [vmem:[#allocation8 + $0x1548] sm:$0xff] }
 0xa8d   :  { %17201 = vmatprep.subr.bf16.mxu1 %v17200_v28  ;;  %v10350_v28 = vld [vmem:[#allocation8 + $0x1598] sm:$0xff]  ;;  %v17230_v24 = vpack.c.bf16 %v10340_v32, %v10331_v29 }
 0xa8e   :  { %v17232_v45 = vpack.c.bf16 %v10359_v5, %v10350_v28 }
 0xa8f   :  { %10593 = vmatmul.mubr.f32.gmra.mrb[132].mxu1 %v19185_v21 }
 0xa90   :  { %17203 = vmatpush1.bf16.msra.mxu1 %v17202_v49  ;;  %10598 = vmatprep.mubr.f32.mxu1 %v17966_v0  ;;  %v10358_v49 = vld [vmem:[#allocation8 + $0x15d8] sm:$0xff] }
 0xa91   :  { %17205 = vmatprep.subr.bf16.mxu1 %v17204_v11  ;;  %v10368_v11 = vld [vmem:[#allocation8 + $0x1628] sm:$0xff]  ;;  %v17234_v35 = vpack.c.bf16 %v10358_v49, %v10349_v27 }
 0xa92   :  { %v17236_v18 = vpack.c.bf16 %v10377_v46, %v10368_v11 }
 0xa93   :  { %10599 = vmatmul.mubr.f32.gmra.mrb[134].mxu1 %v19190_v57 }
 0xa94   :  { %17207 = vmatpush1.bf16.msra.mxu1 %v17206_v20  ;;  %10669 = vmatprep.mubr.f32.mxu1 %v17966_v0  ;;  %v10376_v20 = vld [vmem:[#allocation8 + $0x1668] sm:$0xff] }
 0xa95   :  { %17209 = vmatprep.subr.bf16.mxu1 %v17208_v44  ;;  %v10243_v44 = vld [vmem:[#allocation8 + $0x1240] sm:$0xff]  ;;  %v17238_v4 = vpack.c.bf16 %v10376_v20, %v10367_v52  ;;  %v11027_v20 = vld [vmem:[#allocation6 + $0x910] sm:$0xff] }
 0xa96   :  { %v17240_v7 = vpack.c.bf16 %v10252_v9, %v10243_v44  ;;  %v11028_v9 = vld [vmem:[#allocation6 + $0x918] sm:$0xff] }
 0xa97   :  { %10670 = vmatmul.mubr.f32.vlgmr.msra.gmra.mrb[136].mxu1 %v19153_v30 }
 0xa98   :  { %17211 = vmatpush1.bf16.msra.mxu1 %v17210_v59  ;;  %10675 = vmatprep.mubr.f32.mxu1 %v17966_v0  ;;  %v10270_v59 = vld [vmem:[#allocation8 + $0x1318] sm:$0xff] }
 0xa99   :  { %17213 = vmatprep.subr.bf16.mxu1 %v17212_v6  ;;  %v17244_v6 = vpack.c.bf16 %v10270_v59, %v10261_v8  ;;  %v11029_v8 = vld [vmem:[#allocation6 + $0x920] sm:$0xff] }
 0xa9b   :  { %10676 = vmatmul.mubr.f32.gmra.mrb[138].mxu1 %v19159_v47 }
 0xa9c   :  { %17215 = vmatpush1.bf16.msra.mxu1 %v17214_v3  ;;  %10681 = vmatprep.mubr.f32.mxu1 %v17966_v0  ;;  %v10306_v3 = vld [vmem:[#allocation8 + $0x1438] sm:$0xff] }
 0xa9d   :  { %17217 = vmatprep.subr.bf16.mxu1 %v17216_v62  ;;  %v17252_v62 = vpack.c.bf16 %v10306_v3, %v10297_v33  ;;  %v11032_v3 = vld [vmem:[#allocation6 + $0x938] sm:$0xff] }
 0xa9f   :  { %10682 = vmatmul.mubr.f32.gmra.mrb[140].mxu1 %v19165_v15 }
 0xaa0   :  { %17219 = vmatpush1.bf16.msra.mxu1 %v17218_v25  ;;  %10687 = vmatprep.mubr.f32.mxu1 %v17966_v0  ;;  %v10342_v25 = vld [vmem:[#allocation8 + $0x1558] sm:$0xff] }
 0xaa1   :  { %17221 = vmatprep.subr.bf16.mxu1 %v17220_v40  ;;  %v17260_v40 = vpack.c.bf16 %v10342_v25, %v10333_v53  ;;  %v12644_v53 = vld [vmem:[#allocation11 + $0x100] sm:$0xff]  ;;  %v12645_v25 = vld [vmem:[#allocation11 + $0x108] sm:$0xff] }
 0xaa3   :  { %10688 = vmatmul.mubr.f32.gmra.mrb[142].mxu1 %v19170_v43 }
 0xaa4   :  { %17223 = vmatpush1.bf16.msra.mxu1 %v17222_v10  ;;  %10693 = vmatprep.mubr.f32.mxu1 %v17966_v0  ;;  %v10378_v10 = vld [vmem:[#allocation8 + $0x1678] sm:$0xff] }
 0xaa5   :  { %17225 = vmatprep.subr.bf16.mxu1 %v17224_v38  ;;  %v11025_v38 = vld [vmem:[#allocation6 + $0x900] sm:$0xff]  ;;  %v17268_v41 = vpack.c.bf16 %v10378_v10, %v10369_v63  ;;  %v12647_v63 = vld [vmem:[#allocation11 + $0x118] sm:$0xff] }
 0xaa6   :  { %15536 = vmatprep.mubr.msk.f32.mxu0 %vm954_vm0, %v11025_v38  ;;  %v11197_v38 = vld [vmem:[#allocation6 + $0x950] sm:$0xff] }
 0xaa7   :  { %10694 = vmatmul.mubr.f32.gmra.mrb[144].mxu1 %v19175_v48 }
 0xaa8   :  { %17227 = vmatpush1.bf16.msra.mxu1 %v17226_v51  ;;  %10699 = vmatprep.mubr.f32.mxu1 %v17966_v0 }
 0xaa9   :  { %17229 = vmatprep.subr.bf16.mxu1 %v17228_v60 }
 0xaab   :  { %10700 = vmatmul.mubr.f32.gmra.mrb[146].mxu1 %v19180_v58 }
 0xaac   :  { %17231 = vmatpush1.bf16.msra.mxu1 %v17230_v24  ;;  %10705 = vmatprep.mubr.f32.mxu1 %v17966_v0 }
 0xaad   :  { %17233 = vmatprep.subr.bf16.mxu1 %v17232_v45 }
 0xaaf   :  { %10706 = vmatmul.mubr.f32.gmra.mrb[148].mxu1 %v19185_v21 }
 0xab0   :  { %17235 = vmatpush1.bf16.msra.mxu1 %v17234_v35  ;;  %10711 = vmatprep.mubr.f32.mxu1 %v17966_v0 }
 0xab1   :  { %17237 = vmatprep.subr.bf16.mxu1 %v17236_v18  ;;  %v11026_v18 = vld [vmem:[#allocation6 + $0x908] sm:$0xff] }
 0xab3   :  { %10712 = vmatmul.mubr.f32.gmra.mrb[150].mxu1 %v19190_v57 }
 0xab4   :  { %17239 = vmatpush1.bf16.msra.mxu1 %v17238_v4  ;;  %10782 = vmatprep.mubr.f32.mxu1 %v17966_v0 }
 0xab5   :  { %17241 = vmatprep.subr.bf16.mxu1 %v17240_v7 }
 0xab7   :  { %10783 = vmatmul.mubr.f32.vlgmr.msra.gmra.mrb[152].mxu1 %v19153_v30 }
 0xab8   :  { %17243 = vmatpush3.bf16.msra.mxu1 %v17240_v7  ;;  %10788 = vmatprep.mubr.f32.mxu1 %v17966_v0 }
 0xab9   :  { %17245 = vmatprep.subr.bf16.mxu1 %v17244_v6 }
 0xabb   :  { %10789 = vmatmul.mubr.f32.gmra.mrb[154].mxu1 %v19159_v47 }
 0xabc   :  { %17247 = vmatpush3.bf16.msra.mxu1 %v17244_v6  ;;  %10794 = vmatprep.mubr.f32.mxu1 %v17966_v0 }
 0xabd   :  { %17249 = vmatprep.subr.bf16.mxu1 %v17248_v55 }
 0xabf   :  { %10795 = vmatmul.mubr.f32.gmra.mrb[156].mxu1 %v19165_v15 }
 0xac0   :  { %17251 = vmatpush3.bf16.msra.mxu1 %v17248_v55  ;;  %10800 = vmatprep.mubr.f32.mxu1 %v17966_v0  ;;  %v11031_v55 = vld [vmem:[#allocation6 + $0x930] sm:$0xff] }
 0xac1   :  { %17253 = vmatprep.subr.bf16.mxu1 %v17252_v62 }
 0xac3   :  { %10801 = vmatmul.mubr.f32.gmra.mrb[158].mxu1 %v19170_v43 }
 0xac4   :  { %17255 = vmatpush3.bf16.msra.mxu1 %v17252_v62  ;;  %10806 = vmatprep.mubr.f32.mxu1 %v17966_v0 }
 0xac5   :  { %17257 = vmatprep.subr.bf16.mxu1 %v17256_v23 }
 0xac7   :  { %10807 = vmatmul.mubr.f32.gmra.mrb[160].mxu1 %v19175_v48 }
 0xac8   :  { %17259 = vmatpush3.bf16.msra.mxu1 %v17256_v23  ;;  %10812 = vmatprep.mubr.f32.mxu1 %v17966_v0 }
 0xac9   :  { %17261 = vmatprep.subr.bf16.mxu1 %v17260_v40 }
 0xacb   :  { %10813 = vmatmul.mubr.f32.gmra.mrb[162].mxu1 %v19180_v58 }
 0xacc   :  { %17263 = vmatpush3.bf16.msra.mxu1 %v17260_v40  ;;  %10818 = vmatprep.mubr.f32.mxu1 %v17966_v0  ;;  %v12646_v40 = vld [vmem:[#allocation11 + $0x110] sm:$0xff] }
 0xacd   :  { %17265 = vmatprep.subr.bf16.mxu1 %v17264_v17 }
 0xacf   :  { %10819 = vmatmul.mubr.f32.gmra.mrb[164].mxu1 %v19185_v21 }
 0xad0   :  { %17267 = vmatpush3.bf16.msra.mxu1 %v17264_v17  ;;  %10824 = vmatprep.mubr.f32.mxu1 %v17966_v0  ;;  %v17416_v17 = vpack.c.bf16 %v12645_v25, %v12644_v53  ;;  %v11537_v25 = vld [vmem:[#allocation6 + $0x9d0] sm:$0xff] }
 0xad1   :  { %17269 = vmatprep.subr.bf16.mxu1 %v17268_v41 }
 0xad3   :  { %10825 = vmatmul.mubr.f32.gmra.mrb[166].mxu1 %v19190_v57 }
 0xad4   :  { %17271 = vmatpush3.bf16.msra.mxu1 %v17268_v41  ;;  %15508 = vmatprep.mubr.f32.mxu1 %v19153_v30  ;;  %v17420_v41 = vpack.c.bf16 %v12647_v63, %v12646_v40  ;;  %v11539_v63 = vld [vmem:[#allocation6 + $0x9e0] sm:$0xff] }
 0xad5   :  { %17417 = vmatprep.subr.bf16.mxu1 %v17416_v17 }
 0xad7   :  { %15509 = vmatmul.mubr.f32.vlgmr.msra.gmra.mrb[168].mxu1 %v19159_v47 }
 0xad8   :  { %15511 = vmatprep.mubr.f32.mxu1 %v19165_v15  ;;  %17419 = vmatpush3.bf16.msra.mxu1 %v17416_v17 }
 0xad9   :  { %17421 = vmatprep.subr.bf16.mxu1 %v17420_v41 }
 0xadb   :  { %15512 = vmatmul.mubr.f32.gmra.mrb[170].mxu1 %v19170_v43 }
 0xadc   :  { %15514 = vmatprep.mubr.f32.mxu1 %v19175_v48  ;;  %17423 = vmatpush3.bf16.msra.mxu1 %v17420_v41  ;;  %v11540_v41 = vld [vmem:[#allocation6 + $0x9e8] sm:$0xff] }
 0xadf   :  { %15515 = vmatmul.mubr.f32.gmra.mrb[172].mxu1 %v19180_v58 }
 0xae0   :  { %15517 = vmatprep.mubr.f32.mxu1 %v19185_v21 }
 0xae3   :  { %15518 = vmatmul.mubr.f32.gmra.mrb[174].mxu1 %v19190_v57 }
 0xb2a   :  { %v10445_v0 = vpop.f32.mrb[104].mxu1 }
 0xb2b   :  { %v10447_v42 = vpop.f32.mrb[105].mxu1 }
 0xb2e   :  { %v10451_v14 = vpop.f32.mrb[106].mxu1 }
 0xb2f   :  { %v17272_v37 = vpack.c.bf16 %v10451_v14, %v10445_v0  ;;  %v10453_v51 = vpop.f32.mrb[107].mxu1  ;;  %v12648_v0 = vld [vmem:[#allocation11 + $0x120] sm:$0xff] }
 0xb30   :  { %v17288_v30 = vpack.c.bf16 %v10453_v51, %v10447_v42  ;;  %v12649_v42 = vld [vmem:[#allocation11 + $0x128] sm:$0xff] }
 0xb31   :  { %17273 = vmatprep.subr.bf16.mxu0 %v17272_v37 }
 0xb32   :  { %v10457_v47 = vpop.f32.mrb[108].mxu1  ;;  %17275 = vmatpush3.bf16.msra.mxu0 %v17272_v37  ;;  %v11198_v37 = vld [vmem:[#allocation6 + $0x958] sm:$0xff] }
 0xb33   :  { %v10459_v15 = vpop.f32.mrb[109].mxu1 }
 0xb36   :  { %v10463_v60 = vpop.f32.mrb[110].mxu1 }
 0xb37   :  { %v17276_v43 = vpack.c.bf16 %v10463_v60, %v10457_v47  ;;  %v10465_v29 = vpop.f32.mrb[111].mxu1  ;;  %v11199_v47 = vld [vmem:[#allocation6 + $0x960] sm:$0xff] }
 0xb38   :  { %v17292_v48 = vpack.c.bf16 %v10465_v29, %v10459_v15  ;;  %v17424_v15 = vpack.c.bf16 %v12649_v42, %v12648_v0  ;;  %v12651_v29 = vld [vmem:[#allocation11 + $0x138] sm:$0xff]  ;;  %v11541_v42 = vld [vmem:[#allocation6 + $0x9f0] sm:$0xff] }
 0xb39   :  { %17277 = vmatprep.subr.bf16.mxu0 %v17276_v43 }
 0xb3a   :  { %v10469_v58 = vpop.f32.mrb[112].mxu1  ;;  %17279 = vmatpush3.bf16.msra.mxu0 %v17276_v43  ;;  %v12650_v43 = vld [vmem:[#allocation11 + $0x130] sm:$0xff]  ;;  %17425 = vmatprep.subr.bf16.mxu1 %v17424_v15 }
 0xb3b   :  { %v10471_v21 = vpop.f32.mrb[113].mxu1  ;;  %17427 = vmatpush3.bf16.msra.mxu1 %v17424_v15 }
 0xb3e   :  { %v10475_v32 = vpop.f32.mrb[114].mxu1 }
 0xb3f   :  { %v17280_v57 = vpack.c.bf16 %v10475_v32, %v10469_v58  ;;  %v10477_v28 = vpop.f32.mrb[115].mxu1  ;;  %v11200_v58 = vld [vmem:[#allocation6 + $0x968] sm:$0xff]  ;;  %v11201_v32 = vld [vmem:[#allocation6 + $0x970] sm:$0xff] }
 0xb40   :  { %v17296_v5 = vpack.c.bf16 %v10477_v28, %v10471_v21 }
 0xb41   :  { %17281 = vmatprep.subr.bf16.mxu0 %v17280_v57 }
 0xb42   :  { %v10481_v24 = vpop.f32.mrb[116].mxu1  ;;  %17283 = vmatpush3.bf16.msra.mxu0 %v17280_v57  ;;  %v17428_v57 = vpack.c.bf16 %v12651_v29, %v12650_v43  ;;  %v11706_v43 = vld [vmem:[#allocation6 + $0xa08] sm:$0xff] }
 0xb43   :  { %v10483_v45 = vpop.f32.mrb[117].mxu1 }
 0xb44   :  { %17429 = vmatprep.subr.bf16.mxu1 %v17428_v57 }
 0xb45   :  { %17431 = vmatpush3.bf16.msra.mxu1 %v17428_v57 }
 0xb46   :  { %v10487_v27 = vpop.f32.mrb[118].mxu1 }
 0xb47   :  { %v17284_v49 = vpack.c.bf16 %v10487_v27, %v10481_v24  ;;  %v10489_v11 = vpop.f32.mrb[119].mxu1  ;;  %v11365_v27 = vld [vmem:[#allocation6 + $0x980] sm:$0xff] }
 0xb48   :  { %v17300_v46 = vpack.c.bf16 %v10489_v11, %v10483_v45 }
 0xb49   :  { %17285 = vmatprep.subr.bf16.mxu0 %v17284_v49 }
 0xb4a   :  { %v10558_v35 = vpop.f32.mrb[120].mxu1  ;;  %17287 = vmatpush3.bf16.msra.mxu0 %v17284_v49 }
 0xb4b   :  { %v10560_v52 = vpop.f32.mrb[121].mxu1  ;;  %17289 = vmatprep.subr.bf16.mxu0 %v17288_v30 }
 0xb4d   :  { %15537 = vmatmul.mubr.msk.f32.vlgmr.msra.gmra.mrb[240].mxu0 %vm954_vm0, %v11026_v18  ;;  %v11367_v18 = vld [vmem:[#allocation6 + $0x990] sm:$0xff] }
 0xb4e   :  { %v10564_v44 = vpop.f32.mrb[122].mxu1  ;;  %17291 = vmatpush3.bf16.msra.mxu0 %v17288_v30  ;;  %15539 = vmatprep.mubr.msk.f32.mxu0 %vm954_vm0, %v11027_v20  ;;  %v11368_v20 = vld [vmem:[#allocation6 + $0x998] sm:$0xff] }
 0xb4f   :  { %v17304_v4 = vpack.c.bf16 %v10564_v44, %v10558_v35  ;;  %v10566_v7 = vpop.f32.mrb[123].mxu1  ;;  %17293 = vmatprep.subr.bf16.mxu0 %v17292_v48 }
 0xb50   :  { %v19252_v59 = vpack.c.bf16 %v10566_v7, %v10560_v52 }
 0xb51   :  { %15540 = vmatmul.mubr.msk.f32.gmra.mrb[242].mxu0 %vm954_vm0, %v11028_v9 }
 0xb52   :  { %v10570_v6 = vpop.f32.mrb[124].mxu1  ;;  %17295 = vmatpush3.bf16.msra.mxu0 %v17292_v48  ;;  %15542 = vmatprep.mubr.msk.f32.mxu0 %vm954_vm0, %v11029_v8 }
 0xb53   :  { %v10572_v26 = vpop.f32.mrb[125].mxu1  ;;  %17297 = vmatprep.subr.bf16.mxu0 %v17296_v5 }
 0xb55   :  { %15543 = vmatmul.mubr.msk.f32.gmra.mrb[244].mxu0 %vm954_vm0, %v11030_v34 }
 0xb56   :  { %v10576_v33 = vpop.f32.mrb[126].mxu1  ;;  %17299 = vmatpush3.bf16.msra.mxu0 %v17296_v5  ;;  %15545 = vmatprep.mubr.msk.f32.mxu0 %vm954_vm0, %v11031_v55  ;;  %v11202_v5 = vld [vmem:[#allocation6 + $0x978] sm:$0xff] }
 0xb57   :  { %v17308_v62 = vpack.c.bf16 %v10576_v33, %v10570_v6  ;;  %v10578_v19 = vpop.f32.mrb[127].mxu1  ;;  %17301 = vmatprep.subr.bf16.mxu0 %v17300_v46  ;;  %v11370_v6 = vld [vmem:[#allocation6 + $0x9a8] sm:$0xff]  ;;  %v11372_v55 = vld [vmem:[#allocation6 + $0x9b8] sm:$0xff] }
 0xb58   :  { %v19258_v23 = vpack.c.bf16 %v10578_v19, %v10572_v26 }
 0xb59   :  { %15546 = vmatmul.mubr.msk.f32.gmra.mrb[246].mxu0 %vm954_vm0, %v11032_v3 }
 0xb5a   :  { %v10582_v61 = vpop.f32.mrb[128].mxu1  ;;  %17303 = vmatpush3.bf16.msra.mxu0 %v17300_v46  ;;  %15564 = vmatprep.mubr.msk.f32.mxu0 %vm954_vm0, %v11195_v36  ;;  %v11366_v46 = vld [vmem:[#allocation6 + $0x988] sm:$0xff] }
 0xb5b   :  { %v10584_v10 = vpop.f32.mrb[129].mxu1  ;;  %17305 = vmatprep.subr.bf16.mxu0 %v17304_v4 }
 0xb5d   :  { %15565 = vmatmul.mubr.msk.f32.vlgmr.msra.gmra.mrb[240].mxu0 %vm954_vm0, %v11196_v31 }
 0xb5e   :  { %v10588_v14 = vpop.f32.mrb[130].mxu1  ;;  %17307 = vmatpush3.bf16.msra.mxu0 %v17304_v4  ;;  %15567 = vmatprep.mubr.msk.f32.mxu0 %vm954_vm0, %v11197_v38  ;;  %v11369_v4 = vld [vmem:[#allocation6 + $0x9a0] sm:$0xff] }
 0xb5f   :  { %v17312_v51 = vpack.c.bf16 %v10588_v14, %v10582_v61  ;;  %v10590_v30 = vpop.f32.mrb[131].mxu1  ;;  %17309 = vmatprep.subr.bf16.mxu0 %v17308_v62  ;;  %v11538_v61 = vld [vmem:[#allocation6 + $0x9d8] sm:$0xff] }
 0xb60   :  { %v17328_v60 = vpack.c.bf16 %v10590_v30, %v10584_v10 }
 0xb61   :  { %15568 = vmatmul.mubr.msk.f32.gmra.mrb[242].mxu0 %vm954_vm0, %v11198_v37  ;;  %v11542_v37 = vld [vmem:[#allocation6 + $0x9f8] sm:$0xff] }
 0xb62   :  { %v10594_v48 = vpop.f32.mrb[132].mxu1  ;;  %17311 = vmatpush3.bf16.msra.mxu0 %v17308_v62  ;;  %15570 = vmatprep.mubr.msk.f32.mxu0 %vm954_vm0, %v11199_v47  ;;  %v11535_v62 = vld [vmem:[#allocation6 + $0x9c0] sm:$0xff] }
 0xb63   :  { %v10596_v21 = vpop.f32.mrb[133].mxu1  ;;  %17313 = vmatprep.subr.bf16.mxu0 %v17312_v51  ;;  %v11705_v47 = vld [vmem:[#allocation6 + $0xa00] sm:$0xff] }
 0xb65   :  { %15571 = vmatmul.mubr.msk.f32.gmra.mrb[244].mxu0 %vm954_vm0, %v11200_v58 }
 0xb66   :  { %v10600_v28 = vpop.f32.mrb[134].mxu1  ;;  %17315 = vmatpush3.bf16.msra.mxu0 %v17312_v51  ;;  %15573 = vmatprep.mubr.msk.f32.mxu0 %vm954_vm0, %v11201_v32 }
 0xb67   :  { %v17316_v24 = vpack.c.bf16 %v10600_v28, %v10594_v48  ;;  %v10602_v45 = vpop.f32.mrb[135].mxu1  ;;  %v11707_v48 = vld [vmem:[#allocation6 + $0xa10] sm:$0xff]  ;;  %v11709_v28 = vld [vmem:[#allocation6 + $0xa20] sm:$0xff] }
 0xb68   :  { %v17332_v49 = vpack.c.bf16 %v10602_v45, %v10596_v21  ;;  %v11708_v21 = vld [vmem:[#allocation6 + $0xa18] sm:$0xff]  ;;  %v11710_v45 = vld [vmem:[#allocation6 + $0xa28] sm:$0xff] }
 0xb69   :  { %15574 = vmatmul.mubr.msk.f32.gmra.mrb[246].mxu0 %vm954_vm0, %v11202_v5  ;;  %17317 = vmatprep.subr.bf16.mxu0 %v17316_v24 }
 0xb6a   :  { %v10671_v11 = vpop.f32.mrb[136].mxu1  ;;  %17319 = vmatpush3.bf16.msra.mxu0 %v17316_v24  ;;  %15592 = vmatprep.mubr.msk.f32.mxu0 %vm954_vm0, %v11365_v27 }
 0xb6b   :  { %v10673_v35 = vpop.f32.mrb[137].mxu1  ;;  %17321 = vmatprep.subr.bf16.mxu0 %v19252_v59 }
 0xb6d   :  { %15593 = vmatmul.mubr.msk.f32.vlgmr.msra.gmra.mrb[240].mxu0 %vm954_vm0, %v11366_v46  ;;  %v11712_v46 = vld [vmem:[#allocation6 + $0xa38] sm:$0xff] }
 0xb6e   :  { %v10677_v52 = vpop.f32.mrb[138].mxu1  ;;  %17323 = vmatpush3.bf16.msra.mxu0 %v19252_v59  ;;  %15595 = vmatprep.mubr.msk.f32.mxu0 %vm954_vm0, %v11367_v18  ;;  %v11371_v59 = vld [vmem:[#allocation6 + $0x9b0] sm:$0xff] }
 0xb6f   :  { %v17336_v44 = vpack.c.bf16 %v10677_v52, %v10671_v11  ;;  %v10679_v9 = vpop.f32.mrb[139].mxu1  ;;  %17325 = vmatprep.subr.bf16.mxu0 %v19258_v23  ;;  %v11875_v52 = vld [vmem:[#allocation6 + $0xa40] sm:$0xff] }
 0xb70   :  { %v19275_v7 = vpack.c.bf16 %v10679_v9, %v10673_v35  ;;  %v11876_v9 = vld [vmem:[#allocation6 + $0xa48] sm:$0xff] }
 0xb71   :  { %15596 = vmatmul.mubr.msk.f32.gmra.mrb[242].mxu0 %vm954_vm0, %v11368_v20 }
 0xb72   :  { %v10683_v8 = vpop.f32.mrb[140].mxu1  ;;  %17327 = vmatpush3.bf16.msra.mxu0 %v19258_v23  ;;  %15598 = vmatprep.mubr.msk.f32.mxu0 %vm954_vm0, %v11369_v4  ;;  %v11536_v23 = vld [vmem:[#allocation6 + $0x9c8] sm:$0xff] }
 0xb73   :  { %v10685_v34 = vpop.f32.mrb[141].mxu1  ;;  %17329 = vmatprep.subr.bf16.mxu0 %v17328_v60 }
 0xb75   :  { %15599 = vmatmul.mubr.msk.f32.gmra.mrb[244].mxu0 %vm954_vm0, %v11370_v6  ;;  %v11878_v6 = vld [vmem:[#allocation6 + $0xa58] sm:$0xff] }
 0xb76   :  { %v10689_v26 = vpop.f32.mrb[142].mxu1  ;;  %17331 = vmatpush3.bf16.msra.mxu0 %v17328_v60  ;;  %15601 = vmatprep.mubr.msk.f32.mxu0 %vm954_vm0, %v11371_v59 }
 0xb77   :  { %v17340_v33 = vpack.c.bf16 %v10689_v26, %v10683_v8  ;;  %v10691_v3 = vpop.f32.mrb[143].mxu1  ;;  %17333 = vmatprep.subr.bf16.mxu0 %v17332_v49  ;;  %v11879_v26 = vld [vmem:[#allocation6 + $0xa60] sm:$0xff] }
 0xb78   :  { %v17356_v19 = vpack.c.bf16 %v10691_v3, %v10685_v34  ;;  %v11880_v3 = vld [vmem:[#allocation6 + $0xa68] sm:$0xff] }
 0xb79   :  { %15602 = vmatmul.mubr.msk.f32.gmra.mrb[246].mxu0 %vm954_vm0, %v11372_v55 }
 0xb7a   :  { %v10695_v36 = vpop.f32.mrb[144].mxu1  ;;  %17335 = vmatpush3.bf16.msra.mxu0 %v17332_v49  ;;  %15620 = vmatprep.mubr.msk.f32.mxu0 %vm954_vm0, %v11535_v62  ;;  %v11711_v49 = vld [vmem:[#allocation6 + $0xa30] sm:$0xff] }
 0xb7b   :  { %v10697_v53 = vpop.f32.mrb[145].mxu1  ;;  %17337 = vmatprep.subr.bf16.mxu0 %v17336_v44 }
 0xb7d   :  { %15621 = vmatmul.mubr.msk.f32.vlgmr.msra.gmra.mrb[240].mxu0 %vm954_vm0, %v11536_v23  ;;  %v11882_v23 = vld [vmem:[#allocation6 + $0xa78] sm:$0xff] }
 0xb7e   :  { %v10701_v40 = vpop.f32.mrb[146].mxu1  ;;  %17339 = vmatpush3.bf16.msra.mxu0 %v17336_v44  ;;  %15623 = vmatprep.mubr.msk.f32.mxu0 %vm954_vm0, %v11537_v25 }
 0xb7f   :  { %v17344_v31 = vpack.c.bf16 %v10701_v40, %v10695_v36  ;;  %v10703_v17 = vpop.f32.mrb[147].mxu1  ;;  %17341 = vmatprep.subr.bf16.mxu0 %v17340_v33  ;;  %v12045_v40 = vld [vmem:[#allocation6 + $0xa80] sm:$0xff] }
 0xb80   :  { %v17360_v10 = vpack.c.bf16 %v10703_v17, %v10697_v53  ;;  %v12046_v17 = vld [vmem:[#allocation6 + $0xa88] sm:$0xff] }
 0xb81   :  { %15624 = vmatmul.mubr.msk.f32.gmra.mrb[242].mxu0 %vm954_vm0, %v11538_v61 }
 0xb82   :  { %v10707_v38 = vpop.f32.mrb[148].mxu1  ;;  %17343 = vmatpush3.bf16.msra.mxu0 %v17340_v33  ;;  %15626 = vmatprep.mubr.msk.f32.mxu0 %vm954_vm0, %v11539_v63 }
 0xb83   :  { %v10709_v0 = vpop.f32.mrb[149].mxu1  ;;  %17345 = vmatprep.subr.bf16.mxu0 %v17344_v31 }
 0xb85   :  { %15627 = vmatmul.mubr.msk.f32.gmra.mrb[244].mxu0 %vm954_vm0, %v11540_v41 }
 0xb86   :  { %v10713_v14 = vpop.f32.mrb[150].mxu1  ;;  %17347 = vmatpush3.bf16.msra.mxu0 %v17344_v31  ;;  %15629 = vmatprep.mubr.msk.f32.mxu0 %vm954_vm0, %v11541_v42 }
 0xb87   :  { %v17348_v51 = vpack.c.bf16 %v10713_v14, %v10707_v38  ;;  %v10715_v30 = vpop.f32.mrb[151].mxu1  ;;  %v12049_v14 = vld [vmem:[#allocation6 + $0xaa0] sm:$0xff] }
 0xb88   :  { %v17364_v15 = vpack.c.bf16 %v10715_v30, %v10709_v0  ;;  %v12048_v0 = vld [vmem:[#allocation6 + $0xa98] sm:$0xff]  ;;  %v12050_v30 = vld [vmem:[#allocation6 + $0xaa8] sm:$0xff] }
 0xb89   :  { %15630 = vmatmul.mubr.msk.f32.gmra.mrb[246].mxu0 %vm954_vm0, %v11542_v37  ;;  %17349 = vmatprep.subr.bf16.mxu0 %v17348_v51 }
 0xb8a   :  { %v10784_v60 = vpop.f32.mrb[152].mxu1  ;;  %17351 = vmatpush3.bf16.msra.mxu0 %v17348_v51  ;;  %15648 = vmatprep.mubr.msk.f32.mxu0 %vm954_vm0, %v11705_v47 }
 0xb8b   :  { %v10786_v29 = vpop.f32.mrb[153].mxu1  ;;  %17353 = vmatprep.subr.bf16.mxu0 %v19275_v7 }
 0xb8d   :  { %15649 = vmatmul.mubr.msk.f32.vlgmr.msra.gmra.mrb[240].mxu0 %vm954_vm0, %v11706_v43 }
 0xb8e   :  { %v10790_v58 = vpop.f32.mrb[154].mxu1  ;;  %17355 = vmatpush3.bf16.msra.mxu0 %v19275_v7  ;;  %15651 = vmatprep.mubr.msk.f32.mxu0 %vm954_vm0, %v11707_v48  ;;  %v11877_v7 = vld [vmem:[#allocation6 + $0xa50] sm:$0xff] }
 0xb8f   :  { %v17368_v32 = vpack.c.bf16 %v10790_v58, %v10784_v60  ;;  %v10792_v57 = vpop.f32.mrb[155].mxu1  ;;  %17357 = vmatprep.subr.bf16.mxu0 %v17356_v19  ;;  %v12215_v58 = vld [vmem:[#allocation6 + $0xac0] sm:$0xff] }
 0xb90   :  { %v19296_v5 = vpack.c.bf16 %v10792_v57, %v10786_v29  ;;  %v12052_v29 = vld [vmem:[#allocation6 + $0xab8] sm:$0xff]  ;;  %v12217_v57 = vld [vmem:[#allocation6 + $0xad0] sm:$0xff] }
 0xb91   :  { %15652 = vmatmul.mubr.msk.f32.gmra.mrb[242].mxu0 %vm954_vm0, %v11708_v21 }
 0xb92   :  { %v10796_v24 = vpop.f32.mrb[156].mxu1  ;;  %17359 = vmatpush3.bf16.msra.mxu0 %v17356_v19  ;;  %15654 = vmatprep.mubr.msk.f32.mxu0 %vm954_vm0, %v11709_v28  ;;  %v11881_v19 = vld [vmem:[#allocation6 + $0xa70] sm:$0xff]  ;;  %v12218_v28 = vld [vmem:[#allocation6 + $0xad8] sm:$0xff] }
 0xb93   :  { %v10798_v27 = vpop.f32.mrb[157].mxu1  ;;  %17361 = vmatprep.subr.bf16.mxu0 %v17360_v10 }
 0xb95   :  { %15655 = vmatmul.mubr.msk.f32.gmra.mrb[244].mxu0 %vm954_vm0, %v11710_v45  ;;  %v12221_v45 = vld [vmem:[#allocation6 + $0xaf0] sm:$0xff] }
 0xb96   :  { %v10802_v11 = vpop.f32.mrb[158].mxu1  ;;  %17363 = vmatpush3.bf16.msra.mxu0 %v17360_v10  ;;  %15657 = vmatprep.mubr.msk.f32.mxu0 %vm954_vm0, %v11711_v49  ;;  %v12047_v10 = vld [vmem:[#allocation6 + $0xa90] sm:$0xff]  ;;  %v12385_v49 = vld [vmem:[#allocation6 + $0xb00] sm:$0xff] }
 0xb97   :  { %v17372_v35 = vpack.c.bf16 %v10802_v11, %v10796_v24  ;;  %v10804_v18 = vpop.f32.mrb[159].mxu1  ;;  %17365 = vmatprep.subr.bf16.mxu0 %v17364_v15  ;;  %v12220_v24 = vld [vmem:[#allocation6 + $0xae8] sm:$0xff] }
 0xb98   :  { %v17388_v20 = vpack.c.bf16 %v10804_v18, %v10798_v27  ;;  %v12222_v27 = vld [vmem:[#allocation6 + $0xaf8] sm:$0xff]  ;;  %v12386_v11 = vld [vmem:[#allocation6 + $0xb08] sm:$0xff]  ;;  %v12389_v18 = vld [vmem:[#allocation6 + $0xb20] sm:$0xff] }
 0xb99   :  { %15658 = vmatmul.mubr.msk.f32.gmra.mrb[246].mxu0 %vm954_vm0, %v11712_v46  ;;  %v12387_v46 = vld [vmem:[#allocation6 + $0xb10] sm:$0xff] }
 0xb9a   :  { %v10808_v44 = vpop.f32.mrb[160].mxu1  ;;  %17367 = vmatpush3.bf16.msra.mxu0 %v17364_v15  ;;  %15676 = vmatprep.mubr.msk.f32.mxu0 %vm954_vm0, %v11875_v52  ;;  %v12051_v15 = vld [vmem:[#allocation6 + $0xab0] sm:$0xff]  ;;  %v12390_v52 = vld [vmem:[#allocation6 + $0xb28] sm:$0xff] }
 0xb9b   :  { %v10810_v4 = vpop.f32.mrb[161].mxu1  ;;  %17369 = vmatprep.subr.bf16.mxu0 %v17368_v32 }
 0xb9d   :  { %15677 = vmatmul.mubr.msk.f32.vlgmr.msra.gmra.mrb[240].mxu0 %vm954_vm0, %v11876_v9  ;;  %v12652_v9 = vld [vmem:[#allocation11 + $0x140] sm:$0xff] }
 0xb9e   :  { %v10814_v8 = vpop.f32.mrb[162].mxu1  ;;  %17371 = vmatpush3.bf16.msra.mxu0 %v17368_v32  ;;  %15679 = vmatprep.mubr.msk.f32.mxu0 %vm954_vm0, %v11877_v7  ;;  %v12216_v32 = vld [vmem:[#allocation6 + $0xac8] sm:$0xff] }
 0xb9f   :  { %v17376_v34 = vpack.c.bf16 %v10814_v8, %v10808_v44  ;;  %v10816_v59 = vpop.f32.mrb[163].mxu1  ;;  %17373 = vmatprep.subr.bf16.mxu0 %v17372_v35  ;;  %v12392_v44 = vld [vmem:[#allocation6 + $0xb38] sm:$0xff]  ;;  %v12654_v8 = vld [vmem:[#allocation11 + $0x150] sm:$0xff] }
 0xba0   :  { %v17392_v55 = vpack.c.bf16 %v10816_v59, %v10810_v4  ;;  %v12653_v4 = vld [vmem:[#allocation11 + $0x148] sm:$0xff]  ;;  %v12656_v59 = vld [vmem:[#allocation11 + $0x160] sm:$0xff] }
 0xba1   :  { %15680 = vmatmul.mubr.msk.f32.gmra.mrb[242].mxu0 %vm954_vm0, %v11878_v6  ;;  %v17432_v7 = vpack.c.bf16 %v12653_v4, %v12652_v9  ;;  %v12655_v6 = vld [vmem:[#allocation11 + $0x158] sm:$0xff] }
 0xba2   :  { %v10820_v33 = vpop.f32.mrb[164].mxu1  ;;  %17375 = vmatpush3.bf16.msra.mxu0 %v17372_v35  ;;  %15682 = vmatprep.mubr.msk.f32.mxu0 %vm954_vm0, %v11879_v26  ;;  %v12388_v35 = vld [vmem:[#allocation6 + $0xb18] sm:$0xff]  ;;  %v12657_v26 = vld [vmem:[#allocation11 + $0x168] sm:$0xff] }
 0xba3   :  { %v10822_v62 = vpop.f32.mrb[165].mxu1  ;;  %17377 = vmatprep.subr.bf16.mxu0 %v17376_v34  ;;  %17433 = vmatprep.subr.bf16.mxu1 %v17432_v7 }
 0xba4   :  { %17435 = vmatpush3.bf16.msra.mxu1 %v17432_v7 }
 0xba5   :  { %15683 = vmatmul.mubr.msk.f32.gmra.mrb[244].mxu0 %vm954_vm0, %v11880_v3  ;;  %v12659_v3 = vld [vmem:[#allocation11 + $0x178] sm:$0xff] }
 0xba6   :  { %v10826_v36 = vpop.f32.mrb[166].mxu1  ;;  %17379 = vmatpush3.bf16.msra.mxu0 %v17376_v34  ;;  %15685 = vmatprep.mubr.msk.f32.mxu0 %vm954_vm0, %v11881_v19  ;;  %v17436_v34 = vpack.c.bf16 %v12655_v6, %v12654_v8  ;;  %v17789_v19 = vld [vmem:[%s19389_s1] sm:$0xff]  ;;  %v12573_v6 = vld [vmem:[#allocation9 + $0x130] sm:$0xff] }
 0xba7   :  { %v17380_v53 = vpack.c.bf16 %v10826_v36, %v10820_v33  ;;  %v10828_v25 = vpop.f32.mrb[167].mxu1  ;;  %v12658_v33 = vld [vmem:[#allocation11 + $0x170] sm:$0xff]  ;;  %v12557_v36 = vrot.slane %v17789_v19, %v10224_v54 }
 0xba8   :  { %v17396_v61 = vpack.c.bf16 %v10828_v25, %v10822_v62  ;;  %17437 = vmatprep.subr.bf16.mxu1 %v17436_v34  ;;  %v17444_v62 = vpack.c.bf16 %v12659_v3, %v12658_v33 }
 0xba9   :  { %15686 = vmatmul.mubr.msk.f32.gmra.mrb[246].mxu0 %vm954_vm0, %v11882_v23  ;;  %17381 = vmatprep.subr.bf16.mxu0 %v17380_v53 }
 0xbaa   :  { %v15510_v31 = vpop.f32.mrb[168].mxu1  ;;  %17383 = vmatpush3.bf16.msra.mxu0 %v17380_v53  ;;  %15704 = vmatprep.mubr.msk.f32.mxu0 %vm954_vm0, %v12045_v40  ;;  %v12568_v53 = vld [vmem:[#allocation9 + $0x108] sm:$0xff] }
 0xbab   :  { %v10897_v63 = vpop.f32.mrb[169].mxu1  ;;  %17385 = vmatprep.subr.bf16.mxu0 %v19296_v5  ;;  %17439 = vmatpush3.bf16.msra.mxu1 %v17436_v34 }
 0xbac   :  { %v17400_v38 = vpack.c.bf16 %v15510_v31, %v10897_v63  ;;  %v12633_v63 = vsub.s32 7, %v18125_v39 }
 0xbad   :  { %15705 = vmatmul.mubr.msk.f32.vlgmr.msra.gmra.mrb[240].mxu0 %vm954_vm0, %v12046_v17 }
 0xbae   :  { %v15513_v41 = vpop.f32.mrb[170].mxu1  ;;  %17387 = vmatpush3.bf16.msra.mxu0 %v19296_v5  ;;  %15707 = vmatprep.mubr.msk.f32.mxu0 %vm954_vm0, %v12047_v10  ;;  %v12219_v5 = vld [vmem:[#allocation6 + $0xae0] sm:$0xff] }
 0xbaf   :  { %v10907_v42 = vpop.f32.mrb[171].mxu1  ;;  %17389 = vmatprep.subr.bf16.mxu0 %v17388_v20 }
 0xbb0   :  { %v17404_v37 = vpack.c.bf16 %v15513_v41, %v10907_v42  ;;  %v12570_v41 = vld [vmem:[#allocation9 + $0x118] sm:$0xff] }
 0xbb1   :  { %15708 = vmatmul.mubr.msk.f32.gmra.mrb[242].mxu0 %vm954_vm0, %v12048_v0 }
 0xbb2   :  { %v15516_v51 = vpop.f32.mrb[172].mxu1  ;;  %17391 = vmatpush3.bf16.msra.mxu0 %v17388_v20  ;;  %15710 = vmatprep.mubr.msk.f32.mxu0 %vm954_vm0, %v12049_v14  ;;  %v12391_v20 = vld [vmem:[#allocation6 + $0xb30] sm:$0xff] }
 0xbb3   :  { %v10917_v47 = vpop.f32.mrb[173].mxu1  ;;  %17393 = vmatprep.subr.bf16.mxu0 %v17392_v55 }
 0xbb4   :  { %v17408_v60 = vpack.c.bf16 %v15516_v51, %v10917_v47 }
 0xbb5   :  { %15711 = vmatmul.mubr.msk.f32.gmra.mrb[244].mxu0 %vm954_vm0, %v12050_v30 }
 0xbb6   :  { %v15519_v43 = vpop.f32.mrb[174].mxu1  ;;  %17395 = vmatpush3.bf16.msra.mxu0 %v17392_v55  ;;  %15713 = vmatprep.mubr.msk.f32.mxu0 %vm954_vm0, %v12051_v15  ;;  %v17440_v55 = vpack.c.bf16 %v12657_v26, %v12656_v59 }
 0xbb7   :  { %v10927_v48 = vpop.f32.mrb[175].mxu1  ;;  %17397 = vmatprep.subr.bf16.mxu0 %v17396_v61 }
 0xbb8   :  { %v17412_v21 = vpack.c.bf16 %v15519_v43, %v10927_v48  ;;  %17441 = vmatprep.subr.bf16.mxu1 %v17440_v55  ;;  %v12572_v48 = vld [vmem:[#allocation9 + $0x128] sm:$0xff] }
 0xbb9   :  { %15714 = vmatmul.mubr.msk.f32.gmra.mrb[246].mxu0 %vm954_vm0, %v12052_v29  ;;  %17443 = vmatpush3.bf16.msra.mxu1 %v17440_v55 }
 0xbba   :  { %17399 = vmatpush3.bf16.msra.mxu0 %v17396_v61  ;;  %15732 = vmatprep.mubr.msk.f32.mxu0 %vm954_vm0, %v12215_v58  ;;  %v12567_v61 = vld [vmem:[#allocation9 + $0x100] sm:$0xff] }
 0xbbb   :  { %17401 = vmatprep.subr.bf16.mxu0 %v17400_v38  ;;  %17445 = vmatprep.subr.bf16.mxu1 %v17444_v62  ;;  %v12571_v58 = vld [vmem:[#allocation9 + $0x120] sm:$0xff] }
 0xbbd   :  { %15733 = vmatmul.mubr.msk.f32.vlgmr.msra.gmra.mrb[240].mxu0 %vm954_vm0, %v12216_v32  ;;  %17447 = vmatpush3.bf16.msra.mxu1 %v17444_v62 }
 0xbbe   :  { %17403 = vmatpush3.bf16.msra.mxu0 %v17400_v38  ;;  %15735 = vmatprep.mubr.msk.f32.mxu0 %vm954_vm0, %v12217_v57 }
 0xbbf   :  { %17405 = vmatprep.subr.bf16.mxu0 %v17404_v37 }
 0xbc1   :  { %15736 = vmatmul.mubr.msk.f32.gmra.mrb[242].mxu0 %vm954_vm0, %v12218_v28 }
 0xbc2   :  { %17407 = vmatpush3.bf16.msra.mxu0 %v17404_v37  ;;  %15738 = vmatprep.mubr.msk.f32.mxu0 %vm954_vm0, %v12219_v5  ;;  %v12569_v37 = vld [vmem:[#allocation9 + $0x110] sm:$0xff] }
 0xbc3   :  { %17409 = vmatprep.subr.bf16.mxu0 %v17408_v60 }
 0xbc5   :  { %15739 = vmatmul.mubr.msk.f32.gmra.mrb[244].mxu0 %vm954_vm0, %v12220_v24 }
 0xbc6   :  { %17411 = vmatpush3.bf16.msra.mxu0 %v17408_v60  ;;  %15741 = vmatprep.mubr.msk.f32.mxu0 %vm954_vm0, %v12221_v45  ;;  %v17790_v60 = vld [vmem:[%s19388_s0] sm:$0xff] }
 0xbc7   :  { %17413 = vmatprep.subr.bf16.mxu0 %v17412_v21  ;;  %v19346_v43 = vrot.slane %v17790_v60, %v12633_v63 }
 0xbc9   :  { %15742 = vmatmul.mubr.msk.f32.gmra.mrb[246].mxu0 %vm954_vm0, %v12222_v27 }
 0xbca   :  { %17415 = vmatpush3.bf16.msra.mxu0 %v17412_v21  ;;  %15760 = vmatprep.mubr.msk.f32.mxu0 %vm954_vm0, %v12385_v49 }
 0xbcd   :  { %15761 = vmatmul.mubr.msk.f32.vlgmr.msra.gmra.mrb[240].mxu0 %vm954_vm0, %v12386_v11 }
 0xbce   :  { %15763 = vmatprep.mubr.msk.f32.mxu0 %vm954_vm0, %v12387_v46 }
 0xbd1   :  { %15764 = vmatmul.mubr.msk.f32.gmra.mrb[242].mxu0 %vm954_vm0, %v12388_v35 }
 0xbd2   :  { %15766 = vmatprep.mubr.msk.f32.mxu0 %vm954_vm0, %v12389_v18 }
 0xbd5   :  { %15767 = vmatmul.mubr.msk.f32.gmra.mrb[244].mxu0 %vm954_vm0, %v12390_v52 }
 0xbd6   :  { %15769 = vmatprep.mubr.msk.f32.mxu0 %vm954_vm0, %v12391_v20  ;;  %v12574_v20 = vld [vmem:[#allocation9 + $0x138] sm:$0xff] }
 0xbd9   :  { %15770 = vmatmul.mubr.msk.f32.gmra.mrb[246].mxu0 %vm954_vm0, %v12392_v44 }
 0xca0   :  { %v15762_v23 = vpop.f32.mrb[240].mxu0 }
 0xca1   :  { %v12559_v25 = vmul.f32 %v15762_v23, %v12557_v36  ;;  %v12491_v40 = vpop.f32.mrb[241].mxu0 }
 0xca2   :  { %v12558_v31 = vmul.f32 %v12557_v36, %v12491_v40 }
 0xca3   :  { %v12576_v17 = vadd.f32 %v12568_v53, %v12559_v25 }
 0xca4   :  { %v12575_v10 = vadd.f32 %v12567_v61, %v12558_v31  ;;  %v15765_v38 = vpop.f32.mrb[242].mxu0 }
 0xca5   :  { %vm12584_vm0 = vcmp.ge.f32.partialorder %v12576_v17, 0.0  ;;  %v12592_v0 = vmul.f32 0.2, %v12576_v17  ;;  %v12561_v42 = vmul.f32 %v15765_v38, %v12557_v36  ;;  %v12501_v14 = vpop.f32.mrb[243].mxu0 }
 0xca6   :  { %vm12583_vm3 = vcmp.ge.f32.partialorder %v12575_v10, 0.0  ;;  %v12591_v51 = vmul.f32 0.2, %v12575_v10  ;;  %v12560_v54 = vmul.f32 %v12557_v36, %v12501_v14 }
 0xca7   :  { %v12600_v30 = vsel %vm12584_vm0, %v12576_v17, %v12592_v0  ;;  %v12578_v47 = vadd.f32 %v12570_v41, %v12561_v42 }
 0xca8   :  { %v12608_v15 = vmul.f32 1.4142135, %v12600_v30  ;;  %v12577_v39 = vadd.f32 %v12569_v37, %v12560_v54  ;;  %v15768_v29 = vpop.f32.mrb[244].mxu0  ;;  %v12599_v21 = vsel %vm12583_vm3, %v12575_v10, %v12591_v51 }
 0xca9   :  { %vm12586_vm4 = vcmp.ge.f32.partialorder %v12578_v47, 0.0  ;;  %v12594_v32 = vmul.f32 0.2, %v12578_v47  ;;  %v12563_v57 = vmul.f32 %v15768_v29, %v12557_v36  ;;  %v12511_v28 = vpop.f32.mrb[245].mxu0  ;;  %v12607_v5 = vmul.f32 1.4142135, %v12599_v21 }
 0xcaa   :  { %v13232_v24 = vclamps-f32 %v12608_v15, 256.0  ;;  %vm12585_vm5 = vcmp.ge.f32.partialorder %v12577_v39, 0.0  ;;  %v12593_v45 = vmul.f32 0.2, %v12577_v39  ;;  %v12562_v27 = vmul.f32 %v12557_v36, %v12511_v28  ;;  %v13239_v15 = vld [vmem:[#allocation12 + $0x2] ss:$0 sm:$0xff] }
 0xcab   :  { %v12580_v49 = vadd.f32 %v12572_v48, %v12563_v57  ;;  %v13231_v11 = vclamps-f32 %v12607_v5, 256.0  ;;  %v12602_v46 = vsel %vm12586_vm4, %v12578_v47, %v12594_v32 }
 0xcac   :  { %v12636_v35 = vmul.f32 %v13232_v24, %v19346_v43  ;;  %v12579_v18 = vadd.f32 %v12571_v58, %v12562_v27  ;;  %v15771_v52 = vpop.f32.mrb[246].mxu0  ;;  %v12601_v44 = vsel %vm12585_vm5, %v12577_v39, %v12593_v45  ;;  %v12610_v9 = vmul.f32 1.4142135, %v12602_v46 }
 0xcad   :  { %vm12588_vm6 = vcmp.ge.f32.partialorder %v12580_v49, 0.0  ;;  %v12596_v4 = vmul.f32 0.2, %v12580_v49  ;;  %v12565_v7 = vmul.f32 %v15771_v52, %v12557_v36  ;;  %v12521_v8 = vpop.f32.mrb[247].mxu0  ;;  %v12635_v34 = vmul.f32 %v13231_v11, %v19346_v43 }
 0xcae   :  { %vm12587_vm7 = vcmp.ge.f32.partialorder %v12579_v18, 0.0  ;;  %v12595_v59 = vmul.f32 0.2, %v12579_v18  ;;  %v12564_v26 = vmul.f32 %v12557_v36, %v12521_v8  ;;  %v12609_v55 = vmul.f32 1.4142135, %v12601_v44 }
 0xcaf   :  { %v12582_v33 = vadd.f32 %v12574_v20, %v12565_v7  ;;  %15804 = vmatprep.mubr.f32.mxu1 %v12635_v34  ;;  %v13234_v3 = vclamps-f32 %v12610_v9, 256.0  ;;  %v12604_v62 = vsel %vm12588_vm6, %v12580_v49, %v12596_v4 }
 0xcb0   :  { %v12581_v19 = vadd.f32 %v12573_v6, %v12564_v26  ;;  %15805 = vmatmul.mubr.f32.vlgmr.msra.gmra.mrb[176].mxu1 %v12636_v35  ;;  %v13233_v23 = vclamps-f32 %v12609_v55, 256.0  ;;  %v12603_v53 = vsel %vm12587_vm7, %v12579_v18, %v12595_v59  ;;  %v12612_v25 = vmul.f32 1.4142135, %v12604_v62 }
 0xcb1   :  { %vm12590_vm8 = vcmp.ge.f32.partialorder %v12582_v33, 0.0  ;;  %v12598_v40 = vmul.f32 0.2, %v12582_v33  ;;  %v12611_v61 = vmul.f32 1.4142135, %v12603_v53  ;;  %v12638_v63 = vmul.f32 %v13234_v3, %v19346_v43 }
 0xcb2   :  { %vm12589_vm9 = vcmp.ge.f32.partialorder %v12581_v19, 0.0  ;;  %v12597_v31 = vmul.f32 0.2, %v12581_v19  ;;  %v12637_v17 = vmul.f32 %v13233_v23, %v19346_v43  ;;  %v13236_v10 = vclamps-f32 %v12612_v25, 256.0 }
 0xcb3   :  { %v13235_v36 = vclamps-f32 %v12611_v61, 256.0  ;;  %v12606_v38 = vsel %vm12590_vm8, %v12582_v33, %v12598_v40 }
 0xcb4   :  { %15807 = vmatprep.mubr.f32.mxu1 %v12637_v17  ;;  %v12605_v41 = vsel %vm12589_vm9, %v12581_v19, %v12597_v31  ;;  %v12614_v0 = vmul.f32 1.4142135, %v12606_v38  ;;  %v12640_v37 = vmul.f32 %v13236_v10, %v19346_v43 }
 0xcb5   :  { %15808 = vmatmul.mubr.f32.gmra.mrb[178].mxu1 %v12638_v63  ;;  %v12639_v42 = vmul.f32 %v13235_v36, %v19346_v43  ;;  %v12613_v14 = vmul.f32 1.4142135, %v12605_v41 }
 0xcb6   :  { %v13238_v54 = vclamps-f32 %v12614_v0, 256.0 }
 0xcb7   :  { %15810 = vmatprep.mubr.f32.mxu1 %v12639_v42  ;;  %v13237_v51 = vclamps-f32 %v12613_v14, 256.0 }
 0xcb8   :  { %v12642_v47 = vmul.f32 %v13238_v54, %v19346_v43 }
 0xcb9   :  { %15811 = vmatmul.mubr.f32.gmra.mrb[180].mxu1 %v12640_v37  ;;  %v12641_v30 = vmul.f32 %v13237_v51, %v19346_v43 }
 0xcbb   :  { %15813 = vmatprep.mubr.f32.mxu1 %v12641_v30 }
 0xcbd   :  { %15814 = vmatmul.mubr.f32.gmra.mrb[182].mxu1 %v12642_v47 }
 0xd83   :  { %v15806_v60 = vpop.f32.mrb[176].mxu1 }
 0xd84   :  { %v12740_v39 = vadd.f32 %v15806_v60, %v13239_v15  ;;  %v12734_v29 = vpop.f32.mrb[177].mxu1 }
 0xd85   :  { %v12735_v48 = vadd.f32 %v13239_v15, %v12734_v29 }
 0xd86   :  { %v13241_v58 = vclamps-f32 %v12740_v39, 256.0 }
 0xd87   :  { %v13240_v21 = vclamps-f32 %v12735_v48, 256.0 }
 0xd88   :  { %v12790_v32 = vadd.f32 %v13241_v58, %v18992_v50  ;;  %v15809_v57 = vpop.f32.mrb[178].mxu1 }
 0xd89   :  { %v12789_v28 = vadd.f32 %v13240_v21, %v18994_v1  ;;  %v12750_v5 = vadd.f32 %v15809_v57, %v13239_v15  ;;  %v12744_v24 = vpop.f32.mrb[179].mxu1 }
 0xd8a   :  { %12798 = vst [vmem:[%s19397_s9 + $0x8] sm:$0xff] %v12790_v32  ;;  %v12745_v43 = vadd.f32 %v13239_v15, %v12744_v24 }
 0xd8b   :  { %12797 = vst [vmem:[%s19397_s9] sm:$0xff] %v12789_v28  ;;  %v13243_v45 = vclamps-f32 %v12750_v5, 256.0 }
 0xd8c   :  { %v13242_v27 = vclamps-f32 %v12745_v43, 256.0  ;;  %v15812_v49 = vpop.f32.mrb[180].mxu1 }
 0xd8d   :  { %v12792_v11 = vadd.f32 %v13243_v45, %v19000_v56  ;;  %v12760_v50 = vadd.f32 %v15812_v49, %v13239_v15  ;;  %v12754_v46 = vpop.f32.mrb[181].mxu1 }
 0xd8e   :  { %v12791_v1 = vadd.f32 %v13242_v27, %v19002_v13  ;;  %v12755_v35 = vadd.f32 %v13239_v15, %v12754_v46 }
 0xd8f   :  { %12800 = vst [vmem:[%s19397_s9 + $0x18] sm:$0xff] %v12792_v11  ;;  %v13245_v18 = vclamps-f32 %v12760_v50, 256.0 }
 0xd90   :  { %12799 = vst [vmem:[%s19397_s9 + $0x10] sm:$0xff] %v12791_v1  ;;  %v13244_v52 = vclamps-f32 %v12755_v35, 256.0  ;;  %v15815_v20 = vpop.f32.mrb[182].mxu1 }
 0xd91   :  { %v12794_v44 = vadd.f32 %v13245_v18, %v19004_v22  ;;  %v12770_v9 = vadd.f32 %v15815_v20, %v13239_v15  ;;  %v12764_v56 = vpop.f32.mrb[183].mxu1 }
 0xd92   :  { %v12793_v4 = vadd.f32 %v13244_v52, %v19006_v2  ;;  %v12765_v7 = vadd.f32 %v13239_v15, %v12764_v56 }
 0xd93   :  { %12802 = vst [vmem:[%s19397_s9 + $0x28] sm:$0xff] %v12794_v44  ;;  %v13247_v13 = vclamps-f32 %v12770_v9, 256.0 }
 0xd94   :  { %12801 = vst [vmem:[%s19397_s9 + $0x20] sm:$0xff] %v12793_v4  ;;  %v13246_v8 = vclamps-f32 %v12765_v7, 256.0 }
 0xd95   :  { %v12796_v6 = vadd.f32 %v13247_v13, %v19012_v12 }
 0xd96   :  { %v12795_v34 = vadd.f32 %v13246_v8, %v19014_v16 }
 0xd97   :  { %12804 = vst [vmem:[%s19397_s9 + $0x38] sm:$0xff] %v12796_v6 }
 0xd98   :  { %12803 = vst [vmem:[%s19397_s9 + $0x30] sm:$0xff] %v12795_v34 }
 0xd99   :  { %12809 = vsyncpa [#allocation5], 1 }
 0xd9a   :  { %12810 = vsyncpa [#allocation7], 1 }
 0xd9b   :  { %12811 = vsyncpa [#allocation10], 1 }
 0xd9c   :  { %12812 = vsyncpa [#allocation13], 1 }

</bundles_post_ra>
